<compile_context>
chip_gen: v5e
topology: v5e:2x2
jax: 0.10.0
libtpu: 0.0.40
codegen_flags: <defaults>
</compile_context>

<pallas_src>
import functools
import math

import jax
import jax.numpy as jnp
import numpy as np
from jax import lax
from jax.experimental import pallas as pl
from jax.experimental.pallas import tpu as pltpu

ENC_HEADS = 4     # relTransformerEncoderLayer(nheads=4)
ENC_LAYERS = 2    # relTransformerEncoder(num_layers=2)
LN_EPS = 1e-5
NEG_INF = -1e9    # additive stand-in for masked_fill(-inf); token 0 never padded


# ----------------------------------------------------------------------------
# Fused per-branch kernel: embedding-MLP chain + 2 encoder layers + pooling.
# grid = (branch, batch_tile); all weights VMEM-resident per branch.
# ----------------------------------------------------------------------------
def _branch_kernel(*refs, n_heads, n_layers, has_mask):
    idx = 0
    x_ref = refs[idx]; idx += 1
    mask_ref = None
    if has_mask:
        mask_ref = refs[idx]; idx += 1
    (mw1, mb1, mw2, mb2, mw3, mb3, mw4, mb4, mw5, mb5,
     wqkv, bqkv, wo, bo, w1, b1, w2, b2,
     g1, be1, g2, be2) = refs[idx:idx + 22]
    out_ref = refs[idx + 22]
    attn_sc = refs[idx + 23]                         # (M, E) bf16 VMEM scratch

    _, TB, S, Din = x_ref.shape
    E = out_ref.shape[-1]
    Dh = E // n_heads
    M = TB * S

    def mm(a, w):  # bf16 MXU matmul with f32 accumulation
        return jnp.dot(a.astype(jnp.bfloat16), w,
                       preferred_element_type=jnp.float32)

    # ---- fused per-peak embedding MLP (nom1 -> nom2 -> peak_emb) ----
    # Per-group shared Linear == block-diagonal dense matmul (exact: zero blocks
    # contribute exact f32 zeros), so the whole chain is 5 row matmuls.
    h = x_ref[0].reshape(M, Din)
    h = jnp.maximum(mm(h, mw1[0]) + mb1[0], 0.0)
    h = mm(h, mw2[0]) + mb2[0]
    h = jnp.maximum(mm(h, mw3[0]) + mb3[0], 0.0)
    h = mm(h, mw4[0]) + mb4[0]
    h = mm(h, mw5[0]) + mb5[0]                       # (M, E) peak embeddings

    if has_mask:
        add_mask = mask_ref[0][:, None, :]           # (TB, 1, S) additive key mask

    # ---- transformer encoder, layers statically unrolled ----
    x = h                                            # (M, E) f32
    for layer in range(n_layers):
        # fused QKV projection (scale already folded into Wq / bq)
        qkv = mm(x, wqkv[0, layer]) + bqkv[0, layer]     # (M, 3E)
        q = qkv[:, :E].reshape(TB, S, E)
        k = qkv[:, E:2 * E].reshape(TB, S, E)
        v = qkv[:, 2 * E:].reshape(TB, S, E)

        # per-head attention, batched over the TB batch elements of this tile
        for hd in range(n_heads):
            lo = hd * Dh
            qh = q[:, :, lo:lo + Dh].astype(jnp.bfloat16)
            kh = k[:, :, lo:lo + Dh].astype(jnp.bfloat16)
            vh = v[:, :, lo:lo + Dh].astype(jnp.bfloat16)
            s = jnp.einsum("bqd,bkd->bqk", qh, kh,
                           preferred_element_type=jnp.float32)   # (TB, S, S)
            if has_mask:
                s = s + add_mask
            s = s - jnp.max(s, axis=-1, keepdims=True)
            p = jnp.exp(s)
            p = p * pl.reciprocal(jnp.sum(p, axis=-1, keepdims=True), approx=True)
            oh = jnp.einsum("bqk,bkd->bqd", p.astype(jnp.bfloat16), vh,
                            preferred_element_type=jnp.float32)  # (TB, S, Dh)
            # stash head output at its static column offset (heads concatenated)
            attn_sc[:, lo:lo + Dh] = oh.reshape(M, Dh).astype(jnp.bfloat16)

        # single full-K out-projection over the concatenated heads
        attn = jnp.dot(attn_sc[...], wo[0, layer],
                       preferred_element_type=jnp.float32) + bo[0, layer]

        # residual + LayerNorm 1 (f32)
        y = x + attn
        mu = jnp.mean(y, axis=-1, keepdims=True)
        var = jnp.mean(jnp.square(y - mu), axis=-1, keepdims=True)
        y = (y - mu) * lax.rsqrt(var + LN_EPS) * g1[0, layer] + be1[0, layer]

        # feed-forward (Linear -> ReLU -> Linear)
        f = jnp.maximum(mm(y, w1[0, layer]) + b1[0, layer], 0.0)
        f = mm(f, w2[0, layer]) + b2[0, layer]

        # residual + LayerNorm 2 (f32)
        z = y + f
        mu2 = jnp.mean(z, axis=-1, keepdims=True)
        var2 = jnp.mean(jnp.square(z - mu2), axis=-1, keepdims=True)
        x = (z - mu2) * lax.rsqrt(var2 + LN_EPS) * g2[0, layer] + be2[0, layer]

    # pooling = first token only (downstream uses h[:, 0, :] exclusively)
    out_ref[0] = x.reshape(TB, S, E)[:, 0, :].astype(out_ref.dtype)


def _pick_tb(B, S, target_rows):
    """Batch-tile size: TB*S ~ target_rows, TB multiple of 8 or == B, divides B."""
    tb = max(1, target_rows // max(S, 1))
    if tb >= B:
        return B
    tb = max(8, (tb // 8) * 8)
    if tb >= B:
        return B
    while B % tb != 0 and tb > 8:
        tb -= 8
    return tb


_BRANCH_WEIGHT_NAMES = (
    "mw1", "mb1", "mw2", "mb2", "mw3", "mb3", "mw4", "mb4", "mw5", "mb5",
    "wqkv", "bqkv", "wo", "bo", "w1", "b1", "w2", "b2",
    "ln1_g", "ln1_b", "ln2_g", "ln2_b",
)


def branch_forward_pallas(x_emb, add_mask, bp, *, n_heads=ENC_HEADS, tile_rows=256):
    """x_emb: (2, B, S, Din) f32 flattened defect embeddings of both branches.
       add_mask: (2, B, S) f32 additive key-padding mask or None.
       Returns pooled first-token activations (2, B, E) f32."""
    nbr, B, S, Din = x_emb.shape
    E = bp["mw5"].shape[-1]
    L = bp["wqkv"].shape[1]
    has_mask = add_mask is not None

    # tile_rows=256 targets v6e/v7x MXU depth; use 128 on v5e.
    TB = _pick_tb(B, S, tile_rows)
    n_tiles = pl.cdiv(B, TB)

    def branch_spec(arr):
        nd = arr.ndim
        return pl.BlockSpec((1,) + tuple(arr.shape[1:]),
                            lambda br, t, _nd=nd: (br,) + (0,) * (_nd - 1))

    w_args = [bp[n] for n in _BRANCH_WEIGHT_NAMES]

    in_specs = [pl.BlockSpec((1, TB, S, Din), lambda br, t: (br, t, 0, 0))]
    args = [x_emb]
    if has_mask:
        in_specs.append(pl.BlockSpec((1, TB, S), lambda br, t: (br, t, 0)))
        args.append(add_mask)
    in_specs += [branch_spec(a) for a in w_args]
    args += w_args

    kernel = functools.partial(_branch_kernel, n_heads=n_heads,
                               n_layers=L, has_mask=has_mask)

    return pl.pallas_call(
        kernel,
        out_shape=jax.ShapeDtypeStruct((nbr, B, E), jnp.float32),
        grid=(nbr, n_tiles),
        in_specs=in_specs,
        out_specs=pl.BlockSpec((1, TB, E), lambda br, t: (br, t, 0)),
        scratch_shapes=[pltpu.VMEM((TB * S, E), jnp.bfloat16)],   # head concat buffer
        compiler_params=pltpu.CompilerParams(
            dimension_semantics=("parallel", "parallel"),
        ),
    )(*args)


# ----------------------------------------------------------------------------
# Small single-block Pallas MLP kernel (used only for the final fc head).
# ----------------------------------------------------------------------------
def _mlp_kernel(*refs, relu_flags):
    x_ref, out_ref = refs[0], refs[-1]
    wb = refs[1:-1]
    h = x_ref[...].astype(jnp.float32)
    for i, relu in enumerate(relu_flags):
        w = wb[2 * i][...]
        b = wb[2 * i + 1][...]
        h = jnp.dot(h.astype(w.dtype), w, preferred_element_type=jnp.float32) + b
        if relu:
            h = jnp.maximum(h, 0.0)
    out_ref[...] = h.astype(out_ref.dtype)


def _mlp_pallas(x, layers):
    """layers: list of (W (din,dout) bf16, b (1,dout) f32, relu: bool)."""
    relu_flags = tuple(bool(r) for _, _, r in layers)
    args = [x]
    for w, b, _ in layers:
        args += [w, b]
    out_dim = layers[-1][0].shape[-1]
    kernel = functools.partial(_mlp_kernel, relu_flags=relu_flags)
    return pl.pallas_call(
        kernel,
        out_shape=jax.ShapeDtypeStruct((x.shape[0], out_dim), x.dtype),
    )(*args)


# ----------------------------------------------------------------------------
# Full model forward (Pallas path).  Takes the *prepared* parameter dict.
# ----------------------------------------------------------------------------
def ms_similarity_forward(mz_ids, mz_mask, loss_ids, loss_mask, kp):
    B, S, _ = mz_ids.shape
    # TODO(synk): the Embedding gather (padding_idx / max_norm handled at init)
    # stays in plain JAX; a Pallas DMA-gather buys nothing at these sizes.
    x_mz = jnp.take(kp["emb"][0], mz_ids, axis=0).reshape(B, S, -1)
    x_loss = jnp.take(kp["emb"][1], loss_ids, axis=0).reshape(B, S, -1)
    x = jnp.stack([x_mz, x_loss], axis=0)                       # (2, B, S, Din)

    if mz_mask is None and loss_mask is None:
        add_mask = None
    else:
        zeros = jnp.zeros((B, S), jnp.bool_)
        m_mz = mz_mask if mz_mask is not None else zeros
        m_ls = loss_mask if loss_mask is not None else zeros
        add_mask = jnp.where(jnp.stack([m_mz, m_ls], axis=0),
                             NEG_INF, 0.0).astype(jnp.float32)  # (2, B, S)

    pooled = branch_forward_pallas(x, add_mask, kp["branch"])   # (2, B, E)
    h = jnp.concatenate([pooled[0], pooled[1]], axis=-1)        # relCat, dim=-1
    hd = kp["head"]
    return _mlp_pallas(h, [(hd["w1"], hd["b1"], True),
                           (hd["w2"], hd["b2"], False),
                           (hd["w3"], hd["b3"], False)])


# ----------------------------------------------------------------------------
# Deterministic "logical" parameter init (bf16 weights, f32 biases / LN params),
# mirroring the PyTorch module structure.
# ----------------------------------------------------------------------------
def _linear_init(key, fan_in, fan_out, dtype=jnp.bfloat16):
    kw, kb = jax.random.split(key)
    bound = 1.0 / math.sqrt(fan_in)
    w = jax.random.uniform(kw, (fan_in, fan_out), jnp.float32, -bound, bound).astype(dtype)
    b = jax.random.uniform(kb, (1, fan_out), jnp.float32, -bound, bound)
    return w, b


def _encoder_init(key, num_layers, d_model, ffn_dim):
    ks = jax.random.split(key, 12)
    s_e = 1.0 / math.sqrt(d_model)
    s_f = 1.0 / math.sqrt(ffn_dim)

    def w(k, shape, s):
        return jax.random.uniform(k, shape, jnp.float32, -s, s).astype(jnp.bfloat16)

    def b(k, shape, s):
        return jax.random.uniform(k, shape, jnp.float32, -s, s)

    L = num_layers
    return dict(
        wq=w(ks[0], (L, d_model, d_model), s_e), bq=b(ks[1], (L, 1, d_model), s_e),
        wk=w(ks[2], (L, d_model, d_model), s_e), bk=b(ks[3], (L, 1, d_model), s_e),
        wv=w(ks[4], (L, d_model, d_model), s_e), bv=b(ks[5], (L, 1, d_model), s_e),
        wo=w(ks[6], (L, d_model, d_model), s_e), bo=b(ks[7], (L, 1, d_model), s_e),
        w1=w(ks[8], (L, d_model, ffn_dim), s_e), b1=b(ks[9], (L, 1, ffn_dim), s_e),
        w2=w(ks[10], (L, ffn_dim, d_model), s_f), b2=b(ks[11], (L, 1, d_model), s_f),
        ln1_g=jnp.ones((L, 1, d_model), jnp.float32),
        ln1_b=jnp.zeros((L, 1, d_model), jnp.float32),
        ln2_g=jnp.ones((L, 1, d_model), jnp.float32),
        ln2_b=jnp.zeros((L, 1, d_model), jnp.float32),
    )


def _ms_diff_init(key, nnominals, ndefects, defect_dim=32, nominal_dim=64,
                  hidden_dim=128, ffn_dim=256, num_layers=ENC_LAYERS):
    ks = jax.random.split(key, 7)
    # Embedding(padding_idx=0, max_norm=1.0): renorm applied up front, padding row zeroed
    # (forward-equivalent to PyTorch's at-lookup renorm).
    emb = jax.random.normal(ks[0], (ndefects, defect_dim), jnp.float32)
    norm = jnp.linalg.norm(emb, axis=-1, keepdims=True)
    emb = emb * jnp.where(norm > 1.0, 1.0 / (norm + 1e-7), 1.0)
    emb = emb.at[0].set(0.0)

    nheads1 = nnominals // 3
    dim1 = (defect_dim * nnominals) // nheads1
    nheads2 = nheads1 // 5
    dim2 = (nominal_dim * nheads1) // nheads2

    n1w1, n1b1 = _linear_init(ks[1], dim1, 128)
    n1w2, n1b2 = _linear_init(ks[2], 128, nominal_dim)
    n2w1, n2b1 = _linear_init(ks[3], dim2, 128)
    n2w2, n2b2 = _linear_init(ks[4], 128, nominal_dim)
    pw, pb = _linear_init(ks[5], nominal_dim * nheads2, hidden_dim)
    enc = _encoder_init(ks[6], num_layers, hidden_dim, ffn_dim)
    return dict(
        emb=emb,
        nom1=dict(w1=n1w1, b1=n1b1, w2=n1w2, b2=n1b2), nom1_heads=nheads1,
        nom2=dict(w1=n2w1, b1=n2b1, w2=n2w2, b2=n2b2), nom2_heads=nheads2,
        peak_w=pw, peak_b=pb,
        enc=enc,
    )


def init_model_params(key, nnominals, ndefects, hidden_dim=128, nclasses=1):
    k_mz, k_loss, k1, k2, k3 = jax.random.split(key, 5)
    hw1, hb1 = _linear_init(k1, 2 * hidden_dim, 128)
    hw2, hb2 = _linear_init(k2, 128, 64)
    hw3, hb3 = _linear_init(k3, 64, nclasses)
    return dict(
        mz=_ms_diff_init(k_mz, nnominals, ndefects, hidden_dim=hidden_dim),
        loss=_ms_diff_init(k_loss, nnominals, ndefects, hidden_dim=hidden_dim),
        head=dict(w1=hw1, b1=hb1, w2=hw2, b2=hb2, w3=hw3, b3=hb3),
    )


# ----------------------------------------------------------------------------
# Parameter preparation: block-diagonal group weights, fused & scale-folded QKV,
# branch stacking.  Pure bit-preserving rearrangement except the scale fold.
# ----------------------------------------------------------------------------
def _block_diag(w, n):
    din, dout = w.shape
    out = jnp.zeros((n * din, n * dout), w.dtype)
    for g in range(n):
        out = out.at[g * din:(g + 1) * din, g * dout:(g + 1) * dout].set(w)
    return out


def prepare_params(params, num_heads=ENC_HEADS):
    def prep_branch(p):
        nh1, nh2 = p["nom1_heads"], p["nom2_heads"]
        out = dict(
            mw1=_block_diag(p["nom1"]["w1"], nh1), mb1=jnp.tile(p["nom1"]["b1"], (1, nh1)),
            mw2=_block_diag(p["nom1"]["w2"], nh1), mb2=jnp.tile(p["nom1"]["b2"], (1, nh1)),
            mw3=_block_diag(p["nom2"]["w1"], nh2), mb3=jnp.tile(p["nom2"]["b1"], (1, nh2)),
            mw4=_block_diag(p["nom2"]["w2"], nh2), mb4=jnp.tile(p["nom2"]["b2"], (1, nh2)),
            mw5=p["peak_w"], mb5=p["peak_b"],
        )
        enc = p["enc"]
        E = enc["wq"].shape[-1]
        scale = 1.0 / math.sqrt(E // num_heads)
        wq_s = (enc["wq"].astype(jnp.float32) * scale).astype(jnp.bfloat16)
        bq_s = enc["bq"] * scale
        out.update(
            wqkv=jnp.concatenate([wq_s, enc["wk"], enc["wv"]], axis=-1),
            bqkv=jnp.concatenate([bq_s, enc["bk"], enc["bv"]], axis=-1),
            wo=enc["wo"], bo=enc["bo"],
            w1=enc["w1"], b1=enc["b1"], w2=enc["w2"], b2=enc["b2"],
            ln1_g=enc["ln1_g"], ln1_b=enc["ln1_b"],
            ln2_g=enc["ln2_g"], ln2_b=enc["ln2_b"],
        )
        return out

    bmz = prep_branch(params["mz"])
    bls = prep_branch(params["loss"])
    branch = {k: jnp.stack([bmz[k], bls[k]], axis=0) for k in bmz}
    emb = jnp.stack([params["mz"]["emb"], params["loss"]["emb"]], axis=0)
    return dict(emb=emb, branch=branch, head=params["head"])


# ----------------------------------------------------------------------------
# Pure-JAX reference (PyTorch-structured, same bf16 matmul precision & scale fold).
# ----------------------------------------------------------------------------
def _ref_multihead_linear(x, p, nheads):
    B, L, D = x.shape
    xh = x.reshape(B, L, nheads, D // nheads)
    h = jnp.dot(xh.astype(jnp.bfloat16), p["w1"],
                preferred_element_type=jnp.float32) + p["b1"]
    h = jnp.maximum(h, 0.0)
    h = jnp.dot(h.astype(jnp.bfloat16), p["w2"],
                preferred_element_type=jnp.float32) + p["b2"]
    return h.reshape(B, L, -1)


def _ref_encoder(x, pad_mask, enc, num_heads):
    f32 = jnp.float32
    bf = lambda a: a.astype(jnp.bfloat16)
    B, S, E = x.shape
    Dh = E // num_heads
    scale = 1.0 / math.sqrt(Dh)
    L = enc["wq"].shape[0]
    add_mask = None
    if pad_mask is not None:
        add_mask = jnp.where(pad_mask, NEG_INF, 0.0).astype(f32)[:, None, :]
    out = x.astype(f32)
    for l in range(L):
        wq = (enc["wq"][l].astype(f32) * scale).astype(jnp.bfloat16)   # folded scale
        bq = enc["bq"][l] * scale
        q = jnp.einsum("bse,ef->bsf", bf(out), wq, preferred_element_type=f32) + bq
        k = jnp.einsum("bse,ef->bsf", bf(out), enc["wk"][l],
                       preferred_element_type=f32) + enc["bk"][l]
        v = jnp.einsum("bse,ef->bsf", bf(out), enc["wv"][l],
                       preferred_element_type=f32) + enc["bv"][l]

        heads = []
        for h in range(num_heads):
            lo, hi = h * Dh, (h + 1) * Dh
            s = jnp.einsum("bqd,bkd->bqk", bf(q[..., lo:hi]), bf(k[..., lo:hi]),
                           preferred_element_type=f32)
            if add_mask is not None:
                s = s + add_mask
            s = s - jnp.max(s, axis=-1, keepdims=True)
            p = jnp.exp(s)
            p = p / jnp.sum(p, axis=-1, keepdims=True)
            heads.append(jnp.einsum("bqk,bkd->bqd", bf(p), bf(v[..., lo:hi]),
                                    preferred_element_type=f32))
        attn = jnp.concatenate(heads, axis=-1)
        attn = jnp.einsum("bse,ef->bsf", bf(attn), enc["wo"][l],
                          preferred_element_type=f32) + enc["bo"][l]

        y = out + attn
        mu = jnp.mean(y, -1, keepdims=True)
        var = jnp.mean(jnp.square(y - mu), -1, keepdims=True)
        y = (y - mu) * lax.rsqrt(var + LN_EPS) * enc["ln1_g"][l] + enc["ln1_b"][l]

        h1 = jnp.maximum(jnp.einsum("bse,ef->bsf", bf(y), enc["w1"][l],
                                    preferred_element_type=f32) + enc["b1"][l], 0.0)
        h2 = jnp.einsum("bsf,fe->bse", bf(h1), enc["w2"][l],
                        preferred_element_type=f32) + enc["b2"][l]

        z = y + h2
        mu2 = jnp.mean(z, -1, keepdims=True)
        var2 = jnp.mean(jnp.square(z - mu2), -1, keepdims=True)
        out = (z - mu2) * lax.rsqrt(var2 + LN_EPS) * enc["ln2_g"][l] + enc["ln2_b"][l]
    return out


def _ref_ms_diff(ids, pad_mask, prm):
    B, L, _ = ids.shape
    e = jnp.take(prm["emb"], ids, axis=0)
    x = e.reshape(B, L, -1)
    x = _ref_multihead_linear(x, prm["nom1"], prm["nom1_heads"])
    x = _ref_multihead_linear(x, prm["nom2"], prm["nom2_heads"])
    x = jnp.dot(x.astype(jnp.bfloat16), prm["peak_w"],
                preferred_element_type=jnp.float32) + prm["peak_b"]
    h = _ref_encoder(x, pad_mask, prm["enc"], num_heads=ENC_HEADS)
    return h[:, 0, :]


def ref_forward(mz_f, mz_mask, loss_f, loss_mask, params):
    mz_x = _ref_ms_diff(mz_f, mz_mask, params["mz"])
    loss_x = _ref_ms_diff(loss_f, loss_mask, params["loss"])
    h = jnp.concatenate([mz_x, loss_x], axis=-1)
    hd = params["head"]
    h = jnp.maximum(jnp.dot(h.astype(hd["w1"].dtype), hd["w1"],
                            preferred_element_type=jnp.float32) + hd["b1"], 0.0)
    h = jnp.dot(h.astype(hd["w2"].dtype), hd["w2"],
                preferred_element_type=jnp.float32) + hd["b2"]
    return jnp.dot(h.astype(hd["w3"].dtype), hd["w3"],
                   preferred_element_type=jnp.float32) + hd["b3"]


# ----------------------------------------------------------------------------
if __name__ == "__main__":
    # hidden=128, 4 heads, ffn=256, 2 layers are fixed by the module's constructors.
    B, SEQ = 2, 8                 # batch, number of peaks (sequence length)
    NNOMINALS, NDEFECTS = 15, 11  # -> nheads_1 = 5, nheads_2 = 1
    HIDDEN, NCLASSES = 128, 1

    key = jax.random.PRNGKey(0)
    key, k_mz, k_loss = jax.random.split(key, 3)
    mz_f = jax.random.randint(k_mz, (B, SEQ, NNOMINALS), 0, NDEFECTS, dtype=jnp.int32)
    loss_f = jax.random.randint(k_loss, (B, SEQ, NNOMINALS), 0, NDEFECTS, dtype=jnp.int32)
    # key-padding masks (True = padded position); token 0 is never padded.
    pos = jnp.arange(SEQ)[None, :]
    mz_mask = pos >= jnp.array([[SEQ], [SEQ - 2]])
    loss_mask = pos >= jnp.array([[SEQ - 1], [SEQ]])

    params = init_model_params(key, NNOMINALS, NDEFECTS, hidden_dim=HIDDEN,
                               nclasses=NCLASSES)
    kparams = prepare_params(params, num_heads=ENC_HEADS)

    out = ms_similarity_forward(mz_f, mz_mask, loss_f, loss_mask, kparams)
    out = jax.block_until_ready(out)

    ref = ref_forward(mz_f, mz_mask, loss_f, loss_mask, params)
    # Tolerance covers the approximate (EUP) softmax reciprocal and accumulation
    # order; both paths use identical bf16 weights with f32 accumulation.
    np.testing.assert_allclose(np.asarray(out), np.asarray(ref),
                               rtol=5e-3, atol=5e-3)
    print("KERNEL_OK")
</pallas_src>

<mosaic_0001>
module attributes {stable_mosaic.version = 11 : i64} {
  func.func @_branch_kernel(%arg0: i32, %arg1: i32, %arg2: memref<1x2x8x480xf32, #tpu.memory_space<vmem>>, %arg3: memref<1x2x8xf32, #tpu.memory_space<vmem>>, %arg4: memref<1x480x640xbf16, #tpu.memory_space<vmem>>, %arg5: memref<1x1x640xf32, #tpu.memory_space<vmem>>, %arg6: memref<1x640x320xbf16, #tpu.memory_space<vmem>>, %arg7: memref<1x1x320xf32, #tpu.memory_space<vmem>>, %arg8: memref<1x320x128xbf16, #tpu.memory_space<vmem>>, %arg9: memref<1x1x128xf32, #tpu.memory_space<vmem>>, %arg10: memref<1x128x64xbf16, #tpu.memory_space<vmem>>, %arg11: memref<1x1x64xf32, #tpu.memory_space<vmem>>, %arg12: memref<1x64x128xbf16, #tpu.memory_space<vmem>>, %arg13: memref<1x1x128xf32, #tpu.memory_space<vmem>>, %arg14: memref<1x2x128x384xbf16, #tpu.memory_space<vmem>>, %arg15: memref<1x2x1x384xf32, #tpu.memory_space<vmem>>, %arg16: memref<1x2x128x128xbf16, #tpu.memory_space<vmem>>, %arg17: memref<1x2x1x128xf32, #tpu.memory_space<vmem>>, %arg18: memref<1x2x128x256xbf16, #tpu.memory_space<vmem>>, %arg19: memref<1x2x1x256xf32, #tpu.memory_space<vmem>>, %arg20: memref<1x2x256x128xbf16, #tpu.memory_space<vmem>>, %arg21: memref<1x2x1x128xf32, #tpu.memory_space<vmem>>, %arg22: memref<1x2x1x128xf32, #tpu.memory_space<vmem>>, %arg23: memref<1x2x1x128xf32, #tpu.memory_space<vmem>>, %arg24: memref<1x2x1x128xf32, #tpu.memory_space<vmem>>, %arg25: memref<1x2x1x128xf32, #tpu.memory_space<vmem>>, %arg26: memref<1x2x128xf32, #tpu.memory_space<vmem>>, %arg27: memref<16x128xbf16, #tpu.memory_space<vmem>>) attributes {dimension_semantics = [#tpu.dimension_semantics<parallel>, #tpu.dimension_semantics<parallel>], iteration_bounds = array<i64: 2, 1>, scalar_prefetch = 0 : i64, scratch_operands = 1 : i64, tpu.core_type = #tpu.core_type<tc>, window_params = [{transform_indices = @transform_0, window_bounds = array<i64: 1, 2, 8, 480>}, {transform_indices = @transform_1, window_bounds = array<i64: 1, 2, 8>}, {transform_indices = @transform_2, window_bounds = array<i64: 1, 480, 640>}, {transform_indices = @transform_3, window_bounds = array<i64: 1, 1, 640>}, {transform_indices = @transform_4, window_bounds = array<i64: 1, 640, 320>}, {transform_indices = @transform_5, window_bounds = array<i64: 1, 1, 320>}, {transform_indices = @transform_6, window_bounds = array<i64: 1, 320, 128>}, {transform_indices = @transform_7, window_bounds = array<i64: 1, 1, 128>}, {transform_indices = @transform_8, window_bounds = array<i64: 1, 128, 64>}, {transform_indices = @transform_9, window_bounds = array<i64: 1, 1, 64>}, {transform_indices = @transform_10, window_bounds = array<i64: 1, 64, 128>}, {transform_indices = @transform_11, window_bounds = array<i64: 1, 1, 128>}, {transform_indices = @transform_12, window_bounds = array<i64: 1, 2, 128, 384>}, {transform_indices = @transform_13, window_bounds = array<i64: 1, 2, 1, 384>}, {transform_indices = @transform_14, window_bounds = array<i64: 1, 2, 128, 128>}, {transform_indices = @transform_15, window_bounds = array<i64: 1, 2, 1, 128>}, {transform_indices = @transform_16, window_bounds = array<i64: 1, 2, 128, 256>}, {transform_indices = @transform_17, window_bounds = array<i64: 1, 2, 1, 256>}, {transform_indices = @transform_18, window_bounds = array<i64: 1, 2, 256, 128>}, {transform_indices = @transform_19, window_bounds = array<i64: 1, 2, 1, 128>}, {transform_indices = @transform_20, window_bounds = array<i64: 1, 2, 1, 128>}, {transform_indices = @transform_21, window_bounds = array<i64: 1, 2, 1, 128>}, {transform_indices = @transform_22, window_bounds = array<i64: 1, 2, 1, 128>}, {transform_indices = @transform_23, window_bounds = array<i64: 1, 2, 1, 128>}, {transform_indices = @transform_24, window_bounds = array<i64: 1, 2, 128>}]} {
    %c0 = arith.constant 0 : index
    %c0_0 = arith.constant 0 : index
    %c0_1 = arith.constant 0 : index
    %c0_2 = arith.constant 0 : index
    %0 = vector.load %arg2[%c0, %c0_0, %c0_1, %c0_2] : memref<1x2x8x480xf32, #tpu.memory_space<vmem>>, vector<1x2x8x480xf32>
    %1 = vector.shape_cast %0 : vector<1x2x8x480xf32> to vector<2x8x480xf32>
    %2 = vector.shape_cast %1 : vector<2x8x480xf32> to vector<16x480xf32>
    %c0_3 = arith.constant 0 : index
    %c0_4 = arith.constant 0 : index
    %c0_5 = arith.constant 0 : index
    %3 = vector.load %arg4[%c0_3, %c0_4, %c0_5] : memref<1x480x640xbf16, #tpu.memory_space<vmem>>, vector<1x480x640xbf16>
    %4 = vector.shape_cast %3 : vector<1x480x640xbf16> to vector<480x640xbf16>
    %5 = arith.truncf %2 : vector<16x480xf32> to vector<16x480xbf16>
    %cst = arith.constant dense<0.000000e+00> : vector<16x640xf32>
    %6 = tpu.matmul %5, %4, %cst {dimension_numbers = #tpu.dot_dimension_numbers<[1], [0], [0], [1], [0, 0, 1, 1], [], []>} : vector<16x480xbf16>, vector<480x640xbf16>, vector<16x640xf32> -> vector<16x640xf32>
    %c0_6 = arith.constant 0 : index
    %c0_7 = arith.constant 0 : index
    %c0_8 = arith.constant 0 : index
    %7 = vector.load %arg5[%c0_6, %c0_7, %c0_8] : memref<1x1x640xf32, #tpu.memory_space<vmem>>, vector<1x1x640xf32>
    %8 = vector.shape_cast %7 : vector<1x1x640xf32> to vector<1x640xf32>
    %9 = vector.broadcast %8 : vector<1x640xf32> to vector<16x640xf32>
    %10 = arith.addf %6, %9 : vector<16x640xf32>
    %cst_9 = arith.constant 0.000000e+00 : f32
    %11 = vector.broadcast %cst_9 : f32 to vector<16x640xf32>
    %12 = arith.maximumf %10, %11 : vector<16x640xf32>
    %c0_10 = arith.constant 0 : index
    %c0_11 = arith.constant 0 : index
    %c0_12 = arith.constant 0 : index
    %13 = vector.load %arg6[%c0_10, %c0_11, %c0_12] : memref<1x640x320xbf16, #tpu.memory_space<vmem>>, vector<1x640x320xbf16>
    %14 = vector.shape_cast %13 : vector<1x640x320xbf16> to vector<640x320xbf16>
    %15 = arith.truncf %12 : vector<16x640xf32> to vector<16x640xbf16>
    %cst_13 = arith.constant dense<0.000000e+00> : vector<16x320xf32>
    %16 = tpu.matmul %15, %14, %cst_13 {dimension_numbers = #tpu.dot_dimension_numbers<[1], [0], [0], [1], [0, 0, 1, 1], [], []>} : vector<16x640xbf16>, vector<640x320xbf16>, vector<16x320xf32> -> vector<16x320xf32>
    %c0_14 = arith.constant 0 : index
    %c0_15 = arith.constant 0 : index
    %c0_16 = arith.constant 0 : index
    %17 = vector.load %arg7[%c0_14, %c0_15, %c0_16] : memref<1x1x320xf32, #tpu.memory_space<vmem>>, vector<1x1x320xf32>
    %18 = vector.shape_cast %17 : vector<1x1x320xf32> to vector<1x320xf32>
    %19 = vector.broadcast %18 : vector<1x320xf32> to vector<16x320xf32>
    %20 = arith.addf %16, %19 : vector<16x320xf32>
    %c0_17 = arith.constant 0 : index
    %c0_18 = arith.constant 0 : index
    %c0_19 = arith.constant 0 : index
    %21 = vector.load %arg8[%c0_17, %c0_18, %c0_19] : memref<1x320x128xbf16, #tpu.memory_space<vmem>>, vector<1x320x128xbf16>
    %22 = vector.shape_cast %21 : vector<1x320x128xbf16> to vector<320x128xbf16>
    %23 = arith.truncf %20 : vector<16x320xf32> to vector<16x320xbf16>
    %cst_20 = arith.constant dense<0.000000e+00> : vector<16x128xf32>
    %24 = tpu.matmul %23, %22, %cst_20 {dimension_numbers = #tpu.dot_dimension_numbers<[1], [0], [0], [1], [0, 0, 1, 1], [], []>} : vector<16x320xbf16>, vector<320x128xbf16>, vector<16x128xf32> -> vector<16x128xf32>
    %c0_21 = arith.constant 0 : index
    %c0_22 = arith.constant 0 : index
    %c0_23 = arith.constant 0 : index
    %25 = vector.load %arg9[%c0_21, %c0_22, %c0_23] : memref<1x1x128xf32, #tpu.memory_space<vmem>>, vector<1x1x128xf32>
    %26 = vector.shape_cast %25 : vector<1x1x128xf32> to vector<1x128xf32>
    %27 = vector.broadcast %26 : vector<1x128xf32> to vector<16x128xf32>
    %28 = arith.addf %24, %27 : vector<16x128xf32>
    %cst_24 = arith.constant 0.000000e+00 : f32
    %29 = vector.broadcast %cst_24 : f32 to vector<16x128xf32>
    %30 = arith.maximumf %28, %29 : vector<16x128xf32>
    %c0_25 = arith.constant 0 : index
    %c0_26 = arith.constant 0 : index
    %c0_27 = arith.constant 0 : index
    %31 = vector.load %arg10[%c0_25, %c0_26, %c0_27] : memref<1x128x64xbf16, #tpu.memory_space<vmem>>, vector<1x128x64xbf16>
    %32 = vector.shape_cast %31 : vector<1x128x64xbf16> to vector<128x64xbf16>
    %33 = arith.truncf %30 : vector<16x128xf32> to vector<16x128xbf16>
    %cst_28 = arith.constant dense<0.000000e+00> : vector<16x64xf32>
    %34 = tpu.matmul %33, %32, %cst_28 {dimension_numbers = #tpu.dot_dimension_numbers<[1], [0], [0], [1], [0, 0, 1, 1], [], []>} : vector<16x128xbf16>, vector<128x64xbf16>, vector<16x64xf32> -> vector<16x64xf32>
    %c0_29 = arith.constant 0 : index
    %c0_30 = arith.constant 0 : index
    %c0_31 = arith.constant 0 : index
    %35 = vector.load %arg11[%c0_29, %c0_30, %c0_31] : memref<1x1x64xf32, #tpu.memory_space<vmem>>, vector<1x1x64xf32>
    %36 = vector.shape_cast %35 : vector<1x1x64xf32> to vector<1x64xf32>
    %37 = vector.broadcast %36 : vector<1x64xf32> to vector<16x64xf32>
    %38 = arith.addf %34, %37 : vector<16x64xf32>
    %c0_32 = arith.constant 0 : index
    %c0_33 = arith.constant 0 : index
    %c0_34 = arith.constant 0 : index
    %39 = vector.load %arg12[%c0_32, %c0_33, %c0_34] : memref<1x64x128xbf16, #tpu.memory_space<vmem>>, vector<1x64x128xbf16>
    %40 = vector.shape_cast %39 : vector<1x64x128xbf16> to vector<64x128xbf16>
    %41 = arith.truncf %38 : vector<16x64xf32> to vector<16x64xbf16>
    %cst_35 = arith.constant dense<0.000000e+00> : vector<16x128xf32>
    %42 = tpu.matmul %41, %40, %cst_35 {dimension_numbers = #tpu.dot_dimension_numbers<[1], [0], [0], [1], [0, 0, 1, 1], [], []>} : vector<16x64xbf16>, vector<64x128xbf16>, vector<16x128xf32> -> vector<16x128xf32>
    %c0_36 = arith.constant 0 : index
    %c0_37 = arith.constant 0 : index
    %c0_38 = arith.constant 0 : index
    %43 = vector.load %arg13[%c0_36, %c0_37, %c0_38] : memref<1x1x128xf32, #tpu.memory_space<vmem>>, vector<1x1x128xf32>
    %44 = vector.shape_cast %43 : vector<1x1x128xf32> to vector<1x128xf32>
    %45 = vector.broadcast %44 : vector<1x128xf32> to vector<16x128xf32>
    %46 = arith.addf %42, %45 : vector<16x128xf32>
    %c0_39 = arith.constant 0 : index
    %c0_40 = arith.constant 0 : index
    %c0_41 = arith.constant 0 : index
    %47 = vector.load %arg3[%c0_39, %c0_40, %c0_41] : memref<1x2x8xf32, #tpu.memory_space<vmem>>, vector<1x2x8xf32>
    %48 = vector.shape_cast %47 : vector<1x2x8xf32> to vector<2x8xf32>
    %49 = vector.shape_cast %48 : vector<2x8xf32> to vector<2x1x8xf32>
    %c0_42 = arith.constant 0 : index
    %c0_43 = arith.constant 0 : index
    %c0_44 = arith.constant 0 : index
    %c0_45 = arith.constant 0 : index
    %50 = vector.load %arg14[%c0_42, %c0_43, %c0_44, %c0_45] : memref<1x2x128x384xbf16, #tpu.memory_space<vmem>>, vector<1x1x128x384xbf16>
    %51 = vector.shape_cast %50 : vector<1x1x128x384xbf16> to vector<128x384xbf16>
    %52 = arith.truncf %46 : vector<16x128xf32> to vector<16x128xbf16>
    %cst_46 = arith.constant dense<0.000000e+00> : vector<16x384xf32>
    %53 = tpu.matmul %52, %51, %cst_46 {dimension_numbers = #tpu.dot_dimension_numbers<[1], [0], [0], [1], [0, 0, 1, 1], [], []>} : vector<16x128xbf16>, vector<128x384xbf16>, vector<16x384xf32> -> vector<16x384xf32>
    %c0_47 = arith.constant 0 : index
    %c0_48 = arith.constant 0 : index
    %c0_49 = arith.constant 0 : index
    %c0_50 = arith.constant 0 : index
    %54 = vector.load %arg15[%c0_47, %c0_48, %c0_49, %c0_50] : memref<1x2x1x384xf32, #tpu.memory_space<vmem>>, vector<1x1x1x384xf32>
    %55 = vector.shape_cast %54 : vector<1x1x1x384xf32> to vector<1x384xf32>
    %56 = vector.broadcast %55 : vector<1x384xf32> to vector<16x384xf32>
    %57 = arith.addf %53, %56 : vector<16x384xf32>
    %58 = vector.extract_strided_slice %57 {offsets = [0, 0], sizes = [16, 128], strides = [1, 1]} : vector<16x384xf32> to vector<16x128xf32>
    %59 = vector.shape_cast %58 : vector<16x128xf32> to vector<2x8x128xf32>
    %60 = vector.extract_strided_slice %57 {offsets = [0, 128], sizes = [16, 128], strides = [1, 1]} : vector<16x384xf32> to vector<16x128xf32>
    %61 = vector.shape_cast %60 : vector<16x128xf32> to vector<2x8x128xf32>
    %62 = vector.extract_strided_slice %57 {offsets = [0, 256], sizes = [16, 128], strides = [1, 1]} : vector<16x384xf32> to vector<16x128xf32>
    %63 = vector.shape_cast %62 : vector<16x128xf32> to vector<2x8x128xf32>
    %64 = vector.extract_strided_slice %59 {offsets = [0, 0, 0], sizes = [2, 8, 32], strides = [1, 1, 1]} : vector<2x8x128xf32> to vector<2x8x32xf32>
    %65 = arith.truncf %64 : vector<2x8x32xf32> to vector<2x8x32xbf16>
    %66 = vector.extract_strided_slice %61 {offsets = [0, 0, 0], sizes = [2, 8, 32], strides = [1, 1, 1]} : vector<2x8x128xf32> to vector<2x8x32xf32>
    %67 = arith.truncf %66 : vector<2x8x32xf32> to vector<2x8x32xbf16>
    %68 = vector.extract_strided_slice %63 {offsets = [0, 0, 0], sizes = [2, 8, 32], strides = [1, 1, 1]} : vector<2x8x128xf32> to vector<2x8x32xf32>
    %69 = arith.truncf %68 : vector<2x8x32xf32> to vector<2x8x32xbf16>
    "tpu.trace_start"() <{level = 10 : i32, message = "bqd,bkd->bqk"}> : () -> ()
    %cst_51 = arith.constant dense<0.000000e+00> : vector<2x8x8xf32>
    %70 = tpu.matmul %65, %67, %cst_51 {dimension_numbers = #tpu.dot_dimension_numbers<[2], [2], [1], [1], [0, 0, 0, 1, 1, 1], [0], [0]>} : vector<2x8x32xbf16>, vector<2x8x32xbf16>, vector<2x8x8xf32> -> vector<2x8x8xf32>
    "tpu.trace_stop"() : () -> ()
    %71 = vector.broadcast %49 : vector<2x1x8xf32> to vector<2x8x8xf32>
    %72 = arith.addf %70, %71 : vector<2x8x8xf32>
    %cst_52 = arith.constant dense<0xFF800000> : vector<2x8xf32>
    %73 = vector.multi_reduction <maximumf>, %72, %cst_52 [2] : vector<2x8x8xf32> to vector<2x8xf32>
    %74 = vector.shape_cast %73 : vector<2x8xf32> to vector<2x8x1xf32>
    %75 = vector.broadcast %74 : vector<2x8x1xf32> to vector<2x8x8xf32>
    %76 = arith.subf %72, %75 : vector<2x8x8xf32>
    %77 = math.exp %76 : vector<2x8x8xf32>
    %cst_53 = arith.constant dense<0.000000e+00> : vector<2x8xf32>
    %78 = vector.multi_reduction <add>, %77, %cst_53 [2] : vector<2x8x8xf32> to vector<2x8xf32>
    %79 = vector.shape_cast %78 : vector<2x8xf32> to vector<2x8x1xf32>
    %80 = tpu.reciprocal %79 {approx = true} : vector<2x8x1xf32> -> vector<2x8x1xf32>
    %81 = vector.broadcast %80 : vector<2x8x1xf32> to vector<2x8x8xf32>
    %82 = arith.mulf %77, %81 : vector<2x8x8xf32>
    %83 = arith.truncf %82 : vector<2x8x8xf32> to vector<2x8x8xbf16>
    "tpu.trace_start"() <{level = 10 : i32, message = "bqk,bkd->bqd"}> : () -> ()
    %cst_54 = arith.constant dense<0.000000e+00> : vector<2x8x32xf32>
    %84 = tpu.matmul %83, %69, %cst_54 {dimension_numbers = #tpu.dot_dimension_numbers<[2], [1], [1], [2], [0, 0, 0, 1, 1, 2], [0], [0]>} : vector<2x8x8xbf16>, vector<2x8x32xbf16>, vector<2x8x32xf32> -> vector<2x8x32xf32>
    "tpu.trace_stop"() : () -> ()
    %85 = vector.shape_cast %84 : vector<2x8x32xf32> to vector<16x32xf32>
    %86 = arith.truncf %85 : vector<16x32xf32> to vector<16x32xbf16>
    %c0_55 = arith.constant 0 : index
    %c0_56 = arith.constant 0 : index
    %87 = vector.load %arg27[%c0_55, %c0_56] : memref<16x128xbf16, #tpu.memory_space<vmem>>, vector<16x32xbf16>
    tpu.vector_store %arg27[%c0_55, %c0_56], %86 {strides = array<i32>} : memref<16x128xbf16, #tpu.memory_space<vmem>>, vector<16x32xbf16>,
    %88 = vector.extract_strided_slice %59 {offsets = [0, 0, 32], sizes = [2, 8, 32], strides = [1, 1, 1]} : vector<2x8x128xf32> to vector<2x8x32xf32>
    %89 = arith.truncf %88 : vector<2x8x32xf32> to vector<2x8x32xbf16>
    %90 = vector.extract_strided_slice %61 {offsets = [0, 0, 32], sizes = [2, 8, 32], strides = [1, 1, 1]} : vector<2x8x128xf32> to vector<2x8x32xf32>
    %91 = arith.truncf %90 : vector<2x8x32xf32> to vector<2x8x32xbf16>
    %92 = vector.extract_strided_slice %63 {offsets = [0, 0, 32], sizes = [2, 8, 32], strides = [1, 1, 1]} : vector<2x8x128xf32> to vector<2x8x32xf32>
    %93 = arith.truncf %92 : vector<2x8x32xf32> to vector<2x8x32xbf16>
    "tpu.trace_start"() <{level = 10 : i32, message = "bqd,bkd->bqk"}> : () -> ()
    %cst_57 = arith.constant dense<0.000000e+00> : vector<2x8x8xf32>
    %94 = tpu.matmul %89, %91, %cst_57 {dimension_numbers = #tpu.dot_dimension_numbers<[2], [2], [1], [1], [0, 0, 0, 1, 1, 1], [0], [0]>} : vector<2x8x32xbf16>, vector<2x8x32xbf16>, vector<2x8x8xf32> -> vector<2x8x8xf32>
    "tpu.trace_stop"() : () -> ()
    %95 = vector.broadcast %49 : vector<2x1x8xf32> to vector<2x8x8xf32>
    %96 = arith.addf %94, %95 : vector<2x8x8xf32>
    %cst_58 = arith.constant dense<0xFF800000> : vector<2x8xf32>
    %97 = vector.multi_reduction <maximumf>, %96, %cst_58 [2] : vector<2x8x8xf32> to vector<2x8xf32>
    %98 = vector.shape_cast %97 : vector<2x8xf32> to vector<2x8x1xf32>
    %99 = vector.broadcast %98 : vector<2x8x1xf32> to vector<2x8x8xf32>
    %100 = arith.subf %96, %99 : vector<2x8x8xf32>
    %101 = math.exp %100 : vector<2x8x8xf32>
    %cst_59 = arith.constant dense<0.000000e+00> : vector<2x8xf32>
    %102 = vector.multi_reduction <add>, %101, %cst_59 [2] : vector<2x8x8xf32> to vector<2x8xf32>
    %103 = vector.shape_cast %102 : vector<2x8xf32> to vector<2x8x1xf32>
    %104 = tpu.reciprocal %103 {approx = true} : vector<2x8x1xf32> -> vector<2x8x1xf32>
    %105 = vector.broadcast %104 : vector<2x8x1xf32> to vector<2x8x8xf32>
    %106 = arith.mulf %101, %105 : vector<2x8x8xf32>
    %107 = arith.truncf %106 : vector<2x8x8xf32> to vector<2x8x8xbf16>
    "tpu.trace_start"() <{level = 10 : i32, message = "bqk,bkd->bqd"}> : () -> ()
    %cst_60 = arith.constant dense<0.000000e+00> : vector<2x8x32xf32>
    %108 = tpu.matmul %107, %93, %cst_60 {dimension_numbers = #tpu.dot_dimension_numbers<[2], [1], [1], [2], [0, 0, 0, 1, 1, 2], [0], [0]>} : vector<2x8x8xbf16>, vector<2x8x32xbf16>, vector<2x8x32xf32> -> vector<2x8x32xf32>
    "tpu.trace_stop"() : () -> ()
    %109 = vector.shape_cast %108 : vector<2x8x32xf32> to vector<16x32xf32>
    %110 = arith.truncf %109 : vector<16x32xf32> to vector<16x32xbf16>
    %c0_61 = arith.constant 0 : index
    %c32 = arith.constant 32 : index
    %111 = vector.load %arg27[%c0_61, %c32] : memref<16x128xbf16, #tpu.memory_space<vmem>>, vector<16x32xbf16>
    tpu.vector_store %arg27[%c0_61, %c32], %110 {strides = array<i32>} : memref<16x128xbf16, #tpu.memory_space<vmem>>, vector<16x32xbf16>,
    %112 = vector.extract_strided_slice %59 {offsets = [0, 0, 64], sizes = [2, 8, 32], strides = [1, 1, 1]} : vector<2x8x128xf32> to vector<2x8x32xf32>
    %113 = arith.truncf %112 : vector<2x8x32xf32> to vector<2x8x32xbf16>
    %114 = vector.extract_strided_slice %61 {offsets = [0, 0, 64], sizes = [2, 8, 32], strides = [1, 1, 1]} : vector<2x8x128xf32> to vector<2x8x32xf32>
    %115 = arith.truncf %114 : vector<2x8x32xf32> to vector<2x8x32xbf16>
    %116 = vector.extract_strided_slice %63 {offsets = [0, 0, 64], sizes = [2, 8, 32], strides = [1, 1, 1]} : vector<2x8x128xf32> to vector<2x8x32xf32>
    %117 = arith.truncf %116 : vector<2x8x32xf32> to vector<2x8x32xbf16>
    "tpu.trace_start"() <{level = 10 : i32, message = "bqd,bkd->bqk"}> : () -> ()
    %cst_62 = arith.constant dense<0.000000e+00> : vector<2x8x8xf32>
    %118 = tpu.matmul %113, %115, %cst_62 {dimension_numbers = #tpu.dot_dimension_numbers<[2], [2], [1], [1], [0, 0, 0, 1, 1, 1], [0], [0]>} : vector<2x8x32xbf16>, vector<2x8x32xbf16>, vector<2x8x8xf32> -> vector<2x8x8xf32>
    "tpu.trace_stop"() : () -> ()
    %119 = vector.broadcast %49 : vector<2x1x8xf32> to vector<2x8x8xf32>
    %120 = arith.addf %118, %119 : vector<2x8x8xf32>
    %cst_63 = arith.constant dense<0xFF800000> : vector<2x8xf32>
    %121 = vector.multi_reduction <maximumf>, %120, %cst_63 [2] : vector<2x8x8xf32> to vector<2x8xf32>
    %122 = vector.shape_cast %121 : vector<2x8xf32> to vector<2x8x1xf32>
    %123 = vector.broadcast %122 : vector<2x8x1xf32> to vector<2x8x8xf32>
    %124 = arith.subf %120, %123 : vector<2x8x8xf32>
    %125 = math.exp %124 : vector<2x8x8xf32>
    %cst_64 = arith.constant dense<0.000000e+00> : vector<2x8xf32>
    %126 = vector.multi_reduction <add>, %125, %cst_64 [2] : vector<2x8x8xf32> to vector<2x8xf32>
    %127 = vector.shape_cast %126 : vector<2x8xf32> to vector<2x8x1xf32>
    %128 = tpu.reciprocal %127 {approx = true} : vector<2x8x1xf32> -> vector<2x8x1xf32>
    %129 = vector.broadcast %128 : vector<2x8x1xf32> to vector<2x8x8xf32>
    %130 = arith.mulf %125, %129 : vector<2x8x8xf32>
    %131 = arith.truncf %130 : vector<2x8x8xf32> to vector<2x8x8xbf16>
    "tpu.trace_start"() <{level = 10 : i32, message = "bqk,bkd->bqd"}> : () -> ()
    %cst_65 = arith.constant dense<0.000000e+00> : vector<2x8x32xf32>
    %132 = tpu.matmul %131, %117, %cst_65 {dimension_numbers = #tpu.dot_dimension_numbers<[2], [1], [1], [2], [0, 0, 0, 1, 1, 2], [0], [0]>} : vector<2x8x8xbf16>, vector<2x8x32xbf16>, vector<2x8x32xf32> -> vector<2x8x32xf32>
    "tpu.trace_stop"() : () -> ()
    %133 = vector.shape_cast %132 : vector<2x8x32xf32> to vector<16x32xf32>
    %134 = arith.truncf %133 : vector<16x32xf32> to vector<16x32xbf16>
    %c0_66 = arith.constant 0 : index
    %c64 = arith.constant 64 : index
    %135 = vector.load %arg27[%c0_66, %c64] : memref<16x128xbf16, #tpu.memory_space<vmem>>, vector<16x32xbf16>
    tpu.vector_store %arg27[%c0_66, %c64], %134 {strides = array<i32>} : memref<16x128xbf16, #tpu.memory_space<vmem>>, vector<16x32xbf16>,
    %136 = vector.extract_strided_slice %59 {offsets = [0, 0, 96], sizes = [2, 8, 32], strides = [1, 1, 1]} : vector<2x8x128xf32> to vector<2x8x32xf32>
    %137 = arith.truncf %136 : vector<2x8x32xf32> to vector<2x8x32xbf16>
    %138 = vector.extract_strided_slice %61 {offsets = [0, 0, 96], sizes = [2, 8, 32], strides = [1, 1, 1]} : vector<2x8x128xf32> to vector<2x8x32xf32>
    %139 = arith.truncf %138 : vector<2x8x32xf32> to vector<2x8x32xbf16>
    %140 = vector.extract_strided_slice %63 {offsets = [0, 0, 96], sizes = [2, 8, 32], strides = [1, 1, 1]} : vector<2x8x128xf32> to vector<2x8x32xf32>
    %141 = arith.truncf %140 : vector<2x8x32xf32> to vector<2x8x32xbf16>
    "tpu.trace_start"() <{level = 10 : i32, message = "bqd,bkd->bqk"}> : () -> ()
    %cst_67 = arith.constant dense<0.000000e+00> : vector<2x8x8xf32>
    %142 = tpu.matmul %137, %139, %cst_67 {dimension_numbers = #tpu.dot_dimension_numbers<[2], [2], [1], [1], [0, 0, 0, 1, 1, 1], [0], [0]>} : vector<2x8x32xbf16>, vector<2x8x32xbf16>, vector<2x8x8xf32> -> vector<2x8x8xf32>
    "tpu.trace_stop"() : () -> ()
    %143 = vector.broadcast %49 : vector<2x1x8xf32> to vector<2x8x8xf32>
    %144 = arith.addf %142, %143 : vector<2x8x8xf32>
    %cst_68 = arith.constant dense<0xFF800000> : vector<2x8xf32>
    %145 = vector.multi_reduction <maximumf>, %144, %cst_68 [2] : vector<2x8x8xf32> to vector<2x8xf32>
    %146 = vector.shape_cast %145 : vector<2x8xf32> to vector<2x8x1xf32>
    %147 = vector.broadcast %146 : vector<2x8x1xf32> to vector<2x8x8xf32>
    %148 = arith.subf %144, %147 : vector<2x8x8xf32>
    %149 = math.exp %148 : vector<2x8x8xf32>
    %cst_69 = arith.constant dense<0.000000e+00> : vector<2x8xf32>
    %150 = vector.multi_reduction <add>, %149, %cst_69 [2] : vector<2x8x8xf32> to vector<2x8xf32>
    %151 = vector.shape_cast %150 : vector<2x8xf32> to vector<2x8x1xf32>
    %152 = tpu.reciprocal %151 {approx = true} : vector<2x8x1xf32> -> vector<2x8x1xf32>
    %153 = vector.broadcast %152 : vector<2x8x1xf32> to vector<2x8x8xf32>
    %154 = arith.mulf %149, %153 : vector<2x8x8xf32>
    %155 = arith.truncf %154 : vector<2x8x8xf32> to vector<2x8x8xbf16>
    "tpu.trace_start"() <{level = 10 : i32, message = "bqk,bkd->bqd"}> : () -> ()
    %cst_70 = arith.constant dense<0.000000e+00> : vector<2x8x32xf32>
    %156 = tpu.matmul %155, %141, %cst_70 {dimension_numbers = #tpu.dot_dimension_numbers<[2], [1], [1], [2], [0, 0, 0, 1, 1, 2], [0], [0]>} : vector<2x8x8xbf16>, vector<2x8x32xbf16>, vector<2x8x32xf32> -> vector<2x8x32xf32>
    "tpu.trace_stop"() : () -> ()
    %157 = vector.shape_cast %156 : vector<2x8x32xf32> to vector<16x32xf32>
    %158 = arith.truncf %157 : vector<16x32xf32> to vector<16x32xbf16>
    %c0_71 = arith.constant 0 : index
    %c96 = arith.constant 96 : index
    %159 = vector.load %arg27[%c0_71, %c96] : memref<16x128xbf16, #tpu.memory_space<vmem>>, vector<16x32xbf16>
    tpu.vector_store %arg27[%c0_71, %c96], %158 {strides = array<i32>} : memref<16x128xbf16, #tpu.memory_space<vmem>>, vector<16x32xbf16>,
    %c0_72 = arith.constant 0 : index
    %c0_73 = arith.constant 0 : index
    %160 = vector.load %arg27[%c0_72, %c0_73] : memref<16x128xbf16, #tpu.memory_space<vmem>>, vector<16x128xbf16>
    %c0_74 = arith.constant 0 : index
    %c0_75 = arith.constant 0 : index
    %c0_76 = arith.constant 0 : index
    %c0_77 = arith.constant 0 : index
    %161 = vector.load %arg16[%c0_74, %c0_75, %c0_76, %c0_77] : memref<1x2x128x128xbf16, #tpu.memory_space<vmem>>, vector<1x1x128x128xbf16>
    %162 = vector.shape_cast %161 : vector<1x1x128x128xbf16> to vector<128x128xbf16>
    %cst_78 = arith.constant dense<0.000000e+00> : vector<16x128xf32>
    %163 = tpu.matmul %160, %162, %cst_78 {dimension_numbers = #tpu.dot_dimension_numbers<[1], [0], [0], [1], [0, 0, 1, 1], [], []>} : vector<16x128xbf16>, vector<128x128xbf16>, vector<16x128xf32> -> vector<16x128xf32>
    %c0_79 = arith.constant 0 : index
    %c0_80 = arith.constant 0 : index
    %c0_81 = arith.constant 0 : index
    %c0_82 = arith.constant 0 : index
    %164 = vector.load %arg17[%c0_79, %c0_80, %c0_81, %c0_82] : memref<1x2x1x128xf32, #tpu.memory_space<vmem>>, vector<1x1x1x128xf32>
    %165 = vector.shape_cast %164 : vector<1x1x1x128xf32> to vector<1x128xf32>
    %166 = vector.broadcast %165 : vector<1x128xf32> to vector<16x128xf32>
    %167 = arith.addf %163, %166 : vector<16x128xf32>
    %168 = arith.addf %46, %167 : vector<16x128xf32>
    %cst_83 = arith.constant dense<0.000000e+00> : vector<16xf32>
    %169 = vector.multi_reduction <add>, %168, %cst_83 [1] : vector<16x128xf32> to vector<16xf32>
    %170 = vector.shape_cast %169 : vector<16xf32> to vector<16x1xf32>
    %cst_84 = arith.constant 1.280000e+02 : f32
    %171 = vector.broadcast %cst_84 : f32 to vector<16x1xf32>
    %172 = arith.divf %170, %171 : vector<16x1xf32>
    %173 = vector.broadcast %172 : vector<16x1xf32> to vector<16x128xf32>
    %174 = arith.subf %168, %173 : vector<16x128xf32>
    %175 = arith.mulf %174, %174 : vector<16x128xf32>
    %cst_85 = arith.constant dense<0.000000e+00> : vector<16xf32>
    %176 = vector.multi_reduction <add>, %175, %cst_85 [1] : vector<16x128xf32> to vector<16xf32>
    %177 = vector.shape_cast %176 : vector<16xf32> to vector<16x1xf32>
    %cst_86 = arith.constant 1.280000e+02 : f32
    %178 = vector.broadcast %cst_86 : f32 to vector<16x1xf32>
    %179 = arith.divf %177, %178 : vector<16x1xf32>
    %180 = vector.broadcast %172 : vector<16x1xf32> to vector<16x128xf32>
    %181 = arith.subf %168, %180 : vector<16x128xf32>
    %cst_87 = arith.constant 9.99999974E-6 : f32
    %182 = vector.broadcast %cst_87 : f32 to vector<16x1xf32>
    %183 = arith.addf %179, %182 : vector<16x1xf32>
    %184 = math.rsqrt %183 : vector<16x1xf32>
    %185 = vector.broadcast %184 : vector<16x1xf32> to vector<16x128xf32>
    %186 = arith.mulf %181, %185 : vector<16x128xf32>
    %c0_88 = arith.constant 0 : index
    %c0_89 = arith.constant 0 : index
    %c0_90 = arith.constant 0 : index
    %c0_91 = arith.constant 0 : index
    %187 = vector.load %arg22[%c0_88, %c0_89, %c0_90, %c0_91] : memref<1x2x1x128xf32, #tpu.memory_space<vmem>>, vector<1x1x1x128xf32>
    %188 = vector.shape_cast %187 : vector<1x1x1x128xf32> to vector<1x128xf32>
    %189 = vector.broadcast %188 : vector<1x128xf32> to vector<16x128xf32>
    %190 = arith.mulf %186, %189 : vector<16x128xf32>
    %c0_92 = arith.constant 0 : index
    %c0_93 = arith.constant 0 : index
    %c0_94 = arith.constant 0 : index
    %c0_95 = arith.constant 0 : index
    %191 = vector.load %arg23[%c0_92, %c0_93, %c0_94, %c0_95] : memref<1x2x1x128xf32, #tpu.memory_space<vmem>>, vector<1x1x1x128xf32>
    %192 = vector.shape_cast %191 : vector<1x1x1x128xf32> to vector<1x128xf32>
    %193 = vector.broadcast %192 : vector<1x128xf32> to vector<16x128xf32>
    %194 = arith.addf %190, %193 : vector<16x128xf32>
    %c0_96 = arith.constant 0 : index
    %c0_97 = arith.constant 0 : index
    %c0_98 = arith.constant 0 : index
    %c0_99 = arith.constant 0 : index
    %195 = vector.load %arg18[%c0_96, %c0_97, %c0_98, %c0_99] : memref<1x2x128x256xbf16, #tpu.memory_space<vmem>>, vector<1x1x128x256xbf16>
    %196 = vector.shape_cast %195 : vector<1x1x128x256xbf16> to vector<128x256xbf16>
    %197 = arith.truncf %194 : vector<16x128xf32> to vector<16x128xbf16>
    %cst_100 = arith.constant dense<0.000000e+00> : vector<16x256xf32>
    %198 = tpu.matmul %197, %196, %cst_100 {dimension_numbers = #tpu.dot_dimension_numbers<[1], [0], [0], [1], [0, 0, 1, 1], [], []>} : vector<16x128xbf16>, vector<128x256xbf16>, vector<16x256xf32> -> vector<16x256xf32>
    %c0_101 = arith.constant 0 : index
    %c0_102 = arith.constant 0 : index
    %c0_103 = arith.constant 0 : index
    %c0_104 = arith.constant 0 : index
    %199 = vector.load %arg19[%c0_101, %c0_102, %c0_103, %c0_104] : memref<1x2x1x256xf32, #tpu.memory_space<vmem>>, vector<1x1x1x256xf32>
    %200 = vector.shape_cast %199 : vector<1x1x1x256xf32> to vector<1x256xf32>
    %201 = vector.broadcast %200 : vector<1x256xf32> to vector<16x256xf32>
    %202 = arith.addf %198, %201 : vector<16x256xf32>
    %cst_105 = arith.constant 0.000000e+00 : f32
    %203 = vector.broadcast %cst_105 : f32 to vector<16x256xf32>
    %204 = arith.maximumf %202, %203 : vector<16x256xf32>
    %c0_106 = arith.constant 0 : index
    %c0_107 = arith.constant 0 : index
    %c0_108 = arith.constant 0 : index
    %c0_109 = arith.constant 0 : index
    %205 = vector.load %arg20[%c0_106, %c0_107, %c0_108, %c0_109] : memref<1x2x256x128xbf16, #tpu.memory_space<vmem>>, vector<1x1x256x128xbf16>
    %206 = vector.shape_cast %205 : vector<1x1x256x128xbf16> to vector<256x128xbf16>
    %207 = arith.truncf %204 : vector<16x256xf32> to vector<16x256xbf16>
    %cst_110 = arith.constant dense<0.000000e+00> : vector<16x128xf32>
    %208 = tpu.matmul %207, %206, %cst_110 {dimension_numbers = #tpu.dot_dimension_numbers<[1], [0], [0], [1], [0, 0, 1, 1], [], []>} : vector<16x256xbf16>, vector<256x128xbf16>, vector<16x128xf32> -> vector<16x128xf32>
    %c0_111 = arith.constant 0 : index
    %c0_112 = arith.constant 0 : index
    %c0_113 = arith.constant 0 : index
    %c0_114 = arith.constant 0 : index
    %209 = vector.load %arg21[%c0_111, %c0_112, %c0_113, %c0_114] : memref<1x2x1x128xf32, #tpu.memory_space<vmem>>, vector<1x1x1x128xf32>
    %210 = vector.shape_cast %209 : vector<1x1x1x128xf32> to vector<1x128xf32>
    %211 = vector.broadcast %210 : vector<1x128xf32> to vector<16x128xf32>
    %212 = arith.addf %208, %211 : vector<16x128xf32>
    %213 = arith.addf %194, %212 : vector<16x128xf32>
    %cst_115 = arith.constant dense<0.000000e+00> : vector<16xf32>
    %214 = vector.multi_reduction <add>, %213, %cst_115 [1] : vector<16x128xf32> to vector<16xf32>
    %215 = vector.shape_cast %214 : vector<16xf32> to vector<16x1xf32>
    %cst_116 = arith.constant 1.280000e+02 : f32
    %216 = vector.broadcast %cst_116 : f32 to vector<16x1xf32>
    %217 = arith.divf %215, %216 : vector<16x1xf32>
    %218 = vector.broadcast %217 : vector<16x1xf32> to vector<16x128xf32>
    %219 = arith.subf %213, %218 : vector<16x128xf32>
    %220 = arith.mulf %219, %219 : vector<16x128xf32>
    %cst_117 = arith.constant dense<0.000000e+00> : vector<16xf32>
    %221 = vector.multi_reduction <add>, %220, %cst_117 [1] : vector<16x128xf32> to vector<16xf32>
    %222 = vector.shape_cast %221 : vector<16xf32> to vector<16x1xf32>
    %cst_118 = arith.constant 1.280000e+02 : f32
    %223 = vector.broadcast %cst_118 : f32 to vector<16x1xf32>
    %224 = arith.divf %222, %223 : vector<16x1xf32>
    %225 = vector.broadcast %217 : vector<16x1xf32> to vector<16x128xf32>
    %226 = arith.subf %213, %225 : vector<16x128xf32>
    %cst_119 = arith.constant 9.99999974E-6 : f32
    %227 = vector.broadcast %cst_119 : f32 to vector<16x1xf32>
    %228 = arith.addf %224, %227 : vector<16x1xf32>
    %229 = math.rsqrt %228 : vector<16x1xf32>
    %230 = vector.broadcast %229 : vector<16x1xf32> to vector<16x128xf32>
    %231 = arith.mulf %226, %230 : vector<16x128xf32>
    %c0_120 = arith.constant 0 : index
    %c0_121 = arith.constant 0 : index
    %c0_122 = arith.constant 0 : index
    %c0_123 = arith.constant 0 : index
    %232 = vector.load %arg24[%c0_120, %c0_121, %c0_122, %c0_123] : memref<1x2x1x128xf32, #tpu.memory_space<vmem>>, vector<1x1x1x128xf32>
    %233 = vector.shape_cast %232 : vector<1x1x1x128xf32> to vector<1x128xf32>
    %234 = vector.broadcast %233 : vector<1x128xf32> to vector<16x128xf32>
    %235 = arith.mulf %231, %234 : vector<16x128xf32>
    %c0_124 = arith.constant 0 : index
    %c0_125 = arith.constant 0 : index
    %c0_126 = arith.constant 0 : index
    %c0_127 = arith.constant 0 : index
    %236 = vector.load %arg25[%c0_124, %c0_125, %c0_126, %c0_127] : memref<1x2x1x128xf32, #tpu.memory_space<vmem>>, vector<1x1x1x128xf32>
    %237 = vector.shape_cast %236 : vector<1x1x1x128xf32> to vector<1x128xf32>
    %238 = vector.broadcast %237 : vector<1x128xf32> to vector<16x128xf32>
    %239 = arith.addf %235, %238 : vector<16x128xf32>
    %c0_128 = arith.constant 0 : index
    %c1 = arith.constant 1 : index
    %c0_129 = arith.constant 0 : index
    %c0_130 = arith.constant 0 : index
    %240 = vector.load %arg14[%c0_128, %c1, %c0_129, %c0_130] : memref<1x2x128x384xbf16, #tpu.memory_space<vmem>>, vector<1x1x128x384xbf16>
    %241 = vector.shape_cast %240 : vector<1x1x128x384xbf16> to vector<128x384xbf16>
    %242 = arith.truncf %239 : vector<16x128xf32> to vector<16x128xbf16>
    %cst_131 = arith.constant dense<0.000000e+00> : vector<16x384xf32>
    %243 = tpu.matmul %242, %241, %cst_131 {dimension_numbers = #tpu.dot_dimension_numbers<[1], [0], [0], [1], [0, 0, 1, 1], [], []>} : vector<16x128xbf16>, vector<128x384xbf16>, vector<16x384xf32> -> vector<16x384xf32>
    %c0_132 = arith.constant 0 : index
    %c1_133 = arith.constant 1 : index
    %c0_134 = arith.constant 0 : index
    %c0_135 = arith.constant 0 : index
    %244 = vector.load %arg15[%c0_132, %c1_133, %c0_134, %c0_135] : memref<1x2x1x384xf32, #tpu.memory_space<vmem>>, vector<1x1x1x384xf32>
    %245 = vector.shape_cast %244 : vector<1x1x1x384xf32> to vector<1x384xf32>
    %246 = vector.broadcast %245 : vector<1x384xf32> to vector<16x384xf32>
    %247 = arith.addf %243, %246 : vector<16x384xf32>
    %248 = vector.extract_strided_slice %247 {offsets = [0, 0], sizes = [16, 128], strides = [1, 1]} : vector<16x384xf32> to vector<16x128xf32>
    %249 = vector.shape_cast %248 : vector<16x128xf32> to vector<2x8x128xf32>
    %250 = vector.extract_strided_slice %247 {offsets = [0, 128], sizes = [16, 128], strides = [1, 1]} : vector<16x384xf32> to vector<16x128xf32>
    %251 = vector.shape_cast %250 : vector<16x128xf32> to vector<2x8x128xf32>
    %252 = vector.extract_strided_slice %247 {offsets = [0, 256], sizes = [16, 128], strides = [1, 1]} : vector<16x384xf32> to vector<16x128xf32>
    %253 = vector.shape_cast %252 : vector<16x128xf32> to vector<2x8x128xf32>
    %254 = vector.extract_strided_slice %249 {offsets = [0, 0, 0], sizes = [2, 8, 32], strides = [1, 1, 1]} : vector<2x8x128xf32> to vector<2x8x32xf32>
    %255 = arith.truncf %254 : vector<2x8x32xf32> to vector<2x8x32xbf16>
    %256 = vector.extract_strided_slice %251 {offsets = [0, 0, 0], sizes = [2, 8, 32], strides = [1, 1, 1]} : vector<2x8x128xf32> to vector<2x8x32xf32>
    %257 = arith.truncf %256 : vector<2x8x32xf32> to vector<2x8x32xbf16>
    %258 = vector.extract_strided_slice %253 {offsets = [0, 0, 0], sizes = [2, 8, 32], strides = [1, 1, 1]} : vector<2x8x128xf32> to vector<2x8x32xf32>
    %259 = arith.truncf %258 : vector<2x8x32xf32> to vector<2x8x32xbf16>
    "tpu.trace_start"() <{level = 10 : i32, message = "bqd,bkd->bqk"}> : () -> ()
    %cst_136 = arith.constant dense<0.000000e+00> : vector<2x8x8xf32>
    %260 = tpu.matmul %255, %257, %cst_136 {dimension_numbers = #tpu.dot_dimension_numbers<[2], [2], [1], [1], [0, 0, 0, 1, 1, 1], [0], [0]>} : vector<2x8x32xbf16>, vector<2x8x32xbf16>, vector<2x8x8xf32> -> vector<2x8x8xf32>
    "tpu.trace_stop"() : () -> ()
    %261 = vector.broadcast %49 : vector<2x1x8xf32> to vector<2x8x8xf32>
    %262 = arith.addf %260, %261 : vector<2x8x8xf32>
    %cst_137 = arith.constant dense<0xFF800000> : vector<2x8xf32>
    %263 = vector.multi_reduction <maximumf>, %262, %cst_137 [2] : vector<2x8x8xf32> to vector<2x8xf32>
    %264 = vector.shape_cast %263 : vector<2x8xf32> to vector<2x8x1xf32>
    %265 = vector.broadcast %264 : vector<2x8x1xf32> to vector<2x8x8xf32>
    %266 = arith.subf %262, %265 : vector<2x8x8xf32>
    %267 = math.exp %266 : vector<2x8x8xf32>
    %cst_138 = arith.constant dense<0.000000e+00> : vector<2x8xf32>
    %268 = vector.multi_reduction <add>, %267, %cst_138 [2] : vector<2x8x8xf32> to vector<2x8xf32>
    %269 = vector.shape_cast %268 : vector<2x8xf32> to vector<2x8x1xf32>
    %270 = tpu.reciprocal %269 {approx = true} : vector<2x8x1xf32> -> vector<2x8x1xf32>
    %271 = vector.broadcast %270 : vector<2x8x1xf32> to vector<2x8x8xf32>
    %272 = arith.mulf %267, %271 : vector<2x8x8xf32>
    %273 = arith.truncf %272 : vector<2x8x8xf32> to vector<2x8x8xbf16>
    "tpu.trace_start"() <{level = 10 : i32, message = "bqk,bkd->bqd"}> : () -> ()
    %cst_139 = arith.constant dense<0.000000e+00> : vector<2x8x32xf32>
    %274 = tpu.matmul %273, %259, %cst_139 {dimension_numbers = #tpu.dot_dimension_numbers<[2], [1], [1], [2], [0, 0, 0, 1, 1, 2], [0], [0]>} : vector<2x8x8xbf16>, vector<2x8x32xbf16>, vector<2x8x32xf32> -> vector<2x8x32xf32>
    "tpu.trace_stop"() : () -> ()
    %275 = vector.shape_cast %274 : vector<2x8x32xf32> to vector<16x32xf32>
    %276 = arith.truncf %275 : vector<16x32xf32> to vector<16x32xbf16>
    %c0_140 = arith.constant 0 : index
    %c0_141 = arith.constant 0 : index
    %277 = vector.load %arg27[%c0_140, %c0_141] : memref<16x128xbf16, #tpu.memory_space<vmem>>, vector<16x32xbf16>
    tpu.vector_store %arg27[%c0_140, %c0_141], %276 {strides = array<i32>} : memref<16x128xbf16, #tpu.memory_space<vmem>>, vector<16x32xbf16>,
    %278 = vector.extract_strided_slice %249 {offsets = [0, 0, 32], sizes = [2, 8, 32], strides = [1, 1, 1]} : vector<2x8x128xf32> to vector<2x8x32xf32>
    %279 = arith.truncf %278 : vector<2x8x32xf32> to vector<2x8x32xbf16>
    %280 = vector.extract_strided_slice %251 {offsets = [0, 0, 32], sizes = [2, 8, 32], strides = [1, 1, 1]} : vector<2x8x128xf32> to vector<2x8x32xf32>
    %281 = arith.truncf %280 : vector<2x8x32xf32> to vector<2x8x32xbf16>
    %282 = vector.extract_strided_slice %253 {offsets = [0, 0, 32], sizes = [2, 8, 32], strides = [1, 1, 1]} : vector<2x8x128xf32> to vector<2x8x32xf32>
    %283 = arith.truncf %282 : vector<2x8x32xf32> to vector<2x8x32xbf16>
    "tpu.trace_start"() <{level = 10 : i32, message = "bqd,bkd->bqk"}> : () -> ()
    %cst_142 = arith.constant dense<0.000000e+00> : vector<2x8x8xf32>
    %284 = tpu.matmul %279, %281, %cst_142 {dimension_numbers = #tpu.dot_dimension_numbers<[2], [2], [1], [1], [0, 0, 0, 1, 1, 1], [0], [0]>} : vector<2x8x32xbf16>, vector<2x8x32xbf16>, vector<2x8x8xf32> -> vector<2x8x8xf32>
    "tpu.trace_stop"() : () -> ()
    %285 = vector.broadcast %49 : vector<2x1x8xf32> to vector<2x8x8xf32>
    %286 = arith.addf %284, %285 : vector<2x8x8xf32>
    %cst_143 = arith.constant dense<0xFF800000> : vector<2x8xf32>
    %287 = vector.multi_reduction <maximumf>, %286, %cst_143 [2] : vector<2x8x8xf32> to vector<2x8xf32>
    %288 = vector.shape_cast %287 : vector<2x8xf32> to vector<2x8x1xf32>
    %289 = vector.broadcast %288 : vector<2x8x1xf32> to vector<2x8x8xf32>
    %290 = arith.subf %286, %289 : vector<2x8x8xf32>
    %291 = math.exp %290 : vector<2x8x8xf32>
    %cst_144 = arith.constant dense<0.000000e+00> : vector<2x8xf32>
    %292 = vector.multi_reduction <add>, %291, %cst_144 [2] : vector<2x8x8xf32> to vector<2x8xf32>
    %293 = vector.shape_cast %292 : vector<2x8xf32> to vector<2x8x1xf32>
    %294 = tpu.reciprocal %293 {approx = true} : vector<2x8x1xf32> -> vector<2x8x1xf32>
    %295 = vector.broadcast %294 : vector<2x8x1xf32> to vector<2x8x8xf32>
    %296 = arith.mulf %291, %295 : vector<2x8x8xf32>
    %297 = arith.truncf %296 : vector<2x8x8xf32> to vector<2x8x8xbf16>
    "tpu.trace_start"() <{level = 10 : i32, message = "bqk,bkd->bqd"}> : () -> ()
    %cst_145 = arith.constant dense<0.000000e+00> : vector<2x8x32xf32>
    %298 = tpu.matmul %297, %283, %cst_145 {dimension_numbers = #tpu.dot_dimension_numbers<[2], [1], [1], [2], [0, 0, 0, 1, 1, 2], [0], [0]>} : vector<2x8x8xbf16>, vector<2x8x32xbf16>, vector<2x8x32xf32> -> vector<2x8x32xf32>
    "tpu.trace_stop"() : () -> ()
    %299 = vector.shape_cast %298 : vector<2x8x32xf32> to vector<16x32xf32>
    %300 = arith.truncf %299 : vector<16x32xf32> to vector<16x32xbf16>
    %c0_146 = arith.constant 0 : index
    %c32_147 = arith.constant 32 : index
    %301 = vector.load %arg27[%c0_146, %c32_147] : memref<16x128xbf16, #tpu.memory_space<vmem>>, vector<16x32xbf16>
    tpu.vector_store %arg27[%c0_146, %c32_147], %300 {strides = array<i32>} : memref<16x128xbf16, #tpu.memory_space<vmem>>, vector<16x32xbf16>,
    %302 = vector.extract_strided_slice %249 {offsets = [0, 0, 64], sizes = [2, 8, 32], strides = [1, 1, 1]} : vector<2x8x128xf32> to vector<2x8x32xf32>
    %303 = arith.truncf %302 : vector<2x8x32xf32> to vector<2x8x32xbf16>
    %304 = vector.extract_strided_slice %251 {offsets = [0, 0, 64], sizes = [2, 8, 32], strides = [1, 1, 1]} : vector<2x8x128xf32> to vector<2x8x32xf32>
    %305 = arith.truncf %304 : vector<2x8x32xf32> to vector<2x8x32xbf16>
    %306 = vector.extract_strided_slice %253 {offsets = [0, 0, 64], sizes = [2, 8, 32], strides = [1, 1, 1]} : vector<2x8x128xf32> to vector<2x8x32xf32>
    %307 = arith.truncf %306 : vector<2x8x32xf32> to vector<2x8x32xbf16>
    "tpu.trace_start"() <{level = 10 : i32, message = "bqd,bkd->bqk"}> : () -> ()
    %cst_148 = arith.constant dense<0.000000e+00> : vector<2x8x8xf32>
    %308 = tpu.matmul %303, %305, %cst_148 {dimension_numbers = #tpu.dot_dimension_numbers<[2], [2], [1], [1], [0, 0, 0, 1, 1, 1], [0], [0]>} : vector<2x8x32xbf16>, vector<2x8x32xbf16>, vector<2x8x8xf32> -> vector<2x8x8xf32>
    "tpu.trace_stop"() : () -> ()
    %309 = vector.broadcast %49 : vector<2x1x8xf32> to vector<2x8x8xf32>
    %310 = arith.addf %308, %309 : vector<2x8x8xf32>
    %cst_149 = arith.constant dense<0xFF800000> : vector<2x8xf32>
    %311 = vector.multi_reduction <maximumf>, %310, %cst_149 [2] : vector<2x8x8xf32> to vector<2x8xf32>
    %312 = vector.shape_cast %311 : vector<2x8xf32> to vector<2x8x1xf32>
    %313 = vector.broadcast %312 : vector<2x8x1xf32> to vector<2x8x8xf32>
    %314 = arith.subf %310, %313 : vector<2x8x8xf32>
    %315 = math.exp %314 : vector<2x8x8xf32>
    %cst_150 = arith.constant dense<0.000000e+00> : vector<2x8xf32>
    %316 = vector.multi_reduction <add>, %315, %cst_150 [2] : vector<2x8x8xf32> to vector<2x8xf32>
    %317 = vector.shape_cast %316 : vector<2x8xf32> to vector<2x8x1xf32>
    %318 = tpu.reciprocal %317 {approx = true} : vector<2x8x1xf32> -> vector<2x8x1xf32>
    %319 = vector.broadcast %318 : vector<2x8x1xf32> to vector<2x8x8xf32>
    %320 = arith.mulf %315, %319 : vector<2x8x8xf32>
    %321 = arith.truncf %320 : vector<2x8x8xf32> to vector<2x8x8xbf16>
    "tpu.trace_start"() <{level = 10 : i32, message = "bqk,bkd->bqd"}> : () -> ()
    %cst_151 = arith.constant dense<0.000000e+00> : vector<2x8x32xf32>
    %322 = tpu.matmul %321, %307, %cst_151 {dimension_numbers = #tpu.dot_dimension_numbers<[2], [1], [1], [2], [0, 0, 0, 1, 1, 2], [0], [0]>} : vector<2x8x8xbf16>, vector<2x8x32xbf16>, vector<2x8x32xf32> -> vector<2x8x32xf32>
    "tpu.trace_stop"() : () -> ()
    %323 = vector.shape_cast %322 : vector<2x8x32xf32> to vector<16x32xf32>
    %324 = arith.truncf %323 : vector<16x32xf32> to vector<16x32xbf16>
    %c0_152 = arith.constant 0 : index
    %c64_153 = arith.constant 64 : index
    %325 = vector.load %arg27[%c0_152, %c64_153] : memref<16x128xbf16, #tpu.memory_space<vmem>>, vector<16x32xbf16>
    tpu.vector_store %arg27[%c0_152, %c64_153], %324 {strides = array<i32>} : memref<16x128xbf16, #tpu.memory_space<vmem>>, vector<16x32xbf16>,
    %326 = vector.extract_strided_slice %249 {offsets = [0, 0, 96], sizes = [2, 8, 32], strides = [1, 1, 1]} : vector<2x8x128xf32> to vector<2x8x32xf32>
    %327 = arith.truncf %326 : vector<2x8x32xf32> to vector<2x8x32xbf16>
    %328 = vector.extract_strided_slice %251 {offsets = [0, 0, 96], sizes = [2, 8, 32], strides = [1, 1, 1]} : vector<2x8x128xf32> to vector<2x8x32xf32>
    %329 = arith.truncf %328 : vector<2x8x32xf32> to vector<2x8x32xbf16>
    %330 = vector.extract_strided_slice %253 {offsets = [0, 0, 96], sizes = [2, 8, 32], strides = [1, 1, 1]} : vector<2x8x128xf32> to vector<2x8x32xf32>
    %331 = arith.truncf %330 : vector<2x8x32xf32> to vector<2x8x32xbf16>
    "tpu.trace_start"() <{level = 10 : i32, message = "bqd,bkd->bqk"}> : () -> ()
    %cst_154 = arith.constant dense<0.000000e+00> : vector<2x8x8xf32>
    %332 = tpu.matmul %327, %329, %cst_154 {dimension_numbers = #tpu.dot_dimension_numbers<[2], [2], [1], [1], [0, 0, 0, 1, 1, 1], [0], [0]>} : vector<2x8x32xbf16>, vector<2x8x32xbf16>, vector<2x8x8xf32> -> vector<2x8x8xf32>
    "tpu.trace_stop"() : () -> ()
    %333 = vector.broadcast %49 : vector<2x1x8xf32> to vector<2x8x8xf32>
    %334 = arith.addf %332, %333 : vector<2x8x8xf32>
    %cst_155 = arith.constant dense<0xFF800000> : vector<2x8xf32>
    %335 = vector.multi_reduction <maximumf>, %334, %cst_155 [2] : vector<2x8x8xf32> to vector<2x8xf32>
    %336 = vector.shape_cast %335 : vector<2x8xf32> to vector<2x8x1xf32>
    %337 = vector.broadcast %336 : vector<2x8x1xf32> to vector<2x8x8xf32>
    %338 = arith.subf %334, %337 : vector<2x8x8xf32>
    %339 = math.exp %338 : vector<2x8x8xf32>
    %cst_156 = arith.constant dense<0.000000e+00> : vector<2x8xf32>
    %340 = vector.multi_reduction <add>, %339, %cst_156 [2] : vector<2x8x8xf32> to vector<2x8xf32>
    %341 = vector.shape_cast %340 : vector<2x8xf32> to vector<2x8x1xf32>
    %342 = tpu.reciprocal %341 {approx = true} : vector<2x8x1xf32> -> vector<2x8x1xf32>
    %343 = vector.broadcast %342 : vector<2x8x1xf32> to vector<2x8x8xf32>
    %344 = arith.mulf %339, %343 : vector<2x8x8xf32>
    %345 = arith.truncf %344 : vector<2x8x8xf32> to vector<2x8x8xbf16>
    "tpu.trace_start"() <{level = 10 : i32, message = "bqk,bkd->bqd"}> : () -> ()
    %cst_157 = arith.constant dense<0.000000e+00> : vector<2x8x32xf32>
    %346 = tpu.matmul %345, %331, %cst_157 {dimension_numbers = #tpu.dot_dimension_numbers<[2], [1], [1], [2], [0, 0, 0, 1, 1, 2], [0], [0]>} : vector<2x8x8xbf16>, vector<2x8x32xbf16>, vector<2x8x32xf32> -> vector<2x8x32xf32>
    "tpu.trace_stop"() : () -> ()
    %347 = vector.shape_cast %346 : vector<2x8x32xf32> to vector<16x32xf32>
    %348 = arith.truncf %347 : vector<16x32xf32> to vector<16x32xbf16>
    %c0_158 = arith.constant 0 : index
    %c96_159 = arith.constant 96 : index
    %349 = vector.load %arg27[%c0_158, %c96_159] : memref<16x128xbf16, #tpu.memory_space<vmem>>, vector<16x32xbf16>
    tpu.vector_store %arg27[%c0_158, %c96_159], %348 {strides = array<i32>} : memref<16x128xbf16, #tpu.memory_space<vmem>>, vector<16x32xbf16>,
    %c0_160 = arith.constant 0 : index
    %c0_161 = arith.constant 0 : index
    %350 = vector.load %arg27[%c0_160, %c0_161] : memref<16x128xbf16, #tpu.memory_space<vmem>>, vector<16x128xbf16>
    %c0_162 = arith.constant 0 : index
    %c1_163 = arith.constant 1 : index
    %c0_164 = arith.constant 0 : index
    %c0_165 = arith.constant 0 : index
    %351 = vector.load %arg16[%c0_162, %c1_163, %c0_164, %c0_165] : memref<1x2x128x128xbf16, #tpu.memory_space<vmem>>, vector<1x1x128x128xbf16>
    %352 = vector.shape_cast %351 : vector<1x1x128x128xbf16> to vector<128x128xbf16>
    %cst_166 = arith.constant dense<0.000000e+00> : vector<16x128xf32>
    %353 = tpu.matmul %350, %352, %cst_166 {dimension_numbers = #tpu.dot_dimension_numbers<[1], [0], [0], [1], [0, 0, 1, 1], [], []>} : vector<16x128xbf16>, vector<128x128xbf16>, vector<16x128xf32> -> vector<16x128xf32>
    %c0_167 = arith.constant 0 : index
    %c1_168 = arith.constant 1 : index
    %c0_169 = arith.constant 0 : index
    %c0_170 = arith.constant 0 : index
    %354 = vector.load %arg17[%c0_167, %c1_168, %c0_169, %c0_170] : memref<1x2x1x128xf32, #tpu.memory_space<vmem>>, vector<1x1x1x128xf32>
    %355 = vector.shape_cast %354 : vector<1x1x1x128xf32> to vector<1x128xf32>
    %356 = vector.broadcast %355 : vector<1x128xf32> to vector<16x128xf32>
    %357 = arith.addf %353, %356 : vector<16x128xf32>
    %358 = arith.addf %239, %357 : vector<16x128xf32>
    %cst_171 = arith.constant dense<0.000000e+00> : vector<16xf32>
    %359 = vector.multi_reduction <add>, %358, %cst_171 [1] : vector<16x128xf32> to vector<16xf32>
    %360 = vector.shape_cast %359 : vector<16xf32> to vector<16x1xf32>
    %cst_172 = arith.constant 1.280000e+02 : f32
    %361 = vector.broadcast %cst_172 : f32 to vector<16x1xf32>
    %362 = arith.divf %360, %361 : vector<16x1xf32>
    %363 = vector.broadcast %362 : vector<16x1xf32> to vector<16x128xf32>
    %364 = arith.subf %358, %363 : vector<16x128xf32>
    %365 = arith.mulf %364, %364 : vector<16x128xf32>
    %cst_173 = arith.constant dense<0.000000e+00> : vector<16xf32>
    %366 = vector.multi_reduction <add>, %365, %cst_173 [1] : vector<16x128xf32> to vector<16xf32>
    %367 = vector.shape_cast %366 : vector<16xf32> to vector<16x1xf32>
    %cst_174 = arith.constant 1.280000e+02 : f32
    %368 = vector.broadcast %cst_174 : f32 to vector<16x1xf32>
    %369 = arith.divf %367, %368 : vector<16x1xf32>
    %370 = vector.broadcast %362 : vector<16x1xf32> to vector<16x128xf32>
    %371 = arith.subf %358, %370 : vector<16x128xf32>
    %cst_175 = arith.constant 9.99999974E-6 : f32
    %372 = vector.broadcast %cst_175 : f32 to vector<16x1xf32>
    %373 = arith.addf %369, %372 : vector<16x1xf32>
    %374 = math.rsqrt %373 : vector<16x1xf32>
    %375 = vector.broadcast %374 : vector<16x1xf32> to vector<16x128xf32>
    %376 = arith.mulf %371, %375 : vector<16x128xf32>
    %c0_176 = arith.constant 0 : index
    %c1_177 = arith.constant 1 : index
    %c0_178 = arith.constant 0 : index
    %c0_179 = arith.constant 0 : index
    %377 = vector.load %arg22[%c0_176, %c1_177, %c0_178, %c0_179] : memref<1x2x1x128xf32, #tpu.memory_space<vmem>>, vector<1x1x1x128xf32>
    %378 = vector.shape_cast %377 : vector<1x1x1x128xf32> to vector<1x128xf32>
    %379 = vector.broadcast %378 : vector<1x128xf32> to vector<16x128xf32>
    %380 = arith.mulf %376, %379 : vector<16x128xf32>
    %c0_180 = arith.constant 0 : index
    %c1_181 = arith.constant 1 : index
    %c0_182 = arith.constant 0 : index
    %c0_183 = arith.constant 0 : index
    %381 = vector.load %arg23[%c0_180, %c1_181, %c0_182, %c0_183] : memref<1x2x1x128xf32, #tpu.memory_space<vmem>>, vector<1x1x1x128xf32>
    %382 = vector.shape_cast %381 : vector<1x1x1x128xf32> to vector<1x128xf32>
    %383 = vector.broadcast %382 : vector<1x128xf32> to vector<16x128xf32>
    %384 = arith.addf %380, %383 : vector<16x128xf32>
    %c0_184 = arith.constant 0 : index
    %c1_185 = arith.constant 1 : index
    %c0_186 = arith.constant 0 : index
    %c0_187 = arith.constant 0 : index
    %385 = vector.load %arg18[%c0_184, %c1_185, %c0_186, %c0_187] : memref<1x2x128x256xbf16, #tpu.memory_space<vmem>>, vector<1x1x128x256xbf16>
    %386 = vector.shape_cast %385 : vector<1x1x128x256xbf16> to vector<128x256xbf16>
    %387 = arith.truncf %384 : vector<16x128xf32> to vector<16x128xbf16>
    %cst_188 = arith.constant dense<0.000000e+00> : vector<16x256xf32>
    %388 = tpu.matmul %387, %386, %cst_188 {dimension_numbers = #tpu.dot_dimension_numbers<[1], [0], [0], [1], [0, 0, 1, 1], [], []>} : vector<16x128xbf16>, vector<128x256xbf16>, vector<16x256xf32> -> vector<16x256xf32>
    %c0_189 = arith.constant 0 : index
    %c1_190 = arith.constant 1 : index
    %c0_191 = arith.constant 0 : index
    %c0_192 = arith.constant 0 : index
    %389 = vector.load %arg19[%c0_189, %c1_190, %c0_191, %c0_192] : memref<1x2x1x256xf32, #tpu.memory_space<vmem>>, vector<1x1x1x256xf32>
    %390 = vector.shape_cast %389 : vector<1x1x1x256xf32> to vector<1x256xf32>
    %391 = vector.broadcast %390 : vector<1x256xf32> to vector<16x256xf32>
    %392 = arith.addf %388, %391 : vector<16x256xf32>
    %cst_193 = arith.constant 0.000000e+00 : f32
    %393 = vector.broadcast %cst_193 : f32 to vector<16x256xf32>
    %394 = arith.maximumf %392, %393 : vector<16x256xf32>
    %c0_194 = arith.constant 0 : index
    %c1_195 = arith.constant 1 : index
    %c0_196 = arith.constant 0 : index
    %c0_197 = arith.constant 0 : index
    %395 = vector.load %arg20[%c0_194, %c1_195, %c0_196, %c0_197] : memref<1x2x256x128xbf16, #tpu.memory_space<vmem>>, vector<1x1x256x128xbf16>
    %396 = vector.shape_cast %395 : vector<1x1x256x128xbf16> to vector<256x128xbf16>
    %397 = arith.truncf %394 : vector<16x256xf32> to vector<16x256xbf16>
    %cst_198 = arith.constant dense<0.000000e+00> : vector<16x128xf32>
    %398 = tpu.matmul %397, %396, %cst_198 {dimension_numbers = #tpu.dot_dimension_numbers<[1], [0], [0], [1], [0, 0, 1, 1], [], []>} : vector<16x256xbf16>, vector<256x128xbf16>, vector<16x128xf32> -> vector<16x128xf32>
    %c0_199 = arith.constant 0 : index
    %c1_200 = arith.constant 1 : index
    %c0_201 = arith.constant 0 : index
    %c0_202 = arith.constant 0 : index
    %399 = vector.load %arg21[%c0_199, %c1_200, %c0_201, %c0_202] : memref<1x2x1x128xf32, #tpu.memory_space<vmem>>, vector<1x1x1x128xf32>
    %400 = vector.shape_cast %399 : vector<1x1x1x128xf32> to vector<1x128xf32>
    %401 = vector.broadcast %400 : vector<1x128xf32> to vector<16x128xf32>
    %402 = arith.addf %398, %401 : vector<16x128xf32>
    %403 = arith.addf %384, %402 : vector<16x128xf32>
    %cst_203 = arith.constant dense<0.000000e+00> : vector<16xf32>
    %404 = vector.multi_reduction <add>, %403, %cst_203 [1] : vector<16x128xf32> to vector<16xf32>
    %405 = vector.shape_cast %404 : vector<16xf32> to vector<16x1xf32>
    %cst_204 = arith.constant 1.280000e+02 : f32
    %406 = vector.broadcast %cst_204 : f32 to vector<16x1xf32>
    %407 = arith.divf %405, %406 : vector<16x1xf32>
    %408 = vector.broadcast %407 : vector<16x1xf32> to vector<16x128xf32>
    %409 = arith.subf %403, %408 : vector<16x128xf32>
    %410 = arith.mulf %409, %409 : vector<16x128xf32>
    %cst_205 = arith.constant dense<0.000000e+00> : vector<16xf32>
    %411 = vector.multi_reduction <add>, %410, %cst_205 [1] : vector<16x128xf32> to vector<16xf32>
    %412 = vector.shape_cast %411 : vector<16xf32> to vector<16x1xf32>
    %cst_206 = arith.constant 1.280000e+02 : f32
    %413 = vector.broadcast %cst_206 : f32 to vector<16x1xf32>
    %414 = arith.divf %412, %413 : vector<16x1xf32>
    %415 = vector.broadcast %407 : vector<16x1xf32> to vector<16x128xf32>
    %416 = arith.subf %403, %415 : vector<16x128xf32>
    %cst_207 = arith.constant 9.99999974E-6 : f32
    %417 = vector.broadcast %cst_207 : f32 to vector<16x1xf32>
    %418 = arith.addf %414, %417 : vector<16x1xf32>
    %419 = math.rsqrt %418 : vector<16x1xf32>
    %420 = vector.broadcast %419 : vector<16x1xf32> to vector<16x128xf32>
    %421 = arith.mulf %416, %420 : vector<16x128xf32>
    %c0_208 = arith.constant 0 : index
    %c1_209 = arith.constant 1 : index
    %c0_210 = arith.constant 0 : index
    %c0_211 = arith.constant 0 : index
    %422 = vector.load %arg24[%c0_208, %c1_209, %c0_210, %c0_211] : memref<1x2x1x128xf32, #tpu.memory_space<vmem>>, vector<1x1x1x128xf32>
    %423 = vector.shape_cast %422 : vector<1x1x1x128xf32> to vector<1x128xf32>
    %424 = vector.broadcast %423 : vector<1x128xf32> to vector<16x128xf32>
    %425 = arith.mulf %421, %424 : vector<16x128xf32>
    %c0_212 = arith.constant 0 : index
    %c1_213 = arith.constant 1 : index
    %c0_214 = arith.constant 0 : index
    %c0_215 = arith.constant 0 : index
    %426 = vector.load %arg25[%c0_212, %c1_213, %c0_214, %c0_215] : memref<1x2x1x128xf32, #tpu.memory_space<vmem>>, vector<1x1x1x128xf32>
    %427 = vector.shape_cast %426 : vector<1x1x1x128xf32> to vector<1x128xf32>
    %428 = vector.broadcast %427 : vector<1x128xf32> to vector<16x128xf32>
    %429 = arith.addf %425, %428 : vector<16x128xf32>
    %430 = vector.shape_cast %429 : vector<16x128xf32> to vector<2x8x128xf32>
    %431 = vector.extract_strided_slice %430 {offsets = [0, 0, 0], sizes = [2, 1, 128], strides = [1, 1, 1]} : vector<2x8x128xf32> to vector<2x1x128xf32>
    %432 = vector.shape_cast %431 : vector<2x1x128xf32> to vector<2x128xf32>
    %c0_216 = arith.constant 0 : index
    %c0_217 = arith.constant 0 : index
    %c0_218 = arith.constant 0 : index
    %433 = vector.load %arg26[%c0_216, %c0_217, %c0_218] : memref<1x2x128xf32, #tpu.memory_space<vmem>>, vector<1x2x128xf32>
    %434 = vector.shape_cast %433 : vector<1x2x128xf32> to vector<2x128xf32>
    %435 = vector.shape_cast %432 : vector<2x128xf32> to vector<1x2x128xf32>
    tpu.vector_store %arg26[%c0_216, %c0_217, %c0_218], %435 {strides = array<i32>} : memref<1x2x128xf32, #tpu.memory_space<vmem>>, vector<1x2x128xf32>,
    return
  }
  func.func @transform_0(%arg0: i32, %arg1: i32) -> (i32, i32, i32, i32) {
    %c0_i32 = arith.constant 0 : i32
    %c0_i32_0 = arith.constant 0 : i32
    %c0_i32_1 = arith.constant 0 : i32
    return %arg0, %arg1, %c0_i32, %c0_i32_0 : i32, i32, i32, i32
  }
  func.func @transform_1(%arg0: i32, %arg1: i32) -> (i32, i32, i32) {
    %c0_i32 = arith.constant 0 : i32
    %c0_i32_0 = arith.constant 0 : i32
    return %arg0, %arg1, %c0_i32 : i32, i32, i32
  }
  func.func @transform_2(%arg0: i32, %arg1: i32) -> (i32, i32, i32) {
    %c0_i32 = arith.constant 0 : i32
    %c0_i32_0 = arith.constant 0 : i32
    %c0_i32_1 = arith.constant 0 : i32
    return %arg0, %c0_i32, %c0_i32_0 : i32, i32, i32
  }
  func.func @transform_3(%arg0: i32, %arg1: i32) -> (i32, i32, i32) {
    %c0_i32 = arith.constant 0 : i32
    %c0_i32_0 = arith.constant 0 : i32
    %c0_i32_1 = arith.constant 0 : i32
    return %arg0, %c0_i32, %c0_i32_0 : i32, i32, i32
  }
  func.func @transform_4(%arg0: i32, %arg1: i32) -> (i32, i32, i32) {
    %c0_i32 = arith.constant 0 : i32
    %c0_i32_0 = arith.constant 0 : i32
    %c0_i32_1 = arith.constant 0 : i32
    return %arg0, %c0_i32, %c0_i32_0 : i32, i32, i32
  }
  func.func @transform_5(%arg0: i32, %arg1: i32) -> (i32, i32, i32) {
    %c0_i32 = arith.constant 0 : i32
    %c0_i32_0 = arith.constant 0 : i32
    %c0_i32_1 = arith.constant 0 : i32
    return %arg0, %c0_i32, %c0_i32_0 : i32, i32, i32
  }
  func.func @transform_6(%arg0: i32, %arg1: i32) -> (i32, i32, i32) {
    %c0_i32 = arith.constant 0 : i32
    %c0_i32_0 = arith.constant 0 : i32
    %c0_i32_1 = arith.constant 0 : i32
    return %arg0, %c0_i32, %c0_i32_0 : i32, i32, i32
  }
  func.func @transform_7(%arg0: i32, %arg1: i32) -> (i32, i32, i32) {
    %c0_i32 = arith.constant 0 : i32
    %c0_i32_0 = arith.constant 0 : i32
    %c0_i32_1 = arith.constant 0 : i32
    return %arg0, %c0_i32, %c0_i32_0 : i32, i32, i32
  }
  func.func @transform_8(%arg0: i32, %arg1: i32) -> (i32, i32, i32) {
    %c0_i32 = arith.constant 0 : i32
    %c0_i32_0 = arith.constant 0 : i32
    %c0_i32_1 = arith.constant 0 : i32
    return %arg0, %c0_i32, %c0_i32_0 : i32, i32, i32
  }
  func.func @transform_9(%arg0: i32, %arg1: i32) -> (i32, i32, i32) {
    %c0_i32 = arith.constant 0 : i32
    %c0_i32_0 = arith.constant 0 : i32
    %c0_i32_1 = arith.constant 0 : i32
    return %arg0, %c0_i32, %c0_i32_0 : i32, i32, i32
  }
  func.func @transform_10(%arg0: i32, %arg1: i32) -> (i32, i32, i32) {
    %c0_i32 = arith.constant 0 : i32
    %c0_i32_0 = arith.constant 0 : i32
    %c0_i32_1 = arith.constant 0 : i32
    return %arg0, %c0_i32, %c0_i32_0 : i32, i32, i32
  }
  func.func @transform_11(%arg0: i32, %arg1: i32) -> (i32, i32, i32) {
    %c0_i32 = arith.constant 0 : i32
    %c0_i32_0 = arith.constant 0 : i32
    %c0_i32_1 = arith.constant 0 : i32
    return %arg0, %c0_i32, %c0_i32_0 : i32, i32, i32
  }
  func.func @transform_12(%arg0: i32, %arg1: i32) -> (i32, i32, i32, i32) {
    %c0_i32 = arith.constant 0 : i32
    %c0_i32_0 = arith.constant 0 : i32
    %c0_i32_1 = arith.constant 0 : i32
    %c0_i32_2 = arith.constant 0 : i32
    return %arg0, %c0_i32, %c0_i32_0, %c0_i32_1 : i32, i32, i32, i32
  }
  func.func @transform_13(%arg0: i32, %arg1: i32) -> (i32, i32, i32, i32) {
    %c0_i32 = arith.constant 0 : i32
    %c0_i32_0 = arith.constant 0 : i32
    %c0_i32_1 = arith.constant 0 : i32
    %c0_i32_2 = arith.constant 0 : i32
    return %arg0, %c0_i32, %c0_i32_0, %c0_i32_1 : i32, i32, i32, i32
  }
  func.func @transform_14(%arg0: i32, %arg1: i32) -> (i32, i32, i32, i32) {
    %c0_i32 = arith.constant 0 : i32
    %c0_i32_0 = arith.constant 0 : i32
    %c0_i32_1 = arith.constant 0 : i32
    %c0_i32_2 = arith.constant 0 : i32
    return %arg0, %c0_i32, %c0_i32_0, %c0_i32_1 : i32, i32, i32, i32
  }
  func.func @transform_15(%arg0: i32, %arg1: i32) -> (i32, i32, i32, i32) {
    %c0_i32 = arith.constant 0 : i32
    %c0_i32_0 = arith.constant 0 : i32
    %c0_i32_1 = arith.constant 0 : i32
    %c0_i32_2 = arith.constant 0 : i32
    return %arg0, %c0_i32, %c0_i32_0, %c0_i32_1 : i32, i32, i32, i32
  }
  func.func @transform_16(%arg0: i32, %arg1: i32) -> (i32, i32, i32, i32) {
    %c0_i32 = arith.constant 0 : i32
    %c0_i32_0 = arith.constant 0 : i32
    %c0_i32_1 = arith.constant 0 : i32
    %c0_i32_2 = arith.constant 0 : i32
    return %arg0, %c0_i32, %c0_i32_0, %c0_i32_1 : i32, i32, i32, i32
  }
  func.func @transform_17(%arg0: i32, %arg1: i32) -> (i32, i32, i32, i32) {
    %c0_i32 = arith.constant 0 : i32
    %c0_i32_0 = arith.constant 0 : i32
    %c0_i32_1 = arith.constant 0 : i32
    %c0_i32_2 = arith.constant 0 : i32
    return %arg0, %c0_i32, %c0_i32_0, %c0_i32_1 : i32, i32, i32, i32
  }
  func.func @transform_18(%arg0: i32, %arg1: i32) -> (i32, i32, i32, i32) {
    %c0_i32 = arith.constant 0 : i32
    %c0_i32_0 = arith.constant 0 : i32
    %c0_i32_1 = arith.constant 0 : i32
    %c0_i32_2 = arith.constant 0 : i32
    return %arg0, %c0_i32, %c0_i32_0, %c0_i32_1 : i32, i32, i32, i32
  }
  func.func @transform_19(%arg0: i32, %arg1: i32) -> (i32, i32, i32, i32) {
    %c0_i32 = arith.constant 0 : i32
    %c0_i32_0 = arith.constant 0 : i32
    %c0_i32_1 = arith.constant 0 : i32
    %c0_i32_2 = arith.constant 0 : i32
    return %arg0, %c0_i32, %c0_i32_0, %c0_i32_1 : i32, i32, i32, i32
  }
  func.func @transform_20(%arg0: i32, %arg1: i32) -> (i32, i32, i32, i32) {
    %c0_i32 = arith.constant 0 : i32
    %c0_i32_0 = arith.constant 0 : i32
    %c0_i32_1 = arith.constant 0 : i32
    %c0_i32_2 = arith.constant 0 : i32
    return %arg0, %c0_i32, %c0_i32_0, %c0_i32_1 : i32, i32, i32, i32
  }
  func.func @transform_21(%arg0: i32, %arg1: i32) -> (i32, i32, i32, i32) {
    %c0_i32 = arith.constant 0 : i32
    %c0_i32_0 = arith.constant 0 : i32
    %c0_i32_1 = arith.constant 0 : i32
    %c0_i32_2 = arith.constant 0 : i32
    return %arg0, %c0_i32, %c0_i32_0, %c0_i32_1 : i32, i32, i32, i32
  }
  func.func @transform_22(%arg0: i32, %arg1: i32) -> (i32, i32, i32, i32) {
    %c0_i32 = arith.constant 0 : i32
    %c0_i32_0 = arith.constant 0 : i32
    %c0_i32_1 = arith.constant 0 : i32
    %c0_i32_2 = arith.constant 0 : i32
    return %arg0, %c0_i32, %c0_i32_0, %c0_i32_1 : i32, i32, i32, i32
  }
  func.func @transform_23(%arg0: i32, %arg1: i32) -> (i32, i32, i32, i32) {
    %c0_i32 = arith.constant 0 : i32
    %c0_i32_0 = arith.constant 0 : i32
    %c0_i32_1 = arith.constant 0 : i32
    %c0_i32_2 = arith.constant 0 : i32
    return %arg0, %c0_i32, %c0_i32_0, %c0_i32_1 : i32, i32, i32, i32
  }
  func.func @transform_24(%arg0: i32, %arg1: i32) -> (i32, i32, i32) {
    %c0_i32 = arith.constant 0 : i32
    %c0_i32_0 = arith.constant 0 : i32
    return %arg0, %arg1, %c0_i32 : i32, i32, i32
  }
}

</mosaic_0001>

<bundles_post_ra>
// kernel: tpu_custom_call.1
= control target key start
LH: loop header
LB: loop body
LE: loop exit
PB: predicated region body
PF: predicated region fallthrough
CT: control target
= control target key end

     0   :  { %s11690_s0 = inlined_call_operand.hbm [shape: f32[2,2,8,480], index: 0, kind: input, shape index: {}]   ;;  %s11691_s1 = inlined_call_operand.vmem [shape: f32[2,2,8], index: 1, kind: input, shape index: {}]   ;;  %s11692_s2 = inlined_call_operand.vmem [shape: bf16[2,480,640], index: 2, kind: input, shape index: {}]   ;;  %s11693_s3 = inlined_call_operand.vmem [shape: f32[2,1,640], index: 3, kind: input, shape index: {}]   ;;  %s11694_s4 = inlined_call_operand.vmem [shape: bf16[2,640,320], index: 4, kind: input, shape index: {}]   ;;  %s11695_s5 = inlined_call_operand.vmem [shape: f32[2,1,320], index: 5, kind: input, shape index: {}]   ;;  %s11696_s6 = inlined_call_operand.hbm [shape: bf16[2,320,128], index: 6, kind: input, shape index: {}]   ;;  %s11697_s7 = inlined_call_operand.hbm [shape: f32[2,1,128], index: 7, kind: input, shape index: {}]   ;;  %s11698_s8 = inlined_call_operand.vmem [shape: bf16[2,128,64], index: 8, kind: input, shape index: {}]   ;;  %s11699_s9 = inlined_call_operand.hbm [shape: f32[2,1,64], index: 9, kind: input, shape index: {}]   ;;  %s11700_s10 = inlined_call_operand.hbm [shape: bf16[2,64,128], index: 10, kind: input, shape index: {}]   ;;  %s11701_s11 = inlined_call_operand.hbm [shape: f32[2,1,128], index: 11, kind: input, shape index: {}]   ;;  %s11702_s12 = inlined_call_operand.vmem [shape: bf16[2,2,128,384], index: 12, kind: input, shape index: {}]   ;;  %s11703_s13 = inlined_call_operand.vmem [shape: f32[2,2,1,384], index: 13, kind: input, shape index: {}]   ;;  %s11704_s14 = inlined_call_operand.hbm [shape: bf16[2,2,128,128], index: 14, kind: input, shape index: {}]   ;;  %s11705_s15 = inlined_call_operand.vmem [shape: f32[2,2,1,128], index: 15, kind: input, shape index: {}]   ;;  %s11706_s16 = inlined_call_operand.vmem [shape: bf16[2,2,128,256], index: 16, kind: input, shape index: {}]   ;;  %s11707_s17 = inlined_call_operand.vmem [shape: f32[2,2,1,256], index: 17, kind: input, shape index: {}]   ;;  %s11708_s18 = inlined_call_operand.hbm [shape: bf16[2,2,256,128], index: 18, kind: input, shape index: {}]   ;;  %s11709_s19 = inlined_call_operand.vmem [shape: f32[2,2,1,128], index: 19, kind: input, shape index: {}]   ;;  %s11710_s20 = inlined_call_operand.hbm [shape: f32[2,2,1,128], index: 20, kind: input, shape index: {}]   ;;  %s11711_s21 = inlined_call_operand.vmem [shape: f32[2,2,1,128], index: 21, kind: input, shape index: {}]   ;;  %s11712_s22 = inlined_call_operand.hbm [shape: f32[2,2,1,128], index: 22, kind: input, shape index: {}]   ;;  %s11713_s23 = inlined_call_operand.hbm [shape: f32[2,2,1,128], index: 23, kind: input, shape index: {}]   ;;  %s11714_s24 = inlined_call_operand.hbm [shape: f32[2,2,128], index: 24, kind: output, shape index: {}]  }
   0x1   :  { %11739 = sst [smem:[#allocation39_spill]] %s11690_s0 }
   0x2   :  { %11740 = sst [smem:[#allocation40_spill]] %s11691_s1 }
   0x3   :  { %11741 = sst [smem:[#allocation41_spill]] %s11692_s2 }
   0x4   :  { %11742 = sst [smem:[#allocation42_spill]] %s11693_s3 }
   0x5   :  { %11743 = sst [smem:[#allocation43_spill]] %s11694_s4 }
   0x6   :  { %11744 = sst [smem:[#allocation44_spill]] %s11695_s5 }
   0x7   :  { %11745 = sst [smem:[#allocation45_spill]] %s11696_s6 }
   0x8   :  { %11746 = sst [smem:[#allocation46_spill]] %s11697_s7 }
   0x9   :  { %11747 = sst [smem:[#allocation47_spill]] %s11698_s8 }
   0xa   :  { %11748 = sst [smem:[#allocation48_spill]] %s11699_s9 }
   0xb   :  { %11749 = sst [smem:[#allocation49_spill]] %s11701_s11 }
   0xc   :  { %11750 = sst [smem:[#allocation50_spill]] %s11702_s12 }
   0xd   :  { %11751 = sst [smem:[#allocation51_spill]] %s11703_s13 }
   0xe   :  { %11752 = sst [smem:[#allocation52_spill]] %s11705_s15 }
   0xf   :  { %11753 = sst [smem:[#allocation53_spill]] %s11706_s16 }
  0x10   :  { %11754 = sst [smem:[#allocation54_spill]] %s11707_s17 }
  0x11   :  { %11755 = sst [smem:[#allocation55_spill]] %s11708_s18 }
  0x12   :  { %11756 = sst [smem:[#allocation56_spill]] %s11709_s19 }
  0x13   :  { %11757 = sst [smem:[#allocation57_spill]] %s11711_s21 }
  0x14   :  { %11758 = sst [smem:[#allocation58_spill]] %s11712_s22 }
  0x15   :  { %11759 = sst [smem:[#allocation59_spill]] %s11714_s24 }
  0x16   :  { %29 = vsyncpa [#allocation4], 0 }
  0x17   :  { %31 = vsyncpa [#allocation4 + $0x1], 0 }
  0x18   :  { %32 = vsyncpa [#allocation7], 0 }
  0x19   :  { %34 = vsyncpa [#allocation7 + $0x1], 0 }
  0x1a   :  { %35 = vsyncpa [#allocation10], 0 }
  0x1b   :  { %37 = vsyncpa [#allocation10 + $0x1], 0 }
  0x1c   :  { %38 = vsyncpa [#allocation13], 0 }
  0x1d   :  { %40 = vsyncpa [#allocation13 + $0x1], 0 }
  0x1e   :  { %41 = vsyncpa [#allocation16], 0 }
  0x1f   :  { %43 = vsyncpa [#allocation16 + $0x1], 0 }
  0x20   :  { %44 = vsyncpa [#allocation19], 0 }
  0x21   :  { %46 = vsyncpa [#allocation19 + $0x1], 0 }
  0x22   :  { %47 = vsyncpa [#allocation5], 0 }
  0x23   :  { %49 = vsyncpa [#allocation5 + $0x1], 0  ;;  %s10127_s5 = smov 0   ;;  %s10129_s26 = smov 0  }
  0x24   :  { %s10131_s27 = smov 0   ;;  %s10133_s28 = smov 0  }
  0x25   :  { %s10135_s6 = smov 0   ;;  %s10137_s2 = smov 0  }
  0x26 LB: > { %11760 = sst [smem:[#allocation29_spill]] %s9970_s5  ;;  %s10158_s29 = sadd.s32 4294967295, %s9990_s2   ;;  %s9990_s2 = sphi %s10137_s2, %s55_s2   ;;  %s9986_s6 = sphi %s10135_s6, %s11819_s6   ;;  %s9982_s28 = sphi %s10133_s28, %s11818_s28   ;;  %s9978_s27 = sphi %s10131_s27, %s11814_s27   ;;  %s9974_s26 = sphi %s10129_s26, %s11817_s26   ;;  %s9970_s5 = sphi %s10127_s5, %s11816_s5  }
  0x27   : > { %11761 = sst [smem:[#allocation30_spill]] %s9978_s27  ;;  %s6974_s0 = sadd.s32 4294967294, %s9990_s2  }
  0x28   : > { %11762 = sst [smem:[#allocation31_spill]] %s9982_s28  ;;  %s67_s7 = sadd.s32 1, %s9986_s6 }
  0x29   : > { %11763 = sst [smem:[#allocation32_spill]] %s9990_s2  ;;  %s76_s30 = sadd.s32 1, %s9978_s27 }
  0x2a   : > { %11764 = sst [smem:[#allocation33_spill]] %s10158_s29  ;;  %p69_p0 = scmp.ge.s32.totalorder %s67_s7, 2 }
  0x2b   : > { %p83_p1 = scmp.ne.s32.totalorder %s9978_s27, %s9974_s26  ;;  %p84_p2 = scmp.eq.s32.totalorder %s9990_s2, 0 }
  0x2c   : > { %p89_p3 = scmp.ne.s32.totalorder %s9974_s26, %s9970_s5  ;;  %s11821_s7 = smov (%p69_p0, %s67_s7), 0 }
  0x2d   : > { %11765 = sst [smem:[#allocation34_spill]] %s11821_s7  ;;  %p10170_p4 = por %p84_p2, %p83_p1 }
  0x2e   : > { %p90_p5 = scmp.eq.s32.totalorder %s10158_s29, 0  ;;  %s71_s25 = ssub.s32 %s9986_s6, %s11821_s7 }
  0x2f   : > { %p715_p6 = scmp.eq.s32.totalorder %s10158_s29, 1  ;;  %p74_p7 = scmp.eq.s32.totalorder %s71_s25, 0 }
  0x30   : > { %p10178_p8 = por %p90_p5, %p89_p3  ;;  %p721_p10 = scmp.eq.s32.totalorder %s6974_s0, 1 }
  0x31   : > { %p10182_p9 = por %p715_p6, %p83_p1  ;;  %p6976_p12 = scmp.ge.s32.totalorder %s9990_s2, 2 }
  0x32   : > { %s11767_s8 = scalar_select %p10178_p8, 1, 0 }
  0x33   : > { %s11769_s4 = scalar_select %p10182_p9, 1, 0 }
  0x34   : > { %11768 = sst [smem:[#allocation35_spill]] %s11767_s8  ;;  %p10189_p11 = por %p721_p10, %p89_p3 }
  0x35   : > { %11770 = sst [smem:[#allocation36_spill]] %s11769_s4  ;;  %p9401_p13 = scmp.lt.s32.totalorder %s9990_s2, 2 }
  0x36   : > { %s10187_s1 = scalar_select %p74_p7, %s9978_s27, %s76_s30  }
  0x37   : > { %s11772_s5 = scalar_select %p10189_p11, 1, 0 }
  0x38   : > { %11771 = sst [smem:[#allocation37_spill]] %s10187_s1  ;;  %s10196_s7 = sand.u32 1, %s9978_s27  }
  0x39   : > { %11773 = sst [smem:[#allocation38_spill]] %s11772_s5  ;;  %s10199_s25 = sand.u32 1, %s9990_s2  }
  0x3a   : > { %s9330_s24 = smul.u32 160, %s10196_s7  ;;  %p10204_p0 = pnand %p9401_p13, %p10170_p4 }
  0x3b   : > { %s9331_s30 = smul.u32 160, %s9986_s6  ;;  %s11775_s17 = sld [smem:[#allocation45_spill]] }
  0x3c   : > { %s810_s1 = scalar_lea.vmem [#allocation6], %s9330_s24  ;;  %s11722_s3 = scalar_lea.sflag [#allocation7], %s10199_s25 }
  0x3d   : > { %s818_s5 = sshll.u32 %s810_s1, 4  ;;  %s11723_s21 = smov 64   ;;  %s819_s5 = int_to_ptr.vmem [resolvable:$true] %s818_s5 }
  0x3e   : > { %s11725_s15 = smov 4   ;;  %p6996_p1 = scmp.ge.s32.totalorder %s9990_s2, 1 }
  0x3f   : > { %p1065_p2 = scmp.lt.s32.totalorder %s9990_s2, 3  ;;  %s11777_s9 = sld [smem:[#allocation48_spill]] }
  0x40   : > { %s856_s1 = scalar_lea.vmem [#allocation9], %s10196_s7  ;;  %s11778_s11 = sld [smem:[#allocation49_spill]] }
  0x41   : > { %s815_s19 = scalar_lea.hbm %s11775_s17, %s9331_s30  ;;  %p10222_p3 = pnand %p6996_p1, %p1065_p2 }
  0x42   : > { %s816_s16 = sshll.u32 %s815_s19, 4  ;;  %s863_s30 = sshll.u32 %s856_s1, 4  ;;  %s817_s16 = int_to_ptr.hbm [resolvable:$true] %s816_s16  ;;  %s864_s30 = int_to_ptr.vmem [resolvable:$true] %s863_s30 }
  0x43   : > { %9369 = dma.hbm_to_vmem [thread:$0]  (!%p10204_p0), %s817_s16, 2560, %s819_s5, %s11722_s3, %s11723_s21, %s11723_s21, %s11725_s15  }
  0x44   : > { %s11727_s16 = scalar_lea.sflag [#allocation10], %s10199_s25  ;;  %s895_s19 = scalar_lea.vmem [#allocation12], %s10196_s7 }
  0x45   : > { %s859_s27 = scalar_lea.hbm %s11777_s9, %s9986_s6  ;;  %s902_s24 = sshll.u32 %s895_s19, 4  ;;  %s903_s24 = int_to_ptr.vmem [resolvable:$true] %s902_s24 }
  0x46   : > { %s861_s4 = sshll.u32 %s859_s27, 4  ;;  %s898_s21 = scalar_lea.hbm %s11778_s11, %s9986_s6  ;;  %s862_s4 = int_to_ptr.hbm [resolvable:$true] %s861_s4 }
  0x47   : > { %9375 = dma.hbm_to_vmem [thread:$0]  (!%p10204_p0), %s862_s4, 16, %s864_s30, %s11727_s16  }
  0x48   : > { %s900_s27 = sshll.u32 %s898_s21, 4  ;;  %s11728_s1 = scalar_lea.sflag [#allocation13], %s10199_s25  ;;  %s901_s27 = int_to_ptr.hbm [resolvable:$true] %s900_s27 }
  0x49   : > { %9381 = dma.hbm_to_vmem [thread:$0]  (!%p10204_p0), %s901_s27, 16, %s903_s24, %s11728_s1  }
  0x4a   : > { %s6987_s15 = sshll.u32 %s10196_s7, 8  ;;  %s8895_s4 = sshll.u32 %s9986_s6, 8 }
  0x4b   : > { %s11779_s18 = sld [smem:[#allocation55_spill]]  ;;  %s972_s9 = scalar_lea.vmem [#allocation15], %s6987_s15 }
  0x4c   : > { %s980_s11 = sshll.u32 %s972_s9, 4  ;;  %s11729_s21 = scalar_lea.sflag [#allocation16], %s10199_s25  ;;  %s981_s11 = int_to_ptr.vmem [resolvable:$true] %s980_s11 }
  0x4d   : > { %s11780_s19 = smov 4   ;;  %s11781_s24 = smov 64  }
  0x4e   : > { %s10260_s27 = sshll.u32 %s10196_s7, 1  ;;  %s10263_s16 = sshll.u32 %s9986_s6, 1 }
  0x4f   : > { %s11782_s22 = sld [smem:[#allocation58_spill]]  ;;  %s1029_s30 = scalar_lea.vmem [#allocation18], %s10260_s27 }
  0x50   : > { %s6977_s9 = sshll.u32 %s10196_s7, 6  ;;  %s8892_s15 = sshll.u32 %s9986_s6, 6 }
  0x51   : > { %s977_s3 = scalar_lea.hbm %s11779_s18, %s8895_s4  ;;  %s11736_s18 = scalar_lea.sflag [#allocation19], %s10199_s25 }
  0x52   : > { %s978_s5 = sshll.u32 %s977_s3, 4  ;;  %s1036_s3 = sshll.u32 %s1029_s30, 4  ;;  %s979_s5 = int_to_ptr.hbm [resolvable:$true] %s978_s5  ;;  %s1037_s3 = int_to_ptr.vmem [resolvable:$true] %s1036_s3 }
  0x53   : > { %9387 = dma.hbm_to_vmem [thread:$0]  (!%p10204_p0), %s979_s5, 4096, %s981_s11, %s11729_s21, %s11781_s24, %s11781_s24, %s11780_s19  }
  0x54   : > { %s11737_s11 = smov 16   ;;  %s9995_s5 = smov 1  }
  0x55   : > { %s1033_s4 = scalar_lea.hbm %s11782_s22, %s10263_s16  ;;  %s11783_s22 = sld [smem:[#allocation39_spill]] }
  0x56   : > { %s1034_s1 = sshll.u32 %s1033_s4, 4  ;;  %s745_s13 = scalar_lea.vmem [#allocation3], %s6977_s9  ;;  %s1035_s1 = int_to_ptr.hbm [resolvable:$true] %s1034_s1 }
  0x57   : > { %9393 = dma.hbm_to_vmem [thread:$0]  (!%p10204_p0), %s1035_s1, 32, %s1037_s3, %s11736_s18, %s11737_s11, %s11737_s11, %s9995_s5  }
  0x58   : > { %s756_s12 = sshll.u32 %s745_s13, 4  ;;  %s742_s28 = scalar_lea.sflag [#allocation4], %s10196_s7  ;;  %s757_s12 = int_to_ptr.vmem [resolvable:$true] %s756_s12 }
  0x59   : > { %s9996_s29 = smov 512   ;;  %s9997_s8 = smov 32  }
  0x5a   : > { %s11784_s18 = sld [smem:[#allocation46_spill]]  ;;  %s11785_s13 = scalar_lea.sflag [#allocation7], %s10199_s25 }
  0x5b   : > { %s753_s4 = scalar_lea.hbm %s11783_s22, %s8892_s15  ;;  %s831_s15 = scalar_lea.vmem [#allocation8], %s10196_s7 }
  0x5c   : > { %s754_s2 = sshll.u32 %s753_s4, 4  ;;  %s838_s9 = sshll.u32 %s831_s15, 4  ;;  %s755_s2 = int_to_ptr.hbm [resolvable:$true] %s754_s2  ;;  %s839_s9 = int_to_ptr.vmem [resolvable:$true] %s838_s9 }
  0x5d   : > { %9366 = dma.hbm_to_vmem [thread:$0]  (!%p10204_p0), %s755_s2, 1024, %s757_s12, %s742_s28, %s9996_s29, %s9996_s29, %s9997_s8  }
  0x5e   : > { %s6981_s30 = sshll.u32 %s10196_s7, 5  ;;  %s8893_s4 = sshll.u32 %s9986_s6, 5 }
  0x5f   : > { %s879_s28 = scalar_lea.hbm %s11700_s10, %s8893_s4  ;;  %s874_s2 = scalar_lea.vmem [#allocation11], %s6981_s30 }
  0x60   : > { %s834_s22 = scalar_lea.hbm %s11784_s18, %s9986_s6  ;;  %s880_s18 = sshll.u32 %s879_s28, 4  ;;  %s881_s18 = int_to_ptr.hbm [resolvable:$true] %s880_s18 }
  0x61   : > { %s836_s21 = sshll.u32 %s834_s22, 4  ;;  %s882_s29 = sshll.u32 %s874_s2, 4  ;;  %s837_s21 = int_to_ptr.hbm [resolvable:$true] %s836_s21  ;;  %s883_s29 = int_to_ptr.vmem [resolvable:$true] %s882_s29 }
  0x62   : > { %9372 = dma.hbm_to_vmem [thread:$0]  (!%p10204_p0), %s837_s21, 16, %s839_s9, %s11785_s13  }
  0x63   : > { %s11786_s8 = scalar_lea.sflag [#allocation10], %s10199_s25  ;;  %s6984_s1 = sshll.u32 %s10196_s7, 7 }
  0x64   : > { %9378 = dma.hbm_to_vmem [thread:$0]  (!%p10204_p0), %s881_s18, 512, %s883_s29, %s11786_s8, %s11781_s24, %s11781_s24, %s11780_s19  }
  0x65   : > { %s8894_s11 = sshll.u32 %s9986_s6, 7  ;;  %s928_s9 = scalar_lea.vmem [#allocation14], %s6984_s1 }
  0x66   : > { %s933_s21 = scalar_lea.hbm %s11704_s14, %s8894_s11  ;;  %s936_s13 = sshll.u32 %s928_s9, 4  ;;  %s937_s13 = int_to_ptr.vmem [resolvable:$true] %s936_s13 }
  0x67   : > { %s934_s15 = sshll.u32 %s933_s21, 4  ;;  %s11787_s30 = scalar_lea.sflag [#allocation13], %s10199_s25  ;;  %s935_s15 = int_to_ptr.hbm [resolvable:$true] %s934_s15 }
  0x68   : > { %9384 = dma.hbm_to_vmem [thread:$0]  (!%p10204_p0), %s935_s15, 2048, %s937_s13, %s11787_s30, %s11781_s24, %s11781_s24, %s11780_s19  }
  0x69   : > { %s1005_s12 = scalar_lea.hbm %s11710_s20, %s10263_s16  ;;  %s1001_s18 = scalar_lea.vmem [#allocation17], %s10260_s27 }
  0x6a   : > { %s1006_s28 = sshll.u32 %s1005_s12, 4  ;;  %s1008_s2 = sshll.u32 %s1001_s18, 4  ;;  %s1007_s28 = int_to_ptr.hbm [resolvable:$true] %s1006_s28  ;;  %s1009_s2 = int_to_ptr.vmem [resolvable:$true] %s1008_s2 }
  0x6b   : > { %s11788_s29 = smov 16   ;;  %s11789_s8 = scalar_lea.sflag [#allocation16], %s10199_s25 }
  0x6c   : > { %9390 = dma.hbm_to_vmem [thread:$0]  (!%p10204_p0), %s1007_s28, 32, %s1009_s2, %s11789_s8, %s11788_s29, %s11788_s29, %s9995_s5  }
  0x6d   : > { %s1054_s3 = scalar_lea.hbm %s11713_s23, %s10263_s16  ;;  %s1050_s24 = scalar_lea.vmem [#allocation20], %s10260_s27 }
  0x6e   : > { %s1055_s19 = sshll.u32 %s1054_s3, 4  ;;  %s1057_s22 = sshll.u32 %s1050_s24, 4  ;;  %s1056_s19 = int_to_ptr.hbm [resolvable:$true] %s1055_s19  ;;  %s1058_s22 = int_to_ptr.vmem [resolvable:$true] %s1057_s22 }
  0x6f   : > { %s11790_s21 = scalar_lea.sflag [#allocation19], %s10199_s25  ;;  %1069 = sbr.rel (%p10222_p3) target bundleno = 4917 (0x1335), region = 116 }
  0x70   : > { %9396 = dma.hbm_to_vmem [thread:$0]  (!%p10204_p0), %s1056_s19, 32, %s1058_s22, %s11790_s21, %s11788_s29, %s11788_s29, %s9995_s5  }
  0x71   : > { %s10346_s9 = sand.u32 (!%p10222_p3), 1, %s9974_s26  }
  0x72   : > { %s6997_s16 = sshll.u32 (!%p10222_p3), %s10346_s9, 6  ;;  %s1072_s27 = scalar_lea.sflag (!%p10222_p3), [#allocation4], %s10346_s9 }
  0x73   : > { %s10350_s13 = scalar_lea.vmem (!%p10222_p3), [#allocation3], %s6997_s16 }
  0x74   : > { %9941 = dma.done.wait (%p10178_p8), %s1072_s27, 1024  }
  0x75   : > { %9943 = vsyncadd (%p10178_p8), %s1072_s27, 4294966272  ;;  %s11792_s25 = sld [smem:[#allocation33_spill]]  ;;  %s9332_s17 = smul.u32 160, %s10346_s9 }
  0x77   : > { %s10361_s30 = scalar_lea.vmem [#allocation6], %s9332_s17 }
  0x7b   : > { %s10357_s0 = sand.u32 1, %s11792_s25  }
  0x7c   : > { %s1082_s5 = scalar_lea.sflag [#allocation7], %s10357_s0 }
  0x7d   : > { %9945 = dma.done.wait (%p10178_p8), %s1082_s5, 2576  }
  0x7e   : > { %9947 = vsyncadd (%p10178_p8), %s1082_s5, 4294964720  ;;  %s1094_s7 = scalar_lea.vmem [#allocation8], %s10346_s9  ;;  %s1101_s4 = scalar_lea.sflag [#allocation10], %s10357_s0 }
  0x7f   : > { %s1103_s12 = scalar_lea.vmem [#allocation9], %s10346_s9 }
  0x80   : > { %9949 = dma.done.wait (%p10178_p8), %s1101_s4, 528  }
  0x81   : > { %9951 = vsyncadd (%p10178_p8), %s1101_s4, 4294966768  ;;  %s6998_s28 = sshll.u32 %s10346_s9, 5  ;;  %s1120_s2 = scalar_lea.sflag [#allocation13], %s10357_s0 }
  0x82   : > { %s10375_s18 = scalar_lea.vmem [#allocation11], %s6998_s28  ;;  %s1122_s29 = scalar_lea.vmem [#allocation12], %s10346_s9 }
  0x83   : > { %9953 = dma.done.wait (%p10178_p8), %s1120_s2, 2064  }
  0x84   : > { %9955 = vsyncadd (%p10178_p8), %s1120_s2, 4294965232  ;;  %s6999_s8 = sshll.u32 %s10346_s9, 7  ;;  %s7000_s1 = sshll.u32 %s10346_s9, 8 }
  0x85   : > { %s10385_s11 = scalar_lea.vmem [#allocation14], %s6999_s8  ;;  %s1139_s3 = scalar_lea.sflag [#allocation16], %s10357_s0 }
  0x86   : > { %s10388_s19 = scalar_lea.vmem [#allocation15], %s7000_s1 }
  0x87   : > { %9957 = dma.done.wait (%p10178_p8), %s1139_s3, 4128  }
  0x88   : > { %9959 = vsyncadd (%p10178_p8), %s1139_s3, 4294963168  ;;  %s10395_s24 = sshll.u32 %s10346_s9, 1  ;;  %s1159_s21 = scalar_lea.sflag [#allocation19], %s10357_s0 }
  0x89   : > { %s1152_s22 = scalar_lea.vmem [#allocation17], %s10395_s24  ;;  %s1162_s16 = scalar_lea.vmem [#allocation18], %s10395_s24 }
  0x8a   : > { %9961 = dma.done.wait (%p10178_p8), %s1159_s21, 64  }
  0x8b   : > { %9963 = vsyncadd (%p10178_p8), %s1159_s21, 4294967232  ;;  %s11793_s27 = sld [smem:[#allocation31_spill]]  ;;  %vm2391_vm0 = vcmask 785408   ;;  %vm3875_vm1 = vcmask 523264   ;;  %vm4284_vm2 = vcmask 261120   ;;  %vm4351_vm3 = vcmask 1043456  }
  0x8c   : > { %s11794_s28 = sld [smem:[#allocation41_spill]]  ;;  %vm4323_vm4 = vcmask 64512   ;;  %vm4389_vm5 = vcmask 257024   ;;  %vm4532_vm6 = vcmask 519424   ;;  %vm4657_vm7 = vcmask 781824  }
  0x8d   : > { %s11795_s8 = sld [smem:[#allocation43_spill]]  ;;  %vm4782_vm8 = vcmask 1044224  }
  0x8e   : > { %s11796_s5 = sld [smem:[#allocation42_spill]] }
  0x91   : > { %p1346_p4 = scmp.lt.s32.totalorder %s11793_s27, 1 }
  0x93   : > { %s10406_s25 = scalar_select %p1346_p4, %s11793_s27, 1 }
  0x95   : > { %s9333_s17 = smul.u32 1200, %s10406_s25 }
  0x96   : > { %s9335_s15 = smul.u32 960, %s10406_s25 }
  0x97   : > { %s10412_s2 = scalar_lea.vmem %s11794_s28, %s9333_s17  ;;  %s9334_s3 = smul.u32 5, %s10406_s25 }
  0x98   : > { %v7159_v0 = vld [vmem:[%s10412_s2 + $0x118] sm:$0xf]  ;;  %v8935_v1 = vld [vmem:[%s10412_s2 + $0x128] sm:$0xf0]  ;;  %v7599_v9 = vld [vmem:[%s10412_s2 + $0x488] sm:$0xf]  ;;  %s10738_s1 = scalar_lea.vmem %s11795_s8, %s9335_s15 }
  0x99   : > { %v7319_v2 = vld [vmem:[%s10412_s2 + $0x258] sm:$0xf]  ;;  %v7160_v3 = vor.u32 %v8935_v1, %v7159_v0  ;;  %v8975_v4 = vld [vmem:[%s10412_s2 + $0x268] sm:$0xf0]  ;;  %v9045_v10 = vld [vmem:[%s10412_s2 + $0x498] sm:$0xf0]  ;;  %s1361_s4 = scalar_lea.vmem %s11796_s5, %s9334_s3 }
  0x9a   : > { %v7479_v5 = vld [vmem:[%s10412_s2 + $0x398] sm:$0xf]  ;;  %v9015_v6 = vld [vmem:[%s10412_s2 + $0x3a8] sm:$0xf0]  ;;  %v7320_v7 = vor.u32 %v8975_v4, %v7319_v2  ;;  %v7139_v11 = vld [vmem:[%s10412_s2 + $0xf0] sm:$0xf]  ;;  %v7600_v12 = vor.u32 %v9045_v10, %v7599_v9 }
  0x9b   : > { %v7480_v8 = vor.u32 %v9015_v6, %v7479_v5  ;;  %2395 = vmatpush.bf16.msra.mxu0 %v7160_v3  ;;  %v8930_v13 = vld [vmem:[%s10412_s2 + $0x100] sm:$0xf0]  ;;  %v7299_v14 = vld [vmem:[%s10412_s2 + $0x230] sm:$0xf]  ;;  %v7579_v20 = vld [vmem:[%s10412_s2 + $0x460] sm:$0xf] }
  0x9c   : > { %v8970_v15 = vld [vmem:[%s10412_s2 + $0x240] sm:$0xf0]  ;;  %2409 = vmatpush.bf16.msra.mxu1 %v7320_v7  ;;  %v7140_v16 = vor.u32 %v8930_v13, %v7139_v11  ;;  %v7459_v18 = vld [vmem:[%s10412_s2 + $0x370] sm:$0xf]  ;;  %2439 = vmatpush.bf16.msra.mxu3 %v7600_v12  ;;  %v9040_v22 = vld [vmem:[%s10412_s2 + $0x470] sm:$0xf0] }
  0x9d   : > { %2423 = vmatpush.bf16.msra.mxu2 %v7480_v8  ;;  %v7300_v17 = vor.u32 %v8970_v15, %v7299_v14  ;;  %v9010_v19 = vld [vmem:[%s10412_s2 + $0x380] sm:$0xf0]  ;;  %v7119_v23 = vld [vmem:[%s10412_s2 + $0xc8] sm:$0xf]  ;;  %v8925_v24 = vld [vmem:[%s10412_s2 + $0xd8] sm:$0xf0]  ;;  %v7580_v25 = vor.u32 %v9040_v22, %v7579_v20 }
  0x9e   : > { %v7460_v21 = vor.u32 %v9010_v19, %v7459_v18  ;;  %v7279_v26 = vld [vmem:[%s10412_s2 + $0x208] sm:$0xf]  ;;  %v8965_v27 = vld [vmem:[%s10412_s2 + $0x218] sm:$0xf0]  ;;  %v7120_v29 = vor.u32 %v8925_v24, %v7119_v23  ;;  %v7559_v31 = vld [vmem:[%s10412_s2 + $0x438] sm:$0xf] }
  0x9f   : > { %v7439_v28 = vld [vmem:[%s10412_s2 + $0x348] sm:$0xf]  ;;  %2396 = vmatpush.bf16.msra.mxu0 %v7140_v16  ;;  %v9005_v30 = vld [vmem:[%s10412_s2 + $0x358] sm:$0xf0]  ;;  %v9035_v32 = vld [vmem:[%s10412_s2 + $0x448] sm:$0xf0]  ;;  %v7280_v33 = vor.u32 %v8965_v27, %v7279_v26 }
  0xa0   : > { %2410 = vmatpush.bf16.msra.mxu1 %v7300_v17  ;;  %v7440_v34 = vor.u32 %v9005_v30, %v7439_v28  ;;  %v7099_v35 = vld [vmem:[%s10412_s2 + $0xa0] sm:$0xf]  ;;  %v8920_v36 = vld [vmem:[%s10412_s2 + $0xb0] sm:$0xf0]  ;;  %2440 = vmatpush.bf16.msra.mxu3 %v7580_v25  ;;  %v7560_v38 = vor.u32 %v9035_v32, %v7559_v31  ;;  %v7539_v42 = vld [vmem:[%s10412_s2 + $0x410] sm:$0xf] }
  0xa1   : > { %2424 = vmatpush.bf16.msra.mxu2 %v7460_v21  ;;  %v7259_v37 = vld [vmem:[%s10412_s2 + $0x1e0] sm:$0xf]  ;;  %v8960_v39 = vld [vmem:[%s10412_s2 + $0x1f0] sm:$0xf0]  ;;  %v9030_v43 = vld [vmem:[%s10412_s2 + $0x420] sm:$0xf0]  ;;  %v7100_v44 = vor.u32 %v8920_v36, %v7099_v35 }
  0xa2   : > { %v7419_v40 = vld [vmem:[%s10412_s2 + $0x320] sm:$0xf]  ;;  %v9000_v41 = vld [vmem:[%s10412_s2 + $0x330] sm:$0xf0]  ;;  %v7260_v45 = vor.u32 %v8960_v39, %v7259_v37  ;;  %v7079_v47 = vld [vmem:[%s10412_s2 + $0x78] sm:$0xf]  ;;  %v7540_v50 = vor.u32 %v9030_v43, %v7539_v42 }
  0xa3   : > { %2397 = vmatpush.bf16.msra.mxu0 %v7120_v29  ;;  %v7420_v46 = vor.u32 %v9000_v41, %v7419_v40  ;;  %v8915_v48 = vld [vmem:[%s10412_s2 + $0x88] sm:$0xf0]  ;;  %v7239_v49 = vld [vmem:[%s10412_s2 + $0x1b8] sm:$0xf]  ;;  %v7519_v54 = vld [vmem:[%s10412_s2 + $0x3e8] sm:$0xf] }
  0xa4   : > { %2411 = vmatpush.bf16.msra.mxu1 %v7280_v33  ;;  %2441 = vmatpush.bf16.msra.mxu3 %v7560_v38  ;;  %v8955_v51 = vld [vmem:[%s10412_s2 + $0x1c8] sm:$0xf0]  ;;  %v7399_v52 = vld [vmem:[%s10412_s2 + $0x2f8] sm:$0xf]  ;;  %v9025_v55 = vld [vmem:[%s10412_s2 + $0x3f8] sm:$0xf0]  ;;  %v7080_v56 = vor.u32 %v8915_v48, %v7079_v47 }
  0xa5   : > { %2425 = vmatpush.bf16.msra.mxu2 %v7440_v34  ;;  %v8995_v53 = vld [vmem:[%s10412_s2 + $0x308] sm:$0xf0]  ;;  %v7240_v57 = vor.u32 %v8955_v51, %v7239_v49  ;;  %v7059_v59 = vld [vmem:[%s10412_s2 + $0x50] sm:$0xf]  ;;  %v8910_v60 = vld [vmem:[%s10412_s2 + $0x60] sm:$0xf0]  ;;  %v7520_v62 = vor.u32 %v9025_v55, %v7519_v54 }
  0xa6   : > { %v7400_v58 = vor.u32 %v8995_v53, %v7399_v52  ;;  %v7219_v61 = vld [vmem:[%s10412_s2 + $0x190] sm:$0xf]  ;;  %v8950_v63 = vld [vmem:[%s10412_s2 + $0x1a0] sm:$0xf0]  ;;  %v7499_v2 = vld [vmem:[%s10412_s2 + $0x3c0] sm:$0xf]  ;;  %v7060_v4 = vor.u32 %v8910_v60, %v7059_v59 }
  0xa7   : > { %2398 = vmatpush.bf16.msra.mxu0 %v7100_v44  ;;  %v7379_v0 = vld [vmem:[%s10412_s2 + $0x2d0] sm:$0xf]  ;;  %v8990_v1 = vld [vmem:[%s10412_s2 + $0x2e0] sm:$0xf0]  ;;  %v9020_v3 = vld [vmem:[%s10412_s2 + $0x3d0] sm:$0xf0]  ;;  %v7220_v7 = vor.u32 %v8950_v63, %v7219_v61 }
  0xa8   : > { %2412 = vmatpush.bf16.msra.mxu1 %v7260_v45  ;;  %2442 = vmatpush.bf16.msra.mxu3 %v7540_v50  ;;  %v8933_v5 = vld [vmem:[%s10412_s2 + $0x11c] sm:$0xf]  ;;  %v7161_v6 = vld [vmem:[%s10412_s2 + $0x12c] sm:$0xf0]  ;;  %v7380_v8 = vor.u32 %v8990_v1, %v7379_v0  ;;  %v7039_v9 = vld [vmem:[%s10412_s2 + $0x28] sm:$0xf]  ;;  %v7500_v12 = vor.u32 %v9020_v3, %v7499_v2 }
  0xa9   : > { %2426 = vmatpush.bf16.msra.mxu2 %v7420_v46  ;;  %v8905_v10 = vld [vmem:[%s10412_s2 + $0x38] sm:$0xf0]  ;;  %v7199_v11 = vld [vmem:[%s10412_s2 + $0x168] sm:$0xf]  ;;  %v7164_v16 = vor.u32 %v8933_v5, %v7161_v6  ;;  %v8928_v17 = vld [vmem:[%s10412_s2 + $0xf4] sm:$0xf] }
  0xaa   : > { %v8945_v13 = vld [vmem:[%s10412_s2 + $0x178] sm:$0xf0]  ;;  %v7359_v14 = vld [vmem:[%s10412_s2 + $0x2a8] sm:$0xf]  ;;  %v7040_v19 = vor.u32 %v8905_v10, %v7039_v9  ;;  %v7019_v20 = vld [vmem:[%s10412_s2] sm:$0xf] }
  0xab   : > { %2399 = vmatpush.bf16.msra.mxu0 %v7080_v56  ;;  %v8985_v15 = vld [vmem:[%s10412_s2 + $0x2b8] sm:$0xf0]  ;;  %v7141_v18 = vld [vmem:[%s10412_s2 + $0x104] sm:$0xf0]  ;;  %v8900_v21 = vld [vmem:[%s10412_s2 + $0x10] sm:$0xf0]  ;;  %v7200_v23 = vor.u32 %v8945_v13, %v7199_v11 }
  0xac   : > { %2413 = vmatpush.bf16.msra.mxu1 %v7240_v57  ;;  %2443 = vmatpush.bf16.msra.mxu3 %v7520_v62  ;;  %v7179_v22 = vld [vmem:[%s10412_s2 + $0x140] sm:$0xf]  ;;  %v7360_v24 = vor.u32 %v8985_v15, %v7359_v14  ;;  %v8940_v25 = vld [vmem:[%s10412_s2 + $0x150] sm:$0xf0]  ;;  %v8923_v28 = vld [vmem:[%s10412_s2 + $0xcc] sm:$0xf]  ;;  %v7144_v33 = vor.u32 %v8928_v17, %v7141_v18  ;;  %v7020_v37 = vor.u32 %v8900_v21, %v7019_v20 }
  0xad   : > { %2427 = vmatpush.bf16.msra.mxu2 %v7400_v58  ;;  %v7339_v26 = vld [vmem:[%s10412_s2 + $0x280] sm:$0xf]  ;;  %v8980_v27 = vld [vmem:[%s10412_s2 + $0x290] sm:$0xf0]  ;;  %v8973_v30 = vld [vmem:[%s10412_s2 + $0x25c] sm:$0xf]  ;;  %v7180_v41 = vor.u32 %v8940_v25, %v7179_v22 }
  0xae   : > { %v7121_v29 = vld [vmem:[%s10412_s2 + $0xdc] sm:$0xf0]  ;;  %v7321_v31 = vld [vmem:[%s10412_s2 + $0x26c] sm:$0xf0]  ;;  %v9013_v32 = vld [vmem:[%s10412_s2 + $0x39c] sm:$0xf]  ;;  %v7340_v42 = vor.u32 %v8980_v27, %v7339_v26 }
  0xaf   : > { %2400 = vmatpush.bf16.msra.mxu0 %v7060_v4  ;;  %v7481_v34 = vld [vmem:[%s10412_s2 + $0x3ac] sm:$0xf0]  ;;  %v9043_v35 = vld [vmem:[%s10412_s2 + $0x48c] sm:$0xf]  ;;  %v7601_v36 = vld [vmem:[%s10412_s2 + $0x49c] sm:$0xf0]  ;;  %v7324_v46 = vor.u32 %v8973_v30, %v7321_v31  ;;  %v7124_v53 = vor.u32 %v8923_v28, %v7121_v29 }
  0xb0   : > { %2414 = vmatpush.bf16.msra.mxu1 %v7220_v7  ;;  %2444 = vmatpush.bf16.msra.mxu3 %v7500_v12  ;;  %v1409_v38 = vld [vmem:[%s10350_s13 + $0x10] sm:$0xff]  ;;  %v1407_v40 = vld [vmem:[%s10350_s13] sm:$0xff]  ;;  %v1410_v44 = vld [vmem:[%s10350_s13 + $0x18] sm:$0xff]  ;;  %v7484_v47 = vor.u32 %v9013_v32, %v7481_v34  ;;  %v7604_v54 = vor.u32 %v9043_v35, %v7601_v36  ;;  %s9336_s28 = smul.u32 3, %s10406_s25  ;;  %s11798_s3 = sld [smem:[#allocation47_spill]] }
  0xb1   : > { %2428 = vmatpush.bf16.msra.mxu2 %v7380_v8  ;;  %v1413_v39 = vld [vmem:[%s10350_s13 + $0x30] sm:$0xff]  ;;  %v1411_v43 = vld [vmem:[%s10350_s13 + $0x20] sm:$0xff]  ;;  %v1414_v45 = vld [vmem:[%s10350_s13 + $0x38] sm:$0xff]  ;;  %s11800_s15 = sld [smem:[#allocation51_spill]]  ;;  %s11167_s8 = sshll.u32 %s10406_s25, 1 }
  0xb2   : > { %v8918_v48 = vld [vmem:[%s10412_s2 + $0xa4] sm:$0xf]  ;;  %v7101_v49 = vld [vmem:[%s10412_s2 + $0xb4] sm:$0xf0]  ;;  %v8968_v50 = vld [vmem:[%s10412_s2 + $0x234] sm:$0xf]  ;;  %v10496_v52 = vpack.c.bf16 %v1414_v45, %v1410_v44  ;;  %v10502_v59 = vpack.c.bf16 %v1413_v39, %v1409_v38  ;;  %v10504_v60 = vpack.c.bf16 %v1411_v43, %v1407_v40 }
  0xb3   : > { %2401 = vmatpush.bf16.msra.mxu0 %v7040_v19  ;;  %v7301_v51 = vld [vmem:[%s10412_s2 + $0x244] sm:$0xf0]  ;;  %v9008_v55 = vld [vmem:[%s10412_s2 + $0x374] sm:$0xf]  ;;  %v9038_v57 = vld [vmem:[%s10412_s2 + $0x464] sm:$0xf]  ;;  %v7104_v4 = vor.u32 %v8918_v48, %v7101_v49 }
  0xb4   : > { %2451 = vmatpush.bf16.msrb.mxu3 %v7164_v16  ;;  %2415 = vmatpush.bf16.msra.mxu1 %v7200_v23  ;;  %v7461_v56 = vld [vmem:[%s10412_s2 + $0x384] sm:$0xf0]  ;;  %v7581_v58 = vld [vmem:[%s10412_s2 + $0x474] sm:$0xf0]  ;;  %v1408_v61 = vld [vmem:[%s10350_s13 + $0x8] sm:$0xff]  ;;  %v7304_v0 = vor.u32 %v8968_v50, %v7301_v51  ;;  %s11804_s17 = sld [smem:[#allocation53_spill]] }
  0xb5   : > { %2429 = vmatpush.bf16.msra.mxu2 %v7360_v24  ;;  %7617 = vmatmul.msk.bf16.vlgmr.msra.gmra.mxu3 %vm2391_vm0, %v10496_v52  ;;  %v1412_v62 = vld [vmem:[%s10350_s13 + $0x28] sm:$0xff]  ;;  %v7464_v1 = vor.u32 %v9008_v55, %v7461_v56  ;;  %v8913_v2 = vld [vmem:[%s10412_s2 + $0x7c] sm:$0xf]  ;;  %v8963_v3 = vld [vmem:[%s10412_s2 + $0x20c] sm:$0xf]  ;;  %v7584_v5 = vor.u32 %v9038_v57, %v7581_v58  ;;  %s11797_s13 = sld [smem:[#allocation44_spill]] }
  0xb6   : > { %v10510_v63 = vpack.c.bf16 %v1412_v62, %v1408_v61  ;;  %v7281_v6 = vld [vmem:[%s10412_s2 + $0x21c] sm:$0xf0]  ;;  %v9003_v7 = vld [vmem:[%s10412_s2 + $0x34c] sm:$0xf]  ;;  %v7081_v9 = vld [vmem:[%s10412_s2 + $0x8c] sm:$0xf0] }
  0xb7   : > { %2402 = vmatpush.bf16.msra.mxu0 %v7020_v37  ;;  %v7441_v8 = vld [vmem:[%s10412_s2 + $0x35c] sm:$0xf0]  ;;  %v9033_v10 = vld [vmem:[%s10412_s2 + $0x43c] sm:$0xf]  ;;  %v7561_v11 = vld [vmem:[%s10412_s2 + $0x44c] sm:$0xf0]  ;;  %v7284_v12 = vor.u32 %v8963_v3, %v7281_v6  ;;  %v7084_v16 = vor.u32 %v8913_v2, %v7081_v9 }
  0xb8   : > { %2452 = vmatpush.bf16.msrb.mxu3 %v7144_v33  ;;  %2416 = vmatpush.bf16.msra.mxu1 %v7180_v41  ;;  %v7444_v13 = vor.u32 %v9003_v7, %v7441_v8  ;;  %v8908_v14 = vld [vmem:[%s10412_s2 + $0x54] sm:$0xf]  ;;  %v8958_v15 = vld [vmem:[%s10412_s2 + $0x1e4] sm:$0xf]  ;;  %v7564_v17 = vor.u32 %v9033_v10, %v7561_v11  ;;  %v7261_v18 = vld [vmem:[%s10412_s2 + $0x1f4] sm:$0xf0] }
  0xb9   : > { %2430 = vmatpush.bf16.msra.mxu2 %v7340_v42  ;;  %v8998_v19 = vld [vmem:[%s10412_s2 + $0x324] sm:$0xf]  ;;  %v7421_v20 = vld [vmem:[%s10412_s2 + $0x334] sm:$0xf0]  ;;  %v7061_v21 = vld [vmem:[%s10412_s2 + $0x64] sm:$0xf0]  ;;  %v7264_v24 = vor.u32 %v8958_v15, %v7261_v18 }
  0xba   : > { %2403 = vmatmul.bf16.vlgmr.msra.gmra.mxu0 %v10504_v60  ;;  %v9028_v22 = vld [vmem:[%s10412_s2 + $0x414] sm:$0xf]  ;;  %v7541_v23 = vld [vmem:[%s10412_s2 + $0x424] sm:$0xf0]  ;;  %v7424_v25 = vor.u32 %v8998_v19, %v7421_v20  ;;  %v8903_v26 = vld [vmem:[%s10412_s2 + $0x2c] sm:$0xf]  ;;  %v7064_v28 = vor.u32 %v8908_v14, %v7061_v21 }
  0xbb   : > { %2465 = vmatpush.bf16.msrb.mxu0 %v7324_v46  ;;  %2417 = vmatmul.bf16.vlgmr.msra.gmra.mxu1 %v10510_v63  ;;  %v8953_v27 = vld [vmem:[%s10412_s2 + $0x1bc] sm:$0xf]  ;;  %v7544_v29 = vor.u32 %v9028_v22, %v7541_v23  ;;  %v7241_v30 = vld [vmem:[%s10412_s2 + $0x1cc] sm:$0xf0]  ;;  %v7041_v33 = vld [vmem:[%s10412_s2 + $0x3c] sm:$0xf0]  ;;  %s1370_s0 = scalar_lea.vmem %s11797_s13, %s9336_s28 }
  0xbc   : > { %2479 = vmatpush.bf16.msrb.mxu1 %v7484_v47  ;;  %2453 = vmatpush.bf16.msrb.mxu3 %v7124_v53  ;;  %v8993_v31 = vld [vmem:[%s10412_s2 + $0x2fc] sm:$0xf]  ;;  %v7401_v32 = vld [vmem:[%s10412_s2 + $0x30c] sm:$0xf0]  ;;  %v9023_v34 = vld [vmem:[%s10412_s2 + $0x3ec] sm:$0xf]  ;;  %v7244_v36 = vor.u32 %v8953_v27, %v7241_v30  ;;  %v7044_v41 = vor.u32 %v8903_v26, %v7041_v33 }
  0xbd   : > { %2495 = vmatpush.bf16.msrb.mxu2 %v7604_v54  ;;  %v7521_v35 = vld [vmem:[%s10412_s2 + $0x3fc] sm:$0xf0]  ;;  %v7404_v37 = vor.u32 %v8993_v31, %v7401_v32  ;;  %v8898_v38 = vld [vmem:[%s10412_s2 + $0x4] sm:$0xf]  ;;  %v7021_v39 = vld [vmem:[%s10412_s2 + $0x14] sm:$0xf0] }
  0xbe   : > { %2431 = vmatmul.bf16.vlgmr.msra.gmra.mxu2 %v10502_v59  ;;  %v8948_v40 = vld [vmem:[%s10412_s2 + $0x194] sm:$0xf]  ;;  %v7524_v42 = vor.u32 %v9023_v34, %v7521_v35  ;;  %v7221_v43 = vld [vmem:[%s10412_s2 + $0x1a4] sm:$0xf0]  ;;  %v9018_v46 = vld [vmem:[%s10412_s2 + $0x3c4] sm:$0xf]  ;;  %v7024_v55 = vor.u32 %v8898_v38, %v7021_v39 }
  0xbf   : > { %2466 = vmatpush.bf16.msrb.mxu0 %v7304_v0  ;;  %v8988_v44 = vld [vmem:[%s10412_s2 + $0x2d4] sm:$0xf]  ;;  %v7381_v45 = vld [vmem:[%s10412_s2 + $0x2e4] sm:$0xf0]  ;;  %v7501_v47 = vld [vmem:[%s10412_s2 + $0x3d4] sm:$0xf0]  ;;  %v7224_v53 = vor.u32 %v8948_v40, %v7221_v43 }
  0xc0   : > { %2480 = vmatpush.bf16.msrb.mxu1 %v7464_v1  ;;  %2454 = vmatpush.bf16.msrb.mxu3 %v7104_v4  ;;  %v7167_v48 = vld [vmem:[%s10412_s2 + $0x120] sm:$0xf]  ;;  %v8936_v49 = vld [vmem:[%s10412_s2 + $0x130] sm:$0xf0]  ;;  %v7384_v54 = vor.u32 %v8988_v44, %v7381_v45  ;;  %v7504_v56 = vor.u32 %v9018_v46, %v7501_v47  ;;  %v8943_v57 = vld [vmem:[%s10412_s2 + $0x16c] sm:$0xf] }
  0xc1   : > { %2496 = vmatpush.bf16.msrb.mxu2 %v7584_v5  ;;  %v7327_v50 = vld [vmem:[%s10412_s2 + $0x260] sm:$0xf]  ;;  %v8976_v51 = vld [vmem:[%s10412_s2 + $0x270] sm:$0xf0]  ;;  %v7168_v61 = vor.u32 %v8936_v49, %v7167_v48  ;;  %v8983_v0 = vld [vmem:[%s10412_s2 + $0x2ac] sm:$0xf] }
  0xc2   : > { %v7201_v58 = vld [vmem:[%s10412_s2 + $0x17c] sm:$0xf0]  ;;  %v7328_v62 = vor.u32 %v8976_v51, %v7327_v50  ;;  %v7147_v2 = vld [vmem:[%s10412_s2 + $0xf8] sm:$0xf]  ;;  %v8931_v3 = vld [vmem:[%s10412_s2 + $0x108] sm:$0xf0] }
  0xc3   : > { %2467 = vmatpush.bf16.msrb.mxu0 %v7284_v12  ;;  %v7361_v1 = vld [vmem:[%s10412_s2 + $0x2bc] sm:$0xf0]  ;;  %v7307_v4 = vld [vmem:[%s10412_s2 + $0x238] sm:$0xf]  ;;  %v8971_v5 = vld [vmem:[%s10412_s2 + $0x248] sm:$0xf0]  ;;  %v7204_v6 = vor.u32 %v8943_v57, %v7201_v58  ;;  %v7148_v12 = vor.u32 %v8931_v3, %v7147_v2 }
  0xc4   : > { %2481 = vmatpush.bf16.msrb.mxu1 %v7444_v13  ;;  %2455 = vmatpush.bf16.msrb.mxu3 %v7084_v16  ;;  %v8938_v7 = vld [vmem:[%s10412_s2 + $0x144] sm:$0xf]  ;;  %v7364_v8 = vor.u32 %v8983_v0, %v7361_v1  ;;  %v7181_v9 = vld [vmem:[%s10412_s2 + $0x154] sm:$0xf0]  ;;  %v7308_v13 = vor.u32 %v8971_v5, %v7307_v4  ;;  %v7127_v14 = vld [vmem:[%s10412_s2 + $0xd0] sm:$0xf] }
  0xc5   : > { %2497 = vmatpush.bf16.msrb.mxu2 %v7564_v17  ;;  %v8978_v10 = vld [vmem:[%s10412_s2 + $0x284] sm:$0xf]  ;;  %v7341_v11 = vld [vmem:[%s10412_s2 + $0x294] sm:$0xf0]  ;;  %v7487_v15 = vld [vmem:[%s10412_s2 + $0x3a0] sm:$0xf]  ;;  %v7184_v20 = vor.u32 %v8938_v7, %v7181_v9 }
  0xc6   : > { %v9016_v16 = vld [vmem:[%s10412_s2 + $0x3b0] sm:$0xf0]  ;;  %v8926_v17 = vld [vmem:[%s10412_s2 + $0xe0] sm:$0xf0]  ;;  %v7607_v18 = vld [vmem:[%s10412_s2 + $0x490] sm:$0xf]  ;;  %v7344_v23 = vor.u32 %v8978_v10, %v7341_v11 }
  0xc7   : > { %2468 = vmatpush.bf16.msrb.mxu0 %v7264_v24  ;;  %v9046_v19 = vld [vmem:[%s10412_s2 + $0x4a0] sm:$0xf0]  ;;  %v7287_v21 = vld [vmem:[%s10412_s2 + $0x210] sm:$0xf]  ;;  %v7488_v24 = vor.u32 %v9016_v16, %v7487_v15  ;;  %v7107_v27 = vld [vmem:[%s10412_s2 + $0xa8] sm:$0xf] }
  0xc8   : > { %2482 = vmatpush.bf16.msrb.mxu1 %v7424_v25  ;;  %2456 = vmatpush.bf16.msrb.mxu3 %v7064_v28  ;;  %v8966_v22 = vld [vmem:[%s10412_s2 + $0x220] sm:$0xf0]  ;;  %v7128_v25 = vor.u32 %v8926_v17, %v7127_v14  ;;  %v7608_v26 = vor.u32 %v9046_v19, %v7607_v18  ;;  %v7467_v28 = vld [vmem:[%s10412_s2 + $0x378] sm:$0xf]  ;;  %v8921_v31 = vld [vmem:[%s10412_s2 + $0xb8] sm:$0xf0] }
  0xc9   : > { %2498 = vmatpush.bf16.msrb.mxu2 %v7544_v29  ;;  %v9011_v29 = vld [vmem:[%s10412_s2 + $0x388] sm:$0xf0]  ;;  %v7288_v30 = vor.u32 %v8966_v22, %v7287_v21  ;;  %v7587_v32 = vld [vmem:[%s10412_s2 + $0x468] sm:$0xf]  ;;  %v9041_v33 = vld [vmem:[%s10412_s2 + $0x478] sm:$0xf0] }
  0xca   : > { %v7267_v34 = vld [vmem:[%s10412_s2 + $0x1e8] sm:$0xf]  ;;  %v8961_v35 = vld [vmem:[%s10412_s2 + $0x1f8] sm:$0xf0]  ;;  %v7588_v38 = vor.u32 %v9041_v33, %v7587_v32  ;;  %v7087_v39 = vld [vmem:[%s10412_s2 + $0x80] sm:$0xf] }
  0xcb   : > { %2469 = vmatpush.bf16.msrb.mxu0 %v7244_v36  ;;  %v7468_v36 = vor.u32 %v9011_v29, %v7467_v28  ;;  %v7447_v40 = vld [vmem:[%s10412_s2 + $0x350] sm:$0xf]  ;;  %v8916_v43 = vld [vmem:[%s10412_s2 + $0x90] sm:$0xf0]  ;;  %v7567_v44 = vld [vmem:[%s10412_s2 + $0x440] sm:$0xf] }
  0xcc   : > { %2483 = vmatpush.bf16.msrb.mxu1 %v7404_v37  ;;  %2457 = vmatpush.bf16.msrb.mxu3 %v7044_v41  ;;  %v7108_v37 = vor.u32 %v8921_v31, %v7107_v27  ;;  %v9006_v41 = vld [vmem:[%s10412_s2 + $0x360] sm:$0xf0]  ;;  %v9036_v45 = vld [vmem:[%s10412_s2 + $0x450] sm:$0xf0]  ;;  %v7247_v46 = vld [vmem:[%s10412_s2 + $0x1c0] sm:$0xf]  ;;  %v7088_v49 = vor.u32 %v8916_v43, %v7087_v39 }
  0xcd   : > { %2499 = vmatpush.bf16.msrb.mxu2 %v7524_v42  ;;  %v7268_v42 = vor.u32 %v8961_v35, %v7267_v34  ;;  %v8956_v47 = vld [vmem:[%s10412_s2 + $0x1d0] sm:$0xf0]  ;;  %v7448_v48 = vor.u32 %v9006_v41, %v7447_v40  ;;  %v7568_v50 = vor.u32 %v9036_v45, %v7567_v44  ;;  %v7067_v51 = vld [vmem:[%s10412_s2 + $0x58] sm:$0xf]  ;;  %v9031_v58 = vld [vmem:[%s10412_s2 + $0x428] sm:$0xf0] }
  0xce   : > { %v7547_v57 = vld [vmem:[%s10412_s2 + $0x418] sm:$0xf]  ;;  %v7047_v3 = vld [vmem:[%s10412_s2 + $0x30] sm:$0xf]  ;;  %v7407_v4 = vld [vmem:[%s10412_s2 + $0x300] sm:$0xf] }
  0xcf   : > { %2470 = vmatpush.bf16.msrb.mxu0 %v7224_v53  ;;  %v7427_v53 = vld [vmem:[%s10412_s2 + $0x328] sm:$0xf]  ;;  %v7548_v2 = vor.u32 %v9031_v58, %v7547_v57  ;;  %v8996_v5 = vld [vmem:[%s10412_s2 + $0x310] sm:$0xf0]  ;;  %v8906_v7 = vld [vmem:[%s10412_s2 + $0x40] sm:$0xf0] }
  0xd0   : > { %2484 = vmatpush.bf16.msrb.mxu1 %v7384_v54  ;;  %2458 = vmatpush.bf16.msrb.mxu3 %v7024_v55  ;;  %v9001_v54 = vld [vmem:[%s10412_s2 + $0x338] sm:$0xf0]  ;;  %v7248_v55 = vor.u32 %v8956_v47, %v7247_v46  ;;  %v9026_v9 = vld [vmem:[%s10412_s2 + $0x400] sm:$0xf0]  ;;  %v7207_v10 = vld [vmem:[%s10412_s2 + $0x170] sm:$0xf]  ;;  %v7048_v14 = vor.u32 %v8906_v7, %v7047_v3 }
  0xd1   : > { %2500 = vmatpush.bf16.msrb.mxu2 %v7504_v56  ;;  %v8911_v56 = vld [vmem:[%s10412_s2 + $0x68] sm:$0xf0]  ;;  %v7428_v0 = vor.u32 %v9001_v54, %v7427_v53  ;;  %v8946_v11 = vld [vmem:[%s10412_s2 + $0x180] sm:$0xf0]  ;;  %v8901_v16 = vld [vmem:[%s10412_s2 + $0x18] sm:$0xf0] }
  0xd2   : > { %v7068_v1 = vor.u32 %v8911_v56, %v7067_v51  ;;  %v7387_v17 = vld [vmem:[%s10412_s2 + $0x2d8] sm:$0xf]  ;;  %v8991_v18 = vld [vmem:[%s10412_s2 + $0x2e8] sm:$0xf0]  ;;  %v7208_v19 = vor.u32 %v8946_v11, %v7207_v10  ;;  %v9021_v21 = vld [vmem:[%s10412_s2 + $0x3d8] sm:$0xf0] }
  0xd3   : > { %2459 = vmatmul.bf16.vlgmr.msrb.gmra.mxu3 %v10504_v60  ;;  %2471 = vmatpush.bf16.msrb.mxu0 %v7204_v6  ;;  %v8934_v22 = vld [vmem:[%s10412_s2 + $0x124] sm:$0xf]  ;;  %v7187_v27 = vld [vmem:[%s10412_s2 + $0x148] sm:$0xf]  ;;  %v8941_v28 = vld [vmem:[%s10412_s2 + $0x158] sm:$0xf0] }
  0xd4   : > { %2521 = vmatpush.bf16.msra.mxu3 %v7328_v62  ;;  %2485 = vmatpush.bf16.msrb.mxu1 %v7364_v8  ;;  %v8951_v62 = vld [vmem:[%s10412_s2 + $0x1a8] sm:$0xf0]  ;;  %v7527_v8 = vld [vmem:[%s10412_s2 + $0x3f0] sm:$0xf]  ;;  %v9014_v31 = vld [vmem:[%s10412_s2 + $0x3a4] sm:$0xf] }
  0xd5   : > { %2507 = vmatpush.bf16.msra.mxu2 %v7168_v61  ;;  %v7227_v61 = vld [vmem:[%s10412_s2 + $0x198] sm:$0xf]  ;;  %v7528_v15 = vor.u32 %v9026_v9, %v7527_v8  ;;  %v7367_v35 = vld [vmem:[%s10412_s2 + $0x2b0] sm:$0xf]  ;;  %v8969_v41 = vld [vmem:[%s10412_s2 + $0x23c] sm:$0xf] }
  0xd6   : > { %7618 = vmatmul.msk.bf16.vlgmr.msrb.gmra.mxu2 %vm2391_vm0, %v10496_v52  ;;  %v7228_v6 = vor.u32 %v8951_v62, %v7227_v61  ;;  %v7489_v32 = vld [vmem:[%s10412_s2 + $0x3b4] sm:$0xf0]  ;;  %v7149_v39 = vld [vmem:[%s10412_s2 + $0x10c] sm:$0xf0]  ;;  %v9009_v44 = vld [vmem:[%s10412_s2 + $0x37c] sm:$0xf] }
  0xd7   : > { %2472 = vmatpush.bf16.msrb.mxu0 %v7184_v20  ;;  %v7507_v20 = vld [vmem:[%s10412_s2 + $0x3c8] sm:$0xf]  ;;  %v7492_v40 = vor.u32 %v9014_v31, %v7489_v32  ;;  %v7469_v45 = vld [vmem:[%s10412_s2 + $0x38c] sm:$0xf0]  ;;  %v9044_v53 = vld [vmem:[%s10412_s2 + $0x494] sm:$0xf] }
  0xd8   : > { %2522 = vmatpush.bf16.msra.mxu3 %v7308_v13  ;;  %2486 = vmatpush.bf16.msrb.mxu1 %v7344_v23  ;;  %v7027_v13 = vld [vmem:[%s10412_s2 + $0x8] sm:$0xf]  ;;  %v7169_v23 = vld [vmem:[%s10412_s2 + $0x134] sm:$0xf0]  ;;  %v8964_v56 = vld [vmem:[%s10412_s2 + $0x214] sm:$0xf] }
  0xd9   : > { %2508 = vmatpush.bf16.msra.mxu2 %v7148_v12  ;;  %v7408_v12 = vor.u32 %v8996_v5, %v7407_v4  ;;  %v7028_v29 = vor.u32 %v8901_v16, %v7027_v13  ;;  %v7172_v33 = vor.u32 %v8934_v22, %v7169_v23  ;;  %v7347_v47 = vld [vmem:[%s10412_s2 + $0x288] sm:$0xf]  ;;  %v9004_v61 = vld [vmem:[%s10412_s2 + $0x354] sm:$0xf]  ;;  %v7109_v3 = vld [vmem:[%s10412_s2 + $0xbc] sm:$0xf0] }
  0xda   : > { %2473 = vmatmul.bf16.vlgmr.msrb.gmra.mxu0 %v10510_v63  ;;  %v7129_v51 = vld [vmem:[%s10412_s2 + $0xe4] sm:$0xf0]  ;;  %v8959_v4 = vld [vmem:[%s10412_s2 + $0x1ec] sm:$0xf]  ;;  %v7589_v8 = vld [vmem:[%s10412_s2 + $0x47c] sm:$0xf0] }
  0xdb   : > { %2535 = vmatpush.bf16.msra.mxu0 %v7488_v24  ;;  %2487 = vmatmul.bf16.vlgmr.msrb.gmra.mxu1 %v10502_v59  ;;  %v8974_v24 = vld [vmem:[%s10412_s2 + $0x264] sm:$0xf]  ;;  %v7609_v54 = vld [vmem:[%s10412_s2 + $0x4a4] sm:$0xf0]  ;;  %v9039_v7 = vld [vmem:[%s10412_s2 + $0x46c] sm:$0xf] }
  0xdc   : > { %2551 = vmatpush.bf16.msra.mxu1 %v7608_v26  ;;  %2523 = vmatpush.bf16.msra.mxu3 %v7288_v30  ;;  %v7388_v26 = vor.u32 %v8991_v18, %v7387_v17  ;;  %v7508_v30 = vor.u32 %v9021_v21, %v7507_v20  ;;  %v7289_v57 = vld [vmem:[%s10412_s2 + $0x224] sm:$0xf0]  ;;  %v8999_v10 = vld [vmem:[%s10412_s2 + $0x32c] sm:$0xf]  ;;  %v7429_v11 = vld [vmem:[%s10412_s2 + $0x33c] sm:$0xf0]  ;;  %v7592_v13 = vor.u32 %v9039_v7, %v7589_v8 }
  0xdd   : > { %2509 = vmatpush.bf16.msra.mxu2 %v7128_v25  ;;  %v7329_v25 = vld [vmem:[%s10412_s2 + $0x274] sm:$0xf0]  ;;  %v7449_v62 = vld [vmem:[%s10412_s2 + $0x364] sm:$0xf0]  ;;  %v7292_v5 = vor.u32 %v8964_v56, %v7289_v57  ;;  %v8954_v17 = vld [vmem:[%s10412_s2 + $0x1c4] sm:$0xf]  ;;  %v7432_v20 = vor.u32 %v8999_v10, %v7429_v11 }
  0xde   : > { %v7332_v34 = vor.u32 %v8974_v24, %v7329_v25  ;;  %v7452_v9 = vor.u32 %v9004_v61, %v7449_v62  ;;  %v9034_v18 = vld [vmem:[%s10412_s2 + $0x444] sm:$0xf]  ;;  %v7249_v21 = vld [vmem:[%s10412_s2 + $0x1d4] sm:$0xf0]  ;;  %v8949_v32 = vld [vmem:[%s10412_s2 + $0x19c] sm:$0xf] }
  0xdf   : > { %2536 = vmatpush.bf16.msra.mxu0 %v7468_v36  ;;  %v8986_v36 = vld [vmem:[%s10412_s2 + $0x2c0] sm:$0xf0]  ;;  %v7409_v23 = vld [vmem:[%s10412_s2 + $0x314] sm:$0xf0]  ;;  %v9019_v56 = vld [vmem:[%s10412_s2 + $0x3cc] sm:$0xf] }
  0xe0   : > { %2552 = vmatpush.bf16.msra.mxu1 %v7588_v38  ;;  %2524 = vmatpush.bf16.msra.mxu3 %v7268_v42  ;;  %v8929_v38 = vld [vmem:[%s10412_s2 + $0xfc] sm:$0xf]  ;;  %v7309_v42 = vld [vmem:[%s10412_s2 + $0x24c] sm:$0xf0]  ;;  %v7368_v43 = vor.u32 %v8986_v36, %v7367_v35  ;;  %v8994_v22 = vld [vmem:[%s10412_s2 + $0x304] sm:$0xf] }
  0xe1   : > { %2510 = vmatpush.bf16.msra.mxu2 %v7108_v37  ;;  %v7188_v37 = vor.u32 %v8941_v28, %v7187_v27  ;;  %v7152_v46 = vor.u32 %v8929_v38, %v7149_v39  ;;  %v7252_v27 = vor.u32 %v8954_v17, %v7249_v21  ;;  %v7069_v28 = vld [vmem:[%s10412_s2 + $0x6c] sm:$0xf0]  ;;  %v7412_v31 = vor.u32 %v8994_v22, %v7409_v23  ;;  %v8904_v38 = vld [vmem:[%s10412_s2 + $0x34] sm:$0xf]  ;;  %v7509_v57 = vld [vmem:[%s10412_s2 + $0x3dc] sm:$0xf0] }
  0xe2   : > { %v7389_v35 = vld [vmem:[%s10412_s2 + $0x2ec] sm:$0xf0]  ;;  %v7175_v61 = vld [vmem:[%s10412_s2 + $0x128] sm:$0xf]  ;;  %v8937_v62 = vld [vmem:[%s10412_s2 + $0x138] sm:$0xf0] }
  0xe3   : > { %2537 = vmatpush.bf16.msra.mxu0 %v7448_v48  ;;  %v8981_v48 = vld [vmem:[%s10412_s2 + $0x298] sm:$0xf0]  ;;  %v7349_v7 = vld [vmem:[%s10412_s2 + $0x29c] sm:$0xf0]  ;;  %v7615_v10 = vld [vmem:[%s10412_s2 + $0x498] sm:$0xf] }
  0xe4   : > { %2553 = vmatpush.bf16.msra.mxu1 %v7568_v50  ;;  %2525 = vmatpush.bf16.msra.mxu3 %v7248_v55  ;;  %v7312_v50 = vor.u32 %v8969_v41, %v7309_v42  ;;  %v7472_v55 = vor.u32 %v9009_v44, %v7469_v45  ;;  %v7348_v58 = vor.u32 %v8981_v48, %v7347_v47  ;;  %v9024_v41 = vld [vmem:[%s10412_s2 + $0x3f4] sm:$0xf]  ;;  %v7529_v42 = vld [vmem:[%s10412_s2 + $0x404] sm:$0xf0]  ;;  %v9047_v11 = vld [vmem:[%s10412_s2 + $0x4a8] sm:$0xf0] }
  0xe5   : > { %2511 = vmatpush.bf16.msra.mxu2 %v7088_v49  ;;  %v8924_v49 = vld [vmem:[%s10412_s2 + $0xd4] sm:$0xf]  ;;  %v7209_v45 = vld [vmem:[%s10412_s2 + $0x184] sm:$0xf0]  ;;  %v7315_v17 = vld [vmem:[%s10412_s2 + $0x240] sm:$0xf] }
  0xe6   : > { %v8944_v44 = vld [vmem:[%s10412_s2 + $0x174] sm:$0xf]  ;;  %v7369_v47 = vld [vmem:[%s10412_s2 + $0x2c4] sm:$0xf0]  ;;  %v7595_v23 = vld [vmem:[%s10412_s2 + $0x470] sm:$0xf] }
  0xe7   : > { %2538 = vmatpush.bf16.msra.mxu0 %v7428_v0  ;;  %v7132_v0 = vor.u32 %v8924_v49, %v7129_v51  ;;  %v7532_v49 = vor.u32 %v9024_v41, %v7529_v42  ;;  %v7029_v51 = vld [vmem:[%s10412_s2 + $0x1c] sm:$0xf0]  ;;  %v9012_v21 = vld [vmem:[%s10412_s2 + $0x390] sm:$0xf0]  ;;  %v7275_v41 = vld [vmem:[%s10412_s2 + $0x1f0] sm:$0xf] }
  0xe8   : > { %2554 = vmatpush.bf16.msra.mxu1 %v7548_v2  ;;  %2526 = vmatpush.bf16.msra.mxu3 %v7228_v6  ;;  %v8919_v2 = vld [vmem:[%s10412_s2 + $0xac] sm:$0xf]  ;;  %v7269_v6 = vld [vmem:[%s10412_s2 + $0x1fc] sm:$0xf0]  ;;  %v8962_v42 = vld [vmem:[%s10412_s2 + $0x200] sm:$0xf0] }
  0xe9   : > { %2512 = vmatpush.bf16.msra.mxu2 %v7068_v1  ;;  %v7612_v1 = vor.u32 %v9044_v53, %v7609_v54  ;;  %v7272_v16 = vor.u32 %v8959_v4, %v7269_v6  ;;  %v8939_v53 = vld [vmem:[%s10412_s2 + $0x14c] sm:$0xf]  ;;  %v7212_v54 = vor.u32 %v8944_v44, %v7209_v45  ;;  %v7435_v44 = vld [vmem:[%s10412_s2 + $0x330] sm:$0xf]  ;;  %v9002_v45 = vld [vmem:[%s10412_s2 + $0x340] sm:$0xf0] }
  0xea   : > { %v8979_v6 = vld [vmem:[%s10412_s2 + $0x28c] sm:$0xf] }
  0xeb   : > { %2539 = vmatpush.bf16.msra.mxu0 %v7408_v12  ;;  %v7112_v12 = vor.u32 %v8919_v2, %v7109_v3  ;;  %v7495_v2 = vld [vmem:[%s10412_s2 + $0x3a8] sm:$0xf]  ;;  %v9017_v3 = vld [vmem:[%s10412_s2 + $0x3b8] sm:$0xf0] }
  0xec   : > { %2555 = vmatpush.bf16.msra.mxu1 %v7528_v15  ;;  %2527 = vmatpush.bf16.msra.mxu3 %v7208_v19  ;;  %v7089_v15 = vld [vmem:[%s10412_s2 + $0x94] sm:$0xf0] }
  0xed   : > { %2513 = vmatpush.bf16.msra.mxu2 %v7048_v14  ;;  %v8914_v14 = vld [vmem:[%s10412_s2 + $0x84] sm:$0xf]  ;;  %v7569_v19 = vld [vmem:[%s10412_s2 + $0x454] sm:$0xf0] }
  0xee   : > { %v7092_v24 = vor.u32 %v8914_v14, %v7089_v15  ;;  %v7572_v25 = vor.u32 %v9034_v18, %v7569_v19  ;;  %v7155_v14 = vld [vmem:[%s10412_s2 + $0x100] sm:$0xf]  ;;  %v8932_v15 = vld [vmem:[%s10412_s2 + $0x110] sm:$0xf0]  ;;  %v7616_v19 = vor.u32 %v9047_v11, %v7615_v10  ;;  %v7515_v11 = vld [vmem:[%s10412_s2 + $0x3d0] sm:$0xf] }
  0xef   : > { %2540 = vmatpush.bf16.msra.mxu0 %v7388_v26  ;;  %v8909_v26 = vld [vmem:[%s10412_s2 + $0x5c] sm:$0xf]  ;;  %v8972_v18 = vld [vmem:[%s10412_s2 + $0x250] sm:$0xf0]  ;;  %v7156_v22 = vor.u32 %v8932_v15, %v7155_v14  ;;  %v8907_v15 = vld [vmem:[%s10412_s2 + $0x48] sm:$0xf0] }
  0xf0   : > { %2556 = vmatpush.bf16.msra.mxu1 %v7508_v30  ;;  %2528 = vmatpush.bf16.msra.mxu3 %v7188_v37  ;;  %v7549_v30 = vld [vmem:[%s10412_s2 + $0x42c] sm:$0xf0]  ;;  %v7072_v36 = vor.u32 %v8909_v26, %v7069_v28  ;;  %v7135_v26 = vld [vmem:[%s10412_s2 + $0xd8] sm:$0xf] }
  0xf1   : > { %2514 = vmatpush.bf16.msra.mxu2 %v7028_v29  ;;  %v9029_v29 = vld [vmem:[%s10412_s2 + $0x41c] sm:$0xf] }
  0xf2   : > { %v7552_v37 = vor.u32 %v9029_v29, %v7549_v30  ;;  %v7295_v29 = vld [vmem:[%s10412_s2 + $0x218] sm:$0xf]  ;;  %v8967_v30 = vld [vmem:[%s10412_s2 + $0x228] sm:$0xf0] }
  0xf3   : > { %2541 = vmatpush.bf16.msra.mxu0 %v7368_v43  ;;  %7619 = vmatmul.msk.bf16.vlgmr.msra.gmra.mxu1 %vm2391_vm0, %v10496_v52 }
  0xf4   : > { %2563 = vmatpush.bf16.msrb.mxu1 %v7172_v33  ;;  %2515 = vmatmul.bf16.vlgmr.msra.gmra.mxu2 %v10504_v60  ;;  %v7229_v33 = vld [vmem:[%s10412_s2 + $0x1ac] sm:$0xf0] }
  0xf5   : > { %2577 = vmatpush.bf16.msrb.mxu2 %v7332_v34  ;;  %2591 = vmatpush.bf16.msrb.mxu3 %v7492_v40  ;;  %v8989_v34 = vld [vmem:[%s10412_s2 + $0x2dc] sm:$0xf]  ;;  %v7232_v39 = vor.u32 %v8949_v32, %v7229_v33  ;;  %v7049_v40 = vld [vmem:[%s10412_s2 + $0x44] sm:$0xf0]  ;;  %v7455_v32 = vld [vmem:[%s10412_s2 + $0x358] sm:$0xf] }
  0xf6   : > { %2529 = vmatmul.bf16.vlgmr.msra.gmra.mxu3 %v10510_v63  ;;  %v7392_v43 = vor.u32 %v8989_v34, %v7389_v35  ;;  %v7052_v48 = vor.u32 %v8904_v38, %v7049_v40  ;;  %v9007_v33 = vld [vmem:[%s10412_s2 + $0x368] sm:$0xf0]  ;;  %v7575_v35 = vld [vmem:[%s10412_s2 + $0x448] sm:$0xf]  ;;  %v7115_v38 = vld [vmem:[%s10412_s2 + $0xb0] sm:$0xf] }
  0xf7   : > { %2542 = vmatpush.bf16.msra.mxu0 %v7348_v58  ;;  %v7456_v40 = vor.u32 %v9007_v33, %v7455_v32  ;;  %v8942_v33 = vld [vmem:[%s10412_s2 + $0x160] sm:$0xf0] }
  0xf8   : > { %2564 = vmatpush.bf16.msrb.mxu1 %v7152_v46  ;;  %v8984_v46 = vld [vmem:[%s10412_s2 + $0x2b4] sm:$0xf] }
  0xf9   : > { %2578 = vmatpush.bf16.msrb.mxu2 %v7312_v50  ;;  %2592 = vmatpush.bf16.msrb.mxu3 %v7472_v55  ;;  %v8899_v50 = vld [vmem:[%s10412_s2 + $0xc] sm:$0xf]  ;;  %v7189_v55 = vld [vmem:[%s10412_s2 + $0x15c] sm:$0xf0]  ;;  %v7372_v58 = vor.u32 %v8984_v46, %v7369_v47 }
  0xfa   : > { %2543 = vmatmul.bf16.vlgmr.msra.gmra.mxu0 %v10502_v59  ;;  %v7032_v4 = vor.u32 %v8899_v50, %v7029_v51  ;;  %v7192_v8 = vor.u32 %v8939_v53, %v7189_v55  ;;  %v7555_v47 = vld [vmem:[%s10412_s2 + $0x420] sm:$0xf]  ;;  %v7095_v50 = vld [vmem:[%s10412_s2 + $0x88] sm:$0xf]  ;;  %v8917_v51 = vld [vmem:[%s10412_s2 + $0x98] sm:$0xf0]  ;;  %v7436_v53 = vor.u32 %v9002_v45, %v7435_v44 }
  0xfb   : > { %2607 = vmatpush.bf16.msrb.mxu0 %v7612_v1  ;;  %v8977_v1 = vld [vmem:[%s10412_s2 + $0x278] sm:$0xf0]  ;;  %v7792_v45 = vld [vmem:[%s10738_s1 + $0x150] sm:$0xf] }
  0xfc   : > { %2565 = vmatpush.bf16.msrb.mxu1 %v7132_v0  ;;  %v7335_v0 = vld [vmem:[%s10412_s2 + $0x268] sm:$0xf]  ;;  %v8957_v55 = vld [vmem:[%s10412_s2 + $0x1d8] sm:$0xf0] }
  0xfd   : > { %2579 = vmatpush.bf16.msrb.mxu2 %v7292_v5  ;;  %2593 = vmatpush.bf16.msrb.mxu3 %v7452_v9  ;;  %v7512_v5 = vor.u32 %v9019_v56, %v7509_v57  ;;  %v7176_v9 = vor.u32 %v8937_v62, %v7175_v61  ;;  %v7415_v57 = vld [vmem:[%s10412_s2 + $0x308] sm:$0xf]  ;;  %v7096_v61 = vor.u32 %v8917_v51, %v7095_v50  ;;  %v7535_v62 = vld [vmem:[%s10412_s2 + $0x3f8] sm:$0xf]  ;;  %v9088_v51 = vld [vmem:[%s10738_s1 + $0x140] sm:$0xf0] }
  0xff   : > { %2608 = vmatpush.bf16.msrb.mxu0 %v7592_v13  ;;  %v7496_v13 = vor.u32 %v9017_v3, %v7495_v2  ;;  %v7075_v2 = vld [vmem:[%s10412_s2 + $0x60] sm:$0xf]  ;;  %v8912_v3 = vld [vmem:[%s10412_s2 + $0x70] sm:$0xf0] }
 0x100   : > { %2566 = vmatpush.bf16.msrb.mxu1 %v7112_v12  ;;  %v7336_v12 = vor.u32 %v8977_v1, %v7335_v0  ;;  %v9027_v0 = vld [vmem:[%s10412_s2 + $0x408] sm:$0xf0]  ;;  %v7076_v10 = vor.u32 %v8912_v3, %v7075_v2  ;;  %v9115_v3 = vld [vmem:[%s10738_s1 + $0x218] sm:$0xf0] }
 0x101   : > { %2580 = vmatpush.bf16.msrb.mxu2 %v7272_v16  ;;  %2594 = vmatpush.bf16.msrb.mxu3 %v7432_v20  ;;  %v7352_v16 = vor.u32 %v8979_v6, %v7349_v7  ;;  %v7475_v20 = vld [vmem:[%s10412_s2 + $0x380] sm:$0xf]  ;;  %v8952_v6 = vld [vmem:[%s10412_s2 + $0x1b0] sm:$0xf0]  ;;  %v7536_v7 = vor.u32 %v9027_v0, %v7535_v62  ;;  %v7888_v0 = vld [vmem:[%s10738_s1 + $0x210] sm:$0xf] }
 0x102   : > { %v7476_v28 = vor.u32 %v9012_v21, %v7475_v20  ;;  %v8947_v20 = vld [vmem:[%s10412_s2 + $0x188] sm:$0xf0] }
 0x103   : > { %2609 = vmatpush.bf16.msrb.mxu0 %v7572_v25  ;;  %v7316_v25 = vor.u32 %v8972_v18, %v7315_v17  ;;  %v9070_v17 = vld [vmem:[%s10738_s1 + $0xb0] sm:$0xf0] }
 0x104   : > { %2567 = vmatpush.bf16.msrb.mxu1 %v7092_v24  ;;  %v9042_v24 = vld [vmem:[%s10412_s2 + $0x480] sm:$0xf0] }
 0x105   : > { %2581 = vmatpush.bf16.msrb.mxu2 %v7252_v27  ;;  %2595 = vmatpush.bf16.msrb.mxu3 %v7412_v31  ;;  %v8927_v27 = vld [vmem:[%s10412_s2 + $0xe8] sm:$0xf0]  ;;  %v7596_v31 = vor.u32 %v9042_v24, %v7595_v23 }
 0x106   : > { %v7136_v34 = vor.u32 %v8927_v27, %v7135_v26  ;;  %v8987_v23 = vld [vmem:[%s10412_s2 + $0x2c8] sm:$0xf0]  ;;  %v8902_v26 = vld [vmem:[%s10412_s2 + $0x20] sm:$0xf0] }
 0x107   : > { %2610 = vmatpush.bf16.msrb.mxu0 %v7552_v37  ;;  %v7296_v37 = vor.u32 %v8967_v30, %v7295_v29  ;;  %v7195_v29 = vld [vmem:[%s10412_s2 + $0x150] sm:$0xf] }
 0x108   : > { %2568 = vmatpush.bf16.msrb.mxu1 %v7072_v36  ;;  %v9037_v36 = vld [vmem:[%s10412_s2 + $0x458] sm:$0xf0]  ;;  %v7696_v30 = vld [vmem:[%s10738_s1 + $0x90] sm:$0xf] }
 0x109   : > { %2582 = vmatpush.bf16.msrb.mxu2 %v7232_v39  ;;  %2596 = vmatpush.bf16.msrb.mxu3 %v7392_v43  ;;  %v8922_v39 = vld [vmem:[%s10412_s2 + $0xc0] sm:$0xf0]  ;;  %v7576_v43 = vor.u32 %v9037_v36, %v7575_v35  ;;  %v9094_v35 = vld [vmem:[%s10738_s1 + $0x170] sm:$0xf0]  ;;  %v7355_v36 = vld [vmem:[%s10412_s2 + $0x290] sm:$0xf] }
 0x10a   : > { %v7116_v46 = vor.u32 %v8922_v39, %v7115_v38 }
 0x10b   : > { %2611 = vmatpush.bf16.msrb.mxu0 %v7532_v49  ;;  %v7276_v49 = vor.u32 %v8962_v42, %v7275_v41  ;;  %v7684_v41 = vld [vmem:[%s10738_s1 + $0x78] sm:$0xf]  ;;  %v9064_v42 = vld [vmem:[%s10738_s1 + $0x80] sm:$0xf0] }
 0x10c   : > { %2569 = vmatpush.bf16.msrb.mxu1 %v7052_v48  ;;  %v9032_v48 = vld [vmem:[%s10412_s2 + $0x430] sm:$0xf0] }
 0x10d   : > { %2583 = vmatpush.bf16.msrb.mxu2 %v7212_v54  ;;  %2597 = vmatpush.bf16.msrb.mxu3 %v7372_v58  ;;  %v7255_v54 = vld [vmem:[%s10412_s2 + $0x1c8] sm:$0xf]  ;;  %v7556_v56 = vor.u32 %v9032_v48, %v7555_v47  ;;  %v8997_v58 = vld [vmem:[%s10412_s2 + $0x318] sm:$0xf0]  ;;  %v7685_v47 = vor.u32 %v9064_v42, %v7684_v41  ;;  %v7672_v48 = vld [vmem:[%s10738_s1 + $0x60] sm:$0xf] }
 0x10e   : > { %v7256_v1 = vor.u32 %v8957_v55, %v7255_v54  ;;  %v7660_v54 = vld [vmem:[%s10738_s1 + $0x48] sm:$0xf]  ;;  %v9058_v55 = vld [vmem:[%s10738_s1 + $0x50] sm:$0xf0] }
 0x10f   : > { %2612 = vmatpush.bf16.msrb.mxu0 %v7512_v5  ;;  %v7235_v5 = vld [vmem:[%s10412_s2 + $0x1a0] sm:$0xf] }
 0x110   : > { %2570 = vmatpush.bf16.msrb.mxu1 %v7032_v4  ;;  %v7416_v4 = vor.u32 %v8997_v58, %v7415_v57  ;;  %v7236_v14 = vor.u32 %v8952_v6, %v7235_v5  ;;  %v7768_v57 = vld [vmem:[%s10738_s1 + $0x120] sm:$0xf]  ;;  %v9085_v58 = vld [vmem:[%s10738_s1 + $0x128] sm:$0xf0]  ;;  %v9082_v5 = vld [vmem:[%s10738_s1 + $0x110] sm:$0xf0]  ;;  %v7889_v6 = vor.u32 %v9115_v3, %v7888_v0 }
 0x111   : > { %2584 = vmatpush.bf16.msrb.mxu2 %v7192_v8  ;;  %2598 = vmatpush.bf16.msrb.mxu3 %v7352_v16  ;;  %v7395_v8 = vld [vmem:[%s10412_s2 + $0x2e0] sm:$0xf]  ;;  %v7708_v16 = vld [vmem:[%s10738_s1 + $0xa8] sm:$0xf]  ;;  %v7769_v2 = vor.u32 %v9085_v58, %v7768_v57  ;;  %v9063_v57 = vld [vmem:[%s10738_s1 + $0x7c] sm:$0xf] }
 0x112   : > { %7620 = vmatmul.msk.bf16.vlgmr.msrb.gmra.mxu0 %vm2391_vm0, %v10496_v52  ;;  %v7709_v27 = vor.u32 %v9070_v17, %v7708_v16  ;;  %v7686_v58 = vld [vmem:[%s10738_s1 + $0x84] sm:$0xf0]  ;;  %v9060_v0 = vld [vmem:[%s10738_s1 + $0x64] sm:$0xf]  ;;  %v7816_v3 = vld [vmem:[%s10738_s1 + $0x180] sm:$0xf] }
 0x113   : > { %2619 = vmatpush.bf16.msra.mxu0 %v7176_v9  ;;  %2571 = vmatmul.bf16.vlgmr.msrb.gmra.mxu1 %v10504_v60  ;;  %v8992_v9 = vld [vmem:[%s10412_s2 + $0x2f0] sm:$0xf0] }
 0x114   : > { %2633 = vmatpush.bf16.msra.mxu1 %v7336_v12  ;;  %2585 = vmatmul.bf16.vlgmr.msrb.gmra.mxu2 %v10510_v63  ;;  %v9022_v12 = vld [vmem:[%s10412_s2 + $0x3e0] sm:$0xf0]  ;;  %v7396_v18 = vor.u32 %v8992_v9, %v7395_v8  ;;  %v7636_v9 = vld [vmem:[%s10738_s1 + $0x18] sm:$0xf] }
 0x115   : > { %2647 = vmatpush.bf16.msra.mxu2 %v7496_v13  ;;  %2663 = vmatpush.bf16.msra.mxu3 %v7616_v19  ;;  %v7055_v13 = vld [vmem:[%s10412_s2 + $0x38] sm:$0xf]  ;;  %v7516_v21 = vor.u32 %v9022_v12, %v7515_v11  ;;  %v7744_v12 = vld [vmem:[%s10738_s1 + $0xf0] sm:$0xf] }
 0x116   : > { %2599 = vmatmul.bf16.vlgmr.msrb.gmra.mxu3 %v10502_v59  ;;  %v7215_v19 = vld [vmem:[%s10412_s2 + $0x178] sm:$0xf]  ;;  %v7056_v24 = vor.u32 %v8907_v15, %v7055_v13  ;;  %v9079_v13 = vld [vmem:[%s10738_s1 + $0xf8] sm:$0xf0]  ;;  %v9112_v15 = vld [vmem:[%s10738_s1 + $0x200] sm:$0xf0] }
 0x117   : > { %2620 = vmatpush.bf16.msra.mxu0 %v7156_v22  ;;  %v7375_v22 = vld [vmem:[%s10412_s2 + $0x2b8] sm:$0xf] }
 0x118   : > { %2634 = vmatpush.bf16.msra.mxu1 %v7316_v25  ;;  %v7035_v25 = vld [vmem:[%s10412_s2 + $0x10] sm:$0xf]  ;;  %v7376_v32 = vor.u32 %v8987_v23, %v7375_v22  ;;  %v7732_v22 = vld [vmem:[%s10738_s1 + $0xd8] sm:$0xf]  ;;  %v9076_v23 = vld [vmem:[%s10738_s1 + $0xe0] sm:$0xf0] }
 0x119   : > { %2648 = vmatpush.bf16.msra.mxu2 %v7476_v28  ;;  %2664 = vmatpush.bf16.msra.mxu3 %v7596_v31  ;;  %v7216_v28 = vor.u32 %v8947_v20, %v7215_v19  ;;  %v9067_v31 = vld [vmem:[%s10738_s1 + $0x98] sm:$0xf0]  ;;  %v7036_v38 = vor.u32 %v8902_v26, %v7035_v25  ;;  %v7624_v19 = vld [vmem:[%s10738_s1] sm:$0xf]  ;;  %v9049_v20 = vld [vmem:[%s10738_s1 + $0x8] sm:$0xf0] }
 0x11a   : > { %v7697_v39 = vor.u32 %v9067_v31, %v7696_v30  ;;  %v9109_v25 = vld [vmem:[%s10738_s1 + $0x1e8] sm:$0xf0]  ;;  %v7625_v30 = vor.u32 %v9049_v20, %v7624_v19  ;;  %v7733_v31 = vor.u32 %v9076_v23, %v7732_v22  ;;  %v7662_v22 = vld [vmem:[%s10738_s1 + $0x54] sm:$0xf0] }
 0x11b   : > { %2621 = vmatpush.bf16.msra.mxu0 %v7136_v34  ;;  %v7804_v34 = vld [vmem:[%s10738_s1 + $0x168] sm:$0xf] }
 0x11c   : > { %2635 = vmatpush.bf16.msra.mxu1 %v7296_v37  ;;  %v8982_v37 = vld [vmem:[%s10412_s2 + $0x2a0] sm:$0xf0]  ;;  %s11805_s2 = sld [smem:[#allocation56_spill]] }
 0x11d   : > { %2649 = vmatpush.bf16.msra.mxu2 %v7456_v40  ;;  %2665 = vmatpush.bf16.msra.mxu3 %v7576_v43  ;;  %v7196_v40 = vor.u32 %v8942_v33, %v7195_v29  ;;  %v7805_v43 = vor.u32 %v9094_v35, %v7804_v34  ;;  %v7356_v44 = vor.u32 %v8982_v37, %v7355_v36  ;;  %v9073_v33 = vld [vmem:[%s10738_s1 + $0xc8] sm:$0xf0]  ;;  %v7852_v34 = vld [vmem:[%s10738_s1 + $0x1c8] sm:$0xf]  ;;  %v9106_v35 = vld [vmem:[%s10738_s1 + $0x1d0] sm:$0xf0] }
 0x11e   : > { %v9069_v37 = vld [vmem:[%s10738_s1 + $0xac] sm:$0xf] }
 0x11f   : > { %2622 = vmatpush.bf16.msra.mxu0 %v7116_v46  ;;  %v9091_v46 = vld [vmem:[%s10738_s1 + $0x158] sm:$0xf0] }
 0x120   : > { %2636 = vmatpush.bf16.msra.mxu1 %v7276_v49  ;;  %v9061_v49 = vld [vmem:[%s10738_s1 + $0x68] sm:$0xf0]  ;;  %v7793_v50 = vor.u32 %v9091_v46, %v7792_v45  ;;  %v9103_v45 = vld [vmem:[%s10738_s1 + $0x1b8] sm:$0xf0] }
 0x121   : > { %2650 = vmatpush.bf16.msra.mxu2 %v7436_v53  ;;  %2666 = vmatpush.bf16.msra.mxu3 %v7556_v56  ;;  %v7673_v53 = vor.u32 %v9061_v49, %v7672_v48  ;;  %v7698_v48 = vld [vmem:[%s10738_s1 + $0x9c] sm:$0xf0] }
 0x123   : > { %2623 = vmatpush.bf16.msra.mxu0 %v7096_v61  ;;  %v9118_v61 = vld [vmem:[%s10738_s1 + $0x230] sm:$0xf0] }
 0x124   : > { %2637 = vmatpush.bf16.msra.mxu1 %v7256_v1  ;;  %v9055_v1 = vld [vmem:[%s10738_s1 + $0x38] sm:$0xf0] }
 0x125   : > { %2651 = vmatpush.bf16.msra.mxu2 %v7416_v4  ;;  %2667 = vmatpush.bf16.msra.mxu3 %v7536_v7  ;;  %v7756_v4 = vld [vmem:[%s10738_s1 + $0x108] sm:$0xf]  ;;  %v10791_v7 = vld [vmem:[%s1361_s4] sm:$0x1f]  ;;  %s11799_s4 = sld [smem:[#allocation50_spill]] }
 0x126   : > { %v7757_v11 = vor.u32 %v9082_v5, %v7756_v4  ;;  %v1601_v17 = vperm.slane %v10791_v7, 0  ;;  %v9097_v4 = vld [vmem:[%s10738_s1 + $0x188] sm:$0xf0]  ;;  %v7996_v5 = vld [vmem:[%s10738_s1 + $0x2e8] sm:$0xf] }
 0x127   : > { %2624 = vmatpush.bf16.msra.mxu0 %v7076_v10  ;;  %v9052_v10 = vld [vmem:[%s10738_s1 + $0x20] sm:$0xf0] }
 0x128   : > { %2638 = vmatpush.bf16.msra.mxu1 %v7236_v14  ;;  %v7876_v14 = vld [vmem:[%s10738_s1 + $0x1f8] sm:$0xf] }
 0x129   : > { %2652 = vmatpush.bf16.msra.mxu2 %v7396_v18  ;;  %2668 = vmatpush.bf16.msra.mxu3 %v7516_v21  ;;  %v7877_v16 = vor.u32 %v9112_v15, %v7876_v14  ;;  %v7637_v18 = vor.u32 %v9052_v10, %v7636_v9  ;;  %v7745_v21 = vor.u32 %v9079_v13, %v7744_v12  ;;  %v9093_v9 = vld [vmem:[%s10738_s1 + $0x16c] sm:$0xf]  ;;  %v7806_v10 = vld [vmem:[%s10738_s1 + $0x174] sm:$0xf0]  ;;  %v7984_v15 = vld [vmem:[%s10738_s1 + $0x2d0] sm:$0xf] }
 0x12a   : > { %v7809_v14 = vor.u32 %v9093_v9, %v7806_v10 }
 0x12b   : > { %2625 = vmatpush.bf16.msra.mxu0 %v7056_v24  ;;  %v7864_v24 = vld [vmem:[%s10738_s1 + $0x1e0] sm:$0xf] }
 0x12c   : > { %2639 = vmatpush.bf16.msra.mxu1 %v7216_v28  ;;  %7621 = vmatmul.msk.bf16.vlgmr.msra.gmra.mxu3 %vm2391_vm0, %v10496_v52  ;;  %v7780_v52 = vld [vmem:[%s10738_s1 + $0x138] sm:$0xf] }
 0x12d   : > { %3498 = vmatpush.bf16.msrb.mxu3 %v7709_v27  ;;  %2653 = vmatpush.bf16.msra.mxu2 %v7376_v32  ;;  %v7781_v56 = vor.u32 %v9088_v51, %v7780_v52  ;;  %v7865_v27 = vor.u32 %v9109_v25, %v7864_v24  ;;  %v7720_v32 = vld [vmem:[%s10738_s1 + $0xc0] sm:$0xf] }
 0x12e   : > { %v7721_v42 = vor.u32 %v9073_v33, %v7720_v32  ;;  %v9087_v32 = vld [vmem:[%s10738_s1 + $0x13c] sm:$0xf]  ;;  %v7782_v33 = vld [vmem:[%s10738_s1 + $0x144] sm:$0xf0] }
 0x12f   : > { %2626 = vmatpush.bf16.msra.mxu0 %v7036_v38  ;;  %v7710_v38 = vld [vmem:[%s10738_s1 + $0xb4] sm:$0xf0] }
 0x130   : > { %2640 = vmatpush.bf16.msra.mxu1 %v7196_v40 }
 0x131   : > { %3499 = vmatpush.bf16.msrb.mxu3 %v7697_v39  ;;  %2654 = vmatpush.bf16.msra.mxu2 %v7356_v44  ;;  %v7853_v39 = vor.u32 %v9106_v35, %v7852_v34  ;;  %v7840_v44 = vld [vmem:[%s10738_s1 + $0x1b0] sm:$0xf]  ;;  %v1602_v34 = vperm.slane %v10791_v7, 1  ;;  %v7785_v35 = vor.u32 %v9087_v32, %v7782_v33  ;;  %v7902_v33 = vld [vmem:[%s10738_s1 + $0x234] sm:$0xf0] }
 0x132   : > { %2627 = vmatmul.bf16.vlgmr.msra.gmra.mxu0 %v10504_v60  ;;  %v7900_v60 = vld [vmem:[%s10738_s1 + $0x228] sm:$0xf]  ;;  %v7841_v49 = vor.u32 %v9103_v45, %v7840_v44  ;;  %v7770_v44 = vld [vmem:[%s10738_s1 + $0x12c] sm:$0xf0] }
 0x133   : > { %3512 = vmatpush.bf16.msrb.mxu0 %v7805_v43  ;;  %2641 = vmatmul.bf16.vlgmr.msra.gmra.mxu1 %v10510_v63  ;;  %v7661_v63 = vor.u32 %v9058_v55, %v7660_v54  ;;  %v7901_v62 = vor.u32 %v9118_v61, %v7900_v60  ;;  %v7713_v43 = vor.u32 %v9069_v37, %v7710_v38  ;;  %v7828_v55 = vld [vmem:[%s10738_s1 + $0x198] sm:$0xf]  ;;  %v9051_v37 = vld [vmem:[%s10738_s1 + $0x1c] sm:$0xf]  ;;  %v7960_v38 = vld [vmem:[%s10738_s1 + $0x2a0] sm:$0xf] }
 0x134   : > { %2655 = vmatmul.bf16.vlgmr.msra.gmra.mxu2 %v10502_v59  ;;  %v7648_v59 = vld [vmem:[%s10738_s1 + $0x30] sm:$0xf] }
 0x135   : > { %3500 = vmatpush.bf16.msrb.mxu3 %v7685_v47  ;;  %3526 = vmatpush.bf16.msrb.mxu1 %v7901_v62  ;;  %v7649_v8 = vor.u32 %v9055_v1, %v7648_v59  ;;  %v9066_v47 = vld [vmem:[%s10738_s1 + $0x94] sm:$0xf]  ;;  %v7674_v59 = vld [vmem:[%s10738_s1 + $0x6c] sm:$0xf0] }
 0x136   : > { %v7701_v54 = vor.u32 %v9066_v47, %v7698_v48  ;;  %v7677_v20 = vor.u32 %v9060_v0, %v7674_v59  ;;  %v9127_v0 = vld [vmem:[%s10738_s1 + $0x278] sm:$0xf0] }
 0x137   : > { %3513 = vmatpush.bf16.msrb.mxu0 %v7793_v50  ;;  %v2404_v26 = vpop.f32.mrf.mxu0 }
 0x138   : > { %v2405_v28 = vadd.f32 %v2404_v26, %v1601_v17  ;;  %v2418_v29 = vpop.f32.mrf.mxu1  ;;  %v2446_v36 = vpop.f32.mrf.mxu3  ;;  %v7972_v26 = vld [vmem:[%s10738_s1 + $0x2b8] sm:$0xf] }
 0x139   : > { %3501 = vmatpush.bf16.msrb.mxu3 %v7673_v53  ;;  %3527 = vmatpush.bf16.msrb.mxu1 %v7889_v6  ;;  %v7817_v6 = vor.u32 %v9097_v4, %v7816_v3  ;;  %v7746_v3 = vld [vmem:[%s10738_s1 + $0xfc] sm:$0xf0] }
 0x13a   : > { %v2419_v40 = vadd.f32 %v2418_v29, %v2405_v28  ;;  %v9054_v29 = vld [vmem:[%s10738_s1 + $0x34] sm:$0xf] }
 0x13b   : > { %3514 = vmatpush.bf16.msrb.mxu0 %v7781_v56  ;;  %v9100_v56 = vld [vmem:[%s10738_s1 + $0x1a0] sm:$0xf0] }
 0x13c   : > { %v7829_v60 = vor.u32 %v9100_v56, %v7828_v55  ;;  %v7626_v55 = vld [vmem:[%s10738_s1 + $0xc] sm:$0xf0] }
 0x13d   : > { %3502 = vmatpush.bf16.msrb.mxu3 %v7661_v63  ;;  %3528 = vmatpush.bf16.msrb.mxu1 %v7877_v16  ;;  %v9139_v16 = vld [vmem:[%s10738_s1 + $0x2d8] sm:$0xf0] }
 0x13e   : > { %v7985_v23 = vor.u32 %v9139_v16, %v7984_v15  ;;  %v9075_v15 = vld [vmem:[%s10738_s1 + $0xdc] sm:$0xf]  ;;  %v7734_v16 = vld [vmem:[%s10738_s1 + $0xe4] sm:$0xf0] }
 0x13f   : > { %3515 = vmatpush.bf16.msrb.mxu0 %v7769_v2  ;;  %v2406_v46 = vpop.f32.mrf.mxu0  ;;  %v7689_v2 = vor.u32 %v9063_v57, %v7686_v58  ;;  %v9081_v57 = vld [vmem:[%s10738_s1 + $0x10c] sm:$0xf]  ;;  %v7758_v58 = vld [vmem:[%s10738_s1 + $0x114] sm:$0xf0] }
 0x140   : > { %v2407_v52 = vadd.f32 %v2406_v46, %v1601_v17  ;;  %v2420_v51 = vpop.f32.mrf.mxu1  ;;  %v2448_v62 = vpop.f32.mrf.mxu3  ;;  %v9090_v17 = vld [vmem:[%s10738_s1 + $0x154] sm:$0xf] }
 0x141   : > { %3503 = vmatpush.bf16.msrb.mxu3 %v7649_v8  ;;  %3529 = vmatpush.bf16.msrb.mxu1 %v7865_v27  ;;  %v2432_v41 = vpop.f32.mrf.mxu2  ;;  %v9142_v8 = vld [vmem:[%s10738_s1 + $0x2f0] sm:$0xf0]  ;;  %v9136_v27 = vld [vmem:[%s10738_s1 + $0x2c0] sm:$0xf0] }
 0x142   : > { %v2433_v50 = vadd.f32 %v2432_v41, %v2419_v40  ;;  %v2421_v53 = vadd.f32 %v2420_v51, %v2407_v52  ;;  %v7997_v13 = vor.u32 %v9142_v8, %v7996_v5  ;;  %v7638_v41 = vld [vmem:[%s10738_s1 + $0x24] sm:$0xf0]  ;;  %v9048_v51 = vld [vmem:[%s10738_s1 + $0x4] sm:$0xf] }
 0x143   : > { %3516 = vmatpush.bf16.msrb.mxu0 %v7757_v11  ;;  %v7641_v52 = vor.u32 %v9051_v37, %v7638_v41 }
 0x144   : > { %v2447_v61 = vadd.f32 %v2446_v36, %v2433_v50  ;;  %3540 = vmatpush.bf16.msrb.mxu2 %v7997_v13 }
 0x145   : > { %3504 = vmatpush.bf16.msrb.mxu3 %v7637_v18  ;;  %3530 = vmatpush.bf16.msrb.mxu1 %v7853_v39  ;;  %v7794_v18 = vld [vmem:[%s10738_s1 + $0x15c] sm:$0xf0]  ;;  %v9133_v39 = vld [vmem:[%s10738_s1 + $0x2a8] sm:$0xf0] }
 0x146   : > { %v2675_v11 = vmax.f32 %v2447_v61, 0.0  ;;  %v7797_v24 = vor.u32 %v9090_v17, %v7794_v18  ;;  %v7737_v18 = vor.u32 %v9075_v15, %v7734_v16  ;;  %v8070_v15 = vld [vmem:[%s10738_s1 + $0x384] sm:$0xf0] }
 0x147   : > { %3517 = vmatpush.bf16.msrb.mxu0 %v7745_v21  ;;  %v9057_v21 = vld [vmem:[%s10738_s1 + $0x4c] sm:$0xf] }
 0x148   : > { %v7665_v28 = vor.u32 %v9057_v21, %v7662_v22  ;;  %3541 = vmatpush.bf16.msrb.mxu2 %v7985_v23 }
 0x149   : > { %3505 = vmatpush.bf16.msrb.mxu3 %v7625_v30  ;;  %3531 = vmatpush.bf16.msrb.mxu1 %v7841_v49  ;;  %v2434_v63 = vpop.f32.mrf.mxu2  ;;  %v7650_v30 = vld [vmem:[%s10738_s1 + $0x3c] sm:$0xf0] }
 0x14a   : > { %v2435_v1 = vadd.f32 %v2434_v63, %v2421_v53  ;;  %v7653_v36 = vor.u32 %v9054_v29, %v7650_v30  ;;  %v7948_v53 = vld [vmem:[%s10738_s1 + $0x288] sm:$0xf]  ;;  %v7629_v63 = vor.u32 %v9048_v51, %v7626_v55  ;;  %v7722_v29 = vld [vmem:[%s10738_s1 + $0xcc] sm:$0xf0]  ;;  %v9117_v30 = vld [vmem:[%s10738_s1 + $0x22c] sm:$0xf] }
 0x14b   : > { %3518 = vmatpush.bf16.msrb.mxu0 %v7733_v31  ;;  %v7973_v31 = vor.u32 %v9136_v27, %v7972_v26  ;;  %v9121_v26 = vld [vmem:[%s10738_s1 + $0x248] sm:$0xf0]  ;;  %v9108_v55 = vld [vmem:[%s10738_s1 + $0x1e4] sm:$0xf] }
 0x14c   : > { %v2449_v12 = vadd.f32 %v2448_v62, %v2435_v1  ;;  %v7936_v62 = vld [vmem:[%s10738_s1 + $0x270] sm:$0xf]  ;;  %v9165_v51 = vld [vmem:[%s10738_s1 + $0x3ac] sm:$0xf] }
 0x14d   : > { %3532 = vmatpush.bf16.msrb.mxu1 %v7829_v60  ;;  %3542 = vmatpush.bf16.msrb.mxu2 %v7973_v31  ;;  %v7761_v60 = vor.u32 %v9081_v57, %v7758_v58  ;;  %v7937_v1 = vor.u32 %v9127_v0, %v7936_v62  ;;  %v9154_v62 = vld [vmem:[%s10738_s1 + $0x350] sm:$0xf0] }
 0x14e   : > { %v2680_v19 = vmax.f32 %v2449_v12, 0.0  ;;  %v9124_v12 = vld [vmem:[%s10738_s1 + $0x260] sm:$0xf0] }
 0x14f   : > { %3519 = vmatpush.bf16.msrb.mxu0 %v7721_v42  ;;  %v7961_v42 = vor.u32 %v9133_v39, %v7960_v38  ;;  %v9114_v39 = vld [vmem:[%s10738_s1 + $0x214] sm:$0xf] }
 0x150   : > { %v10834_v25 = vpack.c.bf16 %v2680_v19, %v2675_v11  ;;  %v7924_v11 = vld [vmem:[%s10738_s1 + $0x258] sm:$0xf]  ;;  %v8092_v19 = vld [vmem:[%s10738_s1 + $0x3a8] sm:$0xf] }
 0x151   : > { %3533 = vmatpush.bf16.msrb.mxu1 %v7817_v6  ;;  %3543 = vmatpush.bf16.msrb.mxu2 %v7961_v42  ;;  %v8068_v42 = vld [vmem:[%s10738_s1 + $0x378] sm:$0xf] }
 0x152   : > { %3506 = vmatmul.bf16.vlgmr.msrb.gmra.mxu3 %v10834_v25 }
 0x153   : > { %3568 = vmatpush.bf16.msra.mxu0 %v7713_v43  ;;  %v9084_v43 = vld [vmem:[%s10738_s1 + $0x124] sm:$0xf] }
 0x154   : > { %v7773_v47 = vor.u32 %v9084_v43, %v7770_v44  ;;  %v9160_v43 = vld [vmem:[%s10738_s1 + $0x380] sm:$0xf0] }
 0x155   : > { %3582 = vmatpush.bf16.msra.mxu1 %v7809_v14  ;;  %v7925_v14 = vor.u32 %v9124_v12, %v7924_v11  ;;  %v8069_v44 = vor.u32 %v9160_v43, %v8068_v42  ;;  %v8032_v11 = vld [vmem:[%s10738_s1 + $0x330] sm:$0xf]  ;;  %v9151_v12 = vld [vmem:[%s10738_s1 + $0x338] sm:$0xf0]  ;;  %v8008_v42 = vld [vmem:[%s10738_s1 + $0x300] sm:$0xf] }
 0x156   : > { %v2460_v40 = vpop.f32.mrf.mxu3  ;;  %v9145_v43 = vld [vmem:[%s10738_s1 + $0x308] sm:$0xf0] }
 0x157   : > { %3569 = vmatpush.bf16.msra.mxu0 %v7701_v54  ;;  %v2461_v45 = vadd.f32 %v2460_v40, %v1602_v34  ;;  %v2474_v46 = vpop.f32.mrf.mxu0  ;;  %v9130_v54 = vld [vmem:[%s10738_s1 + $0x290] sm:$0xf0]  ;;  %v7890_v40 = vld [vmem:[%s10738_s1 + $0x21c] sm:$0xf0] }
 0x158   : > { %v2488_v48 = vpop.f32.mrf.mxu1  ;;  %v7949_v56 = vor.u32 %v9130_v54, %v7948_v53  ;;  %v7893_v41 = vor.u32 %v9114_v39, %v7890_v40  ;;  %v8094_v53 = vld [vmem:[%s10738_s1 + $0x3b4] sm:$0xf0]  ;;  %v7716_v40 = vld [vmem:[%s10738_s1 + $0xb0] sm:$0xf] }
 0x159   : > { %3583 = vmatpush.bf16.msra.mxu1 %v7797_v24  ;;  %v2502_v49 = vpop.f32.mrf.mxu2  ;;  %v2475_v50 = vadd.f32 %v2474_v46, %v2461_v45  ;;  %v7912_v24 = vld [vmem:[%s10738_s1 + $0x240] sm:$0xf]  ;;  %v9111_v45 = vld [vmem:[%s10738_s1 + $0x1fc] sm:$0xf]  ;;  %v7878_v46 = vld [vmem:[%s10738_s1 + $0x204] sm:$0xf0]  ;;  %v8097_v54 = vor.u32 %v9165_v51, %v8094_v53 }
 0x15a   : > { %3544 = vmatpush.bf16.msrb.mxu2 %v7949_v56  ;;  %v7913_v27 = vor.u32 %v9121_v26, %v7912_v24  ;;  %v7866_v56 = vld [vmem:[%s10738_s1 + $0x1ec] sm:$0xf0]  ;;  %v9148_v24 = vld [vmem:[%s10738_s1 + $0x320] sm:$0xf0] }
 0x15b   : > { %3570 = vmatpush.bf16.msra.mxu0 %v7689_v2  ;;  %v2489_v61 = vadd.f32 %v2488_v48, %v2475_v50  ;;  %v9078_v2 = vld [vmem:[%s10738_s1 + $0xf4] sm:$0xf]  ;;  %v1603_v48 = vperm.slane %v10791_v7, 2  ;;  %v9157_v50 = vld [vmem:[%s10738_s1 + $0x368] sm:$0xf0]  ;;  %v7869_v58 = vor.u32 %v9108_v55, %v7866_v56 }
 0x15c   : > { %v7749_v6 = vor.u32 %v9078_v2, %v7746_v3  ;;  %v9162_v2 = vld [vmem:[%s10738_s1 + $0x394] sm:$0xf]  ;;  %v8082_v3 = vld [vmem:[%s10738_s1 + $0x39c] sm:$0xf0]  ;;  %v7818_v51 = vld [vmem:[%s10738_s1 + $0x18c] sm:$0xf0] }
 0x15d   : > { %3584 = vmatpush.bf16.msra.mxu1 %v7785_v35  ;;  %v2503_v9 = vadd.f32 %v2502_v49, %v2489_v61  ;;  %v8080_v35 = vld [vmem:[%s10738_s1 + $0x390] sm:$0xf]  ;;  %v8056_v49 = vld [vmem:[%s10738_s1 + $0x360] sm:$0xf] }
 0x15e   : > { %v2462_v59 = vpop.f32.mrf.mxu3  ;;  %3545 = vmatpush.bf16.msrb.mxu2 %v7937_v1 }
 0x15f   : > { %3571 = vmatpush.bf16.msra.mxu0 %v7677_v20  ;;  %v2463_v4 = vadd.f32 %v2462_v59, %v1602_v34  ;;  %v2476_v5 = vpop.f32.mrf.mxu0  ;;  %v9166_v20 = vld [vmem:[%s10738_s1 + $0x3b0] sm:$0xf0]  ;;  %v2676_v21 = vmax.f32 %v2503_v9, 0.0  ;;  %v7905_v34 = vor.u32 %v9117_v30, %v7902_v33  ;;  %v8058_v30 = vld [vmem:[%s10738_s1 + $0x36c] sm:$0xf0] }
 0x160   : > { %v2490_v8 = vpop.f32.mrf.mxu1  ;;  %v8093_v23 = vor.u32 %v9166_v20, %v8092_v19  ;;  %v9099_v33 = vld [vmem:[%s10738_s1 + $0x19c] sm:$0xf] }
 0x161   : > { %3585 = vmatpush.bf16.msra.mxu1 %v7773_v47  ;;  %v2477_v10 = vadd.f32 %v2476_v5, %v2463_v4  ;;  %v2504_v13 = vpop.f32.mrf.mxu2  ;;  %v7881_v47 = vor.u32 %v9111_v45, %v7878_v46  ;;  %v8085_v5 = vor.u32 %v9162_v2, %v8082_v3  ;;  %v9141_v45 = vld [vmem:[%s10738_s1 + $0x2ec] sm:$0xf]  ;;  %v7998_v46 = vld [vmem:[%s10738_s1 + $0x2f4] sm:$0xf0]  ;;  %v9135_v3 = vld [vmem:[%s10738_s1 + $0x2bc] sm:$0xf] }
 0x162   : > { %3546 = vmatpush.bf16.msrb.mxu2 %v7925_v14  ;;  %3554 = vmatpush.bf16.msra.mxu3 %v8093_v23  ;;  %v9159_v14 = vld [vmem:[%s10738_s1 + $0x37c] sm:$0xf]  ;;  %v8020_v23 = vld [vmem:[%s10738_s1 + $0x318] sm:$0xf] }
 0x163   : > { %3572 = vmatpush.bf16.msra.mxu0 %v7665_v28  ;;  %v2491_v17 = vadd.f32 %v2490_v8, %v2477_v10  ;;  %v9072_v28 = vld [vmem:[%s10738_s1 + $0xc4] sm:$0xf]  ;;  %v7854_v8 = vld [vmem:[%s10738_s1 + $0x1d4] sm:$0xf0]  ;;  %v8073_v16 = vor.u32 %v9159_v14, %v8070_v15  ;;  %v7680_v14 = vld [vmem:[%s10738_s1 + $0x68] sm:$0xf] }
 0x164   : > { %v7725_v32 = vor.u32 %v9072_v28, %v7722_v29  ;;  %v8021_v28 = vor.u32 %v9148_v24, %v8020_v23  ;;  %v9156_v29 = vld [vmem:[%s10738_s1 + $0x364] sm:$0xf]  ;;  %v9062_v15 = vld [vmem:[%s10738_s1 + $0x70] sm:$0xf0]  ;;  %v9143_v23 = vld [vmem:[%s10738_s1 + $0x2f8] sm:$0xf0] }
 0x165   : > { %3586 = vmatpush.bf16.msra.mxu1 %v7761_v60  ;;  %v2505_v22 = vadd.f32 %v2504_v13, %v2491_v17  ;;  %v8033_v13 = vor.u32 %v9151_v12, %v8032_v11  ;;  %v9102_v17 = vld [vmem:[%s10738_s1 + $0x1b4] sm:$0xf]  ;;  %v8022_v11 = vld [vmem:[%s10738_s1 + $0x324] sm:$0xf0] }
 0x166   : > { %3547 = vmatpush.bf16.msrb.mxu2 %v7913_v27 }
 0x167   : > { %3573 = vmatpush.bf16.msra.mxu0 %v7653_v36  ;;  %v2681_v31 = vmax.f32 %v2505_v22, 0.0  ;;  %v9163_v36 = vld [vmem:[%s10738_s1 + $0x398] sm:$0xf0] }
 0x168   : > { %v8081_v38 = vor.u32 %v9163_v36, %v8080_v35 }
 0x169   : > { %3587 = vmatpush.bf16.msra.mxu1 %v7749_v6  ;;  %v10874_v37 = vpack.c.bf16 %v2681_v31, %v2676_v21  ;;  %v9105_v6 = vld [vmem:[%s10738_s1 + $0x1cc] sm:$0xf] }
 0x16a   : > { %3596 = vmatpush.bf16.msra.mxu2 %v7905_v34  ;;  %3555 = vmatpush.bf16.msra.mxu3 %v8081_v38  ;;  %v7857_v9 = vor.u32 %v9105_v6, %v7854_v8  ;;  %v7830_v34 = vld [vmem:[%s10738_s1 + $0x1a4] sm:$0xf0]  ;;  %v7692_v8 = vld [vmem:[%s10738_s1 + $0x80] sm:$0xf] }
 0x16b   : > { %3574 = vmatpush.bf16.msra.mxu0 %v7641_v52  ;;  %v8057_v52 = vor.u32 %v9157_v50, %v8056_v49  ;;  %v7833_v36 = vor.u32 %v9099_v33, %v7830_v34  ;;  %v8001_v49 = vor.u32 %v9141_v45, %v7998_v46  ;;  %v8046_v50 = vld [vmem:[%s10738_s1 + $0x354] sm:$0xf0]  ;;  %v9059_v34 = vld [vmem:[%s10738_s1 + $0x58] sm:$0xf0]  ;;  %v9126_v45 = vld [vmem:[%s10738_s1 + $0x274] sm:$0xf] }
 0x16c   : > { %3520 = vmatmul.bf16.vlgmr.msrb.gmra.mxu0 %v10874_v37  ;;  %v7938_v46 = vld [vmem:[%s10738_s1 + $0x27c] sm:$0xf0] }
 0x16d   : > { %3588 = vmatpush.bf16.msra.mxu1 %v7737_v18  ;;  %v7842_v18 = vld [vmem:[%s10738_s1 + $0x1bc] sm:$0xf0] }
 0x16e   : > { %3597 = vmatpush.bf16.msra.mxu2 %v7893_v41  ;;  %3556 = vmatpush.bf16.msra.mxu3 %v8069_v44  ;;  %v7845_v20 = vor.u32 %v9102_v17, %v7842_v18  ;;  %v9071_v41 = vld [vmem:[%s10738_s1 + $0xb8] sm:$0xf0]  ;;  %v8009_v44 = vor.u32 %v9145_v43, %v8008_v42  ;;  %v9132_v17 = vld [vmem:[%s10738_s1 + $0x2a4] sm:$0xf]  ;;  %v7962_v18 = vld [vmem:[%s10738_s1 + $0x2ac] sm:$0xf0] }
 0x16f   : > { %3575 = vmatpush.bf16.msra.mxu0 %v7629_v63  ;;  %v8044_v63 = vld [vmem:[%s10738_s1 + $0x348] sm:$0xf]  ;;  %v7717_v56 = vor.u32 %v9071_v41, %v7716_v40 }
 0x170   : > { %v2558_v61 = vpop.f32.mrf.mxu1  ;;  %v8045_v1 = vor.u32 %v9154_v62, %v8044_v63  ;;  %v9068_v63 = vld [vmem:[%s10738_s1 + $0xa0] sm:$0xf0] }
 0x171   : > { %3589 = vmatpush.bf16.msra.mxu1 %v7725_v32  ;;  %v8061_v32 = vor.u32 %v9156_v29, %v8058_v30  ;;  %v7681_v29 = vor.u32 %v9062_v15, %v7680_v14  ;;  %v7668_v30 = vld [vmem:[%s10738_s1 + $0x50] sm:$0xf]  ;;  %v9095_v14 = vld [vmem:[%s10738_s1 + $0x178] sm:$0xf0] }
 0x172   : > { %3598 = vmatpush.bf16.msra.mxu2 %v7881_v47  ;;  %3557 = vmatpush.bf16.msra.mxu3 %v8057_v52  ;;  %v9153_v47 = vld [vmem:[%s10738_s1 + $0x34c] sm:$0xf]  ;;  %v9096_v52 = vld [vmem:[%s10738_s1 + $0x184] sm:$0xf]  ;;  %v7669_v43 = vor.u32 %v9059_v34, %v7668_v30  ;;  %v7944_v30 = vld [vmem:[%s10738_s1 + $0x278] sm:$0xf] }
 0x173   : > { %3624 = vmatpush.bf16.msrb.mxu0 %v8097_v54  ;;  %v8049_v53 = vor.u32 %v9153_v47, %v8046_v50  ;;  %v7821_v54 = vor.u32 %v9096_v52, %v7818_v51  ;;  %v7980_v50 = vld [vmem:[%s10738_s1 + $0x2c0] sm:$0xf]  ;;  %v9137_v52 = vld [vmem:[%s10738_s1 + $0x2c8] sm:$0xf0] }
 0x174   : > { %v7981_v51 = vor.u32 %v9137_v52, %v7980_v50  ;;  %v9086_v50 = vld [vmem:[%s10738_s1 + $0x130] sm:$0xf0]  ;;  %v7920_v52 = vld [vmem:[%s10738_s1 + $0x248] sm:$0xf] }
 0x176   : > { %3599 = vmatpush.bf16.msra.mxu2 %v7869_v58  ;;  %3558 = vmatpush.bf16.msra.mxu3 %v8045_v1  ;;  %v9138_v58 = vld [vmem:[%s10738_s1 + $0x2d4] sm:$0xf] }
 0x177   : > { %v2516_v57 = vpop.f32.mrf.mxu2  ;;  %v2544_v59 = vpop.f32.mrf.mxu0  ;;  %3625 = vmatpush.bf16.msrb.mxu0 %v8085_v5  ;;  %v9147_v5 = vld [vmem:[%s10738_s1 + $0x31c] sm:$0xf] }
 0x178   : > { %v2517_v60 = vadd.f32 %v2516_v57, %v1603_v48  ;;  %v2560_v35 = vpop.f32.mrf.mxu1  ;;  %v7704_v57 = vld [vmem:[%s10738_s1 + $0x98] sm:$0xf]  ;;  %v8025_v12 = vor.u32 %v9147_v5, %v8022_v11  ;;  %v7632_v5 = vld [vmem:[%s10738_s1 + $0x8] sm:$0xf]  ;;  %v7914_v11 = vld [vmem:[%s10738_s1 + $0x24c] sm:$0xf0] }
 0x179   : > { %v2530_v0 = vpop.f32.mrf.mxu3  ;;  %v7705_v2 = vor.u32 %v9068_v63, %v7704_v57  ;;  %v9123_v57 = vld [vmem:[%s10738_s1 + $0x25c] sm:$0xf]  ;;  %v9053_v63 = vld [vmem:[%s10738_s1 + $0x28] sm:$0xf0] }
 0x17a   : > { %v2531_v4 = vadd.f32 %v2530_v0, %v2517_v60  ;;  %3600 = vmatpush.bf16.msra.mxu2 %v7857_v9  ;;  %3559 = vmatpush.bf16.msra.mxu3 %v8033_v13  ;;  %v7986_v60 = vld [vmem:[%s10738_s1 + $0x2dc] sm:$0xf0]  ;;  %v9150_v0 = vld [vmem:[%s10738_s1 + $0x334] sm:$0xf]  ;;  %v9065_v9 = vld [vmem:[%s10738_s1 + $0x88] sm:$0xf0] }
 0x17b   : > { %3626 = vmatpush.bf16.msrb.mxu0 %v8073_v16  ;;  %v7989_v62 = vor.u32 %v9138_v58, %v7986_v60  ;;  %v1604_v13 = vperm.slane %v10791_v7, 3  ;;  %v7693_v16 = vor.u32 %v9065_v9, %v7692_v8  ;;  %v7926_v58 = vld [vmem:[%s10738_s1 + $0x264] sm:$0xf0]  ;;  %v9050_v9 = vld [vmem:[%s10738_s1 + $0x10] sm:$0xf0] }
 0x17c   : > { %v2545_v10 = vadd.f32 %v2544_v59, %v2531_v4  ;;  %3576 = vmatmul.bf16.vlgmr.msra.gmra.mxu0 %v10834_v25  ;;  %v8034_v59 = vld [vmem:[%s10738_s1 + $0x33c] sm:$0xf0]  ;;  %v7974_v4 = vld [vmem:[%s10738_s1 + $0x2c4] sm:$0xf0] }
 0x17d   : > { %v8037_v1 = vor.u32 %v9150_v0, %v8034_v59  ;;  %v7968_v0 = vld [vmem:[%s10738_s1 + $0x2a8] sm:$0xf]  ;;  %v9134_v59 = vld [vmem:[%s10738_s1 + $0x2b0] sm:$0xf0] }
 0x17e   : > { %v2559_v21 = vadd.f32 %v2558_v61, %v2545_v10  ;;  %3601 = vmatpush.bf16.msra.mxu2 %v7845_v20  ;;  %3560 = vmatpush.bf16.msra.mxu3 %v8021_v28  ;;  %v7977_v10 = vor.u32 %v9135_v3, %v7974_v4  ;;  %v7965_v20 = vor.u32 %v9132_v17, %v7962_v18  ;;  %v8100_v17 = vld [vmem:[%s10738_s1 + $0x3b0] sm:$0xf]  ;;  %v9167_v18 = vld [vmem:[%s10738_s1 + $0x3b8] sm:$0xf0] }
 0x17f   : > { %v2518_v19 = vpop.f32.mrf.mxu2  ;;  %v2546_v27 = vpop.f32.mrf.mxu0  ;;  %3627 = vmatpush.bf16.msrb.mxu0 %v8061_v32  ;;  %v7950_v32 = vld [vmem:[%s10738_s1 + $0x294] sm:$0xf0] }
 0x180   : > { %v2519_v22 = vadd.f32 %v2518_v19, %v1603_v48  ;;  %v2677_v38 = vmax.f32 %v2559_v21, 0.0  ;;  %v9144_v19 = vld [vmem:[%s10738_s1 + $0x304] sm:$0xf]  ;;  %v8010_v21 = vld [vmem:[%s10738_s1 + $0x30c] sm:$0xf0] }
 0x181   : > { %v2532_v26 = vpop.f32.mrf.mxu3  ;;  %v8013_v24 = vor.u32 %v9144_v19, %v8010_v21  ;;  %v9131_v19 = vld [vmem:[%s10738_s1 + $0x298] sm:$0xf0] }
 0x182   : > { %v2533_v31 = vadd.f32 %v2532_v26, %v2519_v22  ;;  %3602 = vmatpush.bf16.msra.mxu2 %v7833_v36  ;;  %3561 = vmatpush.bf16.msra.mxu3 %v8009_v44  ;;  %v8004_v22 = vld [vmem:[%s10738_s1 + $0x2f0] sm:$0xf]  ;;  %v7992_v36 = vld [vmem:[%s10738_s1 + $0x2d8] sm:$0xf] }
 0x183   : > { %3628 = vmatpush.bf16.msrb.mxu0 %v8049_v53  ;;  %v8005_v26 = vor.u32 %v9143_v23, %v8004_v22  ;;  %v7656_v44 = vld [vmem:[%s10738_s1 + $0x38] sm:$0xf]  ;;  %v7633_v23 = vor.u32 %v9050_v9, %v7632_v5 }
 0x184   : > { %v2547_v39 = vadd.f32 %v2546_v27, %v2533_v31  ;;  %v9129_v31 = vld [vmem:[%s10738_s1 + $0x28c] sm:$0xf]  ;;  %v8040_v9 = vld [vmem:[%s10738_s1 + $0x338] sm:$0xf] }
 0x186   : > { %v2561_v48 = vadd.f32 %v2560_v35, %v2547_v39  ;;  %3610 = vmatpush.bf16.msrb.mxu3 %v8001_v49  ;;  %3603 = vmatpush.bf16.msra.mxu2 %v7821_v54  ;;  %v7953_v35 = vor.u32 %v9129_v31, %v7950_v32  ;;  %v7941_v49 = vor.u32 %v9126_v45, %v7938_v46  ;;  %v8088_v31 = vld [vmem:[%s10738_s1 + $0x398] sm:$0xf]  ;;  %v9164_v32 = vld [vmem:[%s10738_s1 + $0x3a0] sm:$0xf0]  ;;  %v1605_v46 = vperm.slane %v10791_v7, 4 }
 0x187   : > { %3629 = vmatpush.bf16.msrb.mxu0 %v8037_v1 }
 0x188   : > { %v2682_v55 = vmax.f32 %v2561_v48, 0.0  ;;  %v9056_v48 = vld [vmem:[%s10738_s1 + $0x40] sm:$0xf0] }
 0x18a   : > { %v10922_v61 = vpack.c.bf16 %v2682_v55, %v2677_v38  ;;  %3611 = vmatpush.bf16.msrb.mxu3 %v7989_v62  ;;  %v9140_v38 = vld [vmem:[%s10738_s1 + $0x2e0] sm:$0xf0]  ;;  %v7657_v55 = vor.u32 %v9056_v48, %v7656_v44  ;;  %v7929_v62 = vor.u32 %v9123_v57, %v7926_v58  ;;  %v9161_v44 = vld [vmem:[%s10738_s1 + $0x388] sm:$0xf0]  ;;  %v7776_v48 = vld [vmem:[%s10738_s1 + $0x128] sm:$0xf] }
 0x18b   : > { %3630 = vmatpush.bf16.msrb.mxu0 %v8025_v12  ;;  %v7993_v41 = vor.u32 %v9140_v38, %v7992_v36  ;;  %v7788_v36 = vld [vmem:[%s10738_s1 + $0x140] sm:$0xf]  ;;  %v8089_v38 = vor.u32 %v9164_v32, %v8088_v31  ;;  %v7728_v31 = vld [vmem:[%s10738_s1 + $0xc8] sm:$0xf]  ;;  %v9074_v32 = vld [vmem:[%s10738_s1 + $0xd0] sm:$0xf0] }
 0x18c   : > { %3534 = vmatmul.bf16.vlgmr.msrb.gmra.mxu1 %v10922_v61 }
 0x18d   : > { %3638 = vmatpush.bf16.msrb.mxu1 %v7717_v56  ;;  %v7644_v56 = vld [vmem:[%s10738_s1 + $0x20] sm:$0xf] }
 0x18e   : > { %3612 = vmatpush.bf16.msrb.mxu3 %v7977_v10  ;;  %v7645_v8 = vor.u32 %v9053_v63, %v7644_v56  ;;  %v9120_v10 = vld [vmem:[%s10738_s1 + $0x244] sm:$0xf]  ;;  %v9083_v63 = vld [vmem:[%s10738_s1 + $0x118] sm:$0xf0] }
 0x18f   : > { %v2614_v33 = vpop.f32.mrf.mxu0  ;;  %3631 = vmatpush.bf16.msrb.mxu0 %v8013_v24  ;;  %v7917_v15 = vor.u32 %v9120_v10, %v7914_v11  ;;  %v9152_v10 = vld [vmem:[%s10738_s1 + $0x340] sm:$0xf0] }
 0x190   : > { %v2572_v6 = vpop.f32.mrf.mxu1 }
 0x191   : > { %3639 = vmatpush.bf16.msrb.mxu1 %v7705_v2  ;;  %v2573_v27 = vadd.f32 %v2572_v6, %v1604_v13  ;;  %v7969_v2 = vor.u32 %v9134_v59, %v7968_v0  ;;  %v8052_v59 = vld [vmem:[%s10738_s1 + $0x350] sm:$0xf] }
 0x192   : > { %3613 = vmatpush.bf16.msrb.mxu3 %v7965_v20 }
 0x193   : > { %3680 = vmatpush.bf16.msra.mxu0 %v8005_v26 }
 0x195   : > { %3640 = vmatpush.bf16.msrb.mxu1 %v7693_v16  ;;  %v7956_v16 = vld [vmem:[%s10738_s1 + $0x290] sm:$0xf] }
 0x196   : > { %3614 = vmatpush.bf16.msrb.mxu3 %v7953_v35  ;;  %v7957_v22 = vor.u32 %v9131_v19, %v7956_v16  ;;  %v7740_v16 = vld [vmem:[%s10738_s1 + $0xe0] sm:$0xf] }
 0x197   : > { %v2586_v28 = vpop.f32.mrf.mxu2  ;;  %3681 = vmatpush.bf16.msra.mxu0 %v7993_v41  ;;  %v2616_v6 = vpop.f32.mrf.mxu0  ;;  %v9125_v41 = vld [vmem:[%s10738_s1 + $0x268] sm:$0xf0]  ;;  %v8028_v19 = vld [vmem:[%s10738_s1 + $0x320] sm:$0xf] }
 0x198   : > { %v2574_v40 = vpop.f32.mrf.mxu1  ;;  %v2587_v42 = vadd.f32 %v2586_v28, %v2573_v27  ;;  %v8101_v27 = vor.u32 %v9167_v18, %v8100_v17  ;;  %v7800_v28 = vld [vmem:[%s10738_s1 + $0x158] sm:$0xf]  ;;  %v9077_v17 = vld [vmem:[%s10738_s1 + $0xe8] sm:$0xf0] }
 0x199   : > { %v2600_v39 = vpop.f32.mrf.mxu3  ;;  %3641 = vmatpush.bf16.msrb.mxu1 %v7681_v29  ;;  %v2575_v47 = vadd.f32 %v2574_v40, %v1604_v13  ;;  %v7812_v13 = vld [vmem:[%s10738_s1 + $0x170] sm:$0xf]  ;;  %v9092_v29 = vld [vmem:[%s10738_s1 + $0x160] sm:$0xf0]  ;;  %v7932_v40 = vld [vmem:[%s10738_s1 + $0x260] sm:$0xf] }
 0x19a   : > { %v2601_v53 = vadd.f32 %v2600_v39, %v2587_v42  ;;  %3615 = vmatpush.bf16.msrb.mxu3 %v7941_v49  ;;  %v7813_v24 = vor.u32 %v9095_v14, %v7812_v13  ;;  %v7801_v35 = vor.u32 %v9092_v29, %v7800_v28  ;;  %v9089_v39 = vld [vmem:[%s10738_s1 + $0x148] sm:$0xf0]  ;;  %v7933_v45 = vor.u32 %v9125_v41, %v7932_v40 }
 0x19b   : > { %3682 = vmatpush.bf16.msra.mxu0 %v7981_v51  ;;  %v9122_v51 = vld [vmem:[%s10738_s1 + $0x250] sm:$0xf0] }
 0x19c   : > { %3590 = vmatmul.bf16.vlgmr.msra.gmra.mxu1 %v10874_v37  ;;  %v2615_v3 = vadd.f32 %v2614_v33, %v2601_v53  ;;  %v9128_v33 = vld [vmem:[%s10738_s1 + $0x280] sm:$0xf0]  ;;  %v7921_v56 = vor.u32 %v9122_v51, %v7920_v52  ;;  %v7860_v52 = vld [vmem:[%s10738_s1 + $0x1d0] sm:$0xf]  ;;  %v9107_v51 = vld [vmem:[%s10738_s1 + $0x1d8] sm:$0xf0] }
 0x19d   : > { %3642 = vmatpush.bf16.msrb.mxu1 %v7669_v43  ;;  %v7945_v34 = vor.u32 %v9128_v33, %v7944_v30  ;;  %v8076_v43 = vld [vmem:[%s10738_s1 + $0x380] sm:$0xf]  ;;  %v9119_v30 = vld [vmem:[%s10738_s1 + $0x238] sm:$0xf0]  ;;  %v8016_v33 = vld [vmem:[%s10738_s1 + $0x308] sm:$0xf] }
 0x19e   : > { %3616 = vmatpush.bf16.msrb.mxu3 %v7929_v62  ;;  %v2678_v20 = vmax.f32 %v2615_v3, 0.0  ;;  %v8077_v49 = vor.u32 %v9161_v44, %v8076_v43  ;;  %v9116_v43 = vld [vmem:[%s10738_s1 + $0x220] sm:$0xf0] }
 0x19f   : > { %v2588_v54 = vpop.f32.mrf.mxu2  ;;  %3683 = vmatpush.bf16.msra.mxu0 %v7969_v2 }
 0x1a0   : > { %v2589_v60 = vadd.f32 %v2588_v54, %v2575_v47  ;;  %v7789_v47 = vor.u32 %v9089_v39, %v7788_v36  ;;  %v8064_v54 = vld [vmem:[%s10738_s1 + $0x368] sm:$0xf]  ;;  %v7729_v39 = vor.u32 %v9074_v32, %v7728_v31 }
 0x1a1   : > { %v2602_v1 = vpop.f32.mrf.mxu3  ;;  %3643 = vmatpush.bf16.msrb.mxu1 %v7657_v55  ;;  %v9158_v55 = vld [vmem:[%s10738_s1 + $0x370] sm:$0xf0] }
 0x1a2   : > { %v2603_v4 = vadd.f32 %v2602_v1, %v2589_v60  ;;  %3617 = vmatpush.bf16.msrb.mxu3 %v7917_v15  ;;  %v8065_v58 = vor.u32 %v9158_v55, %v8064_v54  ;;  %v7764_v60 = vld [vmem:[%s10738_s1 + $0x110] sm:$0xf]  ;;  %v9155_v1 = vld [vmem:[%s10738_s1 + $0x358] sm:$0xf0]  ;;  %v8041_v15 = vor.u32 %v9152_v10, %v8040_v9  ;;  %v7848_v54 = vld [vmem:[%s10738_s1 + $0x1b8] sm:$0xf] }
 0x1a3   : > { %3684 = vmatpush.bf16.msra.mxu0 %v7957_v22  ;;  %v7765_v3 = vor.u32 %v9083_v63, %v7764_v60  ;;  %v8053_v5 = vor.u32 %v9155_v1, %v8052_v59  ;;  %v9104_v55 = vld [vmem:[%s10738_s1 + $0x1c0] sm:$0xf0]  ;;  %v9174_v63 = vld [vmem:[%s10361_s30 + $0x30] sm:$0xff]  ;;  %v9180_v9 = vld [vmem:[%s10361_s30 + $0x60] sm:$0xff] }
 0x1a4   : > { %v2617_v12 = vadd.f32 %v2616_v6, %v2603_v4  ;;  %v7752_v6 = vld [vmem:[%s10738_s1 + $0xf8] sm:$0xf]  ;;  %v9171_v59 = vld [vmem:[%s10361_s30 + $0x18] sm:$0xff] }
 0x1a5   : > { %3644 = vmatpush.bf16.msrb.mxu1 %v7645_v8  ;;  %v9080_v8 = vld [vmem:[%s10738_s1 + $0x100] sm:$0xf0] }
 0x1a6   : > { %v2683_v21 = vmax.f32 %v2617_v12, 0.0  ;;  %v7753_v13 = vor.u32 %v9080_v8, %v7752_v6  ;;  %v9183_v1 = vld [vmem:[%s10361_s30 + $0x78] sm:$0xff]  ;;  %v9168_v8 = vld [vmem:[%s10361_s30] sm:$0xff] }
 0x1a7   : > { %3685 = vmatpush.bf16.msra.mxu0 %v7945_v34  ;;  %v9146_v34 = vld [vmem:[%s10738_s1 + $0x310] sm:$0xf0] }
 0x1a8   : > { %v10972_v26 = vpack.c.bf16 %v2683_v21, %v2678_v20  ;;  %v9149_v20 = vld [vmem:[%s10738_s1 + $0x328] sm:$0xf0]  ;;  %v8017_v41 = vor.u32 %v9146_v34, %v8016_v33  ;;  %v9186_v33 = vld [vmem:[%s10361_s30 + $0x90] sm:$0xff] }
 0x1a9   : > { %3645 = vmatpush.bf16.msrb.mxu1 %v7633_v23  ;;  %v8029_v29 = vor.u32 %v9149_v20, %v8028_v19  ;;  %v9176_v20 = vld [vmem:[%s10361_s30 + $0x40] sm:$0xff] }
 0x1aa   : > { %3548 = vmatmul.bf16.vlgmr.msrb.gmra.mxu2 %v10972_v26 }
 0x1ab   : > { %3652 = vmatpush.bf16.msrb.mxu2 %v7813_v24  ;;  %3686 = vmatpush.bf16.msra.mxu0 %v7933_v45  ;;  %v7741_v24 = vor.u32 %v9077_v17, %v7740_v16  ;;  %v7884_v45 = vld [vmem:[%s10738_s1 + $0x200] sm:$0xf]  ;;  %v9177_v16 = vld [vmem:[%s10361_s30 + $0x48] sm:$0xff] }
 0x1ac   : > { %3646 = vmatmul.bf16.vlgmr.msrb.gmra.mxu1 %v10834_v25  ;;  %v7777_v25 = vor.u32 %v9086_v50, %v7776_v48  ;;  %v7872_v48 = vld [vmem:[%s10738_s1 + $0x1e8] sm:$0xf] }
 0x1ad   : > { %3694 = vmatpush.bf16.msra.mxu1 %v8101_v27  ;;  %v7908_v27 = vld [vmem:[%s10738_s1 + $0x230] sm:$0xf] }
 0x1af   : > { %v2628_v42 = vpop.f32.mrf.mxu0  ;;  %3653 = vmatpush.bf16.msrb.mxu2 %v7801_v35  ;;  %v2670_v57 = vpop.f32.mrf.mxu3  ;;  %3687 = vmatpush.bf16.msra.mxu0 %v7921_v56  ;;  %v7836_v56 = vld [vmem:[%s10738_s1 + $0x1a0] sm:$0xf] }
 0x1b0   : > { %v2642_v53 = vpop.f32.mrf.mxu1  ;;  %v2629_v7 = vadd.f32 %v2628_v42, %v1605_v46  ;;  %v7896_v42 = vld [vmem:[%s10738_s1 + $0x218] sm:$0xf] }
 0x1b1   : > { %3695 = vmatpush.bf16.msra.mxu1 %v8089_v38  ;;  %v7909_v38 = vor.u32 %v9119_v30, %v7908_v27  ;;  %v7897_v44 = vor.u32 %v9116_v43, %v7896_v42  ;;  %v9187_v27 = vld [vmem:[%s10361_s30 + $0x98] sm:$0xff]  ;;  %v9185_v42 = vld [vmem:[%s10361_s30 + $0x88] sm:$0xff] }
 0x1b2   : > { %v2643_v2 = vadd.f32 %v2642_v53, %v2629_v7  ;;  %v7861_v53 = vor.u32 %v9107_v51, %v7860_v52  ;;  %v9101_v7 = vld [vmem:[%s10738_s1 + $0x1a8] sm:$0xf0] }
 0x1b3   : > { %3654 = vmatpush.bf16.msrb.mxu2 %v7789_v47 }
 0x1b5   : > { %3696 = vmatpush.bf16.msra.mxu1 %v8077_v49  ;;  %v9110_v49 = vld [vmem:[%s10738_s1 + $0x1f0] sm:$0xf0] }
 0x1b6   : > { %v7873_v50 = vor.u32 %v9110_v49, %v7872_v48 }
 0x1b7   : > { %v2656_v62 = vpop.f32.mrf.mxu2  ;;  %v2630_v0 = vpop.f32.mrf.mxu0  ;;  %3655 = vmatpush.bf16.msrb.mxu2 %v7777_v25  ;;  %v7837_v25 = vor.u32 %v9101_v7, %v7836_v56 }
 0x1b8   : > { %v2631_v4 = vadd.f32 %v2630_v0, %v1605_v46  ;;  %v2657_v11 = vadd.f32 %v2656_v62, %v2643_v2  ;;  %v2644_v12 = vpop.f32.mrf.mxu1  ;;  %v2672_v23 = vpop.f32.mrf.mxu3  ;;  %v9113_v46 = vld [vmem:[%s10738_s1 + $0x208] sm:$0xf0]  ;;  %v9173_v62 = vld [vmem:[%s10361_s30 + $0x28] sm:$0xff]  ;;  %v9170_v2 = vld [vmem:[%s10361_s30 + $0x10] sm:$0xff] }
 0x1b9   : > { %3697 = vmatpush.bf16.msra.mxu1 %v8065_v58  ;;  %v7885_v47 = vor.u32 %v9113_v46, %v7884_v45  ;;  %v9098_v58 = vld [vmem:[%s10738_s1 + $0x190] sm:$0xf0]  ;;  %v9172_v0 = vld [vmem:[%s10361_s30 + $0x20] sm:$0xff] }
 0x1ba   : > { %3604 = vmatmul.bf16.vlgmr.msra.gmra.mxu2 %v10922_v61  ;;  %v2645_v14 = vadd.f32 %v2644_v12, %v2631_v4  ;;  %v2671_v21 = vadd.f32 %v2670_v57, %v2657_v11  ;;  %v7824_v57 = vld [vmem:[%s10738_s1 + $0x188] sm:$0xf]  ;;  %v9179_v11 = vld [vmem:[%s10361_s30 + $0x58] sm:$0xff] }
 0x1bb   : > { %3656 = vmatpush.bf16.msrb.mxu2 %v7765_v3  ;;  %v7825_v60 = vor.u32 %v9098_v58, %v7824_v57  ;;  %v9169_v3 = vld [vmem:[%s10361_s30 + $0x8] sm:$0xff] }
 0x1bc   : > { %v2679_v35 = vmax.f32 %v2671_v21, 0.0 }
 0x1bd   : > { %3698 = vmatpush.bf16.msra.mxu1 %v8053_v5  ;;  %v9181_v5 = vld [vmem:[%s10361_s30 + $0x68] sm:$0xff] }
 0x1bf   : > { %v2658_v18 = vpop.f32.mrf.mxu2  ;;  %3657 = vmatpush.bf16.msrb.mxu2 %v7753_v13 }
 0x1c0   : > { %v2659_v22 = vadd.f32 %v2658_v18, %v2645_v14  ;;  %v2850_v18 = vld [vmem:[%s1370_s0] sm:$0x7]  ;;  %s9999_s0 = smov 96  }
 0x1c1   : > { %3699 = vmatpush.bf16.msra.mxu1 %v8041_v15  ;;  %v9178_v15 = vld [vmem:[%s10361_s30 + $0x50] sm:$0xff]  ;;  %v2853_v48 = vperm.slane %v2850_v18, 1 }
 0x1c2   : > { %v2673_v28 = vadd.f32 %v2672_v23, %v2659_v22  ;;  %v2852_v23 = vperm.slane %v2850_v18, 0 }
 0x1c3   : > { %3658 = vmatpush.bf16.msrb.mxu2 %v7741_v24 }
 0x1c4   : > { %v2684_v36 = vmax.f32 %v2673_v28, 0.0 }
 0x1c5   : > { %3700 = vmatpush.bf16.msra.mxu1 %v8029_v29 }
 0x1c6   : > { %v2849_v40 = vpack.c.bf16 %v2684_v36, %v2679_v35 }
 0x1c7   : > { %3659 = vmatpush.bf16.msrb.mxu2 %v7729_v39 }
 0x1c8   : > { %3562 = vmatmul.bf16.vlgmr.msra.gmra.mxu3 %v2849_v40  ;;  %3632 = vmatmul.bf16.vlgmr.msrb.gmra.mxu0 %v2849_v40 }
 0x1c9   : > { %3666 = vmatpush.bf16.msra.mxu3 %v7909_v38  ;;  %3701 = vmatpush.bf16.msra.mxu1 %v8017_v41 }
 0x1ca   : > { %3660 = vmatmul.bf16.vlgmr.msrb.gmra.mxu2 %v10874_v37  ;;  %v7849_v37 = vor.u32 %v9104_v55, %v7848_v54  ;;  %3911 = vmatpush.bf16.msrb.mxu0 %v9187_v27 }
 0x1cc   : > { %3702 = vmatmul.bf16.vlgmr.msra.gmra.mxu1 %v2849_v40 }
 0x1cd   : > { %3667 = vmatpush.bf16.msra.mxu3 %v7897_v44 }
 0x1ce   : > { %3912 = vmatpush.bf16.msrb.mxu0 %v9186_v33 }
 0x1d1   : > { %3668 = vmatpush.bf16.msra.mxu3 %v7885_v47  ;;  %v9184_v47 = vld [vmem:[%s10361_s30 + $0x80] sm:$0xff] }
 0x1d2   : > { %3913 = vmatpush.bf16.msrb.mxu0 %v9185_v42 }
 0x1d5   : > { %3669 = vmatpush.bf16.msra.mxu3 %v7873_v50  ;;  %v3507_v10 = vpop.f32.mrf.mxu3 }
 0x1d6   : > { %v3508_v28 = vadd.f32 %v3507_v10, %v2852_v23  ;;  %3914 = vmatpush.bf16.msrb.mxu0 %v9184_v47  ;;  %v9198_v47 = vld [vmem:[%s10375_s18 + $0x10] sm:$0xff] }
 0x1d8   : > { %3618 = vmatmul.bf16.vlgmr.msrb.gmra.mxu3 %v10972_v26  ;;  %3688 = vmatmul.bf16.vlgmr.msra.gmra.mxu0 %v10972_v26  ;;  %v9175_v26 = vld [vmem:[%s10361_s30 + $0x38] sm:$0xff] }
 0x1d9   : > { %3670 = vmatpush.bf16.msra.mxu3 %v7861_v53  ;;  %3879 = vmatpush.bf16.msra.mxu2 %v9175_v26 }
 0x1dd   : > { %3671 = vmatpush.bf16.msra.mxu3 %v7849_v37  ;;  %3880 = vmatpush.bf16.msra.mxu2 %v9174_v63  ;;  %v3509_v17 = vpop.f32.mrf.mxu3 }
 0x1de   : > { %v3510_v29 = vadd.f32 %v3509_v17, %v2852_v23 }
 0x1e1   : > { %3672 = vmatpush.bf16.msra.mxu3 %v7837_v25  ;;  %3881 = vmatpush.bf16.msra.mxu2 %v9173_v62 }
 0x1e5   : > { %3673 = vmatpush.bf16.msra.mxu3 %v7825_v60  ;;  %3882 = vmatpush.bf16.msra.mxu2 %v9172_v0  ;;  %v2854_v0 = vperm.slane %v2850_v18, 2 }
 0x1e8   : > { %3674 = vmatmul.bf16.vlgmr.msra.gmra.mxu3 %v10922_v61  ;;  %v9182_v61 = vld [vmem:[%s10361_s30 + $0x70] sm:$0xff]  ;;  %s8896_s30 = sshll.u32 %s10406_s25, 6 }
 0x1e9   : > { %3883 = vmatpush.bf16.msra.mxu2 %v9171_v59  ;;  %3893 = vmatpush.bf16.msrb.mxu3 %v9183_v1  ;;  %v3521_v4 = vpop.f32.mrf.mxu0  ;;  %s1375_s21 = scalar_lea.vmem %s11798_s3, %s8896_s30  ;;  %s10000_s30 = smov 32  }
 0x1ea   : > { %v3522_v30 = vadd.f32 %v3521_v4, %v3508_v28  ;;  %v9191_v23 = vld [vmem:[%s1375_s21 + $0x18] sm:$0xff]  ;;  %v9189_v27 = vld [vmem:[%s1375_s21 + $0x8] sm:$0xff]  ;;  %v9188_v28 = vld [vmem:[%s1375_s21] sm:$0xff]  ;;  %s8897_s3 = sshll.u32 %s10406_s25, 8 }
 0x1eb   : > { %s11298_s5 = scalar_lea.vmem %s11804_s17, %s8897_s3  ;;  %s7014_s3 = sshll.u32 %s10406_s25, 2 }
 0x1ed   : > { %3884 = vmatpush.bf16.msra.mxu2 %v9170_v2  ;;  %3894 = vmatpush.bf16.msrb.mxu3 %v9182_v61 }
 0x1f1   : > { %3885 = vmatpush.bf16.msra.mxu2 %v9169_v3  ;;  %3895 = vmatpush.bf16.msrb.mxu3 %v9181_v5  ;;  %v3523_v12 = vpop.f32.mrf.mxu0 }
 0x1f2   : > { %v3524_v31 = vadd.f32 %v3523_v12, %v3510_v29  ;;  %v9199_v29 = vld [vmem:[%s10375_s18 + $0x18] sm:$0xff] }
 0x1f5   : > { %3886 = vmatpush.bf16.msra.mxu2 %v9168_v8  ;;  %3896 = vmatpush.bf16.msrb.mxu3 %v9180_v9 }
 0x1f9   : > { %3897 = vmatpush.bf16.msrb.mxu3 %v9179_v11  ;;  %v3577_v19 = vpop.f32.mrf.mxu0  ;;  %4050 = vmatpush.bf16.msrb.mxu2 %v9199_v29 }
 0x1fa   : > { %v3578_v51 = vadd.f32 %v3577_v19, %v2853_v48  ;;  %v9195_v19 = vld [vmem:[%s1375_s21 + $0x38] sm:$0xff] }
 0x1fb   : > { %3992 = vmatpush.bf16.msrb.mxu1 %v9195_v19 }
 0x1fd   : > { %3898 = vmatpush.bf16.msrb.mxu3 %v9178_v15  ;;  %4051 = vmatpush.bf16.msrb.mxu2 %v9198_v47 }
 0x201   : > { %3899 = vmatpush.bf16.msrb.mxu3 %v9177_v16  ;;  %v3579_v32 = vpop.f32.mrf.mxu0 }
 0x202   : > { %v3580_v53 = vadd.f32 %v3579_v32, %v2853_v48  ;;  %v9461_v32 = vld [vmem:[%s1094_s7] ss:$0 sm:$0xff]  ;;  %v9197_v48 = vld [vmem:[%s10375_s18 + $0x8] sm:$0xff]  ;;  %s9337_s7 = smul.u32 384, %s10406_s25 }
 0x203   : > { %4052 = vmatpush.bf16.msrb.mxu2 %v9197_v48 }
 0x204   : > { %s11071_s28 = scalar_lea.vmem %s11799_s4, %s9337_s7  ;;  %s11802_s4 = sld [smem:[#allocation52_spill]] }
 0x205   : > { %3900 = vmatpush.bf16.msrb.mxu3 %v9176_v20  ;;  %v9194_v20 = vld [vmem:[%s1375_s21 + $0x30] sm:$0xff]  ;;  %v8270_v19 = vld [vmem:[%s11071_s28 + $0x48] sm:$0xf]  ;;  %v9204_v47 = vld [vmem:[%s11071_s28 + $0x20] sm:$0xf0] }
 0x206   : > { %3993 = vmatpush.bf16.msrb.mxu1 %v9194_v20  ;;  %v9210_v20 = vld [vmem:[%s11071_s28 + $0x50] sm:$0xf0]  ;;  %v9203_v48 = vld [vmem:[%s11071_s28 + $0x1c] sm:$0xf] }
 0x209   : > { %v3535_v6 = vpop.f32.mrf.mxu1 }
 0x20a   : > { %v3536_v34 = vadd.f32 %v3535_v6, %v3522_v30 }
 0x211   : > { %v3537_v13 = vpop.f32.mrf.mxu1 }
 0x212   : > { %v3538_v35 = vadd.f32 %v3537_v13, %v3524_v31 }
 0x219   : > { %v3591_v21 = vpop.f32.mrf.mxu1 }
 0x21a   : > { %v3592_v54 = vadd.f32 %v3591_v21, %v3578_v51  ;;  %v9193_v21 = vld [vmem:[%s1375_s21 + $0x28] sm:$0xff] }
 0x21b   : > { %3994 = vmatpush.bf16.msrb.mxu1 %v9193_v21  ;;  %v9221_v51 = vld [vmem:[%s11071_s28 + $0xac] sm:$0xf] }
 0x21c   : > { %v9209_v21 = vld [vmem:[%s11071_s28 + $0x4c] sm:$0xf] }
 0x221   : > { %v3593_v36 = vpop.f32.mrf.mxu1 }
 0x222   : > { %v3594_v55 = vadd.f32 %v3593_v36, %v3580_v53 }
 0x229   : > { %v3647_v49 = vpop.f32.mrf.mxu1 }
 0x22a   : > { %v3648_v61 = vadd.f32 %v3647_v49, %v2854_v0  ;;  %v9196_v49 = vld [vmem:[%s10375_s18] sm:$0xff] }
 0x22b   : > { %4053 = vmatpush.bf16.msrb.mxu2 %v9196_v49 }
 0x22d   : > { %v3549_v14 = vpop.f32.mrf.mxu2 }
 0x22e   : > { %v3550_v39 = vadd.f32 %v3549_v14, %v3536_v34 }
 0x231   : > { %v3649_v60 = vpop.f32.mrf.mxu1 }
 0x232   : > { %v3650_v6 = vadd.f32 %v3649_v60, %v2854_v0 }
 0x235   : > { %v3551_v22 = vpop.f32.mrf.mxu2 }
 0x236   : > { %v3552_v40 = vadd.f32 %v3551_v22, %v3538_v35  ;;  %v9192_v22 = vld [vmem:[%s1375_s21 + $0x20] sm:$0xff] }
 0x237   : > { %3995 = vmatpush.bf16.msrb.mxu1 %v9192_v22  ;;  %v8272_v22 = vld [vmem:[%s11071_s28 + $0x54] sm:$0xf0] }
 0x23b   : > { %3996 = vmatpush.bf16.msrb.mxu1 %v9191_v23  ;;  %v8278_v23 = vld [vmem:[%s11071_s28 + $0x50] sm:$0xf] }
 0x23d   : > { %v3605_v38 = vpop.f32.mrf.mxu2 }
 0x23e   : > { %v3606_v37 = vadd.f32 %v3605_v38, %v3592_v54  ;;  %v8320_v54 = vld [vmem:[%s11071_s28 + $0xb4] sm:$0xf0] }
 0x245   : > { %v3633_v46 = vpop.f32.mrf.mxu0  ;;  %v3607_v50 = vpop.f32.mrf.mxu2 }
 0x246   : > { %v3608_v7 = vadd.f32 %v3607_v50, %v3594_v55  ;;  %v8318_v50 = vld [vmem:[%s11071_s28 + $0xa8] sm:$0xf]  ;;  %v8326_v55 = vld [vmem:[%s11071_s28 + $0xb0] sm:$0xf] }
 0x249   : > { %v3703_v3 = vpop.f32.mrf.mxu1 }
 0x24b   : > { %v3563_v24 = vpop.f32.mrf.mxu3 }
 0x24c   : > { %v3564_v43 = vadd.f32 %v3563_v24, %v3550_v39  ;;  %v9190_v24 = vld [vmem:[%s1375_s21 + $0x10] sm:$0xff]  ;;  %s11801_s21 = sld [smem:[#allocation40_spill]] }
 0x24d   : > { %v3635_v56 = vpop.f32.mrf.mxu0  ;;  %v3661_v26 = vpop.f32.mrf.mxu2  ;;  %3997 = vmatpush.bf16.msrb.mxu1 %v9190_v24  ;;  %v9211_v24 = vld [vmem:[%s11071_s28 + $0x58] sm:$0xf0] }
 0x24e   : > { %v3662_v4 = vadd.f32 %v3661_v26, %v3648_v61  ;;  %v8308_v26 = vld [vmem:[%s11071_s28 + $0x9c] sm:$0xf0]  ;;  %v9215_v61 = vld [vmem:[%s11071_s28 + $0x7c] sm:$0xf]  ;;  %v8279_v29 = vor.u32 %v9211_v24, %v8278_v23 }
 0x251   : > { %v3705_v15 = vpop.f32.mrf.mxu1  ;;  %3998 = vmatpush.bf16.msrb.mxu1 %v9189_v27  ;;  %v8271_v27 = vor.u32 %v9210_v20, %v8270_v19 }
 0x252   : > { %s1352_s7 = scalar_lea.vmem %s11801_s21, %s11167_s8 }
 0x253   : > { %v3565_v41 = vpop.f32.mrf.mxu3 }
 0x254   : > { %v3566_v44 = vadd.f32 %v3565_v41, %v3552_v40 }
 0x255   : > { %v3689_v1 = vpop.f32.mrf.mxu0  ;;  %v3663_v5 = vpop.f32.mrf.mxu2  ;;  %3999 = vmatpush.bf16.msrb.mxu1 %v9188_v28  ;;  %v8275_v28 = vor.u32 %v9209_v21, %v8272_v22 }
 0x256   : > { %v3748_v45 = vpack.c.bf16 %v3566_v44, %v3564_v43  ;;  %v3664_v9 = vadd.f32 %v3663_v5, %v3650_v6  ;;  %v9217_v5 = vld [vmem:[%s11071_s28 + $0x88] sm:$0xf0] }
 0x258   : > { %3887 = vmatmul.bf16.vlgmr.msra.gmra.mxu2 %v3748_v45 }
 0x25b   : > { %v3619_v52 = vpop.f32.mrf.mxu3 }
 0x25c   : > { %v3620_v25 = vadd.f32 %v3619_v52, %v3606_v37  ;;  %v9222_v52 = vld [vmem:[%s11071_s28 + $0xb0] sm:$0xf0]  ;;  %v9223_v37 = vld [vmem:[%s11071_s28 + $0xb8] sm:$0xf0] }
 0x25d   : > { %v3691_v13 = vpop.f32.mrf.mxu0  ;;  %v8319_v53 = vor.u32 %v9222_v52, %v8318_v50  ;;  %v8248_v50 = vld [vmem:[%s11071_s28 + $0x24] sm:$0xf0]  ;;  %v8254_v52 = vld [vmem:[%s11071_s28 + $0x20] sm:$0xf] }
 0x25e   : > { %v3634_v63 = vadd.f32 %v3633_v46, %v3620_v25  ;;  %v8306_v25 = vld [vmem:[%s11071_s28 + $0x90] sm:$0xf] }
 0x25f   : > { %4232 = vmatpush.bf16.msra.mxu0 %v8319_v53  ;;  %v8251_v53 = vor.u32 %v9203_v48, %v8248_v50  ;;  %v4060_v50 = vld [vmem:[%s1352_s7] sm:$0x3]  ;;  %s11806_s7 = sld [smem:[#allocation54_spill]] }
 0x263   : > { %v3621_v57 = vpop.f32.mrf.mxu3 }
 0x264   : > { %v3622_v58 = vadd.f32 %v3621_v57, %v3608_v7  ;;  %v8327_v7 = vor.u32 %v9223_v37, %v8326_v55  ;;  %v9219_v57 = vld [vmem:[%s11071_s28 + $0x98] sm:$0xf0]  ;;  %v8234_v55 = vld [vmem:[%s11071_s28] sm:$0xf]  ;;  %v9201_v37 = vld [vmem:[%s11071_s28 + $0x8] sm:$0xf0] }
 0x265   : > { %v8307_v60 = vor.u32 %v9219_v57, %v8306_v25  ;;  %v8236_v25 = vld [vmem:[%s11071_s28 + $0xc] sm:$0xf0]  ;;  %v8242_v57 = vld [vmem:[%s11071_s28 + $0x8] sm:$0xf]  ;;  %s11365_s17 = scalar_lea.vmem %s11806_s7, %s7014_s3 }
 0x266   : > { %v3636_v62 = vadd.f32 %v3635_v56, %v3622_v58  ;;  %v8323_v56 = vor.u32 %v9221_v51, %v8320_v54  ;;  %v9218_v58 = vld [vmem:[%s11071_s28 + $0x94] sm:$0xf]  ;;  %4260 = vmatpush.bf16.msra.mxu3 %v8327_v7  ;;  %v9205_v51 = vld [vmem:[%s11071_s28 + $0x28] sm:$0xf0]  ;;  %v8235_v7 = vor.u32 %v9201_v37, %v8234_v55  ;;  %v4062_v37 = vrot.slane %v4060_v50, 1 }
 0x267   : > { %v8311_v0 = vor.u32 %v9218_v58, %v8308_v26  ;;  %4233 = vmatpush.bf16.msra.mxu0 %v8307_v60  ;;  %v8255_v54 = vor.u32 %v9205_v51, %v8254_v52  ;;  %v9202_v58 = vld [vmem:[%s11071_s28 + $0x10] sm:$0xf0]  ;;  %v11176_v51 = vperm.slane %v4060_v50, 0 }
 0x268   : > { %v3749_v59 = vpack.c.bf16 %v3636_v62, %v3634_v63  ;;  %v8314_v63 = vld [vmem:[%s11071_s28 + $0x98] sm:$0xf]  ;;  %v9220_v62 = vld [vmem:[%s11071_s28 + $0xa0] sm:$0xf0]  ;;  %4246 = vmatpush.bf16.msra.mxu2 %v8323_v56  ;;  %v8243_v26 = vor.u32 %v9202_v58, %v8242_v57 }
 0x269   : > { %v9200_v56 = vld [vmem:[%s11071_s28 + $0x4] sm:$0xf] }
 0x26a   : > { %3901 = vmatmul.bf16.vlgmr.msrb.gmra.mxu3 %v3749_v59  ;;  %v8315_v59 = vor.u32 %v9220_v62, %v8314_v63  ;;  %v8239_v60 = vor.u32 %v9200_v56, %v8236_v25  ;;  %v9463_v62 = vld [vmem:[%s1122_s29] ss:$0 sm:$0xff]  ;;  %s9998_s29 = smov 64   ;;  %v11181_v25 = vperm.slane %v4062_v37, 0 }
 0x26b   : > { %v3675_v2 = vpop.f32.mrf.mxu3 }
 0x26c   : > { %v3676_v8 = vadd.f32 %v3675_v2, %v3662_v4  ;;  %v9216_v2 = vld [vmem:[%s11071_s28 + $0x80] sm:$0xf0]  ;;  %v8302_v4 = vld [vmem:[%s11071_s28 + $0x80] sm:$0xf]  ;;  %4247 = vmatpush.bf16.msra.mxu2 %v8311_v0  ;;  %4261 = vmatpush.bf16.msra.mxu3 %v8315_v59 }
 0x26e   : > { %v3690_v11 = vadd.f32 %v3689_v1, %v3676_v8  ;;  %v8294_v1 = vld [vmem:[%s11071_s28 + $0x78] sm:$0xf] }
 0x26f   : > { %v8295_v6 = vor.u32 %v9216_v2, %v8294_v1 }
 0x270   : > { %v3704_v16 = vadd.f32 %v3703_v3, %v3690_v11  ;;  %v8296_v3 = vld [vmem:[%s11071_s28 + $0x84] sm:$0xf0]  ;;  %v9213_v11 = vld [vmem:[%s11071_s28 + $0x68] sm:$0xf0] }
 0x271   : > { %v8299_v8 = vor.u32 %v9215_v61, %v8296_v3  ;;  %4234 = vmatpush.bf16.msra.mxu0 %v8295_v6 }
 0x273   : > { %v3677_v10 = vpop.f32.mrf.mxu3  ;;  %4248 = vmatpush.bf16.msra.mxu2 %v8299_v8 }
 0x274   : > { %v3678_v12 = vadd.f32 %v3677_v10, %v3664_v9  ;;  %v8303_v9 = vor.u32 %v9217_v5, %v8302_v4  ;;  %v8282_v10 = vld [vmem:[%s11071_s28 + $0x60] sm:$0xf] }
 0x276   : > { %v3692_v14 = vadd.f32 %v3691_v13, %v3678_v12  ;;  %v9212_v12 = vld [vmem:[%s11071_s28 + $0x64] sm:$0xf]  ;;  %v8284_v13 = vld [vmem:[%s11071_s28 + $0x6c] sm:$0xf0]  ;;  %4262 = vmatpush.bf16.msra.mxu3 %v8303_v9 }
 0x278   : > { %v3706_v17 = vadd.f32 %v3705_v15, %v3692_v14  ;;  %v8290_v14 = vld [vmem:[%s11071_s28 + $0x68] sm:$0xf]  ;;  %v9214_v15 = vld [vmem:[%s11071_s28 + $0x70] sm:$0xf0] }
 0x27a   : > { %v3750_v18 = vpack.c.bf16 %v3706_v17, %v3704_v16  ;;  %v8283_v16 = vor.u32 %v9213_v11, %v8282_v10  ;;  %v8287_v17 = vor.u32 %v9212_v12, %v8284_v13 }
 0x27c   : > { %8182 = vmatmul.msk.bf16.vlgmr.msrb.gmra.mxu0 %vm3875_vm1, %v3750_v18  ;;  %v8291_v18 = vor.u32 %v9214_v15, %v8290_v14  ;;  %4249 = vmatpush.bf16.msra.mxu2 %v8287_v17 }
 0x27d   : > { %4235 = vmatpush.bf16.msra.mxu0 %v8283_v16 }
 0x27e   : > { %4263 = vmatpush.bf16.msra.mxu3 %v8291_v18 }
 0x280   : > { %4250 = vmatpush.bf16.msra.mxu2 %v8275_v28 }
 0x281   : > { %4236 = vmatpush.bf16.msra.mxu0 %v8271_v27 }
 0x282   : > { %4264 = vmatpush.bf16.msra.mxu3 %v8279_v29 }
 0x2db   : > { %v3888_v30 = vpop.f32.mrf.mxu2 }
 0x2dc   : > { %v3889_v35 = vadd.f32 %v9461_v32, %v3888_v30 }
 0x2e3   : > { %v3890_v34 = vpop.f32.mrf.mxu2 }
 0x2e4   : > { %v3891_v38 = vadd.f32 %v9461_v32, %v3890_v34 }
 0x2ed   : > { %v3902_v31 = vpop.f32.mrf.mxu3 }
 0x2ee   : > { %v3903_v39 = vadd.f32 %v3902_v31, %v3889_v35  ;;  %v9462_v31 = vld [vmem:[%s1103_s12] ss:$0 sm:$0xff]  ;;  %s9338_s12 = smul.u32 6, %s10406_s25  ;;  %s1172_s25 = scalar_lea.vmem [#allocation20], %s10395_s24 }
 0x2f0   : > { %s11136_s13 = scalar_lea.vmem %s11800_s15, %s9338_s12  ;;  %s11256_s12 = scalar_lea.vmem %s11802_s4, %s11167_s8 }
 0x2f1   : > { %v4096_v61 = vld [vmem:[%s11136_s13] sm:$0x7]  ;;  %s11803_s15 = sld [smem:[#allocation57_spill]] }
 0x2f2   : > { %v4099_v3 = vperm.slane %v4096_v61, 1  ;;  %v4100_v5 = vperm.slane %v4096_v61, 2  ;;  %v4098_v6 = vperm.slane %v4096_v61, 0 }
 0x2f5   : > { %v3904_v36 = vpop.f32.mrf.mxu3 }
 0x2f6   : > { %v3905_v40 = vadd.f32 %v3904_v36, %v3891_v38  ;;  %v8258_v36 = vld [vmem:[%s11071_s28 + $0x30] sm:$0xf]  ;;  %v9207_v38 = vld [vmem:[%s11071_s28 + $0x38] sm:$0xf0] }
 0x2f7   : > { %s11279_s1 = scalar_lea.vmem %s11803_s15, %s11167_s8  ;;  %s11351_s15 = scalar_lea.vmem %s11805_s2, %s11167_s8 }
 0x2f9   : > { %v3916_v33 = vpop.f32.mrf.mxu0 }
 0x2fa   : > { %v3917_v41 = vadd.f32 %v3916_v33, %v3903_v39  ;;  %v9206_v39 = vld [vmem:[%s11071_s28 + $0x34] sm:$0xf] }
 0x2fc   : > { %v3921_v44 = vmax.f32 %v3917_v41, 0.0  ;;  %v8260_v41 = vld [vmem:[%s11071_s28 + $0x3c] sm:$0xf0] }
 0x301   : > { %v3918_v42 = vpop.f32.mrf.mxu0 }
 0x302   : > { %v3919_v43 = vadd.f32 %v3918_v42, %v3905_v40  ;;  %v8259_v40 = vor.u32 %v9207_v38, %v8258_v36  ;;  %v8266_v42 = vld [vmem:[%s11071_s28 + $0x38] sm:$0xf] }
 0x304   : > { %v3922_v45 = vmax.f32 %v3919_v43, 0.0  ;;  %v9208_v43 = vld [vmem:[%s11071_s28 + $0x40] sm:$0xf0]  ;;  %4237 = vmatpush.bf16.msra.mxu0 %v8259_v40 }
 0x306   : > { %v3939_v46 = vpack.c.bf16 %v3922_v45, %v3921_v44  ;;  %v8263_v44 = vor.u32 %v9206_v39, %v8260_v41  ;;  %v8267_v45 = vor.u32 %v9208_v43, %v8266_v42 }
 0x308   : > { %4000 = vmatmul.bf16.vlgmr.msrb.gmra.mxu1 %v3939_v46  ;;  %v8246_v46 = vld [vmem:[%s11071_s28 + $0x18] sm:$0xf]  ;;  %4251 = vmatpush.bf16.msra.mxu2 %v8263_v44 }
 0x309   : > { %v8247_v49 = vor.u32 %v9204_v47, %v8246_v46  ;;  %4265 = vmatpush.bf16.msra.mxu3 %v8267_v45 }
 0x30b   : > { %4238 = vmatpush.bf16.msra.mxu0 %v8247_v49 }
 0x30c   : > { %4252 = vmatpush.bf16.msra.mxu2 %v8251_v53 }
 0x30d   : > { %4266 = vmatpush.bf16.msra.mxu3 %v8255_v54 }
 0x30f   : > { %4239 = vmatpush.bf16.msra.mxu0 %v8235_v7 }
 0x310   : > { %4253 = vmatpush.bf16.msra.mxu2 %v8239_v60 }
 0x311   : > { %4267 = vmatpush.bf16.msra.mxu3 %v8243_v26 }
 0x385   : > { %v4001_v30 = vpop.f32.mrf.mxu1 }
 0x386   : > { %v4002_v33 = vadd.f32 %v9462_v31, %v4001_v30 }
 0x38d   : > { %v4003_v32 = vpop.f32.mrf.mxu1 }
 0x38e   : > { %v4004_v34 = vadd.f32 %v9462_v31, %v4003_v32 }
 0x390   : > { %v4014_v35 = vpack.c.bf16 %v4004_v34, %v4002_v33 }
 0x392   : > { %8231 = vmatmul.msk.bf16.vlgmr.msrb.gmra.mxu2 %vm3875_vm1, %v4014_v35 }
 0x415   : > { %v4055_v63 = vpop.f32.mrf.mxu2 }
 0x416   : > { %v11126_v59 = vadd.f32 %v9463_v62, %v4055_v63 }
 0x41d   : > { %v4057_v0 = vpop.f32.mrf.mxu2 }
 0x41e   : > { %v11128_v1 = vadd.f32 %v9463_v62, %v4057_v0 }
 0x420   : > { %v4095_v2 = vpack.c.bf16 %v11128_v1, %v11126_v59 }
 0x422   : > { %4240 = vmatmul.bf16.vlgmr.msra.gmra.mxu0 %v4095_v2  ;;  %4254 = vmatmul.bf16.vlgmr.msra.gmra.mxu2 %v4095_v2 }
 0x423   : > { %4268 = vmatmul.bf16.vlgmr.msra.gmra.mxu3 %v4095_v2 }
 0x49f   : > { %v4241_v4 = vpop.f32.mrf.mxu0 }
 0x4a0   : > { %v4242_v13 = vadd.f32 %v4241_v4, %v4098_v6 }
 0x4a2   : > { %v4274_v19 = vpack.c.bf16 %v4242_v13, %v4242_v13 }
 0x4a4   : > { %v4393_v29 = vunpack.c.l.b16 %v4274_v19 }
 0x4a5   : > { %v4255_v8 = vpop.f32.mrf.mxu2 }
 0x4a6   : > { %v4256_v9 = vadd.f32 %v4255_v8, %v4099_v3  ;;  %v4269_v10 = vpop.f32.mrf.mxu3  ;;  %v4394_v36 = vpack.c.b16 %v4393_v29, %v4393_v29 }
 0x4a7   : > { %v4270_v11 = vadd.f32 %v4269_v10, %v4100_v5  ;;  %v4243_v20 = vpop.f32.mrf.mxu0 }
 0x4a8   : > { %v4276_v12 = vpack.c.bf16 %v4256_v9, %v4256_v9  ;;  %v4244_v27 = vadd.f32 %v4243_v20, %v4098_v6 }
 0x4a9   : > { %v11139_v14 = vpack.c.bf16 %v4270_v11, %v4270_v11 }
 0x4aa   : > { %v4289_v15 = vsel %vm4284_vm2, %v4276_v12, 0  ;;  %v4398_v16 = vunpack.c.l.b16 %v4276_v12  ;;  %v4275_v34 = vpack.c.bf16 %v4244_v27, %v4244_v27 }
 0x4ab   : > { %v4353_v17 = vsel %vm4351_vm3, %v11139_v14, 0  ;;  %4298 = vmatpush.bf16.xpose.msra.mxu1 %v4289_v15 }
 0x4ac   : > { %v4399_v18 = vpack.c.b16 %v4398_v16, %v4398_v16  ;;  %v4422_v38 = vunpack.c.l.b16 %v4275_v34 }
 0x4ad   : > { %v4257_v21 = vpop.f32.mrf.mxu2 }
 0x4ae   : > { %v4258_v22 = vadd.f32 %v4257_v21, %v4099_v3  ;;  %v4271_v23 = vpop.f32.mrf.mxu3  ;;  %4537 = vrot.lane.b32.xlu2 %v4399_v18, %s9998_s29  ;;  %4400 = vrot.lane.b32.xlu0 %v4399_v18, %s9999_s0  ;;  %v4423_v39 = vpack.c.b16 %v4422_v38, %v4422_v38 }
 0x4af   : > { %v4272_v24 = vadd.f32 %v4271_v23, %v4100_v5 }
 0x4b0   : > { %v4277_v28 = vpack.c.bf16 %v4258_v22, %v4258_v22 }
 0x4b1   : > { %v11146_v30 = vpack.c.bf16 %v4272_v24, %v4272_v24 }
 0x4b2   : > { %v4308_v31 = vsel %vm4284_vm2, %v4277_v28, 0  ;;  %v4427_v32 = vunpack.c.l.b16 %v4277_v28  ;;  %8328 = vmatmul.msk.bf16.vlgmr.msra.gmra.mxu1 %vm4284_vm2, %v4274_v19 }
 0x4b3   : > { %4362 = vmatpush.bf16.msrb.mxu1 %v4353_v17  ;;  %v4372_v33 = vsel %vm4351_vm3, %v11146_v30, 0  ;;  %4317 = vmatpush.bf16.xpose.msrb.mxu0 %v4308_v31 }
 0x4b4   : > { %v4428_v35 = vpack.c.b16 %v4427_v32, %v4427_v32  ;;  %4381 = vmatpush.bf16.msrb.mxu2 %v4372_v33 }
 0x4b6   : > { %4429 = vrot.lane.b32.xlu1 %v4428_v35, %s9999_s0  ;;  %4560 = vrot.lane.b32.xlu2 %v4428_v35, %s9998_s29 }
 0x4b7   : > { %4395 = vrot.lane.b32.xlu0 %v4394_v36, %s9999_s0 }
 0x4ba   : > { %8329 = vmatmul.msk.bf16.vlgmr.msrb.gmra.mxu0 %vm4284_vm2, %v4275_v34 }
 0x4be   : > { %4662 = vrot.lane.b32.xlu2 %v4399_v18, %s10000_s30  ;;  %4424 = vrot.lane.b32.xlu1 %v4423_v39, %s9999_s0 }
 0x4bf   : > { %4535 = vrot.lane.b32.xlu0 %v4394_v36, %s9998_s29 }
 0x4c6   : > { %4683 = vrot.lane.b32.xlu2 %v4423_v39, %s10000_s30  ;;  %4558 = vrot.lane.b32.xlu1 %v4423_v39, %s9998_s29 }
 0x4c7   : > { %4685 = vrot.lane.b32.xlu0 %v4428_v35, %s10000_s30 }
 0x4ce   : > { %4660 = vrot.lane.b32.xlu1 %v4394_v36, %s10000_s30 }
 0x508   : > { %v4538_v40 = vpop.permute.xlu2 %4537 }
 0x509   : > { %v4543_v41 = vsel %vm4284_vm2, %v4538_v40, 0 }
 0x50a   : > { %4552 = vmatpush.bf16.xpose.msrb.mxu3 %v4543_v41 }
 0x510   : > { %v4561_v42 = vpop.permute.xlu2 %4560 }
 0x511   : > { %v4566_v52 = vsel %vm4284_vm2, %v4561_v42, 0  ;;  %v4475_v42 = vunpack.c.l.b16 %v11139_v14 }
 0x518   : > { %v4663_v43 = vpop.permute.xlu2 %4662 }
 0x519   : > { %v4668_v44 = vsel %vm4284_vm2, %v4663_v43, 0 }
 0x51a   : > { %4677 = vmatpush.bf16.xpose.msra.mxu3 %v4668_v44  ;;  %v4499_v44 = vunpack.c.l.b16 %v11146_v30 }
 0x520   : > { %v4401_v45 = vpop.permute.xlu0 %4400  ;;  %v4684_v3 = vpop.permute.xlu2 %4683 }
 0x521   : > { %v4406_v46 = vsel %vm4284_vm2, %v4401_v45, 0  ;;  %v11209_v45 = vpack.c.b16 %v4475_v42, %v4475_v42 }
 0x522   : > { %4415 = vmatpush.bf16.xpose.msra.mxu0 %v4406_v46 }
 0x528   : > { %v4430_v47 = vpop.permute.xlu1 %4429 }
 0x529   : > { %v4435_v48 = vsel %vm4284_vm2, %v4430_v47, 0  ;;  %v4396_v49 = vpop.permute.xlu0 %4395  ;;  %v4500_v47 = vpack.c.b16 %v4499_v44, %v4499_v44 }
 0x52a   : > { %8332 = vmatmul.msk.bf16.vlgmr.msra.gmra.mxu0 %vm4284_vm2, %v4396_v49 }
 0x52b   : > { %4444 = vmatpush.bf16.xpose.msrb.mxu0 %v4435_v48 }
 0x52f   : > { %v4300_v53 = vpop.f32.mrf.mxu1 }
 0x530   : > { %v4301_v54 = vadd.f32 %v4300_v53, %v11176_v51  ;;  %v4425_v55 = vpop.permute.xlu1 %4424 }
 0x531   : > { %v4536_v56 = vpop.permute.xlu0 %4535 }
 0x532   : > { %8336 = vmatmul.msk.bf16.vlgmr.msrb.gmra.mxu3 %vm4284_vm2, %v4536_v56  ;;  %v4324_v7 = vsel %vm4323_vm4, %v4301_v54, -inf }
 0x533   : > { %4575 = vmatpush.bf16.xpose.msra.mxu0 %v4566_v52  ;;  %4325 = vmax.xlane.f32.xlu1 %v4324_v7 }
 0x537   : > { %v4302_v57 = vpop.f32.mrf.mxu1  ;;  %v4319_v58 = vpop.f32.mrf.mxu0 }
 0x538   : > { %v4320_v60 = vadd.f32 %v4319_v58, %v11181_v25  ;;  %v4559_v26 = vpop.permute.xlu1 %4558 }
 0x539   : > { %v4686_v63 = vpop.permute.xlu0 %4685 }
 0x53a   : > { %v4691_v62 = vsel %vm4284_vm2, %v4686_v63, 0  ;;  %8333 = vmatmul.msk.bf16.vlgmr.msrb.gmra.mxu0 %vm4284_vm2, %v4425_v55  ;;  %v4327_v0 = vsel %vm4323_vm4, %v4320_v60, -inf }
 0x53b   : > { %4700 = vmatpush.bf16.xpose.msrb.mxu0 %v4691_v62  ;;  %4328 = vmax.xlane.f32.xlu0 %v4327_v0 }
 0x53f   : > { %v4321_v2 = vpop.f32.mrf.mxu0 }
 0x540   : > { %v4661_v61 = vpop.permute.xlu1 %4660 }
 0x542   : > { %8340 = vmatmul.msk.bf16.vlgmr.msra.gmra.mxu3 %vm4284_vm2, %v4661_v61 }
 0x54a   : > { %8337 = vmatmul.msk.bf16.vlgmr.msra.gmra.mxu0 %vm4284_vm2, %v4559_v26 }
 0x55a   : > { %8341 = vmatmul.msk.bf16.vlgmr.msrb.gmra.mxu0 %vm4284_vm2, %v4684_v3 }
 0x5a6   : > { %v4326_v11 = vpop.xlane.xlu1 %4325 }
 0x5a7   : > { %v4417_v4 = vpop.f32.mrf.mxu0  ;;  %v4330_v18 = vsub.f32 %v4301_v54, %v4326_v11 }
 0x5a8   : > { %v4418_v23 = vadd.f32 %v4417_v4, %v11176_v51 }
 0x5a9   : > { %v4332_v21 = vmul.f32 1.442695, %v4330_v18 }
 0x5aa   : > { %v4450_v27 = vsel %vm4323_vm4, %v4418_v23, -inf }
 0x5ae   : > { %v4329_v5 = vpop.xlane.xlu0 %4328 }
 0x5af   : > { %v4419_v6 = vpop.f32.mrf.mxu0  ;;  %v4331_v8 = vsub.f32 %v4320_v60, %v4329_v5 }
 0x5b1   : > { %v4334_v9 = vmul.f32 1.442695, %v4331_v8 }
 0x5b3   : > { %9476 = vpow2.f32 %v4334_v9 }
 0x5b4   : > { %9478 = vpow2.f32 %v4332_v21 }
 0x5b5   : > { %v4554_v10 = vpop.f32.mrf.mxu3 }
 0x5b6   : > { %v4555_v12 = vadd.f32 %v4554_v10, %v11176_v51 }
 0x5b7   : > { %v4446_v13 = vpop.f32.mrf.mxu0 }
 0x5b8   : > { %v4447_v15 = vadd.f32 %v4446_v13, %v11181_v25  ;;  %v4581_v16 = vsel %vm4323_vm4, %v4555_v12, -inf }
 0x5b9   : > { %v9477_v17 = vpop.eup %9476  ;;  %4582 = vmax.xlane.f32.xlu1 %v4581_v16 }
 0x5ba   : > { %v4453_v19 = vsel %vm4323_vm4, %v4447_v15, -inf  ;;  %v4339_v20 = vsel %vm4323_vm4, %v9477_v17, 0.0  ;;  %v9479_v31 = vpop.eup %9478 }
 0x5bb   : > { %4454 = vmax.xlane.f32.xlu2 %v4453_v19  ;;  %4340 = vadd.xlane.f32.xlu0 %v4339_v20  ;;  %v4336_v36 = vsel %vm4323_vm4, %v9479_v31, 0.0 }
 0x5bd   : > { %v4556_v22 = vpop.f32.mrf.mxu3 }
 0x5bf   : > { %v4448_v24 = vpop.f32.mrf.mxu0 }
 0x5c3   : > { %4451 = vmax.xlane.f32.xlu2 %v4450_v27 }
 0x5c5   : > { %v4679_v28 = vpop.f32.mrf.mxu3 }
 0x5c6   : > { %v11198_v29 = vadd.f32 %v4679_v28, %v11176_v51 }
 0x5c7   : > { %v4577_v32 = vpop.f32.mrf.mxu0 }
 0x5c8   : > { %v4578_v33 = vadd.f32 %v4577_v32, %v11181_v25  ;;  %v4706_v34 = vsel %vm4323_vm4, %v11198_v29, -inf }
 0x5c9   : > { %4707 = vmax.xlane.f32.xlu1 %v4706_v34 }
 0x5ca   : > { %v4584_v35 = vsel %vm4323_vm4, %v4578_v33, -inf }
 0x5cb   : > { %4585 = vmax.xlane.f32.xlu0 %v4584_v35  ;;  %4337 = vadd.xlane.f32.xlu2 %v4336_v36 }
 0x5cd   : > { %v4681_v38 = vpop.f32.mrf.mxu3 }
 0x5cf   : > { %v4579_v39 = vpop.f32.mrf.mxu0 }
 0x5d7   : > { %v4702_v40 = vpop.f32.mrf.mxu0 }
 0x5d8   : > { %v4703_v41 = vadd.f32 %v4702_v40, %v11181_v25 }
 0x5da   : > { %v4709_v43 = vsel %vm4323_vm4, %v4703_v41, -inf }
 0x5db   : > { %4710 = vmax.xlane.f32.xlu2 %v4709_v43 }
 0x5df   : > { %v4704_v46 = vpop.f32.mrf.mxu0  ;;  %4477 = vrot.lane.b32.xlu0 %v11209_v45, %s9999_s0 }
 0x5e2   : > { %4626 = vrot.lane.b32.xlu1 %v4500_v47, %s9998_s29 }
 0x5f3   : > { %4501 = vrot.lane.b32.xlu2 %v4500_v47, %s9999_s0 }
 0x62c   : > { %v4583_v53 = vpop.xlane.xlu1 %4582 }
 0x62d   : > { %v4587_v7 = vsub.f32 %v4555_v12, %v4583_v53 }
 0x62e   : > { %v4455_v48 = vpop.xlane.xlu2 %4454  ;;  %v4341_v49 = vpop.xlane.xlu0 %4340 }
 0x62f   : > { %v4457_v50 = vsub.f32 %v4447_v15, %v4455_v48  ;;  %9480 = vrcp.f32 %v4341_v49  ;;  %v4589_v60 = vmul.f32 1.442695, %v4587_v7 }
 0x631   : > { %v4460_v14 = vmul.f32 1.442695, %v4457_v50 }
 0x633   : > { %9482 = vpow2.f32 %v4460_v14 }
 0x635   : > { %v9481_v52 = vpop.eup %9480 }
 0x636   : > { %v4345_v30 = vmul.f32 %v9481_v52, %v9477_v17  ;;  %v4452_v54 = vpop.xlane.xlu2 %4451 }
 0x637   : > { %v4456_v55 = vsub.f32 %v4418_v23, %v4452_v54 }
 0x638   : > { %v4347_v37 = vpack.c.bf16 %v4345_v30, %v4345_v30 }
 0x639   : > { %v9483_v56 = vpop.eup %9482  ;;  %v4458_v57 = vmul.f32 1.442695, %v4456_v55 }
 0x63a   : > { %v4465_v58 = vsel %vm4323_vm4, %v9483_v56, 0.0  ;;  %8331 = vmatmul.msk.bf16.vlgmr.msrb.gmra.mxu2 %vm4323_vm4, %v4347_v37 }
 0x63b   : > { %9484 = vpow2.f32 %v4458_v57  ;;  %4466 = vadd.xlane.f32.xlu0 %v4465_v58 }
 0x63c   : > { %v4708_v9 = vpop.xlane.xlu1 %4707 }
 0x63d   : > { %v4712_v24 = vsub.f32 %v11198_v29, %v4708_v9 }
 0x63e   : > { %v4586_v26 = vpop.xlane.xlu0 %4585  ;;  %v4338_v63 = vpop.xlane.xlu2 %4337 }
 0x63f   : > { %9486 = vrcp.f32 %v4338_v63  ;;  %v4588_v0 = vsub.f32 %v4578_v33, %v4586_v26  ;;  %v4714_v27 = vmul.f32 1.442695, %v4712_v24  ;;  %v9231_v24 = vld [vmem:[%s10385_s11 + $0x30] sm:$0xff] }
 0x640   : > { %9488 = vpow2.f32 %v4589_v60 }
 0x641   : > { %v9485_v62 = vpop.eup %9484  ;;  %v4591_v3 = vmul.f32 1.442695, %v4588_v0 }
 0x642   : > { %v4462_v2 = vsel %vm4323_vm4, %v9485_v62, 0.0 }
 0x643   : > { %4463 = vadd.xlane.f32.xlu1 %v4462_v2  ;;  %9490 = vpow2.f32 %v4591_v3 }
 0x645   : > { %v9487_v61 = vpop.eup %9486 }
 0x646   : > { %v4344_v4 = vmul.f32 %v9487_v61, %v9479_v31  ;;  %v11218_v5 = vpop.eup %9488 }
 0x647   : > { %v4593_v8 = vsel %vm4323_vm4, %v11218_v5, 0.0 }
 0x648   : > { %v4346_v6 = vpack.c.bf16 %v4344_v4, %v4344_v4 }
 0x649   : > { %v9491_v11 = vpop.eup %9490 }
 0x64a   : > { %8330 = vmatmul.msk.bf16.vlgmr.msrb.gmra.mxu1 %vm4323_vm4, %v4346_v6  ;;  %v4596_v17 = vsel %vm4323_vm4, %v9491_v11, 0.0 }
 0x64b   : > { %4594 = vadd.xlane.f32.xlu1 %v4593_v8 }
 0x64e   : > { %v4711_v10 = vpop.xlane.xlu2 %4710 }
 0x64f   : > { %v4713_v12 = vsub.f32 %v4703_v41, %v4711_v10  ;;  %4605 = vrot.lane.b32.xlu0 %v11209_v45, %s9998_s29 }
 0x651   : > { %v4716_v13 = vmul.f32 1.442695, %v4713_v12  ;;  %v4478_v15 = vpop.permute.xlu0 %4477 }
 0x652   : > { %v4483_v16 = vsel %vm4351_vm3, %v4478_v15, 0 }
 0x653   : > { %9492 = vpow2.f32 %v4716_v13  ;;  %4492 = vmatpush.bf16.msra.mxu1 %v4483_v16  ;;  %4597 = vadd.xlane.f32.xlu1 %v4596_v17 }
 0x654   : > { %v4627_v18 = vpop.permute.xlu1 %4626  ;;  %9494 = vpow2.f32 %v4714_v27  ;;  %v9230_v27 = vld [vmem:[%s10385_s11 + $0x28] sm:$0xff] }
 0x655   : > { %v4632_v21 = vsel %vm4351_vm3, %v4627_v18, 0 }
 0x656   : > { %v4502_v19 = vpop.permute.xlu2 %4501 }
 0x657   : > { %v4507_v20 = vsel %vm4351_vm3, %v4502_v19, 0 }
 0x658   : > { %4516 = vmatpush.bf16.msra.mxu2 %v4507_v20 }
 0x659   : > { %v9493_v22 = vpop.eup %9492 }
 0x65a   : > { %v4721_v23 = vsel %vm4323_vm4, %v9493_v22, 0.0  ;;  %v9495_v28 = vpop.eup %9494 }
 0x65b   : > { %4722 = vadd.xlane.f32.xlu2 %v4721_v23  ;;  %v4718_v31 = vsel %vm4323_vm4, %v9495_v28, 0.0  ;;  %v9232_v23 = vld [vmem:[%s10385_s11 + $0x38] sm:$0xff] }
 0x65c   : > { %4641 = vmatpush.bf16.msrb.mxu2 %v4632_v21  ;;  %4861 = vmatpush.bf16.msrb.mxu3 %v9232_v23  ;;  %v9239_v23 = vld [vmem:[%s11298_s5 + $0x34] sm:$0xf] }
 0x660   : > { %4862 = vmatpush.bf16.msrb.mxu3 %v9231_v24 }
 0x664   : > { %4863 = vmatpush.bf16.msrb.mxu3 %v9230_v27  ;;  %v8408_v27 = vld [vmem:[%s11298_s5 + $0x38] sm:$0xf0] }
 0x66c   : > { %4751 = vrot.lane.b32.xlu1 %v4500_v47, %s10000_s30 }
 0x674   : > { %4730 = vrot.lane.b32.xlu1 %v11209_v45, %s10000_s30 }
 0x679   : > { %4719 = vadd.xlane.f32.xlu0 %v4718_v31  ;;  %v9229_v31 = vld [vmem:[%s10385_s11 + $0x20] sm:$0xff] }
 0x67a   : > { %4864 = vmatpush.bf16.msrb.mxu3 %v9229_v31  ;;  %v8398_v31 = vld [vmem:[%s11298_s5 + $0x20] sm:$0xf] }
 0x6ae   : > { %v4467_v32 = vpop.xlane.xlu0 %4466 }
 0x6af   : > { %9496 = vrcp.f32 %v4467_v32 }
 0x6b5   : > { %v9497_v33 = vpop.eup %9496 }
 0x6b6   : > { %v4471_v34 = vmul.f32 %v9497_v33, %v9483_v56  ;;  %v4464_v35 = vpop.xlane.xlu1 %4463 }
 0x6b7   : > { %9498 = vrcp.f32 %v4464_v35  ;;  %v9227_v35 = vld [vmem:[%s10385_s11 + $0x10] sm:$0xff] }
 0x6b8   : > { %v4473_v36 = vpack.c.bf16 %v4471_v34, %v4471_v34  ;;  %v9228_v34 = vld [vmem:[%s10385_s11 + $0x18] sm:$0xff] }
 0x6b9   : > { %4865 = vmatpush.bf16.msrb.mxu3 %v9228_v34 }
 0x6ba   : > { %8335 = vmatmul.msk.bf16.vlgmr.msra.gmra.mxu2 %vm4323_vm4, %v4473_v36  ;;  %v9226_v36 = vld [vmem:[%s10385_s11 + $0x8] sm:$0xff] }
 0x6bd   : > { %v9499_v29 = vpop.eup %9498  ;;  %v4383_v38 = vpop.f32.mrf.mxu2  ;;  %4866 = vmatpush.bf16.msrb.mxu3 %v9227_v35  ;;  %v8400_v35 = vld [vmem:[%s11298_s5 + $0x28] sm:$0xf0] }
 0x6be   : > { %v4470_v39 = vmul.f32 %v9499_v29, %v9485_v62  ;;  %v4388_v40 = vpack.c.bf16 %v4383_v38, %v4383_v38  ;;  %v4595_v41 = vpop.xlane.xlu1 %4594  ;;  %v9225_v29 = vld [vmem:[%s10385_s11] sm:$0xff] }
 0x6bf   : > { %9500 = vrcp.f32 %v4595_v41  ;;  %v9464_v41 = vld [vmem:[%s11256_s12] ss:$0 sm:$0xff] }
 0x6c0   : > { %v4472_v42 = vpack.c.bf16 %v4470_v39, %v4470_v39  ;;  %4391 = vst.msk [vmem:[#allocation2 + $0x4] sm:$0xf] %vm4389_vm5, %v4388_v40 }
 0x6c1   : > { %v4606_v43 = vpop.permute.xlu0 %4605  ;;  %4867 = vmatpush.bf16.msrb.mxu3 %v9226_v36 }
 0x6c2   : > { %v4611_v44 = vsel %vm4351_vm3, %v4606_v43, 0  ;;  %8334 = vmatmul.msk.bf16.vlgmr.msra.gmra.mxu1 %vm4323_vm4, %v4472_v42 }
 0x6c3   : > { %4620 = vmatpush.bf16.msrb.mxu1 %v4611_v44 }
 0x6c5   : > { %v4385_v45 = vpop.f32.mrf.mxu2  ;;  %v9501_v49 = vpop.eup %9500  ;;  %4868 = vmatpush.bf16.msrb.mxu3 %v9225_v29  ;;  %v8390_v29 = vld [vmem:[%s11298_s5 + $0x10] sm:$0xf] }
 0x6c6   : > { %v4598_v46 = vpop.xlane.xlu1 %4597  ;;  %v4601_v50 = vmul.f32 %v9501_v49, %v11218_v5 }
 0x6c7   : > { %9502 = vrcp.f32 %v4598_v46  ;;  %v4364_v47 = vpop.f32.mrf.mxu1 }
 0x6c8   : > { %v4387_v48 = vpack.c.bf16 %v4364_v47, %v4364_v47  ;;  %v4603_v30 = vpack.c.bf16 %v4601_v50, %v4601_v50 }
 0x6ca   : > { %4390 = vst.msk [vmem:[#allocation2] sm:$0xf] %vm4389_vm5, %v4387_v48  ;;  %v10001_v48 = vmov 128.0  }
 0x6cd   : > { %v9503_v14 = vpop.eup %9502 }
 0x6ce   : > { %v4602_v52 = vmul.f32 %v9503_v14, %v9491_v11  ;;  %v4723_v55 = vpop.xlane.xlu2 %4722 }
 0x6cf   : > { %v4366_v53 = vpop.f32.mrf.mxu1  ;;  %9504 = vrcp.f32 %v4723_v55 }
 0x6d0   : > { %v4604_v54 = vpack.c.bf16 %v4602_v52, %v4602_v52 }
 0x6d2   : > { %8338 = vmatmul.msk.bf16.vlgmr.msrb.gmra.mxu1 %vm4323_vm4, %v4603_v30  ;;  %8339 = vmatmul.msk.bf16.vlgmr.msrb.gmra.mxu2 %vm4323_vm4, %v4604_v54 }
 0x6d5   : > { %v9505_v37 = vpop.eup %9504 }
 0x6d6   : > { %v4727_v56 = vmul.f32 %v9505_v37, %v9493_v22 }
 0x6d8   : > { %v4729_v58 = vpack.c.bf16 %v4727_v56, %v4727_v56 }
 0x6de   : > { %v4752_v7 = vpop.permute.xlu1 %4751 }
 0x6df   : > { %v4757_v57 = vsel %vm4351_vm3, %v4752_v7, 0 }
 0x6e0   : > { %4766 = vmatpush.bf16.msra.mxu2 %v4757_v57 }
 0x6e3   : > { %8343 = vmatmul.msk.bf16.vlgmr.msra.gmra.mxu2 %vm4323_vm4, %v4729_v58  ;;  %v8438_v58 = vld [vmem:[%s11298_s5 + $0x70] sm:$0xf] }
 0x6e6   : > { %v4731_v60 = vpop.permute.xlu1 %4730 }
 0x6e7   : > { %v4736_v26 = vsel %vm4351_vm3, %v4731_v60, 0  ;;  %v9248_v60 = vld [vmem:[%s11298_s5 + $0x74] sm:$0xf0] }
 0x6e8   : > { %4745 = vmatpush.bf16.msra.mxu1 %v4736_v26  ;;  %v9247_v26 = vld [vmem:[%s11298_s5 + $0x74] sm:$0xf] }
 0x6ec   : > { %v4720_v63 = vpop.xlane.xlu0 %4719 }
 0x6ed   : > { %9506 = vrcp.f32 %v4720_v63  ;;  %v8439_v63 = vor.u32 %v9248_v60, %v8438_v58  ;;  %v9254_v60 = vld [vmem:[%s10388_s19 + $0x28] sm:$0xff] }
 0x6ee   : > { %9508 = vrcp.f32 %v10001_v48 }
 0x6ef   : > { %5039 = vmatpush.bf16.msra.mxu0 %v8439_v63 }
 0x6f3   : > { %v9507_v62 = vpop.eup %9506 }
 0x6f4   : > { %v4726_v0 = vmul.f32 %v9507_v62, %v9495_v28  ;;  %v9509_v49 = vpop.eup %9508  ;;  %v8440_v62 = vld [vmem:[%s11298_s5 + $0x78] sm:$0xf0] }
 0x6f5   : > { %v4882_v50 = vmul.f32 128.0, %v9509_v49  ;;  %vm4886_vm9 = vweird.f32 %v9509_v49 }
 0x6f6   : > { %v4728_v2 = vpack.c.bf16 %v4726_v0, %v4726_v0  ;;  %v8443_v0 = vor.u32 %v9247_v26, %v8440_v62  ;;  %v9262_v26 = vld [vmem:[%s10388_s19 + $0x68] sm:$0xff] }
 0x6f7   : > { %v4883_v14 = vsub.f32 1.0, %v4882_v50 }
 0x6f8   : > { %8342 = vmatmul.msk.bf16.vlgmr.msra.gmra.mxu1 %vm4323_vm4, %v4728_v2  ;;  %v8430_v2 = vld [vmem:[%s11298_s5 + $0x60] sm:$0xf] }
 0x6f9   : > { %v4884_v52 = vmul.f32 %v9509_v49, %v4883_v14  ;;  %5053 = vmatpush.bf16.msrb.mxu1 %v8443_v0  ;;  %v9253_v0 = vld [vmem:[%s10388_s19 + $0x20] sm:$0xff] }
 0x6fb   : > { %v4885_v53 = vadd.f32 %v9509_v49, %v4884_v52  ;;  %v9256_v52 = vld [vmem:[%s10388_s19 + $0x38] sm:$0xff] }
 0x6fc   : > { %5205 = vmatpush.bf16.msrb.mxu2 %v9256_v52 }
 0x73d   : > { %v4518_v61 = vpop.f32.mrf.mxu2 }
 0x73e   : > { %v4523_v3 = vpack.c.bf16 %v4518_v61, %v4518_v61  ;;  %v9246_v61 = vld [vmem:[%s11298_s5 + $0x64] sm:$0xf0] }
 0x73f   : > { %v4494_v4 = vpop.f32.mrf.mxu1 }
 0x740   : > { %v4522_v5 = vpack.c.bf16 %v4494_v4, %v4494_v4  ;;  %4528 = vrot.lane.b32.xlu2 %v4523_v3, %s10000_s30  ;;  %v9245_v3 = vld [vmem:[%s11298_s5 + $0x64] sm:$0xf]  ;;  %v8431_v4 = vor.u32 %v9246_v61, %v8430_v2  ;;  %v9261_v2 = vld [vmem:[%s10388_s19 + $0x60] sm:$0xff] }
 0x742   : > { %4526 = vrot.lane.b32.xlu1 %v4522_v5, %s10000_s30  ;;  %v8432_v5 = vld [vmem:[%s11298_s5 + $0x68] sm:$0xf0]  ;;  %5040 = vmatpush.bf16.msra.mxu0 %v8431_v4 }
 0x745   : > { %v4520_v6 = vpop.f32.mrf.mxu2 }
 0x746   : > { %v8435_v6 = vor.u32 %v9245_v3, %v8432_v5 }
 0x747   : > { %v4496_v8 = vpop.f32.mrf.mxu1 }
 0x748   : > { %5054 = vmatpush.bf16.msrb.mxu1 %v8435_v6  ;;  %v8422_v8 = vld [vmem:[%s11298_s5 + $0x50] sm:$0xf] }
 0x74f   : > { %v4622_v9 = vpop.f32.mrf.mxu1 }
 0x750   : > { %v4647_v10 = vpack.c.bf16 %v4622_v9, %v4622_v9  ;;  %v9244_v9 = vld [vmem:[%s11298_s5 + $0x54] sm:$0xf0] }
 0x752   : > { %4651 = vrot.lane.b32.xlu1 %v4647_v10, %s9998_s29  ;;  %v9243_v10 = vld [vmem:[%s11298_s5 + $0x54] sm:$0xf] }
 0x755   : > { %v4643_v11 = vpop.f32.mrf.mxu2 }
 0x756   : > { %v4648_v12 = vpack.c.bf16 %v4643_v11, %v4643_v11  ;;  %v8423_v11 = vor.u32 %v9244_v9, %v8422_v8 }
 0x757   : > { %v4624_v13 = vpop.f32.mrf.mxu1 }
 0x758   : > { %4653 = vrot.lane.b32.xlu0 %v4648_v12, %s9998_s29  ;;  %v8424_v12 = vld [vmem:[%s11298_s5 + $0x58] sm:$0xf0]  ;;  %5041 = vmatpush.bf16.msra.mxu0 %v8423_v11  ;;  %v9465_v11 = vld [vmem:[%s1152_s22] ss:$0 sm:$0xff] }
 0x759   : > { %v8427_v13 = vor.u32 %v9243_v10, %v8424_v12 }
 0x75b   : > { %5055 = vmatpush.bf16.msrb.mxu1 %v8427_v13 }
 0x75d   : > { %v4645_v15 = vpop.f32.mrf.mxu2 }
 0x75e   : > { %v8414_v15 = vld [vmem:[%s11298_s5 + $0x40] sm:$0xf] }
 0x766   : > { %v4768_v16 = vpop.f32.mrf.mxu2 }
 0x767   : > { %v4773_v21 = vpack.c.bf16 %v4768_v16, %v4768_v16  ;;  %v9242_v16 = vld [vmem:[%s11298_s5 + $0x44] sm:$0xf0] }
 0x76e   : > { %v4770_v17 = vpop.f32.mrf.mxu2 }
 0x76f   : > { %v9241_v17 = vld [vmem:[%s11298_s5 + $0x44] sm:$0xf] }
 0x775   : > { %v4747_v18 = vpop.f32.mrf.mxu1 }
 0x776   : > { %v4772_v19 = vpack.c.bf16 %v4747_v18, %v4747_v18  ;;  %v8415_v18 = vor.u32 %v9242_v16, %v8414_v15  ;;  %v9466_v16 = vld [vmem:[%s11279_s1] ss:$0 sm:$0xff] }
 0x778   : > { %4776 = vrot.lane.b32.xlu1 %v4772_v19, %s9999_s0  ;;  %v8416_v19 = vld [vmem:[%s11298_s5 + $0x48] sm:$0xf0]  ;;  %5042 = vmatpush.bf16.msra.mxu0 %v8415_v18 }
 0x77d   : > { %v4749_v20 = vpop.f32.mrf.mxu1 }
 0x77e   : > { %v8419_v20 = vor.u32 %v9241_v17, %v8416_v19 }
 0x780   : > { %4778 = vrot.lane.b32.xlu1 %v4773_v21, %s9999_s0  ;;  %5056 = vmatpush.bf16.msrb.mxu1 %v8419_v20  ;;  %v8406_v21 = vld [vmem:[%s11298_s5 + $0x30] sm:$0xf] }
 0x79a   : > { %v4529_v22 = vpop.permute.xlu2 %4528 }
 0x79b   : > { %4534 = vst.msk [vmem:[#allocation2 + $0x4] sm:$0xf] %vm4532_vm6, %v4529_v22  ;;  %v9240_v22 = vld [vmem:[%s11298_s5 + $0x34] sm:$0xf0] }
 0x79c   : > { %v8407_v24 = vor.u32 %v9240_v22, %v8406_v21 }
 0x79e   : > { %5043 = vmatpush.bf16.msra.mxu0 %v8407_v24  ;;  %v9259_v24 = vld [vmem:[%s10388_s19 + $0x50] sm:$0xff] }
 0x7b4   : > { %v4527_v28 = vpop.permute.xlu1 %4526 }
 0x7b5   : > { %4533 = vst.msk [vmem:[#allocation2] sm:$0xf] %vm4532_vm6, %v4527_v28  ;;  %v8411_v28 = vor.u32 %v9239_v23, %v8408_v27  ;;  %v9260_v23 = vld [vmem:[%s10388_s19 + $0x58] sm:$0xff]  ;;  %v9250_v27 = vld [vmem:[%s10388_s19 + $0x8] sm:$0xff] }
 0x7b7   : > { %5057 = vmatpush.bf16.msrb.mxu1 %v8411_v28  ;;  %v9258_v28 = vld [vmem:[%s10388_s19 + $0x48] sm:$0xff] }
 0x7c4   : > { %v4652_v32 = vpop.permute.xlu1 %4651 }
 0x7c5   : > { %4658 = vst.msk [vmem:[#allocation2] sm:$0xf] %vm4657_vm7, %v4652_v32  ;;  %v9238_v32 = vld [vmem:[%s11298_s5 + $0x24] sm:$0xf0] }
 0x7c6   : > { %v8399_v34 = vor.u32 %v9238_v32, %v8398_v31  ;;  %v9249_v31 = vld [vmem:[%s10388_s19] sm:$0xff] }
 0x7c7   : > { %v9257_v32 = vld [vmem:[%s10388_s19 + $0x40] sm:$0xff] }
 0x7c8   : > { %5044 = vmatpush.bf16.msra.mxu0 %v8399_v34 }
 0x7ca   : > { %v4654_v33 = vpop.permute.xlu0 %4653 }
 0x7cb   : > { %4659 = vst.msk [vmem:[#allocation2 + $0x4] sm:$0xf] %vm4657_vm7, %v4654_v33  ;;  %v9237_v33 = vld [vmem:[%s11298_s5 + $0x24] sm:$0xf] }
 0x7cc   : > { %v8403_v36 = vor.u32 %v9237_v33, %v8400_v35  ;;  %v4953_v33 = vld [vmem:[%s11365_s17] sm:$0x3] }
 0x7ce   : > { %5058 = vmatpush.bf16.msrb.mxu1 %v8403_v36  ;;  %v4955_v36 = vperm.slane %v4953_v33, 0 }
 0x7ea   : > { %v4777_v38 = vpop.permute.xlu1 %4776 }
 0x7eb   : > { %4783 = vst.msk [vmem:[#allocation2] sm:$0xf] %vm4782_vm8, %v4777_v38  ;;  %v9236_v38 = vld [vmem:[%s11298_s5 + $0x14] sm:$0xf0] }
 0x7f2   : > { %v4779_v39 = vpop.permute.xlu1 %4778 }
 0x7f3   : > { %4784 = vst.msk [vmem:[#allocation2 + $0x4] sm:$0xf] %vm4782_vm8, %v4779_v39  ;;  %v9235_v39 = vld [vmem:[%s11298_s5 + $0x14] sm:$0xf] }
 0x7fa   : > { %v9224_v40 = vld [vmem:[#allocation2] sm:$0xff] }
 0x7fb   : > { %4869 = vmatmul.bf16.vlgmr.msrb.gmra.mxu3 %v9224_v40  ;;  %v8391_v40 = vor.u32 %v9236_v38, %v8390_v29  ;;  %v4956_v29 = vperm.slane %v4953_v33, 1 }
 0x7fd   : > { %5045 = vmatpush.bf16.msra.mxu0 %v8391_v40 }
 0x87e   : > { %v4870_v42 = vpop.f32.mrf.mxu3 }
 0x87f   : > { %v4871_v43 = vadd.f32 %v9464_v41, %v4870_v42 }
 0x881   : > { %v4875_v44 = vadd.f32 %v4871_v43, %v11126_v59  ;;  %v11282_v59 = vsel %vm4886_vm9, %v9509_v49, %v4885_v53  ;;  %v8384_v49 = vld [vmem:[%s11298_s5 + $0x8] sm:$0xf0] }
 0x882   : > { %v9264_v53 = vld [vmem:[%s10388_s19 + $0x78] sm:$0xff] }
 0x883   : > { %4877 = vadd.xlane.f32.xlu2 %v4875_v44  ;;  %5219 = vmatpush.bf16.msra.mxu3 %v9264_v53 }
 0x886   : > { %v4872_v45 = vpop.f32.mrf.mxu3 }
 0x887   : > { %v4873_v46 = vadd.f32 %v9464_v41, %v4872_v45  ;;  %v8392_v41 = vld [vmem:[%s11298_s5 + $0x18] sm:$0xf0]  ;;  %v8382_v45 = vld [vmem:[%s11298_s5] sm:$0xf] }
 0x888   : > { %v8395_v42 = vor.u32 %v9235_v39, %v8392_v41 }
 0x889   : > { %v4876_v47 = vadd.f32 %v4873_v46, %v11128_v1  ;;  %v9234_v46 = vld [vmem:[%s11298_s5 + $0x4] sm:$0xf0] }
 0x88a   : > { %5059 = vmatpush.bf16.msrb.mxu1 %v8395_v42  ;;  %v8383_v48 = vor.u32 %v9234_v46, %v8382_v45 }
 0x88b   : > { %4879 = vadd.xlane.f32.xlu1 %v4876_v47 }
 0x88c   : > { %5046 = vmatpush.bf16.msra.mxu0 %v8383_v48 }
 0x8f6   : > { %v4878_v30 = vpop.xlane.xlu2 %4877 }
 0x8f7   : > { %v4888_v54 = vmul.f32 %v11282_v59, %v4878_v30 }
 0x8f9   : > { %v11285_v55 = vsub.f32 %v4875_v44, %v4888_v54 }
 0x8fb   : > { %v4892_v1 = vmul.f32 %v11285_v55, %v11285_v55 }
 0x8fd   : > { %4894 = vadd.xlane.f32.xlu0 %v4892_v1  ;;  %v9255_v1 = vld [vmem:[%s10388_s19 + $0x30] sm:$0xff] }
 0x8fe   : > { %v4880_v37 = vpop.xlane.xlu1 %4879  ;;  %5206 = vmatpush.bf16.msrb.mxu2 %v9255_v1 }
 0x8ff   : > { %v4889_v56 = vmul.f32 %v11282_v59, %v4880_v37  ;;  %v9263_v37 = vld [vmem:[%s10388_s19 + $0x70] sm:$0xff] }
 0x900   : > { %5220 = vmatpush.bf16.msra.mxu3 %v9263_v37 }
 0x901   : > { %v11290_v7 = vsub.f32 %v4876_v47, %v4889_v56  ;;  %v9233_v47 = vld [vmem:[%s11298_s5 + $0x4] sm:$0xf] }
 0x902   : > { %v8387_v14 = vor.u32 %v9233_v47, %v8384_v49  ;;  %5207 = vmatpush.bf16.msrb.mxu2 %v9254_v60 }
 0x903   : > { %v4893_v57 = vmul.f32 %v11290_v7, %v11290_v7 }
 0x904   : > { %5060 = vmatpush.bf16.msrb.mxu1 %v8387_v14  ;;  %5221 = vmatpush.bf16.msra.mxu3 %v9262_v26 }
 0x905   : > { %4896 = vadd.xlane.f32.xlu2 %v4893_v57 }
 0x906   : > { %5208 = vmatpush.bf16.msrb.mxu2 %v9253_v0 }
 0x908   : > { %5222 = vmatpush.bf16.msra.mxu3 %v9261_v2 }
 0x90c   : > { %5223 = vmatpush.bf16.msra.mxu3 %v9260_v23  ;;  %v8603_v23 = vld [vmem:[%s11071_s28 + $0x138] sm:$0xf] }
 0x910   : > { %5224 = vmatpush.bf16.msra.mxu3 %v9259_v24  ;;  %v9280_v24 = vld [vmem:[%s11071_s28 + $0x13c] sm:$0xf] }
 0x914   : > { %5225 = vmatpush.bf16.msra.mxu3 %v9258_v28  ;;  %v8605_v28 = vld [vmem:[%s11071_s28 + $0x144] sm:$0xf0] }
 0x915   : > { %v8608_v33 = vor.u32 %v9280_v24, %v8605_v28 }
 0x918   : > { %5226 = vmatpush.bf16.msra.mxu3 %v9257_v32  ;;  %v9282_v32 = vld [vmem:[%s11071_s28 + $0x148] sm:$0xf0] }
 0x970   : > { %v4895_v43 = vpop.xlane.xlu0 %4894 }
 0x971   : > { %v4898_v44 = vmul.f32 %v4895_v43, %v11282_v59 }
 0x973   : > { %v4900_v50 = vadd.f32 1e-05, %v4898_v44 }
 0x975   : > { %9510 = vrsqrt.f32 %v4900_v50  ;;  %vm4908_vm11 = vweird.f32 %v4900_v50 }
 0x978   : > { %v4897_v30 = vpop.xlane.xlu2 %4896 }
 0x979   : > { %v4899_v54 = vmul.f32 %v4897_v30, %v11282_v59 }
 0x97b   : > { %v9511_v56 = vpop.eup %9510  ;;  %v4901_v57 = vadd.f32 1e-05, %v4899_v54 }
 0x97c   : > { %v4903_v58 = vmul.f32 %v9511_v56, %v4900_v50  ;;  %vm4909_vm10 = vweird.f32 %v9511_v56  ;;  %v9467_v50 = vld [vmem:[%s11351_s15] ss:$0 sm:$0xff] }
 0x97d   : > { %9512 = vrsqrt.f32 %v4901_v57  ;;  %vm4910_vm12 = vmor %vm4908_vm11, %vm4909_vm10  ;;  %vm4918_vm14 = vweird.f32 %v4901_v57 }
 0x97e   : > { %v4904_v63 = vmul.f32 %v9511_v56, %v4903_v58 }
 0x980   : > { %v4905_v62 = vmul.f32 0.5, %v4904_v63 }
 0x982   : > { %v4906_v61 = vsub.f32 1.5, %v4905_v62 }
 0x983   : > { %v9513_v3 = vpop.eup %9512 }
 0x984   : > { %v4907_v4 = vmul.f32 %v9511_v56, %v4906_v61  ;;  %v4913_v5 = vmul.f32 %v9513_v3, %v4901_v57  ;;  %vm4919_vm13 = vweird.f32 %v9513_v3 }
 0x985   : > { %vm4920_vm15 = vmor %vm4918_vm14, %vm4919_vm13 }
 0x986   : > { %v4914_v6 = vmul.f32 %v9513_v3, %v4913_v5  ;;  %v4911_v8 = vsel %vm4910_vm12, %v9511_v56, %v4907_v4  ;;  %v8627_v4 = vld [vmem:[%s11071_s28 + $0x168] sm:$0xf]  ;;  %v9287_v5 = vld [vmem:[%s11071_s28 + $0x170] sm:$0xf0] }
 0x987   : > { %v4922_v12 = vmul.f32 %v4911_v8, %v11285_v55  ;;  %v9252_v55 = vld [vmem:[%s10388_s19 + $0x18] sm:$0xff]  ;;  %v8628_v8 = vor.u32 %v9287_v5, %v8627_v4  ;;  %v8563_v4 = vld [vmem:[%s11071_s28 + $0xe0] sm:$0xf] }
 0x988   : > { %v4915_v9 = vmul.f32 0.5, %v4914_v6  ;;  %5209 = vmatpush.bf16.msrb.mxu2 %v9252_v55  ;;  %v9286_v6 = vld [vmem:[%s11071_s28 + $0x16c] sm:$0xf] }
 0x989   : > { %v4928_v17 = vmul.f32 %v9465_v11, %v4922_v12  ;;  %5458 = vmatpush.bf16.msrb.mxu0 %v8628_v8  ;;  %v9270_v5 = vld [vmem:[%s11071_s28 + $0xe8] sm:$0xf0] }
 0x98a   : > { %v4916_v10 = vsub.f32 1.5, %v4915_v9  ;;  %v8629_v9 = vld [vmem:[%s11071_s28 + $0x174] sm:$0xf0]  ;;  %v8564_v8 = vor.u32 %v9270_v5, %v8563_v4 }
 0x98b   : > { %v4934_v20 = vadd.f32 %v9466_v16, %v4928_v17  ;;  %v8632_v12 = vor.u32 %v9286_v6, %v8629_v9  ;;  %v9283_v17 = vld [vmem:[%s11071_s28 + $0x154] sm:$0xf] }
 0x98c   : > { %v4917_v13 = vmul.f32 %v9513_v3, %v4916_v10  ;;  %v8635_v10 = vld [vmem:[%s11071_s28 + $0x170] sm:$0xf] }
 0x98d   : > { %5472 = vmatpush.bf16.msra.mxu1 %v8632_v12  ;;  %v9266_v12 = vld [vmem:[%s11071_s28 + $0xc8] sm:$0xf0] }
 0x98e   : > { %v4921_v15 = vsel %vm4920_vm15, %v9513_v3, %v4917_v13 }
 0x98f   : > { %v4923_v18 = vmul.f32 %v4921_v15, %v11290_v7  ;;  %v9251_v7 = vld [vmem:[%s10388_s19 + $0x10] sm:$0xff]  ;;  %v8615_v15 = vld [vmem:[%s11071_s28 + $0x150] sm:$0xf] }
 0x990   : > { %5210 = vmatpush.bf16.msrb.mxu2 %v9251_v7  ;;  %v9281_v7 = vld [vmem:[%s11071_s28 + $0x140] sm:$0xf0] }
 0x991   : > { %v4929_v19 = vmul.f32 %v9465_v11, %v4923_v18  ;;  %v9288_v11 = vld [vmem:[%s11071_s28 + $0x178] sm:$0xf0] }
 0x992   : > { %v8636_v13 = vor.u32 %v9288_v11, %v8635_v10  ;;  %v8543_v11 = vld [vmem:[%s11071_s28 + $0xc0] sm:$0xf] }
 0x993   : > { %v4935_v21 = vadd.f32 %v9466_v16, %v4929_v19  ;;  %v9284_v16 = vld [vmem:[%s11071_s28 + $0x158] sm:$0xf0]  ;;  %v8617_v19 = vld [vmem:[%s11071_s28 + $0x15c] sm:$0xf0] }
 0x994   : > { %5211 = vmatpush.bf16.msrb.mxu2 %v9250_v27  ;;  %v8616_v18 = vor.u32 %v9284_v16, %v8615_v15  ;;  %v8604_v27 = vor.u32 %v9281_v7, %v8603_v23  ;;  %v8544_v15 = vor.u32 %v9266_v12, %v8543_v11  ;;  %v8545_v16 = vld [vmem:[%s11071_s28 + $0xcc] sm:$0xf0] }
 0x995   : > { %v4952_v22 = vpack.c.bf16 %v4935_v21, %v4934_v20 }
 0x996   : > { %5459 = vmatpush.bf16.msrb.mxu0 %v8616_v18  ;;  %v9267_v18 = vld [vmem:[%s11071_s28 + $0xd0] sm:$0xf0] }
 0x997   : > { %5047 = vmatmul.bf16.vlgmr.msra.gmra.mxu0 %v4952_v22  ;;  %5061 = vmatmul.bf16.vlgmr.msrb.gmra.mxu1 %v4952_v22  ;;  %v8620_v22 = vor.u32 %v9283_v17, %v8617_v19  ;;  %v8551_v17 = vld [vmem:[%s11071_s28 + $0xc8] sm:$0xf] }
 0x998   : > { %5212 = vmatpush.bf16.msrb.mxu2 %v9249_v31  ;;  %v8611_v31 = vld [vmem:[%s11071_s28 + $0x140] sm:$0xf] }
 0x999   : > { %5473 = vmatpush.bf16.msra.mxu1 %v8620_v22 }
 0x99a   : > { %5460 = vmatpush.bf16.msrb.mxu0 %v8604_v27 }
 0x99c   : > { %5486 = vmatpush.bf16.msra.mxu2 %v8636_v13  ;;  %v9265_v13 = vld [vmem:[%s11071_s28 + $0xc4] sm:$0xf] }
 0x99d   : > { %5474 = vmatpush.bf16.msra.mxu1 %v8608_v33 }
 0xa14   : > { %v5048_v34 = vpop.f32.mrf.mxu0  ;;  %v5062_v35 = vpop.f32.mrf.mxu1 }
 0xa15   : > { %v5049_v38 = vadd.f32 %v5048_v34, %v4955_v36  ;;  %v5063_v39 = vadd.f32 %v5062_v35, %v4956_v29  ;;  %v8612_v34 = vor.u32 %v9282_v32, %v8611_v31  ;;  %v8591_v35 = vld [vmem:[%s11071_s28 + $0x120] sm:$0xf] }
 0xa17   : > { %v5067_v44 = vmax.f32 %v5049_v38, 0.0  ;;  %v5068_v45 = vmax.f32 %v5063_v39, 0.0  ;;  %v8593_v39 = vld [vmem:[%s11071_s28 + $0x12c] sm:$0xf0] }
 0xa1c   : > { %v5050_v40 = vpop.f32.mrf.mxu0  ;;  %v5064_v41 = vpop.f32.mrf.mxu1 }
 0xa1d   : > { %v5051_v42 = vadd.f32 %v5050_v40, %v4955_v36  ;;  %v5065_v43 = vadd.f32 %v5064_v41, %v4956_v29  ;;  %v9278_v36 = vld [vmem:[%s11071_s28 + $0x128] sm:$0xf0]  ;;  %v9277_v29 = vld [vmem:[%s11071_s28 + $0x124] sm:$0xf]  ;;  %v8599_v40 = vld [vmem:[%s11071_s28 + $0x128] sm:$0xf] }
 0xa1e   : > { %v8592_v38 = vor.u32 %v9278_v36, %v8591_v35  ;;  %v9279_v41 = vld [vmem:[%s11071_s28 + $0x130] sm:$0xf0] }
 0xa1f   : > { %v5069_v46 = vmax.f32 %v5051_v42, 0.0  ;;  %v5070_v47 = vmax.f32 %v5065_v43, 0.0  ;;  %v8596_v42 = vor.u32 %v9277_v29, %v8593_v39  ;;  %v8600_v43 = vor.u32 %v9279_v41, %v8599_v40  ;;  %v9468_v39 = vld [vmem:[%s1162_s16] ss:$0 sm:$0xff] }
 0xa20   : > { %5461 = vmatpush.bf16.msrb.mxu0 %v8592_v38 }
 0xa21   : > { %v5103_v48 = vpack.c.bf16 %v5069_v46, %v5067_v44  ;;  %v5104_v49 = vpack.c.bf16 %v5070_v47, %v5068_v45  ;;  %5475 = vmatpush.bf16.msra.mxu1 %v8596_v42  ;;  %v8579_v44 = vld [vmem:[%s11071_s28 + $0x108] sm:$0xf]  ;;  %v9275_v45 = vld [vmem:[%s11071_s28 + $0x110] sm:$0xf0]  ;;  %v9274_v46 = vld [vmem:[%s11071_s28 + $0x10c] sm:$0xf] }
 0xa22   : > { %v8580_v47 = vor.u32 %v9275_v45, %v8579_v44 }
 0xa23   : > { %5213 = vmatmul.bf16.vlgmr.msrb.gmra.mxu2 %v5103_v48  ;;  %5227 = vmatmul.bf16.vlgmr.msra.gmra.mxu3 %v5104_v49  ;;  %v8581_v48 = vld [vmem:[%s11071_s28 + $0x114] sm:$0xf0]  ;;  %v8587_v49 = vld [vmem:[%s11071_s28 + $0x110] sm:$0xf] }
 0xa24   : > { %5462 = vmatpush.bf16.msrb.mxu0 %v8580_v47 }
 0xaa6   : > { %v5214_v14 = vpop.f32.mrf.mxu2  ;;  %v5228_v52 = vpop.f32.mrf.mxu3 }
 0xaa7   : > { %v5215_v53 = vadd.f32 %v9467_v50, %v5214_v14  ;;  %v8584_v14 = vor.u32 %v9274_v46, %v8581_v48 }
 0xaa9   : > { %v5229_v30 = vadd.f32 %v5228_v52, %v5215_v53  ;;  %5476 = vmatpush.bf16.msra.mxu1 %v8584_v14  ;;  %v8567_v53 = vld [vmem:[%s11071_s28 + $0xf0] sm:$0xf] }
 0xaab   : > { %v5233_v54 = vadd.f32 %v5229_v30, %v4934_v20  ;;  %v8623_v20 = vld [vmem:[%s11071_s28 + $0x158] sm:$0xf]  ;;  %v9272_v30 = vld [vmem:[%s11071_s28 + $0xf8] sm:$0xf0] }
 0xaad   : > { %5235 = vadd.xlane.f32.xlu1 %v5233_v54 }
 0xaae   : > { %v5216_v1 = vpop.f32.mrf.mxu2  ;;  %v5230_v56 = vpop.f32.mrf.mxu3 }
 0xaaf   : > { %v5217_v37 = vadd.f32 %v9467_v50, %v5216_v1  ;;  %v9276_v50 = vld [vmem:[%s11071_s28 + $0x118] sm:$0xf0]  ;;  %v8568_v1 = vor.u32 %v9272_v30, %v8567_v53 }
 0xab0   : > { %v8588_v52 = vor.u32 %v9276_v50, %v8587_v49 }
 0xab1   : > { %v5231_v57 = vadd.f32 %v5230_v56, %v5217_v37  ;;  %v8569_v37 = vld [vmem:[%s11071_s28 + $0xfc] sm:$0xf0]  ;;  %v8575_v56 = vld [vmem:[%s11071_s28 + $0xf8] sm:$0xf]  ;;  %5463 = vmatpush.bf16.msrb.mxu0 %v8568_v1 }
 0xab3   : > { %v5234_v58 = vadd.f32 %v5231_v57, %v4935_v21  ;;  %v9285_v21 = vld [vmem:[%s11071_s28 + $0x160] sm:$0xf0] }
 0xab4   : > { %v8624_v55 = vor.u32 %v9285_v21, %v8623_v20  ;;  %v9273_v57 = vld [vmem:[%s11071_s28 + $0x100] sm:$0xf0]  ;;  %v8548_v20 = vor.u32 %v9265_v13, %v8545_v16  ;;  %v8552_v21 = vor.u32 %v9267_v18, %v8551_v17 }
 0xab5   : > { %5237 = vadd.xlane.f32.xlu0 %v5234_v58 }
 0xab6   : > { %5487 = vmatpush.bf16.msra.mxu2 %v8624_v55 }
 0xaba   : > { %5488 = vmatpush.bf16.msra.mxu2 %v8612_v34 }
 0xabe   : > { %5489 = vmatpush.bf16.msra.mxu2 %v8600_v43  ;;  %v9469_v43 = vld [vmem:[%s1172_s25] ss:$0 sm:$0xff] }
 0xac2   : > { %5490 = vmatpush.bf16.msra.mxu2 %v8588_v52 }
 0xb20   : > { %v5236_v60 = vpop.xlane.xlu1 %5235 }
 0xb21   : > { %v5239_v26 = vmul.f32 %v5236_v60, %v11282_v59  ;;  %v8576_v60 = vor.u32 %v9273_v57, %v8575_v56 }
 0xb23   : > { %v11371_v63 = vsub.f32 %v5233_v54, %v5239_v26  ;;  %v9271_v54 = vld [vmem:[%s11071_s28 + $0xf4] sm:$0xf]  ;;  %5491 = vmatpush.bf16.msra.mxu2 %v8576_v60  ;;  %v8555_v26 = vld [vmem:[%s11071_s28 + $0xd8] sm:$0xf] }
 0xb25   : > { %v5243_v62 = vmul.f32 %v11371_v63, %v11371_v63 }
 0xb27   : > { %5245 = vadd.xlane.f32.xlu2 %v5243_v62  ;;  %v9269_v62 = vld [vmem:[%s11071_s28 + $0xe0] sm:$0xf0]  ;;  %5492 = vmatpush.bf16.msra.mxu2 %v8564_v8 }
 0xb28   : > { %v5238_v0 = vpop.xlane.xlu0 %5237 }
 0xb29   : > { %v5240_v2 = vmul.f32 %v5238_v0, %v11282_v59  ;;  %v9268_v0 = vld [vmem:[%s11071_s28 + $0xdc] sm:$0xf] }
 0xb2b   : > { %v11376_v61 = vsub.f32 %v5234_v58, %v5240_v2  ;;  %v8572_v58 = vor.u32 %v9271_v54, %v8569_v37  ;;  %v8556_v2 = vor.u32 %v9269_v62, %v8555_v26  ;;  %5493 = vmatpush.bf16.msra.mxu2 %v8552_v21 }
 0xb2d   : > { %v5244_v3 = vmul.f32 %v11376_v61, %v11376_v61  ;;  %5477 = vmatpush.bf16.msra.mxu1 %v8572_v58  ;;  %5464 = vmatpush.bf16.msrb.mxu0 %v8556_v2 }
 0xb2f   : > { %5247 = vadd.xlane.f32.xlu1 %v5244_v3  ;;  %v8557_v3 = vld [vmem:[%s11071_s28 + $0xe4] sm:$0xf0]  ;;  %s11807_s28 = sld [smem:[#allocation59_spill]] }
 0xb30   : > { %v8560_v6 = vor.u32 %v9268_v0, %v8557_v3 }
 0xb31   : > { %5465 = vmatpush.bf16.msrb.mxu0 %v8544_v15 }
 0xb32   : > { %5478 = vmatpush.bf16.msra.mxu1 %v8560_v6 }
 0xb36   : > { %5479 = vmatpush.bf16.msra.mxu1 %v8548_v20 }
 0xb9a   : > { %v5246_v9 = vpop.xlane.xlu2 %5245 }
 0xb9b   : > { %v5249_v10 = vmul.f32 %v5246_v9, %v11282_v59 }
 0xb9d   : > { %v5251_v19 = vadd.f32 1e-05, %v5249_v10 }
 0xb9f   : > { %9514 = vrsqrt.f32 %v5251_v19  ;;  %vm5259_vm1 = vweird.f32 %v5251_v19 }
 0xba2   : > { %v5248_v22 = vpop.xlane.xlu1 %5247 }
 0xba3   : > { %v5250_v55 = vmul.f32 %v5248_v22, %v11282_v59 }
 0xba5   : > { %v9515_v23 = vpop.eup %9514  ;;  %v5252_v7 = vadd.f32 1e-05, %v5250_v55 }
 0xba6   : > { %v5254_v24 = vmul.f32 %v9515_v23, %v5251_v19  ;;  %vm5260_vm0 = vweird.f32 %v9515_v23 }
 0xba7   : > { %9516 = vrsqrt.f32 %v5252_v7  ;;  %vm5261_vm9 = vmor %vm5259_vm1, %vm5260_vm0  ;;  %vm5269_vm11 = vweird.f32 %v5252_v7 }
 0xba8   : > { %v5255_v27 = vmul.f32 %v9515_v23, %v5254_v24 }
 0xbaa   : > { %v5256_v28 = vmul.f32 0.5, %v5255_v27 }
 0xbac   : > { %v5257_v31 = vsub.f32 1.5, %v5256_v28 }
 0xbad   : > { %v9517_v32 = vpop.eup %9516 }
 0xbae   : > { %v5258_v33 = vmul.f32 %v9515_v23, %v5257_v31  ;;  %v5264_v34 = vmul.f32 %v9517_v32, %v5252_v7  ;;  %vm5270_vm10 = vweird.f32 %v9517_v32 }
 0xbaf   : > { %vm5271_vm12 = vmor %vm5269_vm11, %vm5270_vm10 }
 0xbb0   : > { %v5265_v35 = vmul.f32 %v9517_v32, %v5264_v34  ;;  %v5262_v36 = vsel %vm5261_vm9, %v9515_v23, %v5258_v33  ;;  %vm6508_vm9 = vcmask 1041409  }
 0xbb1   : > { %v5273_v40 = vmul.f32 %v5262_v36, %v11371_v63  ;;  %v8540_v63 = vld [vmem:[%s11136_s13 + $0x3] sm:$0x7]  ;;  %s11808_s13 = smov %s11807_s28 }
 0xbb2   : > { %v5266_v29 = vmul.f32 0.5, %v5265_v35  ;;  %v5324_v50 = vperm.slane %v8540_v63, 0  ;;  %v5325_v14 = vperm.slane %v8540_v63, 1  ;;  %v5326_v37 = vperm.slane %v8540_v63, 2 }
 0xbb3   : > { %v5279_v44 = vmul.f32 %v9468_v39, %v5273_v40 }
 0xbb4   : > { %v5267_v38 = vsub.f32 1.5, %v5266_v29 }
 0xbb5   : > { %v11436_v47 = vadd.f32 %v9469_v43, %v5279_v44 }
 0xbb6   : > { %v5268_v41 = vmul.f32 %v9517_v32, %v5267_v38 }
 0xbb8   : > { %v5272_v42 = vsel %vm5271_vm12, %v9517_v32, %v5268_v41 }
 0xbb9   : > { %v5274_v45 = vmul.f32 %v5272_v42, %v11376_v61 }
 0xbbb   : > { %v5280_v46 = vmul.f32 %v9468_v39, %v5274_v45 }
 0xbbd   : > { %v11438_v48 = vadd.f32 %v9469_v43, %v5280_v46 }
 0xbbf   : > { %v5320_v49 = vpack.c.bf16 %v11438_v48, %v11436_v47 }
 0xbc1   : > { %5466 = vmatmul.bf16.vlgmr.msrb.gmra.mxu0 %v5320_v49  ;;  %5480 = vmatmul.bf16.vlgmr.msra.gmra.mxu1 %v5320_v49 }
 0xbc2   : > { %5494 = vmatmul.bf16.vlgmr.msra.gmra.mxu2 %v5320_v49 }
 0xc3e   : > { %v5467_v52 = vpop.f32.mrf.mxu0  ;;  %v5481_v53 = vpop.f32.mrf.mxu1 }
 0xc3f   : > { %v5468_v30 = vadd.f32 %v5467_v52, %v5324_v50  ;;  %v5482_v54 = vadd.f32 %v5481_v53, %v5325_v14 }
 0xc41   : > { %v5500_v1 = vpack.c.bf16 %v5468_v30, %v5468_v30  ;;  %v5502_v61 = vpack.c.bf16 %v5482_v54, %v5482_v54 }
 0xc43   : > { %v5611_v56 = vunpack.c.l.b16 %v5500_v1  ;;  %v5510_v57 = vsel %vm4284_vm2, %v5502_v61, 0  ;;  %v5616_v58 = vunpack.c.l.b16 %v5502_v61 }
 0xc44   : > { %5519 = vmatpush.bf16.xpose.msrb.mxu3 %v5510_v57 }
 0xc45   : > { %v5612_v60 = vpack.c.b16 %v5611_v56, %v5611_v56  ;;  %v5617_v26 = vpack.c.b16 %v5616_v58, %v5616_v58  ;;  %v5495_v62 = vpop.f32.mrf.mxu2 }
 0xc46   : > { %v5496_v0 = vadd.f32 %v5495_v62, %v5326_v37  ;;  %v5469_v2 = vpop.f32.mrf.mxu0  ;;  %v5483_v3 = vpop.f32.mrf.mxu1 }
 0xc47   : > { %v5470_v4 = vadd.f32 %v5469_v2, %v5324_v50  ;;  %v5484_v5 = vadd.f32 %v5483_v3, %v5325_v14  ;;  %5618 = vrot.lane.b32.xlu0 %v5617_v26, %s9999_s0  ;;  %5613 = vrot.lane.b32.xlu1 %v5612_v60, %s9999_s0 }
 0xc48   : > { %v11446_v6 = vpack.c.bf16 %v5496_v0, %v5496_v0 }
 0xc49   : > { %v5501_v8 = vpack.c.bf16 %v5470_v4, %v5470_v4  ;;  %v5503_v9 = vpack.c.bf16 %v5484_v5, %v5484_v5 }
 0xc4a   : > { %v5572_v10 = vsel %vm4351_vm3, %v11446_v6, 0 }
 0xc4b   : > { %v5640_v11 = vunpack.c.l.b16 %v5501_v8  ;;  %v5529_v12 = vsel %vm4284_vm2, %v5503_v9, 0  ;;  %v5645_v13 = vunpack.c.l.b16 %v5503_v9  ;;  %5581 = vmatpush.bf16.msrb.mxu1 %v5572_v10  ;;  %8637 = vmatmul.msk.bf16.vlgmr.msrb.gmra.mxu3 %vm4284_vm2, %v5500_v1 }
 0xc4c   : > { %5538 = vmatpush.bf16.xpose.msra.mxu0 %v5529_v12 }
 0xc4d   : > { %v5641_v15 = vpack.c.b16 %v5640_v11, %v5640_v11  ;;  %v5646_v16 = vpack.c.b16 %v5645_v13, %v5645_v13  ;;  %v5497_v17 = vpop.f32.mrf.mxu2 }
 0xc4e   : > { %v5498_v18 = vadd.f32 %v5497_v17, %v5326_v37 }
 0xc4f   : > { %5647 = vrot.lane.b32.xlu2 %v5646_v16, %s9999_s0  ;;  %5642 = vrot.lane.b32.xlu0 %v5641_v15, %s9999_s0 }
 0xc50   : > { %v11454_v19 = vpack.c.bf16 %v5498_v18, %v5498_v18  ;;  %5752 = vrot.lane.b32.xlu1 %v5612_v60, %s9998_s29 }
 0xc52   : > { %v5591_v20 = vsel %vm4351_vm3, %v11454_v19, 0 }
 0xc53   : > { %5600 = vmatpush.bf16.msrb.mxu2 %v5591_v20  ;;  %8638 = vmatmul.msk.bf16.vlgmr.msra.gmra.mxu0 %vm4284_vm2, %v5501_v8 }
 0xc57   : > { %5777 = vrot.lane.b32.xlu2 %v5646_v16, %s9998_s29  ;;  %5754 = vrot.lane.b32.xlu0 %v5617_v26, %s9998_s29 }
 0xc58   : > { %5901 = vrot.lane.b32.xlu1 %v5646_v16, %s10000_s30 }
 0xc5f   : > { %5878 = vrot.lane.b32.xlu2 %v5617_v26, %s10000_s30  ;;  %5775 = vrot.lane.b32.xlu0 %v5641_v15, %s9998_s29 }
 0xc67   : > { %5899 = vrot.lane.b32.xlu2 %v5641_v15, %s10000_s30  ;;  %5876 = vrot.lane.b32.xlu0 %v5612_v60, %s10000_s30 }
 0xca9   : > { %v5648_v21 = vpop.permute.xlu2 %5647 }
 0xcaa   : > { %v5653_v22 = vsel %vm4284_vm2, %v5648_v21, 0 }
 0xcab   : > { %5662 = vmatpush.bf16.xpose.msrb.mxu0 %v5653_v22 }
 0xcb1   : > { %v5778_v55 = vpop.permute.xlu2 %5777 }
 0xcb2   : > { %v5783_v23 = vsel %vm4284_vm2, %v5778_v55, 0  ;;  %v5693_v55 = vunpack.c.l.b16 %v11446_v6 }
 0xcb3   : > { %5792 = vmatpush.bf16.xpose.msra.mxu0 %v5783_v23 }
 0xcb9   : > { %v5619_v7 = vpop.permute.xlu0 %5618  ;;  %v5614_v27 = vpop.permute.xlu1 %5613 }
 0xcba   : > { %v5624_v24 = vsel %vm4284_vm2, %v5619_v7, 0  ;;  %v5879_v32 = vpop.permute.xlu2 %5878  ;;  %v11501_v7 = vpack.c.b16 %v5693_v55, %v5693_v55 }
 0xcbb   : > { %5633 = vmatpush.bf16.xpose.msra.mxu3 %v5624_v24  ;;  %v5884_v36 = vsel %vm4284_vm2, %v5879_v32, 0 }
 0xcc1   : > { %v5643_v28 = vpop.permute.xlu0 %5642 }
 0xcc2   : > { %v5753_v31 = vpop.permute.xlu1 %5752  ;;  %8641 = vmatmul.msk.bf16.vlgmr.msra.gmra.mxu3 %vm4284_vm2, %v5614_v27  ;;  %8642 = vmatmul.msk.bf16.vlgmr.msrb.gmra.mxu0 %vm4284_vm2, %v5643_v28  ;;  %v5900_v49 = vpop.permute.xlu2 %5899 }
 0xcc9   : > { %v5755_v33 = vpop.permute.xlu0 %5754 }
 0xcca   : > { %v5760_v34 = vsel %vm4284_vm2, %v5755_v33, 0  ;;  %v5902_v35 = vpop.permute.xlu1 %5901 }
 0xccb   : > { %v5907_v29 = vsel %vm4284_vm2, %v5902_v35, 0  ;;  %5769 = vmatpush.bf16.xpose.msrb.mxu3 %v5760_v34 }
 0xccc   : > { %5916 = vmatpush.bf16.xpose.msrb.mxu0 %v5907_v29 }
 0xcce   : > { %v5521_v38 = vpop.f32.mrf.mxu3 }
 0xccf   : > { %v5522_v39 = vadd.f32 %v5521_v38, %v11176_v51 }
 0xcd0   : > { %v5540_v40 = vpop.f32.mrf.mxu0 }
 0xcd1   : > { %v5541_v41 = vadd.f32 %v5540_v40, %v11181_v25  ;;  %v5776_v42 = vpop.permute.xlu0 %5775  ;;  %v5544_v43 = vsel %vm4323_vm4, %v5522_v39, -inf }
 0xcd2   : > { %8645 = vmatmul.msk.bf16.vlgmr.msrb.gmra.mxu3 %vm4284_vm2, %v5753_v31  ;;  %8646 = vmatmul.msk.bf16.vlgmr.msra.gmra.mxu0 %vm4284_vm2, %v5776_v42 }
 0xcd3   : > { %5893 = vmatpush.bf16.xpose.msra.mxu3 %v5884_v36  ;;  %5545 = vmax.xlane.f32.xlu0 %v5544_v43  ;;  %v5547_v44 = vsel %vm4323_vm4, %v5541_v41, -inf }
 0xcd4   : > { %5548 = vmax.xlane.f32.xlu1 %v5547_v44 }
 0xcd6   : > { %v5523_v45 = vpop.f32.mrf.mxu3 }
 0xcd8   : > { %v5542_v46 = vpop.f32.mrf.mxu0 }
 0xcd9   : > { %v5877_v63 = vpop.permute.xlu0 %5876 }
 0xce2   : > { %8649 = vmatmul.msk.bf16.vlgmr.msra.gmra.mxu3 %vm4284_vm2, %v5877_v63  ;;  %8650 = vmatmul.msk.bf16.vlgmr.msrb.gmra.mxu0 %vm4284_vm2, %v5900_v49 }
 0xd3f   : > { %v5664_v50 = vpop.f32.mrf.mxu0 }
 0xd40   : > { %v5665_v14 = vadd.f32 %v5664_v50, %v11181_v25 }
 0xd42   : > { %v5671_v52 = vsel %vm4323_vm4, %v5665_v14, -inf }
 0xd43   : > { %5672 = vmax.xlane.f32.xlu2 %v5671_v52 }
 0xd45   : > { %v5635_v53 = vpop.f32.mrf.mxu3 }
 0xd46   : > { %v5636_v30 = vadd.f32 %v5635_v53, %v11176_v51  ;;  %v5546_v54 = vpop.xlane.xlu0 %5545 }
 0xd47   : > { %v5550_v1 = vsub.f32 %v5522_v39, %v5546_v54  ;;  %v5666_v61 = vpop.f32.mrf.mxu0  ;;  %v5549_v37 = vpop.xlane.xlu1 %5548 }
 0xd48   : > { %v5551_v56 = vsub.f32 %v5541_v41, %v5549_v37  ;;  %v5668_v57 = vsel %vm4323_vm4, %v5636_v30, -inf }
 0xd49   : > { %v5552_v58 = vmul.f32 1.442695, %v5550_v1  ;;  %5669 = vmax.xlane.f32.xlu1 %v5668_v57 }
 0xd4a   : > { %v5554_v60 = vmul.f32 1.442695, %v5551_v56 }
 0xd4b   : > { %9518 = vpow2.f32 %v5552_v58 }
 0xd4c   : > { %9520 = vpow2.f32 %v5554_v60 }
 0xd4d   : > { %v5637_v26 = vpop.f32.mrf.mxu3 }
 0xd4f   : > { %v5794_v62 = vpop.f32.mrf.mxu0 }
 0xd50   : > { %v5795_v9 = vadd.f32 %v5794_v62, %v11181_v25 }
 0xd51   : > { %v9519_v0 = vpop.eup %9518 }
 0xd52   : > { %v9521_v2 = vpop.eup %9520  ;;  %v5556_v3 = vsel %vm4323_vm4, %v9519_v0, 0.0  ;;  %v5801_v12 = vsel %vm4323_vm4, %v5795_v9, -inf }
 0xd53   : > { %5557 = vadd.xlane.f32.xlu1 %v5556_v3  ;;  %v5559_v4 = vsel %vm4323_vm4, %v9521_v2, 0.0 }
 0xd54   : > { %5560 = vadd.xlane.f32.xlu0 %v5559_v4 }
 0xd55   : > { %v5771_v5 = vpop.f32.mrf.mxu3 }
 0xd56   : > { %v5772_v8 = vadd.f32 %v5771_v5, %v11176_v51 }
 0xd57   : > { %v5796_v10 = vpop.f32.mrf.mxu0 }
 0xd58   : > { %v5798_v11 = vsel %vm4323_vm4, %v5772_v8, -inf }
 0xd59   : > { %5799 = vmax.xlane.f32.xlu2 %v5798_v11 }
 0xd5c   : > { %5802 = vmax.xlane.f32.xlu0 %v5801_v12 }
 0xd5d   : > { %v5773_v13 = vpop.f32.mrf.mxu3 }
 0xd5f   : > { %v5918_v15 = vpop.f32.mrf.mxu0 }
 0xd60   : > { %v5919_v16 = vadd.f32 %v5918_v15, %v11181_v25  ;;  %v5717_v25 = vunpack.c.l.b16 %v11454_v19 }
 0xd62   : > { %v5925_v17 = vsel %vm4323_vm4, %v5919_v16, -inf  ;;  %v11506_v24 = vpack.c.b16 %v5717_v25, %v5717_v25 }
 0xd63   : > { %5926 = vmax.xlane.f32.xlu1 %v5925_v17 }
 0xd65   : > { %v5895_v18 = vpop.f32.mrf.mxu3 }
 0xd66   : > { %v11496_v20 = vadd.f32 %v5895_v18, %v11176_v51 }
 0xd67   : > { %v5920_v21 = vpop.f32.mrf.mxu0 }
 0xd68   : > { %v5922_v22 = vsel %vm4323_vm4, %v11496_v20, -inf }
 0xd69   : > { %5923 = vmax.xlane.f32.xlu2 %v5922_v22 }
 0xd6d   : > { %v5897_v23 = vpop.f32.mrf.mxu3 }
 0xd70   : > { %5695 = vrot.lane.b32.xlu0 %v11501_v7, %s9999_s0 }
 0xd7c   : > { %5719 = vrot.lane.b32.xlu1 %v11506_v24, %s9999_s0 }
 0xd81   : > { %5843 = vrot.lane.b32.xlu2 %v11506_v24, %s9998_s29 }
 0xdb6   : > { %v5673_v51 = vpop.xlane.xlu2 %5672 }
 0xdb7   : > { %v5675_v27 = vsub.f32 %v5665_v14, %v5673_v51 }
 0xdb9   : > { %v5678_v28 = vmul.f32 1.442695, %v5675_v27 }
 0xdbb   : > { %9522 = vpow2.f32 %v5678_v28 }
 0xdbc   : > { %v5670_v6 = vpop.xlane.xlu1 %5669 }
 0xdbd   : > { %v5674_v31 = vsub.f32 %v5636_v30, %v5670_v6 }
 0xdbf   : > { %v5676_v32 = vmul.f32 1.442695, %v5674_v31 }
 0xdc1   : > { %v11512_v33 = vpop.eup %9522  ;;  %9524 = vpow2.f32 %v5676_v32 }
 0xdc2   : > { %v5683_v19 = vsel %vm4323_vm4, %v11512_v33, 0.0 }
 0xdc3   : > { %5684 = vadd.xlane.f32.xlu0 %v5683_v19 }
 0xdc6   : > { %v5558_v34 = vpop.xlane.xlu1 %5557 }
 0xdc7   : > { %v11516_v35 = vpop.eup %9524  ;;  %9526 = vrcp.f32 %v5558_v34  ;;  %v5561_v36 = vpop.xlane.xlu0 %5560 }
 0xdc8   : > { %9528 = vrcp.f32 %v5561_v36  ;;  %v5680_v29 = vsel %vm4323_vm4, %v11516_v35, 0.0 }
 0xdc9   : > { %5681 = vadd.xlane.f32.xlu2 %v5680_v29 }
 0xdcc   : > { %v5800_v38 = vpop.xlane.xlu2 %5799 }
 0xdcd   : > { %v9527_v39 = vpop.eup %9526  ;;  %v5804_v40 = vsub.f32 %v5772_v8, %v5800_v38 }
 0xdce   : > { %v9529_v41 = vpop.eup %9528  ;;  %v5564_v42 = vmul.f32 %v9527_v39, %v9519_v0 }
 0xdcf   : > { %v5565_v43 = vmul.f32 %v9529_v41, %v9521_v2  ;;  %v5806_v44 = vmul.f32 1.442695, %v5804_v40  ;;  %v5803_v45 = vpop.xlane.xlu0 %5802 }
 0xdd0   : > { %v5566_v46 = vpack.c.bf16 %v5564_v42, %v5564_v42  ;;  %v5805_v49 = vsub.f32 %v5795_v9, %v5803_v45 }
 0xdd1   : > { %v5567_v63 = vpack.c.bf16 %v5565_v43, %v5565_v43  ;;  %9530 = vpow2.f32 %v5806_v44 }
 0xdd2   : > { %8639 = vmatmul.msk.bf16.vlgmr.msrb.gmra.mxu1 %vm4323_vm4, %v5566_v46  ;;  %v5808_v50 = vmul.f32 1.442695, %v5805_v49 }
 0xdd3   : > { %8640 = vmatmul.msk.bf16.vlgmr.msrb.gmra.mxu2 %vm4323_vm4, %v5567_v63 }
 0xdd4   : > { %9532 = vpow2.f32 %v5808_v50 }
 0xdd6   : > { %v5927_v14 = vpop.xlane.xlu1 %5926 }
 0xdd7   : > { %v9531_v52 = vpop.eup %9530  ;;  %v5929_v53 = vsub.f32 %v5919_v16, %v5927_v14  ;;  %5822 = vrot.lane.b32.xlu0 %v11501_v7, %s9998_s29 }
 0xdd8   : > { %v5810_v30 = vsel %vm4323_vm4, %v9531_v52, 0.0 }
 0xdd9   : > { %v5932_v54 = vmul.f32 1.442695, %v5929_v53  ;;  %5811 = vadd.xlane.f32.xlu2 %v5810_v30 }
 0xdda   : > { %v9533_v1 = vpop.eup %9532 }
 0xddb   : > { %9534 = vpow2.f32 %v5932_v54  ;;  %v5813_v61 = vsel %vm4323_vm4, %v9533_v1, 0.0 }
 0xddc   : > { %v5924_v58 = vpop.xlane.xlu2 %5923 }
 0xddd   : > { %v5928_v0 = vsub.f32 %v11496_v20, %v5924_v58 }
 0xddf   : > { %v5930_v4 = vmul.f32 1.442695, %v5928_v0  ;;  %v9296_v0 = vld [vmem:[%s10385_s11 + $0x70] sm:$0xff] }
 0xde1   : > { %v11526_v37 = vpop.eup %9534  ;;  %5814 = vadd.xlane.f32.xlu2 %v5813_v61  ;;  %9536 = vpow2.f32 %v5930_v4 }
 0xde2   : > { %v5696_v56 = vpop.permute.xlu0 %5695  ;;  %v5937_v57 = vsel %vm4323_vm4, %v11526_v37, 0.0 }
 0xde3   : > { %v5701_v60 = vsel %vm4351_vm3, %v5696_v56, 0  ;;  %5938 = vadd.xlane.f32.xlu1 %v5937_v57 }
 0xde4   : > { %5710 = vmatpush.bf16.msra.mxu1 %v5701_v60  ;;  %v5844_v26 = vpop.permute.xlu2 %5843 }
 0xde5   : > { %v5849_v3 = vsel %vm4351_vm3, %v5844_v26, 0 }
 0xde7   : > { %v9537_v5 = vpop.eup %9536 }
 0xde8   : > { %v5934_v8 = vsel %vm4323_vm4, %v9537_v5, 0.0 }
 0xdee   : > { %v5720_v62 = vpop.permute.xlu1 %5719 }
 0xdef   : > { %v5725_v2 = vsel %vm4351_vm3, %v5720_v62, 0  ;;  %v9297_v62 = vld [vmem:[%s10385_s11 + $0x78] sm:$0xff] }
 0xdf0   : > { %5734 = vmatpush.bf16.msra.mxu2 %v5725_v2  ;;  %6078 = vmatpush.bf16.msrb.mxu3 %v9297_v62  ;;  %v9295_v2 = vld [vmem:[%s10385_s11 + $0x68] sm:$0xff] }
 0xdf4   : > { %5858 = vmatpush.bf16.msrb.mxu2 %v5849_v3  ;;  %6079 = vmatpush.bf16.msrb.mxu3 %v9296_v0  ;;  %v8745_v0 = vld [vmem:[%s11298_s5 + $0xa8] sm:$0xf0] }
 0xdf8   : > { %6080 = vmatpush.bf16.msrb.mxu3 %v9295_v2 }
 0xdf9   : > { %5967 = vrot.lane.b32.xlu2 %v11506_v24, %s10000_s30 }
 0xe01   : > { %5935 = vadd.xlane.f32.xlu0 %v5934_v8  ;;  %5946 = vrot.lane.b32.xlu2 %v11501_v7, %s10000_s30 }
 0xe36   : > { %v5685_v9 = vpop.xlane.xlu0 %5684 }
 0xe37   : > { %9538 = vrcp.f32 %v5685_v9  ;;  %v9293_v9 = vld [vmem:[%s10385_s11 + $0x58] sm:$0xff] }
 0xe3c   : > { %v5682_v10 = vpop.xlane.xlu2 %5681 }
 0xe3d   : > { %v9539_v11 = vpop.eup %9538  ;;  %9540 = vrcp.f32 %v5682_v10  ;;  %v9292_v10 = vld [vmem:[%s10385_s11 + $0x50] sm:$0xff] }
 0xe3e   : > { %v5689_v12 = vmul.f32 %v9539_v11, %v11512_v33  ;;  %v9291_v11 = vld [vmem:[%s10385_s11 + $0x48] sm:$0xff] }
 0xe40   : > { %v5691_v13 = vpack.c.bf16 %v5689_v12, %v5689_v12  ;;  %v9290_v12 = vld [vmem:[%s10385_s11 + $0x40] sm:$0xff] }
 0xe42   : > { %8644 = vmatmul.msk.bf16.vlgmr.msra.gmra.mxu2 %vm4323_vm4, %v5691_v13 }
 0xe43   : > { %v9541_v15 = vpop.eup %9540 }
 0xe44   : > { %v5688_v16 = vmul.f32 %v9541_v15, %v11516_v35 }
 0xe46   : > { %v5690_v17 = vpack.c.bf16 %v5688_v16, %v5688_v16 }
 0xe48   : > { %8643 = vmatmul.msk.bf16.vlgmr.msra.gmra.mxu1 %vm4323_vm4, %v5690_v17 }
 0xe49   : > { %v5823_v18 = vpop.permute.xlu0 %5822 }
 0xe4a   : > { %v5828_v20 = vsel %vm4351_vm3, %v5823_v18, 0  ;;  %v9470_v18 = vld [vmem:[%s11256_s12 + $0x1] ss:$0 sm:$0xff] }
 0xe4b   : > { %5837 = vmatpush.bf16.msrb.mxu1 %v5828_v20 }
 0xe4c   : > { %v5812_v21 = vpop.xlane.xlu2 %5811 }
 0xe4d   : > { %9542 = vrcp.f32 %v5812_v21 }
 0xe4f   : > { %v5583_v22 = vpop.f32.mrf.mxu1 }
 0xe50   : > { %v5606_v55 = vpack.c.bf16 %v5583_v22, %v5583_v22 }
 0xe52   : > { %5608 = vst.msk [vmem:[#allocation2] sm:$0xf] %vm4389_vm5, %v5606_v55 }
 0xe53   : > { %v9543_v23 = vpop.eup %9542 }
 0xe54   : > { %v5818_v7 = vmul.f32 %v9543_v23, %v9531_v52  ;;  %v5815_v25 = vpop.xlane.xlu2 %5814 }
 0xe55   : > { %9544 = vrcp.f32 %v5815_v25 }
 0xe56   : > { %v5820_v24 = vpack.c.bf16 %v5818_v7, %v5818_v7  ;;  %v5602_v51 = vpop.f32.mrf.mxu2  ;;  %v5939_v34 = vpop.xlane.xlu1 %5938 }
 0xe57   : > { %v5585_v27 = vpop.f32.mrf.mxu1  ;;  %v5607_v28 = vpack.c.bf16 %v5602_v51, %v5602_v51  ;;  %9546 = vrcp.f32 %v5939_v34  ;;  %v8785_v34 = vld [vmem:[%s11298_s5 + $0xf8] sm:$0xf0] }
 0xe58   : > { %8647 = vmatmul.msk.bf16.vlgmr.msrb.gmra.mxu1 %vm4323_vm4, %v5820_v24 }
 0xe59   : > { %5609 = vst.msk [vmem:[#allocation2 + $0x4] sm:$0xf] %vm4389_vm5, %v5607_v28 }
 0xe5b   : > { %v9545_v6 = vpop.eup %9544 }
 0xe5c   : > { %v5819_v31 = vmul.f32 %v9545_v6, %v9533_v1  ;;  %v5968_v32 = vpop.permute.xlu2 %5967 }
 0xe5d   : > { %v5973_v33 = vsel %vm4351_vm3, %v5968_v32, 0  ;;  %v9547_v38 = vpop.eup %9546  ;;  %v9313_v32 = vld [vmem:[%s11298_s5 + $0xf4] sm:$0xf0] }
 0xe5e   : > { %v5821_v19 = vpack.c.bf16 %v5819_v31, %v5819_v31  ;;  %v5604_v35 = vpop.f32.mrf.mxu2  ;;  %5982 = vmatpush.bf16.msra.mxu2 %v5973_v33  ;;  %v5943_v39 = vmul.f32 %v9547_v38, %v11526_v37  ;;  %v8783_v31 = vld [vmem:[%s11298_s5 + $0xf0] sm:$0xf]  ;;  %v9312_v33 = vld [vmem:[%s11298_s5 + $0xf4] sm:$0xf]  ;;  %v9310_v38 = vld [vmem:[%s11298_s5 + $0xe4] sm:$0xf] }
 0xe5f   : > { %v8788_v35 = vor.u32 %v9312_v33, %v8785_v34  ;;  %v9326_v34 = vld [vmem:[%s10388_s19 + $0xe0] sm:$0xff] }
 0xe60   : > { %8648 = vmatmul.msk.bf16.vlgmr.msrb.gmra.mxu2 %vm4323_vm4, %v5821_v19  ;;  %v5945_v40 = vpack.c.bf16 %v5943_v39, %v5943_v39  ;;  %v8784_v19 = vor.u32 %v9313_v32, %v8783_v31  ;;  %v9327_v31 = vld [vmem:[%s10388_s19 + $0xe8] sm:$0xff] }
 0xe62   : > { %6253 = vmatpush.bf16.msra.mxu0 %v8784_v19  ;;  %v9318_v19 = vld [vmem:[%s10388_s19 + $0xa0] sm:$0xff] }
 0xe64   : > { %v5947_v36 = vpop.permute.xlu2 %5946 }
 0xe65   : > { %v5952_v29 = vsel %vm4351_vm3, %v5947_v36, 0  ;;  %v8775_v36 = vld [vmem:[%s11298_s5 + $0xe0] sm:$0xf] }
 0xe66   : > { %5961 = vmatpush.bf16.msra.mxu1 %v5952_v29  ;;  %v9311_v29 = vld [vmem:[%s11298_s5 + $0xe4] sm:$0xf0] }
 0xe67   : > { %v8776_v39 = vor.u32 %v9311_v29, %v8775_v36 }
 0xe69   : > { %6254 = vmatpush.bf16.msra.mxu0 %v8776_v39 }
 0xe6a   : > { %6267 = vmatpush.bf16.msrb.mxu1 %v8788_v35 }
 0xe70   : > { %8652 = vmatmul.msk.bf16.vlgmr.msra.gmra.mxu2 %vm4323_vm4, %v5945_v40  ;;  %v8777_v40 = vld [vmem:[%s11298_s5 + $0xe8] sm:$0xf0] }
 0xe74   : > { %v5936_v41 = vpop.xlane.xlu0 %5935 }
 0xe75   : > { %9548 = vrcp.f32 %v5936_v41  ;;  %v8780_v41 = vor.u32 %v9310_v38, %v8777_v40 }
 0xe77   : > { %6268 = vmatpush.bf16.msrb.mxu1 %v8780_v41 }
 0xe7b   : > { %v9549_v42 = vpop.eup %9548 }
 0xe7c   : > { %v5942_v43 = vmul.f32 %v9549_v42, %v9537_v5  ;;  %v9294_v5 = vld [vmem:[%s10385_s11 + $0x60] sm:$0xff]  ;;  %s8889_s11 = sshll.u32 %s11793_s27, 1 }
 0xe7d   : > { %6081 = vmatpush.bf16.msrb.mxu3 %v9294_v5  ;;  %v8767_v42 = vld [vmem:[%s11298_s5 + $0xd0] sm:$0xf]  ;;  %v9300_v5 = vld [vmem:[%s11298_s5 + $0x94] sm:$0xf] }
 0xe7e   : > { %v5944_v44 = vpack.c.bf16 %v5942_v43, %v5942_v43  ;;  %v9309_v43 = vld [vmem:[%s11298_s5 + $0xd4] sm:$0xf0] }
 0xe80   : > { %8651 = vmatmul.msk.bf16.vlgmr.msra.gmra.mxu1 %vm4323_vm4, %v5944_v44  ;;  %v9308_v44 = vld [vmem:[%s11298_s5 + $0xd4] sm:$0xf] }
 0xe81   : > { %6082 = vmatpush.bf16.msrb.mxu3 %v9293_v9  ;;  %v8737_v9 = vld [vmem:[%s11298_s5 + $0x98] sm:$0xf0] }
 0xe85   : > { %6083 = vmatpush.bf16.msrb.mxu3 %v9292_v10 }
 0xe89   : > { %6084 = vmatpush.bf16.msrb.mxu3 %v9291_v11  ;;  %v8740_v11 = vor.u32 %v9300_v5, %v8737_v9 }
 0xe8d   : > { %6085 = vmatpush.bf16.msrb.mxu3 %v9290_v12 }
 0xec5   : > { %v5712_v45 = vpop.f32.mrf.mxu1  ;;  %v5736_v46 = vpop.f32.mrf.mxu2 }
 0xec6   : > { %v5740_v49 = vpack.c.bf16 %v5712_v45, %v5712_v45  ;;  %v5741_v63 = vpack.c.bf16 %v5736_v46, %v5736_v46  ;;  %v8768_v45 = vor.u32 %v9309_v43, %v8767_v42  ;;  %v8769_v46 = vld [vmem:[%s11298_s5 + $0xd8] sm:$0xf0]  ;;  %v9471_v43 = vld [vmem:[%s1152_s22 + $0x1] ss:$0 sm:$0xff] }
 0xec8   : > { %5744 = vrot.lane.b32.xlu2 %v5740_v49, %s10000_s30  ;;  %5746 = vrot.lane.b32.xlu1 %v5741_v63, %s10000_s30  ;;  %v8772_v49 = vor.u32 %v9308_v44, %v8769_v46  ;;  %v8759_v63 = vld [vmem:[%s11298_s5 + $0xc0] sm:$0xf]  ;;  %s1344_s30 = scalar_lea.vmem [#allocation21], %s10395_s24  ;;  %s9908_s24 = scalar_lea.hbm %s11808_s13, 4 }
 0xec9   : > { %6255 = vmatpush.bf16.msra.mxu0 %v8768_v45  ;;  %s6526_s12 = sshll.u32 %s1344_s30, 4  ;;  %s6527_s12 = int_to_ptr.vmem [resolvable:$true] %s6526_s12 }
 0xeca   : > { %6269 = vmatpush.bf16.msrb.mxu1 %v8772_v49  ;;  %v9472_v49 = vld [vmem:[%s11279_s1 + $0x1] ss:$0 sm:$0xff] }
 0xecd   : > { %v5714_v50 = vpop.f32.mrf.mxu1  ;;  %v5738_v14 = vpop.f32.mrf.mxu2 }
 0xece   : > { %v9307_v50 = vld [vmem:[%s11298_s5 + $0xc4] sm:$0xf0]  ;;  %v9306_v14 = vld [vmem:[%s11298_s5 + $0xc4] sm:$0xf] }
 0xed5   : > { %v5839_v52 = vpop.f32.mrf.mxu1 }
 0xed6   : > { %v5864_v53 = vpack.c.bf16 %v5839_v52, %v5839_v52  ;;  %v8760_v52 = vor.u32 %v9307_v50, %v8759_v63 }
 0xed8   : > { %5868 = vrot.lane.b32.xlu2 %v5864_v53, %s9998_s29  ;;  %v8761_v53 = vld [vmem:[%s11298_s5 + $0xc8] sm:$0xf0]  ;;  %6256 = vmatpush.bf16.msra.mxu0 %v8760_v52 }
 0xedd   : > { %v5841_v30 = vpop.f32.mrf.mxu1 }
 0xede   : > { %v8764_v30 = vor.u32 %v9306_v14, %v8761_v53 }
 0xee0   : > { %6270 = vmatpush.bf16.msrb.mxu1 %v8764_v30 }
 0xee3   : > { %v5860_v54 = vpop.f32.mrf.mxu2 }
 0xee4   : > { %v5865_v1 = vpack.c.bf16 %v5860_v54, %v5860_v54  ;;  %v8751_v54 = vld [vmem:[%s11298_s5 + $0xb0] sm:$0xf] }
 0xee6   : > { %5870 = vrot.lane.b32.xlu0 %v5865_v1, %s9998_s29  ;;  %v9305_v1 = vld [vmem:[%s11298_s5 + $0xb4] sm:$0xf0]  ;;  %s6524_s29 = scalar_lea.hbm %s11807_s28, %s8889_s11 }
 0xee7   : > { %s6528_s1 = sshll.u32 %s6524_s29, 4  ;;  %s6529_s1 = int_to_ptr.hbm [resolvable:$true] %s6528_s1 }
 0xee8   : > { %s9902_s27 = sshra.s32 %s6529_s1, 4  ;;  %s9903_s27 = int_to_ptr.hbm [resolvable:$true] %s9902_s27 }
 0xee9   : > { %p9909_p8 = scmp.lt.s32.totalorder %s9903_s27, %s11808_s13 }
 0xeeb   : > { %v5862_v61 = vpop.f32.mrf.mxu2 }
 0xeec   : > { %v9304_v61 = vld [vmem:[%s11298_s5 + $0xb4] sm:$0xf] }
 0xef3   : > { %v5984_v37 = vpop.f32.mrf.mxu2 }
 0xef4   : > { %v5989_v26 = vpack.c.bf16 %v5984_v37, %v5984_v37  ;;  %v8752_v37 = vor.u32 %v9305_v1, %v8751_v54  ;;  %v9325_v54 = vld [vmem:[%s10388_s19 + $0xd8] sm:$0xff]  ;;  %v9316_v1 = vld [vmem:[%s10388_s19 + $0x90] sm:$0xff] }
 0xef6   : > { %6257 = vmatpush.bf16.msra.mxu0 %v8752_v37  ;;  %v9315_v37 = vld [vmem:[%s10388_s19 + $0x88] sm:$0xff] }
 0xefb   : > { %v5986_v56 = vpop.f32.mrf.mxu2 }
 0xefc   : > { %v8753_v56 = vld [vmem:[%s11298_s5 + $0xb8] sm:$0xf0] }
 0xefd   : > { %v5963_v57 = vpop.f32.mrf.mxu1 }
 0xefe   : > { %v5988_v58 = vpack.c.bf16 %v5963_v57, %v5963_v57  ;;  %v8756_v57 = vor.u32 %v9304_v61, %v8753_v56  ;;  %v9324_v61 = vld [vmem:[%s10388_s19 + $0xd0] sm:$0xff]  ;;  %v9314_v56 = vld [vmem:[%s10388_s19 + $0x80] sm:$0xff] }
 0xf00   : > { %5992 = vrot.lane.b32.xlu2 %v5988_v58, %s9999_s0  ;;  %6271 = vmatpush.bf16.msrb.mxu1 %v8756_v57  ;;  %v8743_v58 = vld [vmem:[%s11298_s5 + $0xa0] sm:$0xf]  ;;  %v9322_v57 = vld [vmem:[%s10388_s19 + $0xc0] sm:$0xff] }
 0xf05   : > { %v5965_v60 = vpop.f32.mrf.mxu1 }
 0xf06   : > { %v9303_v60 = vld [vmem:[%s11298_s5 + $0xa4] sm:$0xf0] }
 0xf07   : > { %v8744_v62 = vor.u32 %v9303_v60, %v8743_v58  ;;  %v8724_v58 = vld [vmem:[%s11365_s17 + $0x2] sm:$0x3] }
 0xf08   : > { %5994 = vrot.lane.b32.xlu2 %v5989_v26, %s9999_s0  ;;  %v9302_v26 = vld [vmem:[%s11298_s5 + $0xa4] sm:$0xf] }
 0xf09   : > { %v8748_v2 = vor.u32 %v9302_v26, %v8745_v0  ;;  %6258 = vmatpush.bf16.msra.mxu0 %v8744_v62  ;;  %v6169_v62 = vperm.slane %v8724_v58, 0  ;;  %v6170_v0 = vperm.slane %v8724_v58, 1 }
 0xf0b   : > { %6272 = vmatpush.bf16.msrb.mxu1 %v8748_v2 }
 0xf0f   : > { %6273 = vmatpush.bf16.msrb.mxu1 %v8740_v11 }
 0xf22   : > { %v5745_v3 = vpop.permute.xlu2 %5744 }
 0xf23   : > { %5750 = vst.msk [vmem:[#allocation2] sm:$0xf] %vm4532_vm6, %v5745_v3  ;;  %v8735_v3 = vld [vmem:[%s11298_s5 + $0x90] sm:$0xf] }
 0xf32   : > { %v5869_v4 = vpop.permute.xlu2 %5868 }
 0xf33   : > { %5874 = vst.msk [vmem:[#allocation2] sm:$0xf] %vm4657_vm7, %v5869_v4  ;;  %v9301_v4 = vld [vmem:[%s11298_s5 + $0x94] sm:$0xf0] }
 0xf3a   : > { %v5747_v8 = vpop.permute.xlu1 %5746 }
 0xf3b   : > { %5751 = vst.msk [vmem:[#allocation2 + $0x4] sm:$0xf] %vm4532_vm6, %v5747_v8  ;;  %v8736_v8 = vor.u32 %v9301_v4, %v8735_v3 }
 0xf3d   : > { %6259 = vmatpush.bf16.msra.mxu0 %v8736_v8 }
 0xf58   : > { %v5871_v13 = vpop.permute.xlu0 %5870 }
 0xf59   : > { %5875 = vst.msk [vmem:[#allocation2 + $0x4] sm:$0xf] %vm4657_vm7, %v5871_v13  ;;  %v8727_v13 = vld [vmem:[%s11298_s5 + $0x80] sm:$0xf] }
 0xf5a   : > { %v5993_v15 = vpop.permute.xlu2 %5992 }
 0xf5b   : > { %5998 = vst.msk [vmem:[#allocation2] sm:$0xf] %vm4782_vm8, %v5993_v15  ;;  %v9299_v15 = vld [vmem:[%s11298_s5 + $0x84] sm:$0xf0] }
 0xf62   : > { %v5995_v16 = vpop.permute.xlu2 %5994 }
 0xf63   : > { %5999 = vst.msk [vmem:[#allocation2 + $0x4] sm:$0xf] %vm4782_vm8, %v5995_v16  ;;  %v9298_v16 = vld [vmem:[%s11298_s5 + $0x84] sm:$0xf] }
 0xf6a   : > { %v9289_v17 = vld [vmem:[#allocation2] sm:$0xff] }
 0xf6b   : > { %6086 = vmatmul.bf16.vlgmr.msrb.gmra.mxu3 %v9289_v17 }
 0xfee   : > { %v6087_v20 = vpop.f32.mrf.mxu3 }
 0xfef   : > { %v6088_v21 = vadd.f32 %v9470_v18, %v6087_v20  ;;  %v8729_v20 = vld [vmem:[%s11298_s5 + $0x88] sm:$0xf0]  ;;  %s9904_s5 = scalar_lea.hbm %s9903_s27, 2 }
 0xff0   : > { %p9905_p5 = scmp.ne.s32.totalorder %s9903_s27, %s9904_s5  ;;  %p9910_p10 = scmp.lt.s32.totalorder %s9908_s24, %s9904_s5 }
 0xff1   : > { %v6092_v22 = vadd.f32 %v6088_v21, %v11436_v47  ;;  %v8732_v21 = vor.u32 %v9298_v16, %v8729_v20 }
 0xff2   : > { %p9906_p6 = pnand %p9905_p5, %p10182_p9  ;;  %p9911_p13 = por %p9910_p10, %p9909_p8 }
 0xff3   : > { %6094 = vadd.xlane.f32.xlu1 %v6092_v22  ;;  %6274 = vmatpush.bf16.msrb.mxu1 %v8732_v21 }
 0xff4   : > { %p9907_p7 = pneg %p9906_p6 }
 0xff6   : > { %v6089_v55 = vpop.f32.mrf.mxu3  ;;  %p9912_p0 = pnand %p9911_p13, %p9907_p7 }
 0xff7   : > { %v6090_v23 = vadd.f32 %v9470_v18, %v6089_v55  ;;  %v8728_v18 = vor.u32 %v9299_v15, %v8727_v13  ;;  %v9329_v55 = vld [vmem:[%s10388_s19 + $0xf8] sm:$0xff] }
 0xff8   : > { %6435 = vmatpush.bf16.msra.mxu3 %v9329_v55 }
 0xff9   : > { %v6093_v7 = vadd.f32 %v6090_v23, %v11438_v48  ;;  %6260 = vmatpush.bf16.msra.mxu0 %v8728_v18 }
 0xffb   : > { %6096 = vadd.xlane.f32.xlu2 %v6093_v7 }
0x1066   : > { %v6095_v25 = vpop.xlane.xlu1 %6094 }
0x1067   : > { %v6098_v24 = vmul.f32 %v6095_v25, %v11282_v59  ;;  %v9320_v25 = vld [vmem:[%s10388_s19 + $0xb0] sm:$0xff] }
0x1069   : > { %v11577_v51 = vsub.f32 %v6092_v22, %v6098_v24  ;;  %v9321_v22 = vld [vmem:[%s10388_s19 + $0xb8] sm:$0xff]  ;;  %v9328_v24 = vld [vmem:[%s10388_s19 + $0xf0] sm:$0xff] }
0x106a   : > { %6421 = vmatpush.bf16.msrb.mxu2 %v9321_v22  ;;  %6436 = vmatpush.bf16.msra.mxu3 %v9328_v24 }
0x106b   : > { %v6102_v27 = vmul.f32 %v11577_v51, %v11577_v51 }
0x106d   : > { %6104 = vadd.xlane.f32.xlu0 %v6102_v27 }
0x106e   : > { %v6097_v47 = vpop.xlane.xlu2 %6096  ;;  %6422 = vmatpush.bf16.msrb.mxu2 %v9320_v25  ;;  %6437 = vmatpush.bf16.msra.mxu3 %v9327_v31 }
0x106f   : > { %v6099_v28 = vmul.f32 %v6097_v47, %v11282_v59 }
0x1071   : > { %v11582_v6 = vsub.f32 %v6093_v7, %v6099_v28 }
0x1072   : > { %6438 = vmatpush.bf16.msra.mxu3 %v9326_v34 }
0x1073   : > { %v6103_v48 = vmul.f32 %v11582_v6, %v11582_v6 }
0x1075   : > { %6106 = vadd.xlane.f32.xlu2 %v6103_v48  ;;  %v9319_v48 = vld [vmem:[%s10388_s19 + $0xa8] sm:$0xff] }
0x1076   : > { %6423 = vmatpush.bf16.msrb.mxu2 %v9319_v48  ;;  %6439 = vmatpush.bf16.msra.mxu3 %v9325_v54 }
0x107a   : > { %6424 = vmatpush.bf16.msrb.mxu2 %v9318_v19  ;;  %6440 = vmatpush.bf16.msra.mxu3 %v9324_v61 }
0x10e0   : > { %v6105_v10 = vpop.xlane.xlu0 %6104 }
0x10e1   : > { %v6108_v12 = vmul.f32 %v6105_v10, %v11282_v59 }
0x10e3   : > { %v6110_v17 = vadd.f32 1e-05, %v6108_v12 }
0x10e5   : > { %9550 = vrsqrt.f32 %v6110_v17  ;;  %vm6118_vm3 = vweird.f32 %v6110_v17 }
0x10e8   : > { %v6107_v23 = vpop.xlane.xlu2 %6106 }
0x10e9   : > { %v6109_v7 = vmul.f32 %v6107_v23, %v11282_v59 }
0x10eb   : > { %v9551_v27 = vpop.eup %9550  ;;  %v6111_v47 = vadd.f32 1e-05, %v6109_v7 }
0x10ec   : > { %v6113_v28 = vmul.f32 %v9551_v27, %v6110_v17  ;;  %vm6119_vm2 = vweird.f32 %v9551_v27  ;;  %v9473_v17 = vld [vmem:[%s11351_s15 + $0x1] ss:$0 sm:$0xff] }
0x10ed   : > { %9552 = vrsqrt.f32 %v6111_v47  ;;  %vm6120_vm4 = vmor %vm6118_vm3, %vm6119_vm2  ;;  %vm6128_vm6 = vweird.f32 %v6111_v47 }
0x10ee   : > { %v6114_v32 = vmul.f32 %v9551_v27, %v6113_v28 }
0x10f0   : > { %v6115_v33 = vmul.f32 0.5, %v6114_v32 }
0x10f2   : > { %v6116_v35 = vsub.f32 1.5, %v6115_v33 }
0x10f3   : > { %v9553_v36 = vpop.eup %9552 }
0x10f4   : > { %v6117_v29 = vmul.f32 %v9551_v27, %v6116_v35  ;;  %v6123_v38 = vmul.f32 %v9553_v36, %v6111_v47  ;;  %vm6129_vm5 = vweird.f32 %v9553_v36 }
0x10f5   : > { %vm6130_vm7 = vmor %vm6128_vm6, %vm6129_vm5 }
0x10f6   : > { %v6124_v39 = vmul.f32 %v9553_v36, %v6123_v38  ;;  %v6121_v40 = vsel %vm6120_vm4, %v9551_v27, %v6117_v29 }
0x10f7   : > { %v6132_v44 = vmul.f32 %v6121_v40, %v11577_v51  ;;  %v9317_v51 = vld [vmem:[%s10388_s19 + $0x98] sm:$0xff] }
0x10f8   : > { %v6125_v41 = vmul.f32 0.5, %v6124_v39  ;;  %6425 = vmatpush.bf16.msrb.mxu2 %v9317_v51 }
0x10f9   : > { %v6139_v63 = vmul.f32 %v9471_v43, %v6132_v44 }
0x10fa   : > { %v6126_v42 = vsub.f32 1.5, %v6125_v41 }
0x10fb   : > { %v6146_v52 = vadd.f32 %v9472_v49, %v6139_v63 }
0x10fc   : > { %v6127_v45 = vmul.f32 %v9553_v36, %v6126_v42  ;;  %6426 = vmatpush.bf16.msrb.mxu2 %v9316_v1 }
0x10fe   : > { %v6131_v46 = vsel %vm6130_vm7, %v9553_v36, %v6127_v45 }
0x10ff   : > { %v6133_v50 = vmul.f32 %v6131_v46, %v11582_v6  ;;  %v9323_v6 = vld [vmem:[%s10388_s19 + $0xc8] sm:$0xff] }
0x1100   : > { %6427 = vmatpush.bf16.msrb.mxu2 %v9315_v37  ;;  %6441 = vmatpush.bf16.msra.mxu3 %v9323_v6  ;;  %v9475_v6 = vld [vmem:[%s1172_s25 + $0x1] ss:$0 sm:$0xff] }
0x1101   : > { %v6140_v14 = vmul.f32 %v9471_v43, %v6133_v50 }
0x1103   : > { %v6147_v53 = vadd.f32 %v9472_v49, %v6140_v14 }
0x1104   : > { %6428 = vmatpush.bf16.msrb.mxu2 %v9314_v56  ;;  %6442 = vmatpush.bf16.msra.mxu3 %v9322_v57 }
0x1105   : > { %v6165_v30 = vpack.c.bf16 %v6147_v53, %v6146_v52 }
0x1107   : > { %6261 = vmatmul.bf16.vlgmr.msra.gmra.mxu0 %v6165_v30  ;;  %6275 = vmatmul.bf16.vlgmr.msrb.gmra.mxu1 %v6165_v30  ;;  %v9474_v30 = vld [vmem:[%s1162_s16 + $0x1] ss:$0 sm:$0xff]  ;;  %s6513_s16 = scalar_lea.sflag [#allocation5], %s10346_s9 }
0x1184   : > { %v6262_v60 = vpop.f32.mrf.mxu0  ;;  %v6276_v26 = vpop.f32.mrf.mxu1 }
0x1185   : > { %v6263_v2 = vadd.f32 %v6262_v60, %v6169_v62  ;;  %v6277_v3 = vadd.f32 %v6276_v26, %v6170_v0 }
0x1187   : > { %v6281_v10 = vmax.f32 %v6263_v2, 0.0  ;;  %v6282_v11 = vmax.f32 %v6277_v3, 0.0 }
0x118c   : > { %v6264_v4 = vpop.f32.mrf.mxu0  ;;  %v6278_v5 = vpop.f32.mrf.mxu1 }
0x118d   : > { %v6265_v8 = vadd.f32 %v6264_v4, %v6169_v62  ;;  %v6279_v9 = vadd.f32 %v6278_v5, %v6170_v0 }
0x118f   : > { %v6283_v12 = vmax.f32 %v6265_v8, 0.0  ;;  %v6284_v13 = vmax.f32 %v6279_v9, 0.0 }
0x1191   : > { %v6318_v15 = vpack.c.bf16 %v6283_v12, %v6281_v10  ;;  %v6319_v16 = vpack.c.bf16 %v6284_v13, %v6282_v11 }
0x1193   : > { %6429 = vmatmul.bf16.vlgmr.msrb.gmra.mxu2 %v6318_v15  ;;  %6443 = vmatmul.bf16.vlgmr.msra.gmra.mxu3 %v6319_v16 }
0x1216   : > { %v6430_v18 = vpop.f32.mrf.mxu2  ;;  %v6444_v20 = vpop.f32.mrf.mxu3 }
0x1217   : > { %v6431_v21 = vadd.f32 %v9473_v17, %v6430_v18 }
0x1219   : > { %v6445_v22 = vadd.f32 %v6444_v20, %v6431_v21 }
0x121b   : > { %v6449_v55 = vadd.f32 %v6445_v22, %v6146_v52 }
0x121d   : > { %6451 = vadd.xlane.f32.xlu0 %v6449_v55 }
0x121e   : > { %v6432_v23 = vpop.f32.mrf.mxu2  ;;  %v6446_v25 = vpop.f32.mrf.mxu3 }
0x121f   : > { %v6433_v7 = vadd.f32 %v9473_v17, %v6432_v23 }
0x1221   : > { %v6447_v24 = vadd.f32 %v6446_v25, %v6433_v7 }
0x1223   : > { %v6450_v27 = vadd.f32 %v6447_v24, %v6147_v53 }
0x1225   : > { %6453 = vadd.xlane.f32.xlu1 %v6450_v27 }
0x1290   : > { %v6452_v47 = vpop.xlane.xlu0 %6451 }
0x1291   : > { %v6455_v28 = vmul.f32 %v6452_v47, %v11282_v59 }
0x1293   : > { %v6457_v48 = vsub.f32 %v6449_v55, %v6455_v28 }
0x1295   : > { %v6459_v31 = vmul.f32 %v6457_v48, %v6457_v48 }
0x1297   : > { %6461 = vadd.xlane.f32.xlu1 %v6459_v31 }
0x1298   : > { %v6454_v32 = vpop.xlane.xlu1 %6453 }
0x1299   : > { %v6456_v33 = vmul.f32 %v6454_v32, %v11282_v59 }
0x129b   : > { %v6458_v19 = vsub.f32 %v6450_v27, %v6456_v33 }
0x129d   : > { %v6460_v34 = vmul.f32 %v6458_v19, %v6458_v19 }
0x129f   : > { %6463 = vadd.xlane.f32.xlu2 %v6460_v34 }
0x130a   : > { %v6462_v35 = vpop.xlane.xlu1 %6461 }
0x130b   : > { %v6465_v36 = vmul.f32 %v6462_v35, %v11282_v59 }
0x130d   : > { %v6467_v29 = vadd.f32 1e-05, %v6465_v36 }
0x130f   : > { %9554 = vrsqrt.f32 %v6467_v29  ;;  %vm6475_vm13 = vweird.f32 %v6467_v29 }
0x1312   : > { %v6464_v38 = vpop.xlane.xlu2 %6463 }
0x1313   : > { %v6466_v39 = vmul.f32 %v6464_v38, %v11282_v59 }
0x1315   : > { %v9555_v40 = vpop.eup %9554  ;;  %v6468_v41 = vadd.f32 1e-05, %v6466_v39 }
0x1316   : > { %v6470_v42 = vmul.f32 %v9555_v40, %v6467_v29  ;;  %vm6476_vm8 = vweird.f32 %v9555_v40 }
0x1317   : > { %9556 = vrsqrt.f32 %v6468_v41  ;;  %vm6477_vm14 = vmor %vm6475_vm13, %vm6476_vm8  ;;  %vm6485_vm0 = vweird.f32 %v6468_v41 }
0x1318   : > { %v6471_v43 = vmul.f32 %v9555_v40, %v6470_v42 }
0x131a   : > { %v6472_v44 = vmul.f32 0.5, %v6471_v43 }
0x131c   : > { %v6473_v45 = vsub.f32 1.5, %v6472_v44 }
0x131d   : > { %v9557_v46 = vpop.eup %9556 }
0x131e   : > { %v6480_v49 = vmul.f32 %v9557_v46, %v6468_v41  ;;  %v6474_v63 = vmul.f32 %v9555_v40, %v6473_v45  ;;  %vm6486_vm15 = vweird.f32 %v9557_v46 }
0x131f   : > { %vm6487_vm1 = vmor %vm6485_vm0, %vm6486_vm15 }
0x1320   : > { %v6481_v50 = vmul.f32 %v9557_v46, %v6480_v49  ;;  %v6478_v52 = vsel %vm6477_vm14, %v9555_v40, %v6474_v63 }
0x1321   : > { %v6489_v51 = vmul.f32 %v6478_v52, %v6457_v48 }
0x1322   : > { %v6482_v14 = vmul.f32 0.5, %v6481_v50 }
0x1323   : > { %v6496_v61 = vmul.f32 %v9474_v30, %v6489_v51 }
0x1324   : > { %v6483_v59 = vsub.f32 1.5, %v6482_v14 }
0x1325   : > { %v6503_v57 = vadd.f32 %v9475_v6, %v6496_v61 }
0x1326   : > { %v6484_v53 = vmul.f32 %v9557_v46, %v6483_v59 }
0x1328   : > { %v6488_v54 = vsel %vm6487_vm1, %v9557_v46, %v6484_v53 }
0x1329   : > { %v6490_v1 = vmul.f32 %v6488_v54, %v6458_v19 }
0x132b   : > { %v6497_v37 = vmul.f32 %v9474_v30, %v6490_v1 }
0x132d   : > { %v6504_v56 = vadd.f32 %v9475_v6, %v6497_v37 }
0x132f   : > { %v6507_v58 = vrot.slane %v6504_v56, 7 }
0x1331   : > { %v6509_v60 = vsel %vm6508_vm9, %v6507_v58, %v6503_v57 }
0x1332   : > { %6511 = vst [vmem:[%s1344_s30] sm:$0x3] %v6509_v60 }
0x1333   : > { %9915 = shalt.err (!%p9912_p0)
}
0x1334   : > { %9361 = dma.vmem_to_hbm [thread:$0]  (%p10182_p9), %s6527_s12, 32, %s6529_s1, %s6513_s16  }
0x1335 PF: > { %s11810_s9 = sld [smem:[#allocation29_spill]]  ;;  %p9398_p1 = pnand %p6976_p12, %p10189_p11 }
0x1336   : > { %s11812_s8 = sld [smem:[#allocation32_spill]] }
0x1337   : > { %p9399_p2 = pneg %p9398_p1 }
0x133b   : > { %s6540_s21 = sand.u32 1, %s11810_s9  }
0x133c   : > { %s6541_s7 = scalar_lea.sflag [#allocation5], %s6540_s21 }
0x133d   : > { %9965 = dma.done.wait (%p9399_p2), %s6541_s7, 32  }
0x133e   : > { %9967 = vsyncadd (%p9399_p2), %s6541_s7, 4294967264  ;;  %s55_s2 = sadd.s32 1, %s11812_s8   ;;  %s11813_s17 = sld [smem:[#allocation30_spill]] }
0x133f   : > { %p52_p3 = scmp.ge.s32.totalorder %s55_s2, 4   ;;  %s11814_s27 = sld [smem:[#allocation37_spill]] }
0x1340   : > { %s11815_s25 = sld [smem:[#allocation34_spill]]  ;;  %s11816_s5 = smov %s9974_s26 }
0x1341   : > { %s11818_s28 = smov %s9986_s6 }
0x1342   :  { %54 = sbr.rel (!%p52_p3) target bundleno = 38 (0x26), region = 332 }
0x1344   : > { %s11817_s26 = smov %s11813_s17 }
0x1346   : > { %s11819_s6 = smov %s11815_s25 }
0x1347   :  { %6547 = vsyncpa [#allocation4], 1 }
0x1348   :  { %6549 = vsyncpa [#allocation4 + $0x1], 1 }
0x1349   :  { %6550 = vsyncpa [#allocation7], 1 }
0x134a   :  { %6552 = vsyncpa [#allocation7 + $0x1], 1 }
0x134b   :  { %6553 = vsyncpa [#allocation10], 1 }
0x134c   :  { %6555 = vsyncpa [#allocation10 + $0x1], 1 }
0x134d   :  { %6556 = vsyncpa [#allocation13], 1 }
0x134e   :  { %6558 = vsyncpa [#allocation13 + $0x1], 1 }
0x134f   :  { %6559 = vsyncpa [#allocation16], 1 }
0x1350   :  { %6561 = vsyncpa [#allocation16 + $0x1], 1 }
0x1351   :  { %6562 = vsyncpa [#allocation19], 1 }
0x1352   :  { %6564 = vsyncpa [#allocation19 + $0x1], 1 }
0x1353   :  { %6565 = vsyncpa [#allocation5], 1 }
0x1354   :  { %6567 = vsyncpa [#allocation5 + $0x1], 1 }

</bundles_post_ra>
